<compile_context>
chip_gen: v5e
topology: v5e:2x2
jax: 0.10.0
libtpu: 0.0.40
codegen_flags: <defaults>
</compile_context>

<pallas_src>
import jax
import jax.numpy as jnp
from jax.experimental import pallas as pl
from jax.experimental.pallas import tpu as pltpu

LANE = 128


def _round_up(x, m):
    return (x + m - 1) // m * m


def _pick_divisor(n, pref):
    r = pref
    while r > 1 and n % r != 0:
        r //= 2
    return max(r, 1)


def _pick_row_tile(ho, wo):
    """Largest R <= 8 dividing Ho such that R*Wo is a sublane multiple."""
    r = 8
    while r > 1 and (ho % r != 0 or (r * wo) % 8 != 0):
        r //= 2
    if ho % r != 0 or (r * wo) % 8 != 0:
        return ho           # degenerate fallback: one tile (block == full dim)
    return r


# ----------------------------------------------------------------------------
# ConvTranspose2d(2x2, stride 2) with the (kh, kw) deinterleave fused into the
# GEMM output side.
# ----------------------------------------------------------------------------
def _deconv2x2_kernel(a_ref, w_ref, b_ref, o_ref):
    rh, wdim, cin = a_ref.shape
    half = o_ref.shape[-1]                                     # 2 * Cp
    a = a_ref[...].reshape(rh * wdim, cin)                     # bf16
    g = jnp.dot(a, w_ref[...], preferred_element_type=jnp.float32) + b_ref[...]
    g0 = g[:, :half].reshape(rh, wdim, half)                   # kh = 0
    g1 = g[:, half:].reshape(rh, wdim, half)                   # kh = 1
    o_ref[...] = jnp.stack([g0, g1], axis=1).astype(o_ref.dtype)


def conv_transpose_2x2_s2(x_nhwc, w, b, c_half_p):
    """nn.ConvTranspose2d(C_in, C_out, (2,2), stride=2) -> NHWC bf16, lane-padded.

    The kernel writes (n, h, kh, w, (kw, c)) blocks, so the upsampled NHWC
    tensor is obtained with a single free row-major reshape (no transpose
    materialization).
    """
    N, H, W, C_in = x_nhwc.shape
    C_out = w.shape[1]
    wm = jnp.transpose(w, (0, 2, 3, 1))                        # (ci, kh, kw, co)
    wm = jnp.pad(wm, ((0, 0), (0, 0), (0, 0), (0, c_half_p - C_out)))
    wm = wm.reshape(C_in, 4 * c_half_p).astype(jnp.bfloat16)
    bias = jnp.tile(jnp.pad(b, (0, c_half_p - C_out)), 4)[None, :]   # f32 (1, 4Cp)
    a = x_nhwc.astype(jnp.bfloat16)

    rh = _pick_divisor(H, 8)
    out = pl.pallas_call(
        _deconv2x2_kernel,
        out_shape=jax.ShapeDtypeStruct((N, H, 2, W, 2 * c_half_p), jnp.bfloat16),
        grid=(N, H // rh),
        in_specs=[
            pl.BlockSpec((None, rh, W, C_in), lambda n, h: (n, h, 0, 0)),
            pl.BlockSpec((C_in, 4 * c_half_p), lambda n, h: (0, 0)),
            pl.BlockSpec((1, 4 * c_half_p), lambda n, h: (0, 0)),
        ],
        out_specs=pl.BlockSpec((None, rh, 2, W, 2 * c_half_p),
                               lambda n, h: (n, h, 0, 0, 0)),
        compiler_params=pltpu.CompilerParams(
            dimension_semantics=("parallel", "parallel")),
    )(a, wm, bias)
    # (n, h, kh, w, (kw, c)) row-major == (n, 2h+kh, 2w+kw, c): free reshape.
    return out.reshape(N, 2 * H, 2 * W, c_half_p)


# ----------------------------------------------------------------------------
# Fused 3x3 conv (pad=1, no bias) with row tiling + BN partial statistics.
# ----------------------------------------------------------------------------
def _make_conv3x3_kernel(n_inputs, row_tile, w_out):
    def kernel(*refs):
        x_refs = refs[:n_inputs]                   # (Hp2, Wp2, Ci) bf16, resident
        w_refs = refs[n_inputs:2 * n_inputs]       # (3, 3, Ci, C_out_p) bf16
        y_ref, stat_ref = refs[2 * n_inputs:]
        c_out = y_ref.shape[-1]
        r0 = pl.multiple_of(pl.program_id(1) * row_tile, row_tile)

        acc = jnp.zeros((row_tile * w_out, c_out), jnp.float32)
        for i in range(n_inputs):
            ci = x_refs[i].shape[-1]
            for kh in range(3):
                slab = x_refs[i][pl.ds(r0 + kh, row_tile), :, :]   # (R, Wp2, Ci)
                for kw in range(3):
                    lhs = slab[:, kw:kw + w_out, :].reshape(row_tile * w_out, ci)
                    acc = acc + jnp.dot(lhs, w_refs[i][kh, kw],
                                        preferred_element_type=jnp.float32)

        y_ref[...] = acc.astype(y_ref.dtype)                        # bf16 store
        # fused BatchNorm partial statistics from the f32 accumulator,
        # packed into a single (2, C) store per tile.
        stat_ref[...] = jnp.concatenate(
            [jnp.sum(acc, axis=0, keepdims=True),
             jnp.sum(acc * acc, axis=0, keepdims=True)], axis=0)
    return kernel


def fused_conv3x3(xs_padded, ws, c_out_p):
    """Fused 3x3 conv (pad=1, no bias) + BN partial stats, R-row tiles.

    xs_padded[i]: (N, Ho+2, Wo+2, Ci) bf16, spatially pre-padded.
    ws[i]:        (3, 3, Ci, C_out_p) bf16.
    Returns y (N, Ho*Wo, C_out_p) bf16 and stats (N, n_tiles, 2, C_out_p) f32
    (per-tile [sum, sum-of-squares]).
    """
    n_in = len(xs_padded)
    N, hp2, wp2, _ = xs_padded[0].shape
    ho, wo = hp2 - 2, wp2 - 2
    r = _pick_row_tile(ho, wo)
    n_tiles = ho // r

    operands, in_specs = [], []
    for x in xs_padded:
        ci = x.shape[-1]
        operands.append(x)
        # whole padded image resident per n: constant block index along the
        # row-tile axis -> DMA'd from HBM once per n (no 3x halo re-read).
        in_specs.append(pl.BlockSpec((None, hp2, wp2, ci),
                                     lambda n, h: (n, 0, 0, 0)))
    for w in ws:
        operands.append(w)
        in_specs.append(pl.BlockSpec(w.shape, lambda n, h: (0, 0, 0, 0)))

    out_shape = (
        jax.ShapeDtypeStruct((N, ho * wo, c_out_p), jnp.bfloat16),
        jax.ShapeDtypeStruct((N, n_tiles, 2, c_out_p), jnp.float32),
    )
    out_specs = (
        pl.BlockSpec((None, r * wo, c_out_p), lambda n, h: (n, h, 0)),
        pl.BlockSpec((None, None, 2, c_out_p), lambda n, h: (n, h, 0, 0)),
    )
    return pl.pallas_call(
        _make_conv3x3_kernel(n_in, r, wo),
        out_shape=out_shape,
        grid=(N, n_tiles),
        in_specs=in_specs,
        out_specs=out_specs,
        compiler_params=pltpu.CompilerParams(
            dimension_semantics=("parallel", "parallel")),
    )(*operands)


# ----------------------------------------------------------------------------
# BN-affine + ReLU epilogue: bf16 in/out, f32 math.
# ----------------------------------------------------------------------------
def _affine_relu_kernel(x_ref, scale_ref, shift_ref, o_ref):
    x = x_ref[...].astype(jnp.float32)
    o_ref[...] = jnp.maximum(x * scale_ref[...] + shift_ref[...],
                             0.0).astype(o_ref.dtype)


def affine_relu(x, scale, shift):
    """relu(x * scale + shift); x bf16 (M, C), scale/shift f32 (1, C) -> bf16."""
    M, C = x.shape
    # keep >= 2 row blocks so both v7x TensorCores get work.
    tm = min(512, _round_up(pl.cdiv(M, 2), 8))
    Mp = _round_up(M, tm)
    if Mp != M:
        x = jnp.pad(x, ((0, Mp - M), (0, 0)))
    out = pl.pallas_call(
        _affine_relu_kernel,
        out_shape=jax.ShapeDtypeStruct((Mp, C), jnp.bfloat16),
        grid=(Mp // tm,),
        in_specs=[
            pl.BlockSpec((tm, C), lambda i: (i, 0)),
            pl.BlockSpec((1, C), lambda i: (0, 0)),
            pl.BlockSpec((1, C), lambda i: (0, 0)),
        ],
        out_specs=pl.BlockSpec((tm, C), lambda i: (i, 0)),
        compiler_params=pltpu.CompilerParams(dimension_semantics=("parallel",)),
    )(x, scale, shift)
    return out[:M] if Mp != M else out


# ----------------------------------------------------------------------------
# Module pieces (layout plumbing in plain JAX, compute in Pallas)
# ----------------------------------------------------------------------------
def conv_bn_relu(xs, ws, gamma, beta, eps=1e-5):
    """ConvBatchNorm: Conv2d(3x3, pad=1) -> BatchNorm2d (training stats) -> ReLU.

    Contracts over a list of inputs (channel split), so torch.cat([up, skip])
    never has to be materialized.  Conv bias is dropped: a per-channel constant
    cancels exactly against the training-mode batch mean.
    """
    N, ho, wo, _ = xs[0].shape
    c_out = ws[0].shape[-1]
    c_out_p = _round_up(c_out, LANE)

    xs_p, ws_p = [], []
    for x, w in zip(xs, ws):
        ci_x = x.shape[-1]
        ci_w = w.shape[2]
        ci_p = _round_up(max(ci_x, ci_w), LANE)
        xs_p.append(jnp.pad(x.astype(jnp.bfloat16),
                            ((0, 0), (1, 1), (1, 1), (0, ci_p - ci_x))))
        ws_p.append(jnp.pad(w, ((0, 0), (0, 0), (0, ci_p - ci_w),
                                (0, c_out_p - c_out))).astype(jnp.bfloat16))

    y, stats = fused_conv3x3(xs_p, ws_p, c_out_p)     # y: (N, Ho*Wo, C) bf16

    M = N * ho * wo
    s_all = jnp.sum(stats, axis=(0, 1))               # (2, C) tiny reduction
    mean = s_all[0] / M
    # E[x^2]-E[x]^2 in f32 can cancel when |mean| >> std; acceptable at the
    # bf16-matmul tolerance this block already targets.
    var = jnp.maximum(s_all[1] / M - mean * mean, 0.0)
    gamma_p = jnp.pad(gamma, (0, c_out_p - c_out))
    beta_p = jnp.pad(beta, (0, c_out_p - c_out))
    scale = gamma_p / jnp.sqrt(var + eps)
    shift = beta_p - mean * scale
    y = affine_relu(y.reshape(M, c_out_p), scale[None, :], shift[None, :])
    return y.reshape(N, ho, wo, c_out_p)              # bf16, lane-padded


def init_params(key, in_channels, out_channels, nb_conv):
    keys = jax.random.split(key, 2 + 4 * nb_conv)
    c_half = in_channels // 2
    params = {
        "up_w": 0.1 * jax.random.normal(keys[0], (in_channels, c_half, 2, 2), jnp.float32),
        "up_b": 0.1 * jax.random.normal(keys[1], (c_half,), jnp.float32),
        "convs": [],
    }
    c_in = in_channels
    for i in range(nb_conv):
        k = keys[2 + 4 * i: 6 + 4 * i]
        params["convs"].append({
            # torch Conv2d weight layout (C_out, C_in, 3, 3).  The conv bias is
            # omitted: it is a per-channel constant and cancels exactly against
            # the training-mode batch mean in the following BatchNorm.
            "w": 0.1 * jax.random.normal(k[0], (out_channels, c_in, 3, 3), jnp.float32),
            "gamma": 1.0 + 0.1 * jax.random.normal(k[2], (out_channels,), jnp.float32),
            "beta": 0.1 * jax.random.normal(k[3], (out_channels,), jnp.float32),
        })
        c_in = out_channels
    return params


@jax.jit
def upblock_forward(params, x_nchw, skip_nchw):
    # NCHW (PyTorch) -> NHWC (kernel layout)
    x = jnp.transpose(x_nchw, (0, 2, 3, 1))
    skip = jnp.transpose(skip_nchw, (0, 2, 3, 1))
    c_in = x.shape[-1]
    c_half = c_in // 2
    c_half_p = _round_up(c_half, LANE)

    up = conv_transpose_2x2_s2(x, params["up_w"], params["up_b"], c_half_p)

    # First ConvBatchNorm: split the contraction over [up, skip] instead of
    # materializing torch.cat([up, skip], dim=1).
    p0 = params["convs"][0]
    w0 = jnp.transpose(p0["w"], (2, 3, 1, 0))        # (kh, kw, ci, co)
    h = conv_bn_relu([up, skip],
                     [w0[:, :, :c_half, :], w0[:, :, c_half:, :]],
                     p0["gamma"], p0["beta"])

    for p in params["convs"][1:]:
        w = jnp.transpose(p["w"], (2, 3, 1, 0))
        h = conv_bn_relu([h], [w], p["gamma"], p["beta"])

    c_out = params["convs"][-1]["w"].shape[0]
    h = h[..., :c_out].astype(jnp.float32)           # drop lane padding, back to f32
    return jnp.transpose(h, (0, 3, 1, 2))            # back to NCHW


if __name__ == "__main__":
    in_channels, out_channels, nb_conv = 8, 4, 2
    N, H, W = 2, 8, 8                                # x: (2,8,8,8); skip: (2,4,16,16)

    key = jax.random.PRNGKey(0)
    kx, ks, kp = jax.random.split(key, 3)
    x = jax.random.normal(kx, (N, in_channels, H, W), jnp.float32)
    skip = jax.random.normal(ks, (N, in_channels // 2, 2 * H, 2 * W), jnp.float32)
    params = init_params(kp, in_channels, out_channels, nb_conv)

    out = upblock_forward(params, x, skip)
    jax.block_until_ready(out)
    assert out.shape == (N, out_channels, 2 * H, 2 * W), out.shape
    print("KERNEL_OK")
</pallas_src>

<mosaic_0001>
module attributes {stable_mosaic.version = 11 : i64} {
  func.func @_deconv2x2_kernel(%arg0: i32, %arg1: i32, %arg2: memref<1x8x8x8xbf16, #tpu.memory_space<vmem>>, %arg3: memref<8x512xbf16, #tpu.memory_space<vmem>>, %arg4: memref<1x512xf32, #tpu.memory_space<vmem>>, %arg5: memref<1x8x2x8x256xbf16, #tpu.memory_space<vmem>>) attributes {dimension_semantics = [#tpu.dimension_semantics<parallel>, #tpu.dimension_semantics<parallel>], iteration_bounds = array<i64: 2, 1>, scalar_prefetch = 0 : i64, scratch_operands = 0 : i64, tpu.core_type = #tpu.core_type<tc>, window_params = [{transform_indices = @transform_0, window_bounds = array<i64: 1, 8, 8, 8>}, {pipeline_mode = #tpu.pipeline_mode<synchronous>, transform_indices = @transform_1, window_bounds = array<i64: 8, 512>}, {pipeline_mode = #tpu.pipeline_mode<synchronous>, transform_indices = @transform_2, window_bounds = array<i64: 1, 512>}, {transform_indices = @transform_3, window_bounds = array<i64: 1, 8, 2, 8, 256>}]} {
    %c0 = arith.constant 0 : index
    %c0_0 = arith.constant 0 : index
    %c0_1 = arith.constant 0 : index
    %c0_2 = arith.constant 0 : index
    %0 = vector.load %arg2[%c0, %c0_0, %c0_1, %c0_2] : memref<1x8x8x8xbf16, #tpu.memory_space<vmem>>, vector<1x8x8x8xbf16>
    %1 = vector.shape_cast %0 : vector<1x8x8x8xbf16> to vector<8x8x8xbf16>
    %2 = vector.shape_cast %1 : vector<8x8x8xbf16> to vector<64x8xbf16>
    %c0_3 = arith.constant 0 : index
    %c0_4 = arith.constant 0 : index
    %3 = vector.load %arg3[%c0_3, %c0_4] : memref<8x512xbf16, #tpu.memory_space<vmem>>, vector<8x512xbf16>
    %cst = arith.constant dense<0.000000e+00> : vector<64x512xf32>
    %4 = tpu.matmul %2, %3, %cst {dimension_numbers = #tpu.dot_dimension_numbers<[1], [0], [0], [1], [0, 0, 1, 1], [], []>} : vector<64x8xbf16>, vector<8x512xbf16>, vector<64x512xf32> -> vector<64x512xf32>
    %c0_5 = arith.constant 0 : index
    %c0_6 = arith.constant 0 : index
    %5 = vector.load %arg4[%c0_5, %c0_6] : memref<1x512xf32, #tpu.memory_space<vmem>>, vector<1x512xf32>
    %6 = vector.broadcast %5 : vector<1x512xf32> to vector<64x512xf32>
    %7 = arith.addf %4, %6 : vector<64x512xf32>
    %8 = vector.extract_strided_slice %7 {offsets = [0, 0], sizes = [64, 256], strides = [1, 1]} : vector<64x512xf32> to vector<64x256xf32>
    %9 = vector.shape_cast %8 : vector<64x256xf32> to vector<8x8x256xf32>
    %10 = vector.extract_strided_slice %7 {offsets = [0, 256], sizes = [64, 256], strides = [1, 1]} : vector<64x512xf32> to vector<64x256xf32>
    %11 = vector.shape_cast %10 : vector<64x256xf32> to vector<8x8x256xf32>
    %12 = vector.shape_cast %9 : vector<8x8x256xf32> to vector<8x1x8x256xf32>
    %13 = vector.shape_cast %11 : vector<8x8x256xf32> to vector<8x1x8x256xf32>
    %14 = tpu.concatenate %12, %13 in 1 : vector<8x1x8x256xf32>, vector<8x1x8x256xf32> -> vector<8x2x8x256xf32>
    %15 = arith.truncf %14 : vector<8x2x8x256xf32> to vector<8x2x8x256xbf16>
    %c0_7 = arith.constant 0 : index
    %c0_8 = arith.constant 0 : index
    %c0_9 = arith.constant 0 : index
    %c0_10 = arith.constant 0 : index
    %c0_11 = arith.constant 0 : index
    %16 = vector.load %arg5[%c0_7, %c0_8, %c0_9, %c0_10, %c0_11] : memref<1x8x2x8x256xbf16, #tpu.memory_space<vmem>>, vector<1x8x2x8x256xbf16>
    %17 = vector.shape_cast %16 : vector<1x8x2x8x256xbf16> to vector<8x2x8x256xbf16>
    %18 = vector.shape_cast %15 : vector<8x2x8x256xbf16> to vector<1x8x2x8x256xbf16>
    tpu.vector_store %arg5[%c0_7, %c0_8, %c0_9, %c0_10, %c0_11], %18 {strides = array<i32>} : memref<1x8x2x8x256xbf16, #tpu.memory_space<vmem>>, vector<1x8x2x8x256xbf16>,
    return
  }
  func.func @transform_0(%arg0: i32, %arg1: i32) -> (i32, i32, i32, i32) {
    %c0_i32 = arith.constant 0 : i32
    %c0_i32_0 = arith.constant 0 : i32
    %c0_i32_1 = arith.constant 0 : i32
    return %arg0, %arg1, %c0_i32, %c0_i32_0 : i32, i32, i32, i32
  }
  func.func @transform_1(%arg0: i32, %arg1: i32) -> (i32, i32) {
    %c0_i32 = arith.constant 0 : i32
    %c0_i32_0 = arith.constant 0 : i32
    %c0_i32_1 = arith.constant 0 : i32
    return %c0_i32, %c0_i32_0 : i32, i32
  }
  func.func @transform_2(%arg0: i32, %arg1: i32) -> (i32, i32) {
    %c0_i32 = arith.constant 0 : i32
    %c0_i32_0 = arith.constant 0 : i32
    %c0_i32_1 = arith.constant 0 : i32
    return %c0_i32, %c0_i32_0 : i32, i32
  }
  func.func @transform_3(%arg0: i32, %arg1: i32) -> (i32, i32, i32, i32, i32) {
    %c0_i32 = arith.constant 0 : i32
    %c0_i32_0 = arith.constant 0 : i32
    %c0_i32_1 = arith.constant 0 : i32
    %c0_i32_2 = arith.constant 0 : i32
    return %arg0, %arg1, %c0_i32, %c0_i32_0, %c0_i32_1 : i32, i32, i32, i32, i32
  }
}

module attributes {stable_mosaic.version = 11 : i64} {
  func.func @kernel(%arg0: i32, %arg1: i32, %arg2: memref<1x18x18x128xbf16, #tpu.memory_space<vmem>>, %arg3: memref<1x18x18x128xbf16, #tpu.memory_space<vmem>>, %arg4: memref<3x3x128x128xbf16, #tpu.memory_space<vmem>>, %arg5: memref<3x3x128x128xbf16, #tpu.memory_space<vmem>>, %arg6: memref<1x128x128xbf16, #tpu.memory_space<vmem>>, %arg7: memref<1x1x2x128xf32, #tpu.memory_space<vmem>>) attributes {dimension_semantics = [#tpu.dimension_semantics<parallel>, #tpu.dimension_semantics<parallel>], iteration_bounds = array<i64: 2, 2>, scalar_prefetch = 0 : i64, scratch_operands = 0 : i64, tpu.core_type = #tpu.core_type<tc>, window_params = [{transform_indices = @transform_0, window_bounds = array<i64: 1, 18, 18, 128>}, {transform_indices = @transform_1, window_bounds = array<i64: 1, 18, 18, 128>}, {pipeline_mode = #tpu.pipeline_mode<synchronous>, transform_indices = @transform_2, window_bounds = array<i64: 3, 3, 128, 128>}, {pipeline_mode = #tpu.pipeline_mode<synchronous>, transform_indices = @transform_3, window_bounds = array<i64: 3, 3, 128, 128>}, {transform_indices = @transform_4, window_bounds = array<i64: 1, 128, 128>}, {transform_indices = @transform_5, window_bounds = array<i64: 1, 1, 2, 128>}]} {
    %c8_i32 = arith.constant 8 : i32
    %0 = arith.muli %arg1, %c8_i32 : i32
    %1 = tpu.assume_multiple %0, 8 : i32
    %cst = arith.constant 0.000000e+00 : f32
    %2 = vector.broadcast %cst : f32 to vector<128x128xf32>
    %c0_i32 = arith.constant 0 : i32
    %3 = arith.addi %1, %c0_i32 : i32
    %c0 = arith.constant 0 : index
    %4 = arith.index_cast %3 : i32 to index
    %c0_0 = arith.constant 0 : index
    %c0_1 = arith.constant 0 : index
    %5 = vector.load %arg2[%c0, %4, %c0_0, %c0_1] : memref<1x18x18x128xbf16, #tpu.memory_space<vmem>>, vector<1x8x18x128xbf16>
    %6 = vector.shape_cast %5 : vector<1x8x18x128xbf16> to vector<8x18x128xbf16>
    %7 = vector.extract_strided_slice %6 {offsets = [0, 0, 0], sizes = [8, 16, 128], strides = [1, 1, 1]} : vector<8x18x128xbf16> to vector<8x16x128xbf16>
    %8 = vector.shape_cast %7 : vector<8x16x128xbf16> to vector<128x128xbf16>
    %c0_2 = arith.constant 0 : index
    %c0_3 = arith.constant 0 : index
    %c0_4 = arith.constant 0 : index
    %c0_5 = arith.constant 0 : index
    %9 = vector.load %arg4[%c0_2, %c0_3, %c0_4, %c0_5] : memref<3x3x128x128xbf16, #tpu.memory_space<vmem>>, vector<1x1x128x128xbf16>
    %10 = vector.shape_cast %9 : vector<1x1x128x128xbf16> to vector<128x128xbf16>
    %cst_6 = arith.constant dense<0.000000e+00> : vector<128x128xf32>
    %11 = tpu.matmul %8, %10, %cst_6 {dimension_numbers = #tpu.dot_dimension_numbers<[1], [0], [0], [1], [0, 0, 1, 1], [], []>} : vector<128x128xbf16>, vector<128x128xbf16>, vector<128x128xf32> -> vector<128x128xf32>
    %12 = arith.addf %2, %11 : vector<128x128xf32>
    %13 = vector.extract_strided_slice %6 {offsets = [0, 1, 0], sizes = [8, 16, 128], strides = [1, 1, 1]} : vector<8x18x128xbf16> to vector<8x16x128xbf16>
    %14 = vector.shape_cast %13 : vector<8x16x128xbf16> to vector<128x128xbf16>
    %c0_7 = arith.constant 0 : index
    %c1 = arith.constant 1 : index
    %c0_8 = arith.constant 0 : index
    %c0_9 = arith.constant 0 : index
    %15 = vector.load %arg4[%c0_7, %c1, %c0_8, %c0_9] : memref<3x3x128x128xbf16, #tpu.memory_space<vmem>>, vector<1x1x128x128xbf16>
    %16 = vector.shape_cast %15 : vector<1x1x128x128xbf16> to vector<128x128xbf16>
    %cst_10 = arith.constant dense<0.000000e+00> : vector<128x128xf32>
    %17 = tpu.matmul %14, %16, %cst_10 {dimension_numbers = #tpu.dot_dimension_numbers<[1], [0], [0], [1], [0, 0, 1, 1], [], []>} : vector<128x128xbf16>, vector<128x128xbf16>, vector<128x128xf32> -> vector<128x128xf32>
    %18 = arith.addf %12, %17 : vector<128x128xf32>
    %19 = vector.extract_strided_slice %6 {offsets = [0, 2, 0], sizes = [8, 16, 128], strides = [1, 1, 1]} : vector<8x18x128xbf16> to vector<8x16x128xbf16>
    %20 = vector.shape_cast %19 : vector<8x16x128xbf16> to vector<128x128xbf16>
    %c0_11 = arith.constant 0 : index
    %c2 = arith.constant 2 : index
    %c0_12 = arith.constant 0 : index
    %c0_13 = arith.constant 0 : index
    %21 = vector.load %arg4[%c0_11, %c2, %c0_12, %c0_13] : memref<3x3x128x128xbf16, #tpu.memory_space<vmem>>, vector<1x1x128x128xbf16>
    %22 = vector.shape_cast %21 : vector<1x1x128x128xbf16> to vector<128x128xbf16>
    %cst_14 = arith.constant dense<0.000000e+00> : vector<128x128xf32>
    %23 = tpu.matmul %20, %22, %cst_14 {dimension_numbers = #tpu.dot_dimension_numbers<[1], [0], [0], [1], [0, 0, 1, 1], [], []>} : vector<128x128xbf16>, vector<128x128xbf16>, vector<128x128xf32> -> vector<128x128xf32>
    %24 = arith.addf %18, %23 : vector<128x128xf32>
    %c1_i32 = arith.constant 1 : i32
    %25 = arith.addi %1, %c1_i32 : i32
    %c0_15 = arith.constant 0 : index
    %26 = arith.index_cast %25 : i32 to index
    %c0_16 = arith.constant 0 : index
    %c0_17 = arith.constant 0 : index
    %27 = vector.load %arg2[%c0_15, %26, %c0_16, %c0_17] : memref<1x18x18x128xbf16, #tpu.memory_space<vmem>>, vector<1x8x18x128xbf16>
    %28 = vector.shape_cast %27 : vector<1x8x18x128xbf16> to vector<8x18x128xbf16>
    %29 = vector.extract_strided_slice %28 {offsets = [0, 0, 0], sizes = [8, 16, 128], strides = [1, 1, 1]} : vector<8x18x128xbf16> to vector<8x16x128xbf16>
    %30 = vector.shape_cast %29 : vector<8x16x128xbf16> to vector<128x128xbf16>
    %c1_18 = arith.constant 1 : index
    %c0_19 = arith.constant 0 : index
    %c0_20 = arith.constant 0 : index
    %c0_21 = arith.constant 0 : index
    %31 = vector.load %arg4[%c1_18, %c0_19, %c0_20, %c0_21] : memref<3x3x128x128xbf16, #tpu.memory_space<vmem>>, vector<1x1x128x128xbf16>
    %32 = vector.shape_cast %31 : vector<1x1x128x128xbf16> to vector<128x128xbf16>
    %cst_22 = arith.constant dense<0.000000e+00> : vector<128x128xf32>
    %33 = tpu.matmul %30, %32, %cst_22 {dimension_numbers = #tpu.dot_dimension_numbers<[1], [0], [0], [1], [0, 0, 1, 1], [], []>} : vector<128x128xbf16>, vector<128x128xbf16>, vector<128x128xf32> -> vector<128x128xf32>
    %34 = arith.addf %24, %33 : vector<128x128xf32>
    %35 = vector.extract_strided_slice %28 {offsets = [0, 1, 0], sizes = [8, 16, 128], strides = [1, 1, 1]} : vector<8x18x128xbf16> to vector<8x16x128xbf16>
    %36 = vector.shape_cast %35 : vector<8x16x128xbf16> to vector<128x128xbf16>
    %c1_23 = arith.constant 1 : index
    %c1_24 = arith.constant 1 : index
    %c0_25 = arith.constant 0 : index
    %c0_26 = arith.constant 0 : index
    %37 = vector.load %arg4[%c1_23, %c1_24, %c0_25, %c0_26] : memref<3x3x128x128xbf16, #tpu.memory_space<vmem>>, vector<1x1x128x128xbf16>
    %38 = vector.shape_cast %37 : vector<1x1x128x128xbf16> to vector<128x128xbf16>
    %cst_27 = arith.constant dense<0.000000e+00> : vector<128x128xf32>
    %39 = tpu.matmul %36, %38, %cst_27 {dimension_numbers = #tpu.dot_dimension_numbers<[1], [0], [0], [1], [0, 0, 1, 1], [], []>} : vector<128x128xbf16>, vector<128x128xbf16>, vector<128x128xf32> -> vector<128x128xf32>
    %40 = arith.addf %34, %39 : vector<128x128xf32>
    %41 = vector.extract_strided_slice %28 {offsets = [0, 2, 0], sizes = [8, 16, 128], strides = [1, 1, 1]} : vector<8x18x128xbf16> to vector<8x16x128xbf16>
    %42 = vector.shape_cast %41 : vector<8x16x128xbf16> to vector<128x128xbf16>
    %c1_28 = arith.constant 1 : index
    %c2_29 = arith.constant 2 : index
    %c0_30 = arith.constant 0 : index
    %c0_31 = arith.constant 0 : index
    %43 = vector.load %arg4[%c1_28, %c2_29, %c0_30, %c0_31] : memref<3x3x128x128xbf16, #tpu.memory_space<vmem>>, vector<1x1x128x128xbf16>
    %44 = vector.shape_cast %43 : vector<1x1x128x128xbf16> to vector<128x128xbf16>
    %cst_32 = arith.constant dense<0.000000e+00> : vector<128x128xf32>
    %45 = tpu.matmul %42, %44, %cst_32 {dimension_numbers = #tpu.dot_dimension_numbers<[1], [0], [0], [1], [0, 0, 1, 1], [], []>} : vector<128x128xbf16>, vector<128x128xbf16>, vector<128x128xf32> -> vector<128x128xf32>
    %46 = arith.addf %40, %45 : vector<128x128xf32>
    %c2_i32 = arith.constant 2 : i32
    %47 = arith.addi %1, %c2_i32 : i32
    %c0_33 = arith.constant 0 : index
    %48 = arith.index_cast %47 : i32 to index
    %c0_34 = arith.constant 0 : index
    %c0_35 = arith.constant 0 : index
    %49 = vector.load %arg2[%c0_33, %48, %c0_34, %c0_35] : memref<1x18x18x128xbf16, #tpu.memory_space<vmem>>, vector<1x8x18x128xbf16>
    %50 = vector.shape_cast %49 : vector<1x8x18x128xbf16> to vector<8x18x128xbf16>
    %51 = vector.extract_strided_slice %50 {offsets = [0, 0, 0], sizes = [8, 16, 128], strides = [1, 1, 1]} : vector<8x18x128xbf16> to vector<8x16x128xbf16>
    %52 = vector.shape_cast %51 : vector<8x16x128xbf16> to vector<128x128xbf16>
    %c2_36 = arith.constant 2 : index
    %c0_37 = arith.constant 0 : index
    %c0_38 = arith.constant 0 : index
    %c0_39 = arith.constant 0 : index
    %53 = vector.load %arg4[%c2_36, %c0_37, %c0_38, %c0_39] : memref<3x3x128x128xbf16, #tpu.memory_space<vmem>>, vector<1x1x128x128xbf16>
    %54 = vector.shape_cast %53 : vector<1x1x128x128xbf16> to vector<128x128xbf16>
    %cst_40 = arith.constant dense<0.000000e+00> : vector<128x128xf32>
    %55 = tpu.matmul %52, %54, %cst_40 {dimension_numbers = #tpu.dot_dimension_numbers<[1], [0], [0], [1], [0, 0, 1, 1], [], []>} : vector<128x128xbf16>, vector<128x128xbf16>, vector<128x128xf32> -> vector<128x128xf32>
    %56 = arith.addf %46, %55 : vector<128x128xf32>
    %57 = vector.extract_strided_slice %50 {offsets = [0, 1, 0], sizes = [8, 16, 128], strides = [1, 1, 1]} : vector<8x18x128xbf16> to vector<8x16x128xbf16>
    %58 = vector.shape_cast %57 : vector<8x16x128xbf16> to vector<128x128xbf16>
    %c2_41 = arith.constant 2 : index
    %c1_42 = arith.constant 1 : index
    %c0_43 = arith.constant 0 : index
    %c0_44 = arith.constant 0 : index
    %59 = vector.load %arg4[%c2_41, %c1_42, %c0_43, %c0_44] : memref<3x3x128x128xbf16, #tpu.memory_space<vmem>>, vector<1x1x128x128xbf16>
    %60 = vector.shape_cast %59 : vector<1x1x128x128xbf16> to vector<128x128xbf16>
    %cst_45 = arith.constant dense<0.000000e+00> : vector<128x128xf32>
    %61 = tpu.matmul %58, %60, %cst_45 {dimension_numbers = #tpu.dot_dimension_numbers<[1], [0], [0], [1], [0, 0, 1, 1], [], []>} : vector<128x128xbf16>, vector<128x128xbf16>, vector<128x128xf32> -> vector<128x128xf32>
    %62 = arith.addf %56, %61 : vector<128x128xf32>
    %63 = vector.extract_strided_slice %50 {offsets = [0, 2, 0], sizes = [8, 16, 128], strides = [1, 1, 1]} : vector<8x18x128xbf16> to vector<8x16x128xbf16>
    %64 = vector.shape_cast %63 : vector<8x16x128xbf16> to vector<128x128xbf16>
    %c2_46 = arith.constant 2 : index
    %c2_47 = arith.constant 2 : index
    %c0_48 = arith.constant 0 : index
    %c0_49 = arith.constant 0 : index
    %65 = vector.load %arg4[%c2_46, %c2_47, %c0_48, %c0_49] : memref<3x3x128x128xbf16, #tpu.memory_space<vmem>>, vector<1x1x128x128xbf16>
    %66 = vector.shape_cast %65 : vector<1x1x128x128xbf16> to vector<128x128xbf16>
    %cst_50 = arith.constant dense<0.000000e+00> : vector<128x128xf32>
    %67 = tpu.matmul %64, %66, %cst_50 {dimension_numbers = #tpu.dot_dimension_numbers<[1], [0], [0], [1], [0, 0, 1, 1], [], []>} : vector<128x128xbf16>, vector<128x128xbf16>, vector<128x128xf32> -> vector<128x128xf32>
    %68 = arith.addf %62, %67 : vector<128x128xf32>
    %c0_i32_51 = arith.constant 0 : i32
    %69 = arith.addi %1, %c0_i32_51 : i32
    %c0_52 = arith.constant 0 : index
    %70 = arith.index_cast %69 : i32 to index
    %c0_53 = arith.constant 0 : index
    %c0_54 = arith.constant 0 : index
    %71 = vector.load %arg3[%c0_52, %70, %c0_53, %c0_54] : memref<1x18x18x128xbf16, #tpu.memory_space<vmem>>, vector<1x8x18x128xbf16>
    %72 = vector.shape_cast %71 : vector<1x8x18x128xbf16> to vector<8x18x128xbf16>
    %73 = vector.extract_strided_slice %72 {offsets = [0, 0, 0], sizes = [8, 16, 128], strides = [1, 1, 1]} : vector<8x18x128xbf16> to vector<8x16x128xbf16>
    %74 = vector.shape_cast %73 : vector<8x16x128xbf16> to vector<128x128xbf16>
    %c0_55 = arith.constant 0 : index
    %c0_56 = arith.constant 0 : index
    %c0_57 = arith.constant 0 : index
    %c0_58 = arith.constant 0 : index
    %75 = vector.load %arg5[%c0_55, %c0_56, %c0_57, %c0_58] : memref<3x3x128x128xbf16, #tpu.memory_space<vmem>>, vector<1x1x128x128xbf16>
    %76 = vector.shape_cast %75 : vector<1x1x128x128xbf16> to vector<128x128xbf16>
    %cst_59 = arith.constant dense<0.000000e+00> : vector<128x128xf32>
    %77 = tpu.matmul %74, %76, %cst_59 {dimension_numbers = #tpu.dot_dimension_numbers<[1], [0], [0], [1], [0, 0, 1, 1], [], []>} : vector<128x128xbf16>, vector<128x128xbf16>, vector<128x128xf32> -> vector<128x128xf32>
    %78 = arith.addf %68, %77 : vector<128x128xf32>
    %79 = vector.extract_strided_slice %72 {offsets = [0, 1, 0], sizes = [8, 16, 128], strides = [1, 1, 1]} : vector<8x18x128xbf16> to vector<8x16x128xbf16>
    %80 = vector.shape_cast %79 : vector<8x16x128xbf16> to vector<128x128xbf16>
    %c0_60 = arith.constant 0 : index
    %c1_61 = arith.constant 1 : index
    %c0_62 = arith.constant 0 : index
    %c0_63 = arith.constant 0 : index
    %81 = vector.load %arg5[%c0_60, %c1_61, %c0_62, %c0_63] : memref<3x3x128x128xbf16, #tpu.memory_space<vmem>>, vector<1x1x128x128xbf16>
    %82 = vector.shape_cast %81 : vector<1x1x128x128xbf16> to vector<128x128xbf16>
    %cst_64 = arith.constant dense<0.000000e+00> : vector<128x128xf32>
    %83 = tpu.matmul %80, %82, %cst_64 {dimension_numbers = #tpu.dot_dimension_numbers<[1], [0], [0], [1], [0, 0, 1, 1], [], []>} : vector<128x128xbf16>, vector<128x128xbf16>, vector<128x128xf32> -> vector<128x128xf32>
    %84 = arith.addf %78, %83 : vector<128x128xf32>
    %85 = vector.extract_strided_slice %72 {offsets = [0, 2, 0], sizes = [8, 16, 128], strides = [1, 1, 1]} : vector<8x18x128xbf16> to vector<8x16x128xbf16>
    %86 = vector.shape_cast %85 : vector<8x16x128xbf16> to vector<128x128xbf16>
    %c0_65 = arith.constant 0 : index
    %c2_66 = arith.constant 2 : index
    %c0_67 = arith.constant 0 : index
    %c0_68 = arith.constant 0 : index
    %87 = vector.load %arg5[%c0_65, %c2_66, %c0_67, %c0_68] : memref<3x3x128x128xbf16, #tpu.memory_space<vmem>>, vector<1x1x128x128xbf16>
    %88 = vector.shape_cast %87 : vector<1x1x128x128xbf16> to vector<128x128xbf16>
    %cst_69 = arith.constant dense<0.000000e+00> : vector<128x128xf32>
    %89 = tpu.matmul %86, %88, %cst_69 {dimension_numbers = #tpu.dot_dimension_numbers<[1], [0], [0], [1], [0, 0, 1, 1], [], []>} : vector<128x128xbf16>, vector<128x128xbf16>, vector<128x128xf32> -> vector<128x128xf32>
    %90 = arith.addf %84, %89 : vector<128x128xf32>
    %c1_i32_70 = arith.constant 1 : i32
    %91 = arith.addi %1, %c1_i32_70 : i32
    %c0_71 = arith.constant 0 : index
    %92 = arith.index_cast %91 : i32 to index
    %c0_72 = arith.constant 0 : index
    %c0_73 = arith.constant 0 : index
    %93 = vector.load %arg3[%c0_71, %92, %c0_72, %c0_73] : memref<1x18x18x128xbf16, #tpu.memory_space<vmem>>, vector<1x8x18x128xbf16>
    %94 = vector.shape_cast %93 : vector<1x8x18x128xbf16> to vector<8x18x128xbf16>
    %95 = vector.extract_strided_slice %94 {offsets = [0, 0, 0], sizes = [8, 16, 128], strides = [1, 1, 1]} : vector<8x18x128xbf16> to vector<8x16x128xbf16>
    %96 = vector.shape_cast %95 : vector<8x16x128xbf16> to vector<128x128xbf16>
    %c1_74 = arith.constant 1 : index
    %c0_75 = arith.constant 0 : index
    %c0_76 = arith.constant 0 : index
    %c0_77 = arith.constant 0 : index
    %97 = vector.load %arg5[%c1_74, %c0_75, %c0_76, %c0_77] : memref<3x3x128x128xbf16, #tpu.memory_space<vmem>>, vector<1x1x128x128xbf16>
    %98 = vector.shape_cast %97 : vector<1x1x128x128xbf16> to vector<128x128xbf16>
    %cst_78 = arith.constant dense<0.000000e+00> : vector<128x128xf32>
    %99 = tpu.matmul %96, %98, %cst_78 {dimension_numbers = #tpu.dot_dimension_numbers<[1], [0], [0], [1], [0, 0, 1, 1], [], []>} : vector<128x128xbf16>, vector<128x128xbf16>, vector<128x128xf32> -> vector<128x128xf32>
    %100 = arith.addf %90, %99 : vector<128x128xf32>
    %101 = vector.extract_strided_slice %94 {offsets = [0, 1, 0], sizes = [8, 16, 128], strides = [1, 1, 1]} : vector<8x18x128xbf16> to vector<8x16x128xbf16>
    %102 = vector.shape_cast %101 : vector<8x16x128xbf16> to vector<128x128xbf16>
    %c1_79 = arith.constant 1 : index
    %c1_80 = arith.constant 1 : index
    %c0_81 = arith.constant 0 : index
    %c0_82 = arith.constant 0 : index
    %103 = vector.load %arg5[%c1_79, %c1_80, %c0_81, %c0_82] : memref<3x3x128x128xbf16, #tpu.memory_space<vmem>>, vector<1x1x128x128xbf16>
    %104 = vector.shape_cast %103 : vector<1x1x128x128xbf16> to vector<128x128xbf16>
    %cst_83 = arith.constant dense<0.000000e+00> : vector<128x128xf32>
    %105 = tpu.matmul %102, %104, %cst_83 {dimension_numbers = #tpu.dot_dimension_numbers<[1], [0], [0], [1], [0, 0, 1, 1], [], []>} : vector<128x128xbf16>, vector<128x128xbf16>, vector<128x128xf32> -> vector<128x128xf32>
    %106 = arith.addf %100, %105 : vector<128x128xf32>
    %107 = vector.extract_strided_slice %94 {offsets = [0, 2, 0], sizes = [8, 16, 128], strides = [1, 1, 1]} : vector<8x18x128xbf16> to vector<8x16x128xbf16>
    %108 = vector.shape_cast %107 : vector<8x16x128xbf16> to vector<128x128xbf16>
    %c1_84 = arith.constant 1 : index
    %c2_85 = arith.constant 2 : index
    %c0_86 = arith.constant 0 : index
    %c0_87 = arith.constant 0 : index
    %109 = vector.load %arg5[%c1_84, %c2_85, %c0_86, %c0_87] : memref<3x3x128x128xbf16, #tpu.memory_space<vmem>>, vector<1x1x128x128xbf16>
    %110 = vector.shape_cast %109 : vector<1x1x128x128xbf16> to vector<128x128xbf16>
    %cst_88 = arith.constant dense<0.000000e+00> : vector<128x128xf32>
    %111 = tpu.matmul %108, %110, %cst_88 {dimension_numbers = #tpu.dot_dimension_numbers<[1], [0], [0], [1], [0, 0, 1, 1], [], []>} : vector<128x128xbf16>, vector<128x128xbf16>, vector<128x128xf32> -> vector<128x128xf32>
    %112 = arith.addf %106, %111 : vector<128x128xf32>
    %c2_i32_89 = arith.constant 2 : i32
    %113 = arith.addi %1, %c2_i32_89 : i32
    %c0_90 = arith.constant 0 : index
    %114 = arith.index_cast %113 : i32 to index
    %c0_91 = arith.constant 0 : index
    %c0_92 = arith.constant 0 : index
    %115 = vector.load %arg3[%c0_90, %114, %c0_91, %c0_92] : memref<1x18x18x128xbf16, #tpu.memory_space<vmem>>, vector<1x8x18x128xbf16>
    %116 = vector.shape_cast %115 : vector<1x8x18x128xbf16> to vector<8x18x128xbf16>
    %117 = vector.extract_strided_slice %116 {offsets = [0, 0, 0], sizes = [8, 16, 128], strides = [1, 1, 1]} : vector<8x18x128xbf16> to vector<8x16x128xbf16>
    %118 = vector.shape_cast %117 : vector<8x16x128xbf16> to vector<128x128xbf16>
    %c2_93 = arith.constant 2 : index
    %c0_94 = arith.constant 0 : index
    %c0_95 = arith.constant 0 : index
    %c0_96 = arith.constant 0 : index
    %119 = vector.load %arg5[%c2_93, %c0_94, %c0_95, %c0_96] : memref<3x3x128x128xbf16, #tpu.memory_space<vmem>>, vector<1x1x128x128xbf16>
    %120 = vector.shape_cast %119 : vector<1x1x128x128xbf16> to vector<128x128xbf16>
    %cst_97 = arith.constant dense<0.000000e+00> : vector<128x128xf32>
    %121 = tpu.matmul %118, %120, %cst_97 {dimension_numbers = #tpu.dot_dimension_numbers<[1], [0], [0], [1], [0, 0, 1, 1], [], []>} : vector<128x128xbf16>, vector<128x128xbf16>, vector<128x128xf32> -> vector<128x128xf32>
    %122 = arith.addf %112, %121 : vector<128x128xf32>
    %123 = vector.extract_strided_slice %116 {offsets = [0, 1, 0], sizes = [8, 16, 128], strides = [1, 1, 1]} : vector<8x18x128xbf16> to vector<8x16x128xbf16>
    %124 = vector.shape_cast %123 : vector<8x16x128xbf16> to vector<128x128xbf16>
    %c2_98 = arith.constant 2 : index
    %c1_99 = arith.constant 1 : index
    %c0_100 = arith.constant 0 : index
    %c0_101 = arith.constant 0 : index
    %125 = vector.load %arg5[%c2_98, %c1_99, %c0_100, %c0_101] : memref<3x3x128x128xbf16, #tpu.memory_space<vmem>>, vector<1x1x128x128xbf16>
    %126 = vector.shape_cast %125 : vector<1x1x128x128xbf16> to vector<128x128xbf16>
    %cst_102 = arith.constant dense<0.000000e+00> : vector<128x128xf32>
    %127 = tpu.matmul %124, %126, %cst_102 {dimension_numbers = #tpu.dot_dimension_numbers<[1], [0], [0], [1], [0, 0, 1, 1], [], []>} : vector<128x128xbf16>, vector<128x128xbf16>, vector<128x128xf32> -> vector<128x128xf32>
    %128 = arith.addf %122, %127 : vector<128x128xf32>
    %129 = vector.extract_strided_slice %116 {offsets = [0, 2, 0], sizes = [8, 16, 128], strides = [1, 1, 1]} : vector<8x18x128xbf16> to vector<8x16x128xbf16>
    %130 = vector.shape_cast %129 : vector<8x16x128xbf16> to vector<128x128xbf16>
    %c2_103 = arith.constant 2 : index
    %c2_104 = arith.constant 2 : index
    %c0_105 = arith.constant 0 : index
    %c0_106 = arith.constant 0 : index
    %131 = vector.load %arg5[%c2_103, %c2_104, %c0_105, %c0_106] : memref<3x3x128x128xbf16, #tpu.memory_space<vmem>>, vector<1x1x128x128xbf16>
    %132 = vector.shape_cast %131 : vector<1x1x128x128xbf16> to vector<128x128xbf16>
    %cst_107 = arith.constant dense<0.000000e+00> : vector<128x128xf32>
    %133 = tpu.matmul %130, %132, %cst_107 {dimension_numbers = #tpu.dot_dimension_numbers<[1], [0], [0], [1], [0, 0, 1, 1], [], []>} : vector<128x128xbf16>, vector<128x128xbf16>, vector<128x128xf32> -> vector<128x128xf32>
    %134 = arith.addf %128, %133 : vector<128x128xf32>
    %135 = arith.truncf %134 : vector<128x128xf32> to vector<128x128xbf16>
    %c0_108 = arith.constant 0 : index
    %c0_109 = arith.constant 0 : index
    %c0_110 = arith.constant 0 : index
    %136 = vector.load %arg6[%c0_108, %c0_109, %c0_110] : memref<1x128x128xbf16, #tpu.memory_space<vmem>>, vector<1x128x128xbf16>
    %137 = vector.shape_cast %136 : vector<1x128x128xbf16> to vector<128x128xbf16>
    %138 = vector.shape_cast %135 : vector<128x128xbf16> to vector<1x128x128xbf16>
    tpu.vector_store %arg6[%c0_108, %c0_109, %c0_110], %138 {strides = array<i32>} : memref<1x128x128xbf16, #tpu.memory_space<vmem>>, vector<1x128x128xbf16>,
    %cst_111 = arith.constant dense<0.000000e+00> : vector<128xf32>
    %139 = vector.multi_reduction <add>, %134, %cst_111 [0] : vector<128x128xf32> to vector<128xf32>
    %140 = vector.shape_cast %139 : vector<128xf32> to vector<1x128xf32>
    %141 = arith.mulf %134, %134 : vector<128x128xf32>
    %cst_112 = arith.constant dense<0.000000e+00> : vector<128xf32>
    %142 = vector.multi_reduction <add>, %141, %cst_112 [0] : vector<128x128xf32> to vector<128xf32>
    %143 = vector.shape_cast %142 : vector<128xf32> to vector<1x128xf32>
    %144 = tpu.concatenate %140, %143 in 0 : vector<1x128xf32>, vector<1x128xf32> -> vector<2x128xf32>
    %c0_113 = arith.constant 0 : index
    %c0_114 = arith.constant 0 : index
    %c0_115 = arith.constant 0 : index
    %c0_116 = arith.constant 0 : index
    %145 = vector.load %arg7[%c0_113, %c0_114, %c0_115, %c0_116] : memref<1x1x2x128xf32, #tpu.memory_space<vmem>>, vector<1x1x2x128xf32>
    %146 = vector.shape_cast %145 : vector<1x1x2x128xf32> to vector<2x128xf32>
    %147 = vector.shape_cast %144 : vector<2x128xf32> to vector<1x1x2x128xf32>
    tpu.vector_store %arg7[%c0_113, %c0_114, %c0_115, %c0_116], %147 {strides = array<i32>} : memref<1x1x2x128xf32, #tpu.memory_space<vmem>>, vector<1x1x2x128xf32>,
    return
  }
  func.func @transform_0(%arg0: i32, %arg1: i32) -> (i32, i32, i32, i32) {
    %c0_i32 = arith.constant 0 : i32
    %c0_i32_0 = arith.constant 0 : i32
    %c0_i32_1 = arith.constant 0 : i32
    %c0_i32_2 = arith.constant 0 : i32
    return %arg0, %c0_i32, %c0_i32_0, %c0_i32_1 : i32, i32, i32, i32
  }
  func.func @transform_1(%arg0: i32, %arg1: i32) -> (i32, i32, i32, i32) {
    %c0_i32 = arith.constant 0 : i32
    %c0_i32_0 = arith.constant 0 : i32
    %c0_i32_1 = arith.constant 0 : i32
    %c0_i32_2 = arith.constant 0 : i32
    return %arg0, %c0_i32, %c0_i32_0, %c0_i32_1 : i32, i32, i32, i32
  }
  func.func @transform_2(%arg0: i32, %arg1: i32) -> (i32, i32, i32, i32) {
    %c0_i32 = arith.constant 0 : i32
    %c0_i32_0 = arith.constant 0 : i32
    %c0_i32_1 = arith.constant 0 : i32
    %c0_i32_2 = arith.constant 0 : i32
    %c0_i32_3 = arith.constant 0 : i32
    return %c0_i32, %c0_i32_0, %c0_i32_1, %c0_i32_2 : i32, i32, i32, i32
  }
  func.func @transform_3(%arg0: i32, %arg1: i32) -> (i32, i32, i32, i32) {
    %c0_i32 = arith.constant 0 : i32
    %c0_i32_0 = arith.constant 0 : i32
    %c0_i32_1 = arith.constant 0 : i32
    %c0_i32_2 = arith.constant 0 : i32
    %c0_i32_3 = arith.constant 0 : i32
    return %c0_i32, %c0_i32_0, %c0_i32_1, %c0_i32_2 : i32, i32, i32, i32
  }
  func.func @transform_4(%arg0: i32, %arg1: i32) -> (i32, i32, i32) {
    %c0_i32 = arith.constant 0 : i32
    %c0_i32_0 = arith.constant 0 : i32
    return %arg0, %arg1, %c0_i32 : i32, i32, i32
  }
  func.func @transform_5(%arg0: i32, %arg1: i32) -> (i32, i32, i32, i32) {
    %c0_i32 = arith.constant 0 : i32
    %c0_i32_0 = arith.constant 0 : i32
    %c0_i32_1 = arith.constant 0 : i32
    return %arg0, %arg1, %c0_i32, %c0_i32_0 : i32, i32, i32, i32
  }
}

module attributes {stable_mosaic.version = 11 : i64} {
  func.func @_affine_relu_kernel(%arg0: i32, %arg1: memref<256x128xbf16, #tpu.memory_space<vmem>>, %arg2: memref<1x128xf32, #tpu.memory_space<vmem>>, %arg3: memref<1x128xf32, #tpu.memory_space<vmem>>, %arg4: memref<256x128xbf16, #tpu.memory_space<vmem>>) attributes {dimension_semantics = [#tpu.dimension_semantics<parallel>], iteration_bounds = array<i64: 2>, scalar_prefetch = 0 : i64, scratch_operands = 0 : i64, tpu.core_type = #tpu.core_type<tc>, window_params = [{transform_indices = @transform_0, window_bounds = array<i64: 256, 128>}, {pipeline_mode = #tpu.pipeline_mode<synchronous>, transform_indices = @transform_1, window_bounds = array<i64: 1, 128>}, {pipeline_mode = #tpu.pipeline_mode<synchronous>, transform_indices = @transform_2, window_bounds = array<i64: 1, 128>}, {transform_indices = @transform_3, window_bounds = array<i64: 256, 128>}]} {
    %c0 = arith.constant 0 : index
    %c0_0 = arith.constant 0 : index
    %0 = vector.load %arg1[%c0, %c0_0] : memref<256x128xbf16, #tpu.memory_space<vmem>>, vector<256x128xbf16>
    %1 = arith.extf %0 : vector<256x128xbf16> to vector<256x128xf32>
    %c0_1 = arith.constant 0 : index
    %c0_2 = arith.constant 0 : index
    %2 = vector.load %arg2[%c0_1, %c0_2] : memref<1x128xf32, #tpu.memory_space<vmem>>, vector<1x128xf32>
    %3 = vector.broadcast %2 : vector<1x128xf32> to vector<256x128xf32>
    %4 = arith.mulf %1, %3 : vector<256x128xf32>
    %c0_3 = arith.constant 0 : index
    %c0_4 = arith.constant 0 : index
    %5 = vector.load %arg3[%c0_3, %c0_4] : memref<1x128xf32, #tpu.memory_space<vmem>>, vector<1x128xf32>
    %6 = vector.broadcast %5 : vector<1x128xf32> to vector<256x128xf32>
    %7 = arith.addf %4, %6 : vector<256x128xf32>
    %cst = arith.constant 0.000000e+00 : f32
    %8 = vector.broadcast %cst : f32 to vector<256x128xf32>
    %9 = arith.maximumf %7, %8 : vector<256x128xf32>
    %10 = arith.truncf %9 : vector<256x128xf32> to vector<256x128xbf16>
    %c0_5 = arith.constant 0 : index
    %c0_6 = arith.constant 0 : index
    %11 = vector.load %arg4[%c0_5, %c0_6] : memref<256x128xbf16, #tpu.memory_space<vmem>>, vector<256x128xbf16>
    tpu.vector_store %arg4[%c0_5, %c0_6], %10 {strides = array<i32>} : memref<256x128xbf16, #tpu.memory_space<vmem>>, vector<256x128xbf16>,
    return
  }
  func.func @transform_0(%arg0: i32) -> (i32, i32) {
    %c0_i32 = arith.constant 0 : i32
    %c0_i32_0 = arith.constant 0 : i32
    return %arg0, %c0_i32 : i32, i32
  }
  func.func @transform_1(%arg0: i32) -> (i32, i32) {
    %c0_i32 = arith.constant 0 : i32
    %c0_i32_0 = arith.constant 0 : i32
    %c0_i32_1 = arith.constant 0 : i32
    return %c0_i32, %c0_i32_0 : i32, i32
  }
  func.func @transform_2(%arg0: i32) -> (i32, i32) {
    %c0_i32 = arith.constant 0 : i32
    %c0_i32_0 = arith.constant 0 : i32
    %c0_i32_1 = arith.constant 0 : i32
    return %c0_i32, %c0_i32_0 : i32, i32
  }
  func.func @transform_3(%arg0: i32) -> (i32, i32) {
    %c0_i32 = arith.constant 0 : i32
    %c0_i32_0 = arith.constant 0 : i32
    return %arg0, %c0_i32 : i32, i32
  }
}

module attributes {stable_mosaic.version = 11 : i64} {
  func.func @kernel(%arg0: i32, %arg1: i32, %arg2: memref<1x18x18x128xbf16, #tpu.memory_space<vmem>>, %arg3: memref<3x3x128x128xbf16, #tpu.memory_space<vmem>>, %arg4: memref<1x128x128xbf16, #tpu.memory_space<vmem>>, %arg5: memref<1x1x2x128xf32, #tpu.memory_space<vmem>>) attributes {dimension_semantics = [#tpu.dimension_semantics<parallel>, #tpu.dimension_semantics<parallel>], iteration_bounds = array<i64: 2, 2>, scalar_prefetch = 0 : i64, scratch_operands = 0 : i64, tpu.core_type = #tpu.core_type<tc>, window_params = [{transform_indices = @transform_0, window_bounds = array<i64: 1, 18, 18, 128>}, {pipeline_mode = #tpu.pipeline_mode<synchronous>, transform_indices = @transform_1, window_bounds = array<i64: 3, 3, 128, 128>}, {transform_indices = @transform_2, window_bounds = array<i64: 1, 128, 128>}, {transform_indices = @transform_3, window_bounds = array<i64: 1, 1, 2, 128>}]} {
    %c8_i32 = arith.constant 8 : i32
    %0 = arith.muli %arg1, %c8_i32 : i32
    %1 = tpu.assume_multiple %0, 8 : i32
    %cst = arith.constant 0.000000e+00 : f32
    %2 = vector.broadcast %cst : f32 to vector<128x128xf32>
    %c0_i32 = arith.constant 0 : i32
    %3 = arith.addi %1, %c0_i32 : i32
    %c0 = arith.constant 0 : index
    %4 = arith.index_cast %3 : i32 to index
    %c0_0 = arith.constant 0 : index
    %c0_1 = arith.constant 0 : index
    %5 = vector.load %arg2[%c0, %4, %c0_0, %c0_1] : memref<1x18x18x128xbf16, #tpu.memory_space<vmem>>, vector<1x8x18x128xbf16>
    %6 = vector.shape_cast %5 : vector<1x8x18x128xbf16> to vector<8x18x128xbf16>
    %7 = vector.extract_strided_slice %6 {offsets = [0, 0, 0], sizes = [8, 16, 128], strides = [1, 1, 1]} : vector<8x18x128xbf16> to vector<8x16x128xbf16>
    %8 = vector.shape_cast %7 : vector<8x16x128xbf16> to vector<128x128xbf16>
    %c0_2 = arith.constant 0 : index
    %c0_3 = arith.constant 0 : index
    %c0_4 = arith.constant 0 : index
    %c0_5 = arith.constant 0 : index
    %9 = vector.load %arg3[%c0_2, %c0_3, %c0_4, %c0_5] : memref<3x3x128x128xbf16, #tpu.memory_space<vmem>>, vector<1x1x128x128xbf16>
    %10 = vector.shape_cast %9 : vector<1x1x128x128xbf16> to vector<128x128xbf16>
    %cst_6 = arith.constant dense<0.000000e+00> : vector<128x128xf32>
    %11 = tpu.matmul %8, %10, %cst_6 {dimension_numbers = #tpu.dot_dimension_numbers<[1], [0], [0], [1], [0, 0, 1, 1], [], []>} : vector<128x128xbf16>, vector<128x128xbf16>, vector<128x128xf32> -> vector<128x128xf32>
    %12 = arith.addf %2, %11 : vector<128x128xf32>
    %13 = vector.extract_strided_slice %6 {offsets = [0, 1, 0], sizes = [8, 16, 128], strides = [1, 1, 1]} : vector<8x18x128xbf16> to vector<8x16x128xbf16>
    %14 = vector.shape_cast %13 : vector<8x16x128xbf16> to vector<128x128xbf16>
    %c0_7 = arith.constant 0 : index
    %c1 = arith.constant 1 : index
    %c0_8 = arith.constant 0 : index
    %c0_9 = arith.constant 0 : index
    %15 = vector.load %arg3[%c0_7, %c1, %c0_8, %c0_9] : memref<3x3x128x128xbf16, #tpu.memory_space<vmem>>, vector<1x1x128x128xbf16>
    %16 = vector.shape_cast %15 : vector<1x1x128x128xbf16> to vector<128x128xbf16>
    %cst_10 = arith.constant dense<0.000000e+00> : vector<128x128xf32>
    %17 = tpu.matmul %14, %16, %cst_10 {dimension_numbers = #tpu.dot_dimension_numbers<[1], [0], [0], [1], [0, 0, 1, 1], [], []>} : vector<128x128xbf16>, vector<128x128xbf16>, vector<128x128xf32> -> vector<128x128xf32>
    %18 = arith.addf %12, %17 : vector<128x128xf32>
    %19 = vector.extract_strided_slice %6 {offsets = [0, 2, 0], sizes = [8, 16, 128], strides = [1, 1, 1]} : vector<8x18x128xbf16> to vector<8x16x128xbf16>
    %20 = vector.shape_cast %19 : vector<8x16x128xbf16> to vector<128x128xbf16>
    %c0_11 = arith.constant 0 : index
    %c2 = arith.constant 2 : index
    %c0_12 = arith.constant 0 : index
    %c0_13 = arith.constant 0 : index
    %21 = vector.load %arg3[%c0_11, %c2, %c0_12, %c0_13] : memref<3x3x128x128xbf16, #tpu.memory_space<vmem>>, vector<1x1x128x128xbf16>
    %22 = vector.shape_cast %21 : vector<1x1x128x128xbf16> to vector<128x128xbf16>
    %cst_14 = arith.constant dense<0.000000e+00> : vector<128x128xf32>
    %23 = tpu.matmul %20, %22, %cst_14 {dimension_numbers = #tpu.dot_dimension_numbers<[1], [0], [0], [1], [0, 0, 1, 1], [], []>} : vector<128x128xbf16>, vector<128x128xbf16>, vector<128x128xf32> -> vector<128x128xf32>
    %24 = arith.addf %18, %23 : vector<128x128xf32>
    %c1_i32 = arith.constant 1 : i32
    %25 = arith.addi %1, %c1_i32 : i32
    %c0_15 = arith.constant 0 : index
    %26 = arith.index_cast %25 : i32 to index
    %c0_16 = arith.constant 0 : index
    %c0_17 = arith.constant 0 : index
    %27 = vector.load %arg2[%c0_15, %26, %c0_16, %c0_17] : memref<1x18x18x128xbf16, #tpu.memory_space<vmem>>, vector<1x8x18x128xbf16>
    %28 = vector.shape_cast %27 : vector<1x8x18x128xbf16> to vector<8x18x128xbf16>
    %29 = vector.extract_strided_slice %28 {offsets = [0, 0, 0], sizes = [8, 16, 128], strides = [1, 1, 1]} : vector<8x18x128xbf16> to vector<8x16x128xbf16>
    %30 = vector.shape_cast %29 : vector<8x16x128xbf16> to vector<128x128xbf16>
    %c1_18 = arith.constant 1 : index
    %c0_19 = arith.constant 0 : index
    %c0_20 = arith.constant 0 : index
    %c0_21 = arith.constant 0 : index
    %31 = vector.load %arg3[%c1_18, %c0_19, %c0_20, %c0_21] : memref<3x3x128x128xbf16, #tpu.memory_space<vmem>>, vector<1x1x128x128xbf16>
    %32 = vector.shape_cast %31 : vector<1x1x128x128xbf16> to vector<128x128xbf16>
    %cst_22 = arith.constant dense<0.000000e+00> : vector<128x128xf32>
    %33 = tpu.matmul %30, %32, %cst_22 {dimension_numbers = #tpu.dot_dimension_numbers<[1], [0], [0], [1], [0, 0, 1, 1], [], []>} : vector<128x128xbf16>, vector<128x128xbf16>, vector<128x128xf32> -> vector<128x128xf32>
    %34 = arith.addf %24, %33 : vector<128x128xf32>
    %35 = vector.extract_strided_slice %28 {offsets = [0, 1, 0], sizes = [8, 16, 128], strides = [1, 1, 1]} : vector<8x18x128xbf16> to vector<8x16x128xbf16>
    %36 = vector.shape_cast %35 : vector<8x16x128xbf16> to vector<128x128xbf16>
    %c1_23 = arith.constant 1 : index
    %c1_24 = arith.constant 1 : index
    %c0_25 = arith.constant 0 : index
    %c0_26 = arith.constant 0 : index
    %37 = vector.load %arg3[%c1_23, %c1_24, %c0_25, %c0_26] : memref<3x3x128x128xbf16, #tpu.memory_space<vmem>>, vector<1x1x128x128xbf16>
    %38 = vector.shape_cast %37 : vector<1x1x128x128xbf16> to vector<128x128xbf16>
    %cst_27 = arith.constant dense<0.000000e+00> : vector<128x128xf32>
    %39 = tpu.matmul %36, %38, %cst_27 {dimension_numbers = #tpu.dot_dimension_numbers<[1], [0], [0], [1], [0, 0, 1, 1], [], []>} : vector<128x128xbf16>, vector<128x128xbf16>, vector<128x128xf32> -> vector<128x128xf32>
    %40 = arith.addf %34, %39 : vector<128x128xf32>
    %41 = vector.extract_strided_slice %28 {offsets = [0, 2, 0], sizes = [8, 16, 128], strides = [1, 1, 1]} : vector<8x18x128xbf16> to vector<8x16x128xbf16>
    %42 = vector.shape_cast %41 : vector<8x16x128xbf16> to vector<128x128xbf16>
    %c1_28 = arith.constant 1 : index
    %c2_29 = arith.constant 2 : index
    %c0_30 = arith.constant 0 : index
    %c0_31 = arith.constant 0 : index
    %43 = vector.load %arg3[%c1_28, %c2_29, %c0_30, %c0_31] : memref<3x3x128x128xbf16, #tpu.memory_space<vmem>>, vector<1x1x128x128xbf16>
    %44 = vector.shape_cast %43 : vector<1x1x128x128xbf16> to vector<128x128xbf16>
    %cst_32 = arith.constant dense<0.000000e+00> : vector<128x128xf32>
    %45 = tpu.matmul %42, %44, %cst_32 {dimension_numbers = #tpu.dot_dimension_numbers<[1], [0], [0], [1], [0, 0, 1, 1], [], []>} : vector<128x128xbf16>, vector<128x128xbf16>, vector<128x128xf32> -> vector<128x128xf32>
    %46 = arith.addf %40, %45 : vector<128x128xf32>
    %c2_i32 = arith.constant 2 : i32
    %47 = arith.addi %1, %c2_i32 : i32
    %c0_33 = arith.constant 0 : index
    %48 = arith.index_cast %47 : i32 to index
    %c0_34 = arith.constant 0 : index
    %c0_35 = arith.constant 0 : index
    %49 = vector.load %arg2[%c0_33, %48, %c0_34, %c0_35] : memref<1x18x18x128xbf16, #tpu.memory_space<vmem>>, vector<1x8x18x128xbf16>
    %50 = vector.shape_cast %49 : vector<1x8x18x128xbf16> to vector<8x18x128xbf16>
    %51 = vector.extract_strided_slice %50 {offsets = [0, 0, 0], sizes = [8, 16, 128], strides = [1, 1, 1]} : vector<8x18x128xbf16> to vector<8x16x128xbf16>
    %52 = vector.shape_cast %51 : vector<8x16x128xbf16> to vector<128x128xbf16>
    %c2_36 = arith.constant 2 : index
    %c0_37 = arith.constant 0 : index
    %c0_38 = arith.constant 0 : index
    %c0_39 = arith.constant 0 : index
    %53 = vector.load %arg3[%c2_36, %c0_37, %c0_38, %c0_39] : memref<3x3x128x128xbf16, #tpu.memory_space<vmem>>, vector<1x1x128x128xbf16>
    %54 = vector.shape_cast %53 : vector<1x1x128x128xbf16> to vector<128x128xbf16>
    %cst_40 = arith.constant dense<0.000000e+00> : vector<128x128xf32>
    %55 = tpu.matmul %52, %54, %cst_40 {dimension_numbers = #tpu.dot_dimension_numbers<[1], [0], [0], [1], [0, 0, 1, 1], [], []>} : vector<128x128xbf16>, vector<128x128xbf16>, vector<128x128xf32> -> vector<128x128xf32>
    %56 = arith.addf %46, %55 : vector<128x128xf32>
    %57 = vector.extract_strided_slice %50 {offsets = [0, 1, 0], sizes = [8, 16, 128], strides = [1, 1, 1]} : vector<8x18x128xbf16> to vector<8x16x128xbf16>
    %58 = vector.shape_cast %57 : vector<8x16x128xbf16> to vector<128x128xbf16>
    %c2_41 = arith.constant 2 : index
    %c1_42 = arith.constant 1 : index
    %c0_43 = arith.constant 0 : index
    %c0_44 = arith.constant 0 : index
    %59 = vector.load %arg3[%c2_41, %c1_42, %c0_43, %c0_44] : memref<3x3x128x128xbf16, #tpu.memory_space<vmem>>, vector<1x1x128x128xbf16>
    %60 = vector.shape_cast %59 : vector<1x1x128x128xbf16> to vector<128x128xbf16>
    %cst_45 = arith.constant dense<0.000000e+00> : vector<128x128xf32>
    %61 = tpu.matmul %58, %60, %cst_45 {dimension_numbers = #tpu.dot_dimension_numbers<[1], [0], [0], [1], [0, 0, 1, 1], [], []>} : vector<128x128xbf16>, vector<128x128xbf16>, vector<128x128xf32> -> vector<128x128xf32>
    %62 = arith.addf %56, %61 : vector<128x128xf32>
    %63 = vector.extract_strided_slice %50 {offsets = [0, 2, 0], sizes = [8, 16, 128], strides = [1, 1, 1]} : vector<8x18x128xbf16> to vector<8x16x128xbf16>
    %64 = vector.shape_cast %63 : vector<8x16x128xbf16> to vector<128x128xbf16>
    %c2_46 = arith.constant 2 : index
    %c2_47 = arith.constant 2 : index
    %c0_48 = arith.constant 0 : index
    %c0_49 = arith.constant 0 : index
    %65 = vector.load %arg3[%c2_46, %c2_47, %c0_48, %c0_49] : memref<3x3x128x128xbf16, #tpu.memory_space<vmem>>, vector<1x1x128x128xbf16>
    %66 = vector.shape_cast %65 : vector<1x1x128x128xbf16> to vector<128x128xbf16>
    %cst_50 = arith.constant dense<0.000000e+00> : vector<128x128xf32>
    %67 = tpu.matmul %64, %66, %cst_50 {dimension_numbers = #tpu.dot_dimension_numbers<[1], [0], [0], [1], [0, 0, 1, 1], [], []>} : vector<128x128xbf16>, vector<128x128xbf16>, vector<128x128xf32> -> vector<128x128xf32>
    %68 = arith.addf %62, %67 : vector<128x128xf32>
    %69 = arith.truncf %68 : vector<128x128xf32> to vector<128x128xbf16>
    %c0_51 = arith.constant 0 : index
    %c0_52 = arith.constant 0 : index
    %c0_53 = arith.constant 0 : index
    %70 = vector.load %arg4[%c0_51, %c0_52, %c0_53] : memref<1x128x128xbf16, #tpu.memory_space<vmem>>, vector<1x128x128xbf16>
    %71 = vector.shape_cast %70 : vector<1x128x128xbf16> to vector<128x128xbf16>
    %72 = vector.shape_cast %69 : vector<128x128xbf16> to vector<1x128x128xbf16>
    tpu.vector_store %arg4[%c0_51, %c0_52, %c0_53], %72 {strides = array<i32>} : memref<1x128x128xbf16, #tpu.memory_space<vmem>>, vector<1x128x128xbf16>,
    %cst_54 = arith.constant dense<0.000000e+00> : vector<128xf32>
    %73 = vector.multi_reduction <add>, %68, %cst_54 [0] : vector<128x128xf32> to vector<128xf32>
    %74 = vector.shape_cast %73 : vector<128xf32> to vector<1x128xf32>
    %75 = arith.mulf %68, %68 : vector<128x128xf32>
    %cst_55 = arith.constant dense<0.000000e+00> : vector<128xf32>
    %76 = vector.multi_reduction <add>, %75, %cst_55 [0] : vector<128x128xf32> to vector<128xf32>
    %77 = vector.shape_cast %76 : vector<128xf32> to vector<1x128xf32>
    %78 = tpu.concatenate %74, %77 in 0 : vector<1x128xf32>, vector<1x128xf32> -> vector<2x128xf32>
    %c0_56 = arith.constant 0 : index
    %c0_57 = arith.constant 0 : index
    %c0_58 = arith.constant 0 : index
    %c0_59 = arith.constant 0 : index
    %79 = vector.load %arg5[%c0_56, %c0_57, %c0_58, %c0_59] : memref<1x1x2x128xf32, #tpu.memory_space<vmem>>, vector<1x1x2x128xf32>
    %80 = vector.shape_cast %79 : vector<1x1x2x128xf32> to vector<2x128xf32>
    %81 = vector.shape_cast %78 : vector<2x128xf32> to vector<1x1x2x128xf32>
    tpu.vector_store %arg5[%c0_56, %c0_57, %c0_58, %c0_59], %81 {strides = array<i32>} : memref<1x1x2x128xf32, #tpu.memory_space<vmem>>, vector<1x1x2x128xf32>,
    return
  }
  func.func @transform_0(%arg0: i32, %arg1: i32) -> (i32, i32, i32, i32) {
    %c0_i32 = arith.constant 0 : i32
    %c0_i32_0 = arith.constant 0 : i32
    %c0_i32_1 = arith.constant 0 : i32
    %c0_i32_2 = arith.constant 0 : i32
    return %arg0, %c0_i32, %c0_i32_0, %c0_i32_1 : i32, i32, i32, i32
  }
  func.func @transform_1(%arg0: i32, %arg1: i32) -> (i32, i32, i32, i32) {
    %c0_i32 = arith.constant 0 : i32
    %c0_i32_0 = arith.constant 0 : i32
    %c0_i32_1 = arith.constant 0 : i32
    %c0_i32_2 = arith.constant 0 : i32
    %c0_i32_3 = arith.constant 0 : i32
    return %c0_i32, %c0_i32_0, %c0_i32_1, %c0_i32_2 : i32, i32, i32, i32
  }
  func.func @transform_2(%arg0: i32, %arg1: i32) -> (i32, i32, i32) {
    %c0_i32 = arith.constant 0 : i32
    %c0_i32_0 = arith.constant 0 : i32
    return %arg0, %arg1, %c0_i32 : i32, i32, i32
  }
  func.func @transform_3(%arg0: i32, %arg1: i32) -> (i32, i32, i32, i32) {
    %c0_i32 = arith.constant 0 : i32
    %c0_i32_0 = arith.constant 0 : i32
    %c0_i32_1 = arith.constant 0 : i32
    return %arg0, %arg1, %c0_i32, %c0_i32_0 : i32, i32, i32, i32
  }
}

</mosaic_0001>

<bundles_post_ra>
// kernel: tile.8
= control target key start
LH: loop header
LB: loop body
LE: loop exit
PB: predicated region body
PF: predicated region fallthrough
CT: control target
= control target key end

     0   :  { %s22_s0 = inlined_call_operand.vmem [shape: f32[128], index: 0, kind: input, shape index: {}]   ;;  %s23_s1 = inlined_call_operand.vmem [shape: f32[4,128], index: 1, kind: output, shape index: {}]  }
   0x1   :  { %v4_v0 = vld [vmem:[%s22_s0] ss:$0 sm:$0xff] }
   0x2   :  { %5 = vst [vmem:[%s23_s1] sm:$0xf] %v4_v0 }

// kernel: upblock_forward.5
= control target key start
LH: loop header
LB: loop body
LE: loop exit
PB: predicated region body
PF: predicated region fallthrough
CT: control target
= control target key end

     0   :  { %s647_s12 = smov 0   ;;  %s649_s13 = smov 0   ;;  %s767_s0 = inlined_call_operand.vmem [shape: bf16[2,8,8,8], index: 0, kind: input, shape index: {}]   ;;  %s768_s1 = inlined_call_operand.vmem [shape: bf16[8,512], index: 1, kind: input, shape index: {}]   ;;  %s769_s2 = inlined_call_operand.vmem [shape: f32[1,512], index: 2, kind: input, shape index: {}]   ;;  %s770_s3 = inlined_call_operand.vmem [shape: bf16[2,8,2,8,256], index: 3, kind: output, shape index: {}]  }
   0x1   :  { %s651_s14 = smov 0  }
   0x2 LB: > { %s25_s15 = sadd.s32 1, %s621_s13  ;;  %p534_p0 = scmp.ge.s32.totalorder %s625_s14, 1  ;;  %s625_s14 = sphi %s651_s14, %s13_s14   ;;  %s621_s13 = sphi %s649_s13, %s772_s13   ;;  %s617_s12 = sphi %s647_s12, %s771_s12  }
   0x3   : > { %p27_p1 = scmp.ge.s32.totalorder %s25_s15, 2  ;;  %p158_p2 = scmp.lt.s32.totalorder %s625_s14, 3 }
   0x5   : > { %s774_s15 = smov (%p27_p1, %s25_s15), 0  ;;  %p159_p3 = pnand %p534_p0, %p158_p2 }
   0x6   : > { %p192_p4 = scmp.lt.s32.totalorder (!%p159_p3), %s617_s12, 1 }
   0x7   : > { %162 = sbr.rel (%p159_p3) target bundleno = 215 (0xd7), region = 32 }
   0xc   : > { %v221_v0 = vld [vmem:[%s768_s1] sm:$0xff]  ;;  %v222_v1 = vld [vmem:[%s768_s1 + $0x8] sm:$0xff]  ;;  %vm276_vm0 = vcmask 1043456   ;;  %s776_s12 = smov (!%p192_p4, %s617_s12), 1  ;;  %vm263_vm1 = vcmask 64512  }
   0xd   : > { %v255_v2 = vunpack.c.l.b16 %v221_v0  ;;  %v256_v3 = vunpack.c.h.b16 %v221_v0  ;;  %v257_v4 = vunpack.c.l.b16 %v222_v1  ;;  %v258_v5 = vunpack.c.h.b16 %v222_v1  ;;  %s573_s20 = sshll.u32 %s776_s12, 5  ;;  %v223_v18 = vld [vmem:[%s769_s2] sm:$0xf]  ;;  %s574_s26 = sshll.u32 %s776_s12, 7 }
   0xe   : > { %s199_s23 = scalar_lea.vmem %s767_s0, %s573_s20  ;;  %v696_v19 = vperm.slane %v223_v18, 0  ;;  %v698_v20 = vperm.slane %v223_v18, 1  ;;  %s706_s29 = scalar_lea.vmem %s770_s3, %s574_s26  ;;  %v708_v26 = vperm.slane %v223_v18, 2  ;;  %v710_v27 = vperm.slane %v223_v18, 3 }
   0xf   : > { %v259_v6 = vpack.c.b16 %v255_v2, %v255_v2  ;;  %v260_v7 = vpack.c.b16 %v256_v3, %v256_v3  ;;  %v261_v8 = vpack.c.b16 %v257_v4, %v257_v4  ;;  %v262_v9 = vpack.c.b16 %v258_v5, %v258_v5  ;;  %v575_v14 = vld [vmem:[%s199_s23] sm:$0xff]  ;;  %v576_v15 = vld [vmem:[%s199_s23 + $0x8] sm:$0xff]  ;;  %v577_v16 = vld [vmem:[%s199_s23 + $0x10] sm:$0xff] }
  0x10   : > { %v578_v17 = vld [vmem:[%s199_s23 + $0x18] sm:$0xff] }
  0x11   : > { %v278_v10 = vsel %vm276_vm0, %v259_v6, 0  ;;  %v281_v11 = vsel %vm276_vm0, %v260_v7, 0  ;;  %v284_v12 = vsel %vm276_vm0, %v261_v8, 0  ;;  %v287_v13 = vsel %vm276_vm0, %v262_v9, 0 }
  0x12   : > { %296 = vmatpush.bf16.msra.mxu0 %v278_v10  ;;  %325 = vmatpush.bf16.msra.mxu1 %v281_v11 }
  0x13   : > { %354 = vmatpush.bf16.msra.mxu2 %v284_v12  ;;  %383 = vmatpush.bf16.msra.mxu3 %v287_v13 }
  0x15   : > { %555 = vmatmul.msk.bf16.vlgmr.msra.gmra.mxu0 %vm263_vm1, %v575_v14  ;;  %559 = vmatmul.msk.bf16.vlgmr.msra.gmra.mxu1 %vm263_vm1, %v575_v14 }
  0x16   : > { %563 = vmatmul.msk.bf16.vlgmr.msra.gmra.mxu2 %vm263_vm1, %v575_v14  ;;  %567 = vmatmul.msk.bf16.vlgmr.msra.gmra.mxu3 %vm263_vm1, %v575_v14 }
  0x25   : > { %556 = vmatmul.msk.bf16.gmra.mxu0 %vm263_vm1, %v576_v15  ;;  %560 = vmatmul.msk.bf16.gmra.mxu1 %vm263_vm1, %v576_v15 }
  0x26   : > { %564 = vmatmul.msk.bf16.gmra.mxu2 %vm263_vm1, %v576_v15  ;;  %568 = vmatmul.msk.bf16.gmra.mxu3 %vm263_vm1, %v576_v15 }
  0x35   : > { %557 = vmatmul.msk.bf16.gmra.mxu0 %vm263_vm1, %v577_v16  ;;  %561 = vmatmul.msk.bf16.gmra.mxu1 %vm263_vm1, %v577_v16 }
  0x36   : > { %565 = vmatmul.msk.bf16.gmra.mxu2 %vm263_vm1, %v577_v16  ;;  %569 = vmatmul.msk.bf16.gmra.mxu3 %vm263_vm1, %v577_v16 }
  0x45   : > { %558 = vmatmul.msk.bf16.gmra.mxu0 %vm263_vm1, %v578_v17  ;;  %562 = vmatmul.msk.bf16.gmra.mxu1 %vm263_vm1, %v578_v17 }
  0x46   : > { %566 = vmatmul.msk.bf16.gmra.mxu2 %vm263_vm1, %v578_v17  ;;  %570 = vmatmul.msk.bf16.gmra.mxu3 %vm263_vm1, %v578_v17 }
  0x92   : > { %v298_v21 = vpop.f32.mrf.mxu0  ;;  %v327_v22 = vpop.f32.mrf.mxu1 }
  0x93   : > { %v299_v23 = vadd.f32 %v298_v21, %v696_v19  ;;  %v328_v24 = vadd.f32 %v327_v22, %v698_v20 }
  0x95   : > { %v405_v25 = vpack.c.bf16 %v328_v24, %v299_v23 }
  0x97   : > { %421 = vst [vmem:[%s706_s29] sm:$0xff] %v405_v25 }
  0x99   : > { %v356_v28 = vpop.f32.mrf.mxu2  ;;  %v385_v29 = vpop.f32.mrf.mxu3 }
  0x9a   : > { %v357_v30 = vadd.f32 %v356_v28, %v708_v26  ;;  %v386_v31 = vadd.f32 %v385_v29, %v710_v27  ;;  %v300_v32 = vpop.f32.mrf.mxu0  ;;  %v329_v33 = vpop.f32.mrf.mxu1 }
  0x9b   : > { %v301_v34 = vadd.f32 %v300_v32, %v696_v19  ;;  %v330_v35 = vadd.f32 %v329_v33, %v698_v20 }
  0x9c   : > { %v406_v36 = vpack.c.bf16 %v386_v31, %v357_v30 }
  0x9d   : > { %v407_v37 = vpack.c.bf16 %v330_v35, %v301_v34 }
  0x9e   : > { %422 = vst [vmem:[%s706_s29 + $0x8] sm:$0xff] %v406_v36 }
  0x9f   : > { %423 = vst [vmem:[%s706_s29 + $0x10] sm:$0xff] %v407_v37 }
  0xa1   : > { %v358_v38 = vpop.f32.mrf.mxu2  ;;  %v387_v39 = vpop.f32.mrf.mxu3 }
  0xa2   : > { %v359_v40 = vadd.f32 %v358_v38, %v708_v26  ;;  %v388_v41 = vadd.f32 %v387_v39, %v710_v27  ;;  %v303_v42 = vpop.f32.mrf.mxu0  ;;  %v332_v43 = vpop.f32.mrf.mxu1 }
  0xa3   : > { %v304_v44 = vadd.f32 %v303_v42, %v696_v19  ;;  %v333_v45 = vadd.f32 %v332_v43, %v698_v20 }
  0xa4   : > { %v408_v46 = vpack.c.bf16 %v388_v41, %v359_v40 }
  0xa5   : > { %v409_v47 = vpack.c.bf16 %v333_v45, %v304_v44 }
  0xa6   : > { %424 = vst [vmem:[%s706_s29 + $0x18] sm:$0xff] %v408_v46 }
  0xa7   : > { %425 = vst [vmem:[%s706_s29 + $0x20] sm:$0xff] %v409_v47 }
  0xa9   : > { %v361_v48 = vpop.f32.mrf.mxu2  ;;  %v390_v49 = vpop.f32.mrf.mxu3 }
  0xaa   : > { %v362_v50 = vadd.f32 %v361_v48, %v708_v26  ;;  %v391_v51 = vadd.f32 %v390_v49, %v710_v27  ;;  %v305_v52 = vpop.f32.mrf.mxu0  ;;  %v334_v53 = vpop.f32.mrf.mxu1 }
  0xab   : > { %v306_v54 = vadd.f32 %v305_v52, %v696_v19  ;;  %v335_v55 = vadd.f32 %v334_v53, %v698_v20 }
  0xac   : > { %v410_v56 = vpack.c.bf16 %v391_v51, %v362_v50 }
  0xad   : > { %v411_v57 = vpack.c.bf16 %v335_v55, %v306_v54 }
  0xae   : > { %426 = vst [vmem:[%s706_s29 + $0x28] sm:$0xff] %v410_v56 }
  0xaf   : > { %427 = vst [vmem:[%s706_s29 + $0x30] sm:$0xff] %v411_v57 }
  0xb1   : > { %v363_v58 = vpop.f32.mrf.mxu2  ;;  %v392_v59 = vpop.f32.mrf.mxu3 }
  0xb2   : > { %v364_v60 = vadd.f32 %v363_v58, %v708_v26  ;;  %v393_v61 = vadd.f32 %v392_v59, %v710_v27  ;;  %v308_v62 = vpop.f32.mrf.mxu0  ;;  %v337_v63 = vpop.f32.mrf.mxu1 }
  0xb3   : > { %v309_v0 = vadd.f32 %v308_v62, %v696_v19  ;;  %v338_v1 = vadd.f32 %v337_v63, %v698_v20 }
  0xb4   : > { %v412_v2 = vpack.c.bf16 %v393_v61, %v364_v60 }
  0xb5   : > { %v413_v3 = vpack.c.bf16 %v338_v1, %v309_v0 }
  0xb6   : > { %428 = vst [vmem:[%s706_s29 + $0x38] sm:$0xff] %v412_v2 }
  0xb7   : > { %429 = vst [vmem:[%s706_s29 + $0x40] sm:$0xff] %v413_v3 }
  0xb9   : > { %v366_v4 = vpop.f32.mrf.mxu2  ;;  %v395_v5 = vpop.f32.mrf.mxu3 }
  0xba   : > { %v367_v6 = vadd.f32 %v366_v4, %v708_v26  ;;  %v396_v7 = vadd.f32 %v395_v5, %v710_v27  ;;  %v310_v8 = vpop.f32.mrf.mxu0  ;;  %v339_v9 = vpop.f32.mrf.mxu1 }
  0xbb   : > { %v311_v10 = vadd.f32 %v310_v8, %v696_v19  ;;  %v340_v11 = vadd.f32 %v339_v9, %v698_v20 }
  0xbc   : > { %v414_v12 = vpack.c.bf16 %v396_v7, %v367_v6 }
  0xbd   : > { %v415_v13 = vpack.c.bf16 %v340_v11, %v311_v10 }
  0xbe   : > { %430 = vst [vmem:[%s706_s29 + $0x48] sm:$0xff] %v414_v12 }
  0xbf   : > { %431 = vst [vmem:[%s706_s29 + $0x50] sm:$0xff] %v415_v13 }
  0xc1   : > { %v368_v14 = vpop.f32.mrf.mxu2  ;;  %v397_v15 = vpop.f32.mrf.mxu3 }
  0xc2   : > { %v369_v16 = vadd.f32 %v368_v14, %v708_v26  ;;  %v398_v17 = vadd.f32 %v397_v15, %v710_v27  ;;  %v313_v18 = vpop.f32.mrf.mxu0  ;;  %v342_v21 = vpop.f32.mrf.mxu1 }
  0xc3   : > { %v314_v22 = vadd.f32 %v313_v18, %v696_v19  ;;  %v343_v23 = vadd.f32 %v342_v21, %v698_v20 }
  0xc4   : > { %v416_v24 = vpack.c.bf16 %v398_v17, %v369_v16 }
  0xc5   : > { %v417_v25 = vpack.c.bf16 %v343_v23, %v314_v22 }
  0xc6   : > { %432 = vst [vmem:[%s706_s29 + $0x58] sm:$0xff] %v416_v24 }
  0xc7   : > { %433 = vst [vmem:[%s706_s29 + $0x60] sm:$0xff] %v417_v25 }
  0xc9   : > { %v371_v28 = vpop.f32.mrf.mxu2  ;;  %v400_v29 = vpop.f32.mrf.mxu3 }
  0xca   : > { %v372_v30 = vadd.f32 %v371_v28, %v708_v26  ;;  %v401_v31 = vadd.f32 %v400_v29, %v710_v27  ;;  %v315_v32 = vpop.f32.mrf.mxu0  ;;  %v344_v33 = vpop.f32.mrf.mxu1 }
  0xcb   : > { %v316_v34 = vadd.f32 %v315_v32, %v696_v19  ;;  %v345_v35 = vadd.f32 %v344_v33, %v698_v20 }
  0xcc   : > { %v418_v36 = vpack.c.bf16 %v401_v31, %v372_v30 }
  0xcd   : > { %v419_v37 = vpack.c.bf16 %v345_v35, %v316_v34 }
  0xce   : > { %434 = vst [vmem:[%s706_s29 + $0x68] sm:$0xff] %v418_v36 }
  0xcf   : > { %435 = vst [vmem:[%s706_s29 + $0x70] sm:$0xff] %v419_v37 }
  0xd1   : > { %v373_v38 = vpop.f32.mrf.mxu2  ;;  %v402_v39 = vpop.f32.mrf.mxu3 }
  0xd2   : > { %v374_v40 = vadd.f32 %v373_v38, %v708_v26  ;;  %v403_v41 = vadd.f32 %v402_v39, %v710_v27 }
  0xd4   : > { %v420_v42 = vpack.c.bf16 %v403_v41, %v374_v40 }
  0xd6   : > { %436 = vst [vmem:[%s706_s29 + $0x78] sm:$0xff] %v420_v42 }
  0xd7 PF: > { %s13_s14 = sadd.s32 1, %s625_s14   ;;  %s771_s12 = smov %s621_s13 }
  0xd8   : > { %p10_p5 = scmp.ge.s32.totalorder %s13_s14, 4   ;;  %s772_s13 = smov %s774_s15 }
  0xda   :  { %12 = sbr.rel (!%p10_p5) target bundleno = 2 (0x2), region = 62 }

// kernel: upblock_forward.7
= control target key start
LH: loop header
LB: loop body
LE: loop exit
PB: predicated region body
PF: predicated region fallthrough
CT: control target
= control target key end

     0   :  { %s685_s12 = smov 0   ;;  %s819_s0 = inlined_call_operand.vmem [shape: bf16[512,128], index: 0, kind: input, shape index: {}]   ;;  %s820_s1 = inlined_call_operand.vmem [shape: f32[1,128], index: 1, kind: input, shape index: {}]   ;;  %s821_s2 = inlined_call_operand.vmem [shape: f32[1,128], index: 2, kind: input, shape index: {}]   ;;  %s822_s3 = inlined_call_operand.vmem [shape: bf16[512,128], index: 3, kind: output, shape index: {}]  }
   0x1 LB: > { %s462_s13 = sadd.s32 4294967295, %s663_s12   ;;  %p466_p0 = scmp.ge.s32.totalorder %s663_s12, 1  ;;  %s663_s12 = sphi %s685_s12, %s13_s12  }
   0x2   : > { %p138_p1 = scmp.lt.s32.totalorder %s663_s12, 3 }
   0x4   : > { %p139_p2 = pnand %p466_p0, %p138_p1 }
   0x5   : > { %s467_s14 = sshll.u32 (!%p139_p2), %s462_s13, 5 }
   0x6   : > { %142 = sbr.rel (%p139_p2) target bundleno = 57 (0x39), region = 32  ;;  %p163_p3 = scmp.lt.s32.totalorder (!%p139_p2), %s467_s14, 63 }
   0xb   : > { %s824_s14 = smov (!%p163_p3, %s467_s14), 63  ;;  %v706_v0 = vld [vmem:[%s820_s1] ss:$0 sm:$0xff] }
   0xc   : > { %s468_s15 = sshll.u32 %s824_s14, 2  ;;  %v714_v6 = vld [vmem:[%s821_s2] ss:$0 sm:$0xff] }
   0xd   : > { %s701_s18 = scalar_lea.vmem %s819_s0, %s468_s15  ;;  %s740_s25 = scalar_lea.vmem %s822_s3, %s468_s15 }
   0xe   : > { %v474_v1 = vld [vmem:[%s701_s18] sm:$0xff]   ;;  %v617_v2 = vld [vmem:[%s701_s18 + $0x8] sm:$0xff]   ;;  %v618_v3 = vld [vmem:[%s701_s18 + $0x10] sm:$0xff]  }
   0xf   : > { %v475_v4 = vunpack.c.l.bf16 %v474_v1  ;;  %v476_v5 = vunpack.c.h.bf16 %v474_v1  ;;  %v479_v7 = vunpack.c.l.bf16 %v617_v2  ;;  %v480_v8 = vunpack.c.h.bf16 %v617_v2  ;;  %v619_v9 = vld [vmem:[%s701_s18 + $0x18] sm:$0xff]   ;;  %v620_v30 = vld [vmem:[%s701_s18 + $0x20] sm:$0xff]   ;;  %v621_v35 = vld [vmem:[%s701_s18 + $0x28] sm:$0xff]  }
  0x10   : > { %v483_v10 = vunpack.c.l.bf16 %v618_v3  ;;  %v484_v11 = vunpack.c.h.bf16 %v618_v3  ;;  %v487_v12 = vunpack.c.l.bf16 %v619_v9  ;;  %v488_v13 = vunpack.c.h.bf16 %v619_v9  ;;  %v622_v40 = vld [vmem:[%s701_s18 + $0x30] sm:$0xff]   ;;  %v623_v45 = vld [vmem:[%s701_s18 + $0x38] sm:$0xff]   ;;  %v624_v3 = vld [vmem:[%s701_s18 + $0x40] sm:$0xff]  }
  0x11   : > { %v242_v14 = vmul.f32 %v706_v0, %v475_v4  ;;  %v243_v15 = vmul.f32 %v706_v0, %v476_v5  ;;  %v244_v16 = vmul.f32 %v706_v0, %v479_v7  ;;  %v245_v17 = vmul.f32 %v706_v0, %v480_v8 }
  0x12   : > { %v246_v18 = vmul.f32 %v706_v0, %v483_v10  ;;  %v247_v19 = vmul.f32 %v706_v0, %v484_v11  ;;  %v248_v20 = vmul.f32 %v706_v0, %v487_v12  ;;  %v249_v21 = vmul.f32 %v706_v0, %v488_v13  ;;  %v625_v13 = vld [vmem:[%s701_s18 + $0x48] sm:$0xff]  }
  0x13   : > { %v278_v22 = vadd.f32 %v714_v6, %v242_v14  ;;  %v279_v23 = vadd.f32 %v714_v6, %v243_v15  ;;  %v280_v24 = vadd.f32 %v714_v6, %v244_v16  ;;  %v281_v25 = vadd.f32 %v714_v6, %v245_v17 }
  0x14   : > { %v282_v26 = vadd.f32 %v714_v6, %v246_v18  ;;  %v283_v27 = vadd.f32 %v714_v6, %v247_v19  ;;  %v284_v28 = vadd.f32 %v714_v6, %v248_v20  ;;  %v285_v29 = vadd.f32 %v714_v6, %v249_v21  ;;  %v626_v18 = vld [vmem:[%s701_s18 + $0x50] sm:$0xff]  }
  0x15   : > { %v310_v31 = vmax.f32 %v278_v22, 0.0  ;;  %v311_v32 = vmax.f32 %v279_v23, 0.0  ;;  %v312_v33 = vmax.f32 %v280_v24, 0.0  ;;  %v313_v34 = vmax.f32 %v281_v25, 0.0  ;;  %v627_v23 = vld [vmem:[%s701_s18 + $0x58] sm:$0xff]  }
  0x16   : > { %v314_v36 = vmax.f32 %v282_v26, 0.0  ;;  %v315_v37 = vmax.f32 %v283_v27, 0.0  ;;  %v316_v38 = vmax.f32 %v284_v28, 0.0  ;;  %v317_v39 = vmax.f32 %v285_v29, 0.0 }
  0x17   : > { %v540_v41 = vpack.c.bf16 %v311_v32, %v310_v31  ;;  %v545_v42 = vpack.c.bf16 %v313_v34, %v312_v33  ;;  %v491_v43 = vunpack.c.l.bf16 %v620_v30  ;;  %v492_v44 = vunpack.c.h.bf16 %v620_v30 }
  0x18   : > { %v550_v46 = vpack.c.bf16 %v315_v37, %v314_v36  ;;  %v555_v47 = vpack.c.bf16 %v317_v39, %v316_v38  ;;  %v495_v48 = vunpack.c.l.bf16 %v621_v35  ;;  %v496_v49 = vunpack.c.h.bf16 %v621_v35 }
  0x19   : > { %541 = vst [vmem:[%s740_s25] sm:$0xff] %v540_v41   ;;  %v250_v50 = vmul.f32 %v706_v0, %v491_v43  ;;  %v251_v51 = vmul.f32 %v706_v0, %v492_v44  ;;  %v499_v52 = vunpack.c.l.bf16 %v622_v40  ;;  %v500_v53 = vunpack.c.h.bf16 %v622_v40  ;;  %v628_v40 = vld [vmem:[%s701_s18 + $0x60] sm:$0xff]  }
  0x1a   : > { %632 = vst [vmem:[%s740_s25 + $0x8] sm:$0xff] %v545_v42   ;;  %v252_v54 = vmul.f32 %v706_v0, %v495_v48  ;;  %v253_v55 = vmul.f32 %v706_v0, %v496_v49  ;;  %v503_v56 = vunpack.c.l.bf16 %v623_v45  ;;  %v504_v57 = vunpack.c.h.bf16 %v623_v45 }
  0x1b   : > { %633 = vst [vmem:[%s740_s25 + $0x10] sm:$0xff] %v550_v46   ;;  %v286_v58 = vadd.f32 %v714_v6, %v250_v50  ;;  %v287_v59 = vadd.f32 %v714_v6, %v251_v51  ;;  %v254_v60 = vmul.f32 %v706_v0, %v499_v52  ;;  %v255_v61 = vmul.f32 %v706_v0, %v500_v53  ;;  %v629_v53 = vld [vmem:[%s701_s18 + $0x68] sm:$0xff]  }
  0x1c   : > { %634 = vst [vmem:[%s740_s25 + $0x18] sm:$0xff] %v555_v47   ;;  %v288_v62 = vadd.f32 %v714_v6, %v252_v54  ;;  %v289_v63 = vadd.f32 %v714_v6, %v253_v55  ;;  %v256_v1 = vmul.f32 %v706_v0, %v503_v56  ;;  %v257_v2 = vmul.f32 %v706_v0, %v504_v57 }
  0x1d   : > { %v318_v4 = vmax.f32 %v286_v58, 0.0  ;;  %v319_v5 = vmax.f32 %v287_v59, 0.0  ;;  %v290_v7 = vadd.f32 %v714_v6, %v254_v60  ;;  %v291_v8 = vadd.f32 %v714_v6, %v255_v61  ;;  %v630_v58 = vld [vmem:[%s701_s18 + $0x70] sm:$0xff]  }
  0x1e   : > { %v320_v9 = vmax.f32 %v288_v62, 0.0  ;;  %v321_v10 = vmax.f32 %v289_v63, 0.0  ;;  %v292_v11 = vadd.f32 %v714_v6, %v256_v1  ;;  %v293_v12 = vadd.f32 %v714_v6, %v257_v2  ;;  %v631_v63 = vld [vmem:[%s701_s18 + $0x78] sm:$0xff]  }
  0x1f   : > { %v560_v14 = vpack.c.bf16 %v319_v5, %v318_v4  ;;  %v322_v15 = vmax.f32 %v290_v7, 0.0  ;;  %v323_v16 = vmax.f32 %v291_v8, 0.0  ;;  %v507_v17 = vunpack.c.l.bf16 %v624_v3 }
  0x20   : > { %v565_v19 = vpack.c.bf16 %v321_v10, %v320_v9  ;;  %v324_v20 = vmax.f32 %v292_v11, 0.0  ;;  %v325_v21 = vmax.f32 %v293_v12, 0.0  ;;  %v508_v22 = vunpack.c.h.bf16 %v624_v3 }
  0x21   : > { %635 = vst [vmem:[%s740_s25 + $0x20] sm:$0xff] %v560_v14   ;;  %v570_v24 = vpack.c.bf16 %v323_v16, %v322_v15  ;;  %v258_v25 = vmul.f32 %v706_v0, %v507_v17  ;;  %v511_v26 = vunpack.c.l.bf16 %v625_v13  ;;  %v512_v27 = vunpack.c.h.bf16 %v625_v13 }
  0x22   : > { %636 = vst [vmem:[%s740_s25 + $0x28] sm:$0xff] %v565_v19   ;;  %v575_v28 = vpack.c.bf16 %v325_v21, %v324_v20  ;;  %v259_v29 = vmul.f32 %v706_v0, %v508_v22  ;;  %v515_v30 = vunpack.c.l.bf16 %v626_v18  ;;  %v516_v31 = vunpack.c.h.bf16 %v626_v18 }
  0x23   : > { %637 = vst [vmem:[%s740_s25 + $0x30] sm:$0xff] %v570_v24   ;;  %v294_v32 = vadd.f32 %v714_v6, %v258_v25  ;;  %v260_v33 = vmul.f32 %v706_v0, %v511_v26  ;;  %v261_v34 = vmul.f32 %v706_v0, %v512_v27  ;;  %v519_v35 = vunpack.c.l.bf16 %v627_v23 }
  0x24   : > { %638 = vst [vmem:[%s740_s25 + $0x38] sm:$0xff] %v575_v28   ;;  %v295_v36 = vadd.f32 %v714_v6, %v259_v29  ;;  %v262_v37 = vmul.f32 %v706_v0, %v515_v30  ;;  %v263_v38 = vmul.f32 %v706_v0, %v516_v31  ;;  %v520_v39 = vunpack.c.h.bf16 %v627_v23 }
  0x25   : > { %v326_v41 = vmax.f32 %v294_v32, 0.0  ;;  %v296_v42 = vadd.f32 %v714_v6, %v260_v33  ;;  %v297_v43 = vadd.f32 %v714_v6, %v261_v34  ;;  %v264_v44 = vmul.f32 %v706_v0, %v519_v35 }
  0x26   : > { %v327_v45 = vmax.f32 %v295_v36, 0.0  ;;  %v298_v46 = vadd.f32 %v714_v6, %v262_v37  ;;  %v299_v47 = vadd.f32 %v714_v6, %v263_v38  ;;  %v265_v48 = vmul.f32 %v706_v0, %v520_v39 }
  0x27   : > { %v328_v49 = vmax.f32 %v296_v42, 0.0  ;;  %v329_v50 = vmax.f32 %v297_v43, 0.0  ;;  %v300_v51 = vadd.f32 %v714_v6, %v264_v44  ;;  %v523_v52 = vunpack.c.l.bf16 %v628_v40 }
  0x28   : > { %v580_v54 = vpack.c.bf16 %v327_v45, %v326_v41  ;;  %v330_v55 = vmax.f32 %v298_v46, 0.0  ;;  %v331_v56 = vmax.f32 %v299_v47, 0.0  ;;  %v301_v57 = vadd.f32 %v714_v6, %v265_v48 }
  0x29   : > { %v585_v59 = vpack.c.bf16 %v329_v50, %v328_v49  ;;  %v332_v60 = vmax.f32 %v300_v51, 0.0  ;;  %v524_v61 = vunpack.c.h.bf16 %v628_v40  ;;  %v266_v62 = vmul.f32 %v706_v0, %v523_v52 }
  0x2a   : > { %639 = vst [vmem:[%s740_s25 + $0x40] sm:$0xff] %v580_v54   ;;  %v590_v1 = vpack.c.bf16 %v331_v56, %v330_v55  ;;  %v333_v2 = vmax.f32 %v301_v57, 0.0  ;;  %v527_v3 = vunpack.c.l.bf16 %v629_v53  ;;  %v528_v4 = vunpack.c.h.bf16 %v629_v53 }
  0x2b   : > { %640 = vst [vmem:[%s740_s25 + $0x48] sm:$0xff] %v585_v59   ;;  %v267_v5 = vmul.f32 %v706_v0, %v524_v61  ;;  %v302_v7 = vadd.f32 %v714_v6, %v266_v62  ;;  %v531_v8 = vunpack.c.l.bf16 %v630_v58  ;;  %v532_v9 = vunpack.c.h.bf16 %v630_v58 }
  0x2c   : > { %641 = vst [vmem:[%s740_s25 + $0x50] sm:$0xff] %v590_v1   ;;  %v595_v10 = vpack.c.bf16 %v333_v2, %v332_v60  ;;  %v268_v11 = vmul.f32 %v706_v0, %v527_v3  ;;  %v269_v12 = vmul.f32 %v706_v0, %v528_v4  ;;  %v535_v13 = vunpack.c.l.bf16 %v631_v63 }
  0x2d   : > { %v303_v14 = vadd.f32 %v714_v6, %v267_v5  ;;  %v334_v15 = vmax.f32 %v302_v7, 0.0  ;;  %v270_v16 = vmul.f32 %v706_v0, %v531_v8  ;;  %v271_v17 = vmul.f32 %v706_v0, %v532_v9 }
  0x2e   : > { %642 = vst [vmem:[%s740_s25 + $0x58] sm:$0xff] %v595_v10   ;;  %v304_v18 = vadd.f32 %v714_v6, %v268_v11  ;;  %v305_v19 = vadd.f32 %v714_v6, %v269_v12  ;;  %v536_v20 = vunpack.c.h.bf16 %v631_v63  ;;  %v272_v21 = vmul.f32 %v706_v0, %v535_v13 }
  0x2f   : > { %v335_v22 = vmax.f32 %v303_v14, 0.0  ;;  %v306_v23 = vadd.f32 %v714_v6, %v270_v16  ;;  %v307_v24 = vadd.f32 %v714_v6, %v271_v17 }
  0x30   : > { %v336_v25 = vmax.f32 %v304_v18, 0.0  ;;  %v337_v26 = vmax.f32 %v305_v19, 0.0  ;;  %v273_v27 = vmul.f32 %v706_v0, %v536_v20  ;;  %v308_v28 = vadd.f32 %v714_v6, %v272_v21 }
  0x31   : > { %v600_v29 = vpack.c.bf16 %v335_v22, %v334_v15  ;;  %v338_v30 = vmax.f32 %v306_v23, 0.0  ;;  %v339_v31 = vmax.f32 %v307_v24, 0.0 }
  0x32   : > { %v605_v32 = vpack.c.bf16 %v337_v26, %v336_v25  ;;  %v309_v33 = vadd.f32 %v714_v6, %v273_v27  ;;  %v340_v34 = vmax.f32 %v308_v28, 0.0 }
  0x33   : > { %643 = vst [vmem:[%s740_s25 + $0x60] sm:$0xff] %v600_v29   ;;  %v610_v35 = vpack.c.bf16 %v339_v31, %v338_v30 }
  0x34   : > { %644 = vst [vmem:[%s740_s25 + $0x68] sm:$0xff] %v605_v32   ;;  %v341_v36 = vmax.f32 %v309_v33, 0.0 }
  0x35   : > { %645 = vst [vmem:[%s740_s25 + $0x70] sm:$0xff] %v610_v35  }
  0x36   : > { %v615_v37 = vpack.c.bf16 %v341_v36, %v340_v34 }
  0x38   : > { %646 = vst [vmem:[%s740_s25 + $0x78] sm:$0xff] %v615_v37  }
  0x39 PF: > { %s13_s12 = sadd.s32 1, %s663_s12  }
  0x3a   : > { %p10_p4 = scmp.ge.s32.totalorder %s13_s12, 4  }
  0x3c   :  { %12 = sbr.rel (!%p10_p4) target bundleno = 1 (0x1), region = 62 }

// kernel: upblock_forward.8
= control target key start
LH: loop header
LB: loop body
LE: loop exit
PB: predicated region body
PF: predicated region fallthrough
CT: control target
= control target key end

     0   :  { %s3656_s12 = smov 0   ;;  %s3658_s13 = smov 0   ;;  %s4680_s0 = inlined_call_operand.vmem [shape: bf16[2,18,18,128], index: 0, kind: input, shape index: {}]   ;;  %s4681_s1 = inlined_call_operand.vmem [shape: bf16[3,3,128,128], index: 1, kind: input, shape index: {}]   ;;  %s4682_s2 = inlined_call_operand.vmem [shape: bf16[2,256,128], index: 2, kind: output, shape index: {0}]   ;;  %s4683_s3 = inlined_call_operand.vmem [shape: f32[2,2,2,128], index: 3, kind: output, shape index: {1}]  }
   0x1   :  { %s3660_s14 = smov 0   ;;  %s3662_s15 = smov 0  }
   0x2   :  { %s3664_s16 = smov 0  }
   0x3 LB: > { %s23_s17 = sadd.s32 1, %s3626_s14  ;;  %s26_s18 = sadd.s32 1, %s3630_s15  ;;  %s3634_s16 = sphi %s3664_s16, %s14_s16   ;;  %s3630_s15 = sphi %s3662_s15, %s4702_s15   ;;  %s3626_s14 = sphi %s3660_s14, %s4701_s14   ;;  %s3622_s13 = sphi %s3658_s13, %s4700_s13   ;;  %s3618_s12 = sphi %s3656_s12, %s4699_s12  }
   0x4   : > { %p24_p0 = scmp.ge.s32.totalorder %s23_s17, 2  ;;  %p2784_p1 = scmp.ge.s32.totalorder %s3634_s16, 1 }
   0x5   : > { %p156_p2 = scmp.lt.s32.totalorder %s3634_s16, 5 }
   0x6   : > { %s4704_s17 = smov (%p24_p0, %s23_s17), 0  ;;  %s4706_s18 = smov (!%p24_p0, %s26_s18), %s3630_s15 }
   0x7   : > { %p157_p3 = pnand %p2784_p1, %p156_p2  ;;  %p28_p4 = scmp.ge.s32.totalorder %s4706_s18, 2 }
   0x9   : > { %s4708_s18 = smov (%p28_p4, %s4706_s18), 0  ;;  %160 = sbr.rel (%p157_p3) target bundleno = 482 (0x1e2), region = 28 }
   0xe   : > { %v3408_v0 = vld [vmem:[%s4681_s1 + $0x78] sm:$0xff]  ;;  %p192_p5 = scmp.lt.s32.totalorder %s3622_s13, 1  ;;  %v3407_v1 = vld [vmem:[%s4681_s1 + $0x70] sm:$0xff]  ;;  %s3384_s23 = smul.u32 96, %s3618_s12  ;;  %v3406_v2 = vld [vmem:[%s4681_s1 + $0x68] sm:$0xff]  ;;  %vm753_vm3 = vcmask 1042432  }
   0xf   : > { %3528 = vmatpush.bf16.msra.mxu1 %v3408_v0  ;;  %3529 = vmatpush.bf16.msra.mxu2 %v3408_v0  ;;  %vm259_vm0 = vsmask.f32 3328  ;;  %vm260_vm1 = vsmask.f32 7440  ;;  %v3405_v3 = vld [vmem:[%s4681_s1 + $0x60] sm:$0xff]  ;;  %v3404_v30 = vld [vmem:[%s4681_s1 + $0x58] sm:$0xff] }
  0x10   : > { %s4710_s13 = smov (!%p192_p5, %s3622_s13), 1  ;;  %3530 = vmatpush.bf16.msra.mxu3 %v3408_v0  ;;  %551 = vmatpush.bf16.msra.mxu0 %v3408_v0  ;;  %vm3744_vm2 = vmor %vm259_vm0, %vm260_vm1  ;;  %v3403_v50 = vld [vmem:[%s4681_s1 + $0x50] sm:$0xff]  ;;  %vm754_vm4 = vcmask 1046532   ;;  %p209_p7 = scmp.lt.s32.totalorder %s3618_s12, 1  ;;  %vm2636_vm6 = vcmask 1040384  }
  0x11   : > { %s3552_s24 = smul.u32 216, %s4710_s13  ;;  %vm3973_vm5 = vmor %vm753_vm3, %vm754_vm4  ;;  %s2787_s9 = sshll.u32 %s4710_s13, 5 }
  0x12   : > { %s2789_s22 = sshll.u32 %s4710_s13, 1 }
  0x13   : > { %3531 = vmatpush.bf16.msra.mxu1 %v3407_v1  ;;  %3532 = vmatpush.bf16.msra.mxu2 %v3407_v1  ;;  %s196_s29 = scalar_lea.vmem %s4680_s0, %s3552_s24 }
  0x14   : > { %3533 = vmatpush.bf16.msra.mxu3 %v3407_v1  ;;  %552 = vmatpush.bf16.msra.mxu0 %v3407_v1  ;;  %s3704_s30 = scalar_lea.vmem %s196_s29, %s3384_s23 }
  0x15   : > { %v3710_v4 = vld [vmem:[%s3704_s30 + $0x18] sm:$0xf]  ;;  %v3713_v5 = vld [vmem:[%s3704_s30 + $0x1c] sm:$0xf]  ;;  %v3716_v6 = vld [vmem:[%s3704_s30 + $0x20] sm:$0x1] }
  0x16   : > { %v311_v7 = vshrl.u32 %v3710_v4, 16  ;;  %v314_v8 = vshll.u32 %v3710_v4, 16  ;;  %v320_v9 = vshll.u32 %v3713_v5, 16  ;;  %v324_v10 = vshrl.u32 %v3713_v5, 16  ;;  %v3723_v11 = vld [vmem:[%s3704_s30 + $0x30] sm:$0xf] }
  0x17   : > { %3534 = vmatpush.bf16.msra.mxu1 %v3406_v2  ;;  %3535 = vmatpush.bf16.msra.mxu2 %v3406_v2  ;;  %v330_v12 = vshll.u32 %v3716_v6, 16  ;;  %v3727_v13 = vld [vmem:[%s3704_s30 + $0x34] sm:$0xf]  ;;  %v3730_v14 = vld [vmem:[%s3704_s30 + $0x38] sm:$0x1]  ;;  %v359_v15 = vshrl.u32 %v3723_v11, 16 }
  0x18   : > { %3536 = vmatpush.bf16.msra.mxu3 %v3406_v2  ;;  %553 = vmatpush.bf16.msra.mxu0 %v3406_v2  ;;  %v313_v16 = vrot.slane %v311_v7, 4  ;;  %v316_v17 = vrot.slane %v314_v8, 5  ;;  %v322_v18 = vrot.slane %v320_v9, 5  ;;  %v326_v19 = vrot.slane %v324_v10, 4  ;;  %v237_v20 = vld [vmem:[%s3704_s30 + $0x48] sm:$0xf] }
  0x19   : > { %v332_v21 = vrot.slane %v330_v12, 5  ;;  %v361_v22 = vrot.slane %v359_v15, 4  ;;  %v362_v23 = vshll.u32 %v3723_v11, 16  ;;  %v368_v24 = vshll.u32 %v3727_v13, 16  ;;  %v238_v29 = vld [vmem:[%s3704_s30 + $0x4c] sm:$0xf] }
  0x1a   : > { %v317_v25 = vor.u32 %v316_v17, %v313_v16  ;;  %v327_v26 = vor.u32 %v326_v19, %v322_v18  ;;  %v372_v27 = vshrl.u32 %v3727_v13, 16  ;;  %v378_v28 = vshll.u32 %v3730_v14, 16  ;;  %v239_v41 = vld [vmem:[%s3704_s30 + $0x50] sm:$0x1]  ;;  %v3754_v49 = vld [vmem:[%s3704_s30] sm:$0xf] }
  0x1b   : > { %3537 = vmatpush.bf16.msra.mxu1 %v3405_v3  ;;  %3538 = vmatpush.bf16.msra.mxu2 %v3405_v3  ;;  %v364_v32 = vrot.slane %v362_v23, 5  ;;  %v370_v33 = vrot.slane %v368_v24, 5  ;;  %v407_v34 = vshrl.u32 %v237_v20, 16  ;;  %v410_v35 = vshll.u32 %v237_v20, 16  ;;  %v3768_v62 = vld [vmem:[%s3704_s30 + $0x4] sm:$0xf] }
  0x1c   : > { %3539 = vmatpush.bf16.msra.mxu3 %v3405_v3  ;;  %554 = vmatpush.bf16.msra.mxu0 %v3405_v3  ;;  %v318_v36 = vrot.slane %v317_v25, 4  ;;  %v328_v37 = vrot.slane %v327_v26, 4  ;;  %v374_v38 = vrot.slane %v372_v27, 4  ;;  %v380_v39 = vrot.slane %v378_v28, 5  ;;  %v3776_v7 = vld [vmem:[%s3704_s30 + $0x8] sm:$0x1] }
  0x1d   : > { %v365_v40 = vor.u32 %v364_v32, %v361_v22  ;;  %v409_v42 = vrot.slane %v407_v34, 4  ;;  %v412_v43 = vrot.slane %v410_v35, 5  ;;  %v416_v44 = vshll.u32 %v238_v29, 16  ;;  %v3779_v8 = vld [vmem:[%s3704_s30 + $0x24] sm:$0xf]  ;;  %v3402_v9 = vld [vmem:[%s4681_s1 + $0x48] sm:$0xff] }
  0x1e   : > { %v323_v45 = vsel %vm3744_vm2, %v318_v36, %v322_v18  ;;  %v333_v46 = vsel %vm3744_vm2, %v328_v37, %v332_v21  ;;  %v375_v47 = vor.u32 %v374_v38, %v370_v33  ;;  %v420_v48 = vshrl.u32 %v238_v29, 16  ;;  %v3794_v21 = vld [vmem:[%s3704_s30 + $0x28] sm:$0xf]  ;;  %v3800_v25 = vld [vmem:[%s3704_s30 + $0x2c] sm:$0x1]  ;;  %v3416_v38 = vld [vmem:[%s4681_s1 + $0xb8] sm:$0xff] }
  0x1f   : > { %3540 = vmatpush.bf16.msra.mxu1 %v3404_v30  ;;  %3541 = vmatpush.bf16.msra.mxu2 %v3404_v30  ;;  %v3759_v51 = vunpack.c.l.b16 %v323_v45  ;;  %v3761_v52 = vunpack.c.l.b16 %v333_v46  ;;  %v366_v53 = vrot.slane %v365_v40, 4  ;;  %v413_v54 = vor.u32 %v412_v43, %v409_v42  ;;  %v3807_v32 = vld [vmem:[%s3704_s30 + $0x3c] sm:$0xf] }
  0x20   : > { %3542 = vmatpush.bf16.msra.mxu3 %v3404_v30  ;;  %555 = vmatpush.bf16.msra.mxu0 %v3404_v30  ;;  %v376_v55 = vrot.slane %v375_v47, 4  ;;  %v418_v56 = vrot.slane %v416_v44, 5  ;;  %v422_v57 = vrot.slane %v420_v48, 4  ;;  %v426_v58 = vshll.u32 %v239_v41, 16  ;;  %v3400_v44 = vld [vmem:[%s4681_s1 + $0x38] sm:$0xff] }
  0x21   : > { %v489_v59 = vpack.c.b16 %v3761_v52, %v3759_v51  ;;  %v371_v60 = vsel %vm3744_vm2, %v366_v53, %v370_v33  ;;  %v414_v61 = vrot.slane %v413_v54, 4  ;;  %v263_v63 = vshrl.u32 %v3754_v49, 16  ;;  %v3401_v33 = vld [vmem:[%s4681_s1 + $0x40] sm:$0xff]  ;;  %v3439_v51 = vld [vmem:[%s4681_s1 + $0x130] sm:$0xff] }
  0x22   : > { %v381_v0 = vsel %vm3744_vm2, %v376_v55, %v380_v39  ;;  %v3773_v1 = vunpack.c.l.b16 %v371_v60  ;;  %v423_v2 = vor.u32 %v422_v57, %v418_v56  ;;  %v428_v3 = vrot.slane %v426_v58, 5  ;;  %v3823_v47 = vld [vmem:[%s3704_s30 + $0x40] sm:$0xf]  ;;  %v3440_v58 = vld [vmem:[%s4681_s1 + $0x138] sm:$0xff] }
  0x23   : > { %3543 = vmatpush.bf16.msra.mxu1 %v3403_v50  ;;  %3544 = vmatpush.bf16.msra.mxu2 %v3403_v50  ;;  %v3784_v10 = vunpack.c.l.b16 %v381_v0  ;;  %v419_v12 = vsel %vm3744_vm2, %v414_v61, %v418_v56  ;;  %v265_v15 = vrot.slane %v263_v63, 4  ;;  %v266_v16 = vshll.u32 %v3754_v49, 16  ;;  %v3827_v56 = vld [vmem:[%s3704_s30 + $0x44] sm:$0x1]  ;;  %v3836_v0 = vld [vmem:[%s3704_s30 + $0x54] sm:$0xf] }
  0x24   : > { %3545 = vmatpush.bf16.msra.mxu3 %v3403_v50  ;;  %556 = vmatpush.bf16.msra.mxu0 %v3403_v50  ;;  %v424_v17 = vrot.slane %v423_v2, 4  ;;  %v3789_v18 = vunpack.c.l.b16 %v419_v12  ;;  %v272_v19 = vshll.u32 %v3768_v62, 16  ;;  %v276_v20 = vshrl.u32 %v3768_v62, 16 }
  0x25   : > { %v491_v22 = vpack.c.b16 %v3784_v10, %v3773_v1  ;;  %v268_v23 = vrot.slane %v266_v16, 5  ;;  %v282_v24 = vshll.u32 %v3776_v7, 16  ;;  %v335_v26 = vshrl.u32 %v3779_v8, 16  ;;  %v3432_v1 = vld [vmem:[%s4681_s1 + $0xf8] sm:$0xff] }
  0x26   : > { %v429_v27 = vsel %vm3744_vm2, %v424_v17, %v428_v3  ;;  %v274_v28 = vrot.slane %v272_v19, 5  ;;  %v278_v29 = vrot.slane %v276_v20, 4  ;;  %v338_v30 = vshll.u32 %v3779_v8, 16  ;;  %v3399_v19 = vld [vmem:[%s4681_s1 + $0x30] sm:$0xff] }
  0x27   : > { %3546 = vmatpush.bf16.msra.mxu1 %v3402_v9  ;;  %3547 = vmatpush.bf16.msra.mxu2 %v3402_v9  ;;  %v484_v34 = vunpack.c.l.b16 %v429_v27  ;;  %v269_v35 = vor.u32 %v268_v23, %v265_v15  ;;  %v284_v36 = vrot.slane %v282_v24, 5  ;;  %v337_v37 = vrot.slane %v335_v26, 4  ;;  %v3415_v15 = vld [vmem:[%s4681_s1 + $0xb0] sm:$0xff]  ;;  %v3858_v26 = vld [vmem:[%s3704_s30 + $0x58] sm:$0xf] }
  0x28   : > { %3548 = vmatpush.bf16.msra.mxu3 %v3402_v9  ;;  %557 = vmatpush.bf16.msra.mxu0 %v3402_v9  ;;  %v279_v39 = vor.u32 %v278_v29, %v274_v28  ;;  %v340_v40 = vrot.slane %v338_v30, 5  ;;  %v344_v41 = vshll.u32 %v3794_v21, 16  ;;  %v348_v42 = vshrl.u32 %v3794_v21, 16  ;;  %v3868_v29 = vld [vmem:[%s3704_s30 + $0xc] sm:$0xf]  ;;  %v3431_v30 = vld [vmem:[%s4681_s1 + $0xf0] sm:$0xff] }
  0x29   : > { %v493_v43 = vpack.c.b16 %v484_v34, %v3789_v18  ;;  %v270_v45 = vrot.slane %v269_v35, 4  ;;  %v354_v46 = vshll.u32 %v3800_v25, 16  ;;  %v383_v48 = vshrl.u32 %v3807_v32, 16 }
  0x2a   : > { %v280_v50 = vrot.slane %v279_v39, 4  ;;  %v341_v53 = vor.u32 %v340_v40, %v337_v37  ;;  %v346_v54 = vrot.slane %v344_v41, 5  ;;  %v350_v55 = vrot.slane %v348_v42, 4  ;;  %v3414_v37 = vld [vmem:[%s4681_s1 + $0xa8] sm:$0xff] }
  0x2b   : > { %3549 = vmatpush.bf16.msra.mxu1 %v3401_v33  ;;  %3550 = vmatpush.bf16.msra.mxu2 %v3401_v33  ;;  %v275_v57 = vsel %vm3744_vm2, %v270_v45, %v274_v28  ;;  %v356_v60 = vrot.slane %v354_v46, 5  ;;  %v385_v61 = vrot.slane %v383_v48, 4  ;;  %v386_v63 = vshll.u32 %v3807_v32, 16  ;;  %v3398_v42 = vld [vmem:[%s4681_s1 + $0x28] sm:$0xff]  ;;  %v3888_v46 = vld [vmem:[%s3704_s30 + $0x10] sm:$0xf] }
  0x2c   : > { %3551 = vmatpush.bf16.msra.mxu3 %v3401_v33  ;;  %558 = vmatpush.bf16.msra.mxu0 %v3401_v33  ;;  %v285_v2 = vsel %vm3744_vm2, %v280_v50, %v284_v36  ;;  %v471_v3 = vunpack.c.l.b16 %v275_v57  ;;  %v342_v9 = vrot.slane %v341_v53, 4  ;;  %v351_v10 = vor.u32 %v350_v55, %v346_v54  ;;  %v3438_v50 = vld [vmem:[%s4681_s1 + $0x128] sm:$0xff] }
  0x2d   : > { %v472_v12 = vunpack.c.l.b16 %v285_v2  ;;  %v388_v16 = vrot.slane %v386_v63, 5  ;;  %v392_v17 = vshll.u32 %v3823_v47, 16  ;;  %v396_v18 = vshrl.u32 %v3823_v47, 16 }
  0x2e   : > { %569 = vmatmul.bf16.vlgmr.msra.gmra.mxu1 %v489_v59  ;;  %579 = vmatmul.bf16.vlgmr.msra.gmra.mxu2 %v491_v22  ;;  %v347_v20 = vsel %vm3744_vm2, %v342_v9, %v346_v54  ;;  %v352_v23 = vrot.slane %v351_v10, 4  ;;  %v402_v24 = vshll.u32 %v3827_v56, 16  ;;  %v431_v27 = vshrl.u32 %v3836_v0, 16  ;;  %v3865_v22 = vld [vmem:[%s3704_s30 + $0x5c] sm:$0x1] }
  0x2f   : > { %909 = vmatpush.bf16.msrb.mxu2 %v3416_v38  ;;  %696 = vmatpush.bf16.msrb.mxu1 %v3400_v44  ;;  %v487_v28 = vpack.c.b16 %v472_v12, %v471_v3  ;;  %v389_v52 = vor.u32 %v388_v16, %v385_v61  ;;  %v394_v59 = vrot.slane %v392_v17, 5  ;;  %v3875_v34 = vunpack.c.l.b16 %v347_v20  ;;  %v3413_v3 = vld [vmem:[%s4681_s1 + $0xa0] sm:$0xff] }
  0x30   : > { %589 = vmatmul.bf16.vlgmr.msra.gmra.mxu3 %v493_v43  ;;  %1469 = vmatpush.bf16.msrb.mxu0 %v3440_v58  ;;  %v357_v33 = vsel %vm3744_vm2, %v352_v23, %v356_v60  ;;  %v398_v35 = vrot.slane %v396_v18, 4  ;;  %v404_v36 = vrot.slane %v402_v24, 5  ;;  %v433_v39 = vrot.slane %v431_v27, 4  ;;  %v3899_v58 = vld [vmem:[%s3704_s30 + $0x14] sm:$0x1]  ;;  %v3430_v60 = vld [vmem:[%s4681_s1 + $0xe8] sm:$0xff] }
  0x31   : > { %1115 = vmatpush.bf16.msrb.mxu3 %v3432_v1  ;;  %559 = vmatmul.bf16.vlgmr.msra.gmra.mxu0 %v487_v28  ;;  %v390_v38 = vrot.slane %v389_v52, 4  ;;  %v434_v40 = vshll.u32 %v3836_v0, 16  ;;  %v440_v41 = vshll.u32 %v3858_v26, 16  ;;  %v444_v44 = vshrl.u32 %v3858_v26, 16  ;;  %v3397_v16 = vld [vmem:[%s4681_s1 + $0x20] sm:$0xff] }
  0x32   : > { %v399_v43 = vor.u32 %v398_v35, %v394_v59  ;;  %v450_v45 = vshll.u32 %v3865_v22, 16  ;;  %v287_v48 = vshrl.u32 %v3868_v29, 16  ;;  %v3894_v53 = vunpack.c.l.b16 %v357_v33  ;;  %v3437_v23 = vld [vmem:[%s4681_s1 + $0x120] sm:$0xff] }
  0x33   : > { %910 = vmatpush.bf16.msrb.mxu2 %v3415_v15  ;;  %697 = vmatpush.bf16.msrb.mxu1 %v3399_v19  ;;  %v395_v54 = vsel %vm3744_vm2, %v390_v38, %v394_v59  ;;  %v436_v55 = vrot.slane %v434_v40, 5  ;;  %v442_v57 = vrot.slane %v440_v41, 5  ;;  %v446_v1 = vrot.slane %v444_v44, 4  ;;  %v3429_v52 = vld [vmem:[%s4681_s1 + $0xe0] sm:$0xff]  ;;  %v3933_v40 = vld [vmem:[%s3704_s30 + $0x10] sm:$0xf] }
  0x34   : > { %1470 = vmatpush.bf16.msrb.mxu0 %v3439_v51  ;;  %v400_v61 = vrot.slane %v399_v43, 4  ;;  %v481_v63 = vunpack.c.l.b16 %v395_v54  ;;  %v452_v2 = vrot.slane %v450_v45, 5  ;;  %v289_v10 = vrot.slane %v287_v48, 4  ;;  %v3396_v45 = vld [vmem:[%s4681_s1 + $0x18] sm:$0xff] }
  0x35   : > { %1116 = vmatpush.bf16.msrb.mxu3 %v3431_v30  ;;  %v437_v9 = vor.u32 %v436_v55, %v433_v39  ;;  %v290_v12 = vshll.u32 %v3868_v29, 16  ;;  %v296_v15 = vshll.u32 %v3888_v46, 16  ;;  %v447_v18 = vor.u32 %v446_v1, %v442_v57  ;;  %v3930_v39 = vld [vmem:[%s3704_s30 + $0xc] sm:$0xf]  ;;  %v3436_v55 = vld [vmem:[%s4681_s1 + $0x118] sm:$0xff]  ;;  %v3411_v1 = vld [vmem:[%s4681_s1 + $0x90] sm:$0xff] }
  0x36   : > { %v405_v17 = vsel %vm3744_vm2, %v400_v61, %v404_v36  ;;  %v300_v19 = vshrl.u32 %v3888_v46, 16  ;;  %v306_v20 = vshll.u32 %v3899_v58, 16  ;;  %v490_v33 = vpack.c.b16 %v3894_v53, %v3875_v34  ;;  %v3412_v36 = vld [vmem:[%s4681_s1 + $0x98] sm:$0xff] }
  0x37   : > { %911 = vmatpush.bf16.msrb.mxu2 %v3414_v37  ;;  %698 = vmatpush.bf16.msrb.mxu1 %v3398_v42  ;;  %v482_v24 = vunpack.c.l.b16 %v405_v17  ;;  %v438_v27 = vrot.slane %v437_v9, 4  ;;  %v292_v28 = vrot.slane %v290_v12, 5  ;;  %v298_v51 = vrot.slane %v296_v15, 5  ;;  %v3428_v53 = vld [vmem:[%s4681_s1 + $0xd8] sm:$0xff] }
  0x38   : > { %1471 = vmatpush.bf16.msrb.mxu0 %v3438_v50  ;;  %v448_v59 = vrot.slane %v447_v18, 4  ;;  %v302_v30 = vrot.slane %v300_v19, 4  ;;  %v308_v38 = vrot.slane %v306_v20, 5  ;;  %v758_v50 = vrot.slane %v3768_v62, 5  ;;  %v3427_v20 = vld [vmem:[%s4681_s1 + $0xd0] sm:$0xff] }
  0x39   : > { %1117 = vmatpush.bf16.msrb.mxu3 %v3430_v60  ;;  %v443_v35 = vsel %vm3744_vm2, %v438_v27, %v442_v57  ;;  %v293_v37 = vor.u32 %v292_v28, %v289_v10  ;;  %v492_v41 = vpack.c.b16 %v482_v24, %v481_v63  ;;  %v1181_v57 = vshrl.u32 %v3930_v39, 16 }
  0x3a   : > { %v453_v42 = vsel %vm3744_vm2, %v448_v59, %v452_v2  ;;  %v485_v43 = vunpack.c.l.b16 %v443_v35  ;;  %v303_v34 = vor.u32 %v302_v30, %v298_v51  ;;  %v1184_v60 = vshll.u32 %v3930_v39, 16  ;;  %v3956_v2 = vld [vmem:[%s3704_s30 + $0x14] sm:$0x1]  ;;  %v3394_v30 = vld [vmem:[%s4681_s1 + $0x8] sm:$0xff] }
  0x3b   : > { %912 = vmatpush.bf16.msrb.mxu2 %v3413_v3  ;;  %699 = vmatpush.bf16.msrb.mxu1 %v3397_v16  ;;  %v486_v44 = vunpack.c.l.b16 %v453_v42  ;;  %v294_v48 = vrot.slane %v293_v37, 4  ;;  %v1190_v61 = vshll.u32 %v3933_v40, 16  ;;  %v2906_v10 = vrot.slane %v3754_v49, 9  ;;  %v3395_v16 = vld [vmem:[%s4681_s1 + $0x10] sm:$0xff]  ;;  %v3434_v35 = vld [vmem:[%s4681_s1 + $0x108] sm:$0xff] }
  0x3c   : > { %1472 = vmatpush.bf16.msrb.mxu0 %v3437_v23  ;;  %v304_v54 = vrot.slane %v303_v34, 4  ;;  %v1183_v12 = vrot.slane %v1181_v57, 4  ;;  %v760_v17 = vrot.slane %v758_v50, 4  ;;  %v761_v18 = vrot.slane %v3776_v7, 5  ;;  %v3435_v49 = vld [vmem:[%s4681_s1 + $0x110] sm:$0xff] }
  0x3d   : > { %1118 = vmatpush.bf16.msrb.mxu3 %v3429_v52  ;;  %v494_v63 = vpack.c.b16 %v486_v44, %v485_v43  ;;  %v299_v62 = vsel %vm3744_vm2, %v294_v48, %v298_v51  ;;  %v1186_v19 = vrot.slane %v1184_v60, 5  ;;  %v1192_v24 = vrot.slane %v1190_v61, 5  ;;  %v3410_v51 = vld [vmem:[%s4681_s1 + $0x88] sm:$0xff]  ;;  %v3996_v43 = vld [vmem:[%s3704_s30 + $0x18] sm:$0xf]  ;;  %v3409_v44 = vld [vmem:[%s4681_s1 + $0x80] sm:$0xff] }
  0x3e   : > { %574 = vmatmul.bf16.gmra.mxu1 %v490_v33  ;;  %584 = vmatmul.bf16.gmra.mxu2 %v492_v41  ;;  %v309_v3 = vsel %vm3744_vm2, %v304_v54, %v308_v38  ;;  %v473_v9 = vunpack.c.l.b16 %v299_v62  ;;  %v1194_v7 = vshrl.u32 %v3933_v40, 16  ;;  %v1200_v27 = vshll.u32 %v3956_v2, 16  ;;  %v3426_v33 = vld [vmem:[%s4681_s1 + $0xc8] sm:$0xff]  ;;  %v3999_v34 = vld [vmem:[%s3704_s30 + $0x1c] sm:$0xf]  ;;  %v3393_v54 = vld [vmem:[%s4681_s1] sm:$0xff] }
  0x3f   : > { %913 = vmatpush.bf16.msrb.mxu2 %v3412_v36  ;;  %700 = vmatpush.bf16.msrb.mxu1 %v3396_v45  ;;  %v474_v15 = vunpack.c.l.b16 %v309_v3  ;;  %v1187_v52 = vor.u32 %v1186_v19, %v1183_v12  ;;  %v759_v36 = vsel %vm3973_vm5, %v2906_v10, %v758_v50  ;;  %v762_v37 = vsel %vm3973_vm5, %v760_v17, %v761_v18  ;;  %v3464_v50 = vld [vmem:[%s4681_s1 + $0x1b8] sm:$0xff]  ;;  %v3425_v61 = vld [vmem:[%s4681_s1 + $0xc0] sm:$0xff] }
  0x40   : > { %594 = vmatmul.bf16.gmra.mxu3 %v494_v63  ;;  %1473 = vmatpush.bf16.msrb.mxu0 %v3436_v55  ;;  %v1196_v59 = vrot.slane %v1194_v7, 4  ;;  %v1202_v42 = vrot.slane %v1200_v27, 5  ;;  %v829_v45 = vunpack.c.l.b16 %v759_v36  ;;  %v830_v48 = vunpack.c.l.b16 %v762_v37  ;;  %v3433_v63 = vld [vmem:[%s4681_s1 + $0x100] sm:$0xff]  ;;  %v3472_v10 = vld [vmem:[%s4681_s1 + $0x1f8] sm:$0xff] }
  0x41   : > { %1119 = vmatpush.bf16.msrb.mxu3 %v3428_v53  ;;  %v488_v28 = vpack.c.b16 %v474_v15, %v473_v9  ;;  %v1188_v38 = vrot.slane %v1187_v52, 4  ;;  %v1205_v55 = vshrl.u32 %v3996_v43, 16  ;;  %v1208_v57 = vshll.u32 %v3996_v43, 16  ;;  %v3448_v12 = vld [vmem:[%s4681_s1 + $0x178] sm:$0xff] }
  0x42   : > { %v1197_v41 = vor.u32 %v1196_v59, %v1192_v24  ;;  %v1214_v60 = vshll.u32 %v3999_v34, 16  ;;  %v1218_v3 = vshrl.u32 %v3999_v34, 16  ;;  %v772_v9 = vrot.slane %v3713_v5, 5  ;;  %v3417_v5 = vld [vmem:[%s3704_s30 + $0xc] sm:$0xff]  ;;  %v3480_v7 = vld [vmem:[%s4681_s1 + $0x238] sm:$0xff] }
  0x43   : > { %914 = vmatpush.bf16.msrb.mxu2 %v3411_v1  ;;  %564 = vmatmul.bf16.gmra.mxu0 %v488_v28  ;;  %v1193_v62 = vsel %vm3744_vm2, %v1188_v38, %v1192_v24  ;;  %v765_v15 = vrot.slane %v3888_v46, 5  ;;  %v845_v17 = vpack.c.b16 %v830_v48, %v829_v45  ;;  %v2908_v18 = vrot.slane %v3710_v4, 9  ;;  %v3463_v4 = vld [vmem:[%s4681_s1 + $0x1b0] sm:$0xff] }
  0x44   : > { %701 = vmatpush.bf16.msrb.mxu1 %v3395_v16  ;;  %1474 = vmatpush.bf16.msrb.mxu0 %v3435_v49  ;;  %v1198_v53 = vrot.slane %v1197_v41, 4  ;;  %v3385_v16 = vld [vmem:[%s3704_s30] sm:$0xff]  ;;  %v774_v19 = vrot.slane %v772_v9, 4  ;;  %v1389_v49 = vunpack.c.l.b16 %v1193_v62  ;;  %v1207_v27 = vrot.slane %v1205_v55, 4 }
  0x45   : > { %1120 = vmatpush.bf16.msrb.mxu3 %v3427_v20  ;;  %v775_v20 = vrot.slane %v3716_v6, 5  ;;  %v1210_v28 = vrot.slane %v1208_v57, 5  ;;  %v4042_v46 = vrot.slane %v1214_v60, 5  ;;  %v1220_v6 = vrot.slane %v1218_v3, 4  ;;  %v4074_v55 = vld [vmem:[%s3704_s30 + $0x24] sm:$0xf] }
  0x46   : > { %v1203_v1 = vsel %vm3744_vm2, %v1198_v53, %v1202_v42  ;;  %v2907_v59 = vrot.slane %v3868_v29, 9  ;;  %v767_v38 = vrot.slane %v765_v15, 4  ;;  %v768_v41 = vrot.slane %v3899_v58, 5  ;;  %v3462_v58 = vld [vmem:[%s4681_s1 + $0x1a8] sm:$0xff] }
  0x47   : > { %915 = vmatpush.bf16.msrb.mxu2 %v3410_v51  ;;  %v1390_v24 = vunpack.c.l.b16 %v1203_v1  ;;  %v773_v51 = vsel %vm3973_vm5, %v2908_v18, %v772_v9  ;;  %v776_v52 = vsel %vm3973_vm5, %v774_v19, %v775_v20  ;;  %v1221_v45 = vor.u32 %v1220_v6, %v4042_v46  ;;  %v4077_v57 = vld [vmem:[%s3704_s30 + $0x28] sm:$0xf] }
  0x48   : > { %702 = vmatpush.bf16.msrb.mxu1 %v3394_v30  ;;  %1475 = vmatpush.bf16.msrb.mxu0 %v3434_v35  ;;  %v4050_v30 = vld [vmem:[%s3704_s30 + $0x20] sm:$0x1]  ;;  %v3447_v35 = vld [vmem:[%s4681_s1 + $0x170] sm:$0xff]  ;;  %v833_v36 = vunpack.c.l.b16 %v773_v51  ;;  %v834_v37 = vunpack.c.l.b16 %v776_v52  ;;  %v766_v53 = vsel %vm3973_vm5, %v2907_v59, %v765_v15  ;;  %v3470_v60 = vld [vmem:[%s4681_s1 + $0x1e8] sm:$0xff]  ;;  %v1232_v15 = vshll.u32 %v4074_v55, 16 }
  0x49   : > { %1121 = vmatpush.bf16.msrb.mxu3 %v3426_v33  ;;  %v3471_v33 = vld [vmem:[%s4681_s1 + $0x1f0] sm:$0xff]  ;;  %v1405_v29 = vpack.c.b16 %v1390_v24, %v1389_v49  ;;  %v1224_v48 = vshll.u32 %v4050_v30, 16  ;;  %v1222_v1 = vrot.slane %v1221_v45, 4  ;;  %v3478_v9 = vld [vmem:[%s4681_s1 + $0x228] sm:$0xff]  ;;  %v779_v20 = vrot.slane %v3794_v21, 5  ;;  %v3418_v52 = vld [vmem:[%s3704_s30 + $0x18] sm:$0xff] }
  0x4a   : > { %v4059_v42 = vpack.c.b16 %v834_v37, %v833_v36  ;;  %v1234_v24 = vrot.slane %v1232_v15, 5  ;;  %v782_v51 = vrot.slane %v3800_v25, 5 }
  0x4b   : > { %916 = vmatpush.bf16.msrb.mxu2 %v3409_v44  ;;  %v1211_v44 = vor.u32 %v1210_v28, %v1207_v27  ;;  %v1226_v3 = vrot.slane %v1224_v48, 5  ;;  %v3386_v27 = vld [vmem:[%s3704_s30 + $0xc] sm:$0xff]  ;;  %v781_v6 = vrot.slane %v779_v20, 4 }
  0x4c   : > { %703 = vmatpush.bf16.msrb.mxu1 %v3393_v54  ;;  %1476 = vmatpush.bf16.msrb.mxu0 %v3433_v63  ;;  %v769_v54 = vsel %vm3973_vm5, %v767_v38, %v768_v41  ;;  %v831_v63 = vunpack.c.l.b16 %v766_v53  ;;  %v3445_v53 = vld [vmem:[%s4681_s1 + $0x160] sm:$0xff] }
  0x4d   : > { %1122 = vmatpush.bf16.msrb.mxu3 %v3425_v61  ;;  %v3446_v61 = vld [vmem:[%s4681_s1 + $0x168] sm:$0xff]  ;;  %v1212_v62 = vrot.slane %v1211_v44, 4  ;;  %v1227_v19 = vsel %vm3744_vm2, %v1222_v1, %v1226_v3  ;;  %v783_v21 = vsel %vm3973_vm5, %v781_v6, %v782_v51  ;;  %v3461_v44 = vld [vmem:[%s4681_s1 + $0x1a0] sm:$0xff] }
  0x4e   : > { %917 = vmatmul.bf16.vlgmr.msrb.gmra.mxu2 %v845_v17  ;;  %v1242_v17 = vshrl.u32 %v4077_v57, 16  ;;  %v1392_v59 = vunpack.c.l.b16 %v1227_v19  ;;  %v836_v37 = vunpack.c.l.b16 %v783_v21  ;;  %v4161_v21 = vld [vmem:[%s3704_s30 + $0x40] sm:$0xf] }
  0x4f   : > { %1901 = vmatpush.bf16.msra.mxu2 %v3464_v50  ;;  %704 = vmatmul.bf16.vlgmr.msrb.gmra.mxu1 %v3385_v16  ;;  %v3479_v50 = vld [vmem:[%s4681_s1 + $0x230] sm:$0xff]  ;;  %v1238_v16 = vshll.u32 %v4077_v57, 16  ;;  %v1217_v18 = vsel %vm3744_vm2, %v1212_v62, %v4042_v46 }
  0x50   : > { %1695 = vmatpush.bf16.msra.mxu1 %v3448_v12  ;;  %1123 = vmatmul.bf16.vlgmr.msrb.gmra.mxu3 %v3417_v5  ;;  %v1229_v12 = vshrl.u32 %v4074_v55, 16  ;;  %v1244_v28 = vrot.slane %v1242_v17, 4  ;;  %v1391_v46 = vunpack.c.l.b16 %v1217_v18  ;;  %v3419_v17 = vld [vmem:[%s3704_s30 + $0x24] sm:$0xff] }
  0x51   : > { %2255 = vmatpush.bf16.msra.mxu3 %v3472_v10  ;;  %2481 = vmatpush.bf16.msra.mxu0 %v3480_v7  ;;  %v832_v10 = vunpack.c.l.b16 %v769_v54  ;;  %v1240_v7 = vrot.slane %v1238_v16, 5  ;;  %v3477_v54 = vld [vmem:[%s4681_s1 + $0x220] sm:$0xff] }
  0x52   : > { %v1231_v49 = vrot.slane %v1229_v12, 4  ;;  %v1406_v41 = vpack.c.b16 %v1392_v59, %v1391_v46  ;;  %v3387_v12 = vld [vmem:[%s3704_s30 + $0x18] sm:$0xff] }
  0x53   : > { %1902 = vmatpush.bf16.msra.mxu2 %v3463_v4  ;;  %1477 = vmatmul.bf16.vlgmr.msrb.gmra.mxu0 %v1405_v29  ;;  %v846_v5 = vpack.c.b16 %v832_v10, %v831_v63  ;;  %v2909_v4 = vrot.slane %v3779_v8, 9  ;;  %v1245_v38 = vor.u32 %v1244_v28, %v1240_v7  ;;  %v3444_v46 = vld [vmem:[%s4681_s1 + $0x158] sm:$0xff] }
  0x54   : > { %1696 = vmatpush.bf16.msra.mxu1 %v3447_v35  ;;  %v1235_v8 = vor.u32 %v1234_v24, %v1231_v49  ;;  %v4141_v49 = vld [vmem:[%s3704_s30 + $0x38] sm:$0x1] }
  0x55   : > { %2256 = vmatpush.bf16.msra.mxu3 %v3471_v33  ;;  %2482 = vmatpush.bf16.msra.mxu0 %v3479_v50  ;;  %v4103_v33 = vld [vmem:[%s3704_s30 + $0x2c] sm:$0x1]  ;;  %v780_v35 = vsel %vm3973_vm5, %v2909_v4, %v779_v20  ;;  %v1246_v48 = vrot.slane %v1245_v38, 4  ;;  %v1272_v28 = vshll.u32 %v4141_v49, 16  ;;  %v3460_v4 = vld [vmem:[%s4681_s1 + $0x198] sm:$0xff] }
  0x56   : > { %v835_v36 = vunpack.c.l.b16 %v780_v35  ;;  %v1248_v25 = vshll.u32 %v4103_v33, 16  ;;  %v1236_v45 = vrot.slane %v1235_v8, 4  ;;  %v3476_v59 = vld [vmem:[%s4681_s1 + $0x218] sm:$0xff] }
  0x57   : > { %1903 = vmatpush.bf16.msra.mxu2 %v3462_v58  ;;  %v3469_v58 = vld [vmem:[%s4681_s1 + $0x1e0] sm:$0xff]  ;;  %v4158_v35 = vld [vmem:[%s3704_s30 + $0x3c] sm:$0xf] }
  0x58   : > { %1697 = vmatpush.bf16.msra.mxu1 %v3446_v61  ;;  %v4110_v29 = vpack.c.b16 %v836_v37, %v835_v36  ;;  %v1250_v50 = vrot.slane %v1248_v25, 5  ;;  %v4128_v61 = vld [vmem:[%s3704_s30 + $0x34] sm:$0xf]  ;;  %v1241_v63 = vsel %vm3744_vm2, %v1236_v45, %v1240_v7  ;;  %v1277_v8 = vshrl.u32 %v4158_v35, 16 }
  0x59   : > { %2257 = vmatpush.bf16.msra.mxu3 %v3470_v60  ;;  %2483 = vmatpush.bf16.msra.mxu0 %v3478_v9  ;;  %v4125_v60 = vld [vmem:[%s3704_s30 + $0x30] sm:$0xf]  ;;  %v1262_v9 = vshll.u32 %v4128_v61, 16  ;;  %v1266_v10 = vshrl.u32 %v4128_v61, 16  ;;  %v1393_v15 = vunpack.c.l.b16 %v1241_v63  ;;  %v1280_v38 = vshll.u32 %v4158_v35, 16 }
  0x5a   : > { %v1251_v62 = vsel %vm3744_vm2, %v1246_v48, %v1250_v50  ;;  %v1253_v1 = vshrl.u32 %v4125_v60, 16  ;;  %v1256_v3 = vshll.u32 %v4125_v60, 16  ;;  %v1286_v25 = vshll.u32 %v4161_v21, 16  ;;  %v3420_v48 = vld [vmem:[%s3704_s30 + $0x30] sm:$0xff] }
  0x5b   : > { %1904 = vmatpush.bf16.msra.mxu2 %v3461_v44  ;;  %v1394_v16 = vunpack.c.l.b16 %v1251_v62  ;;  %v1264_v20 = vrot.slane %v1262_v9, 5  ;;  %v3388_v44 = vld [vmem:[%s3704_s30 + $0x24] sm:$0xff]  ;;  %v786_v45 = vrot.slane %v3727_v13, 5 }
  0x5c   : > { %1698 = vmatpush.bf16.msra.mxu1 %v3445_v53  ;;  %v1255_v18 = vrot.slane %v1253_v1, 4  ;;  %v1258_v19 = vrot.slane %v1256_v3, 5  ;;  %v1279_v53 = vrot.slane %v1277_v8, 4  ;;  %v1288_v63 = vrot.slane %v1286_v25, 5  ;;  %v4175_v1 = vld [vmem:[%s3704_s30 + $0x44] sm:$0x1] }
  0x5d   : > { %2258 = vmatpush.bf16.msra.mxu3 %v3469_v58  ;;  %2484 = vmatpush.bf16.msra.mxu0 %v3477_v54  ;;  %v1407_v24 = vpack.c.b16 %v1394_v16, %v1393_v15  ;;  %v1282_v54 = vrot.slane %v1280_v38, 5  ;;  %v2910_v3 = vrot.slane %v3723_v11, 9  ;;  %v788_v9 = vrot.slane %v786_v45, 4 }
  0x5e   : > { %922 = vmatmul.bf16.gmra.mxu2 %v846_v5  ;;  %v1268_v5 = vrot.slane %v1266_v10, 4  ;;  %v1259_v7 = vor.u32 %v1258_v19, %v1255_v18  ;;  %v789_v10 = vrot.slane %v3730_v14, 5  ;;  %v4192_v14 = vld [vmem:[%s3704_s30 + $0x4c] sm:$0xf]  ;;  %v3467_v19 = vld [vmem:[%s4681_s1 + $0x1d0] sm:$0xff] }
  0x5f   : > { %709 = vmatmul.bf16.gmra.mxu1 %v3386_v27  ;;  %1905 = vmatpush.bf16.msra.mxu2 %v3460_v4  ;;  %v1283_v15 = vor.u32 %v1282_v54, %v1279_v53  ;;  %v787_v18 = vsel %vm3973_vm5, %v2910_v3, %v786_v45  ;;  %v2911_v3 = vrot.slane %v3807_v32, 9  ;;  %v3466_v32 = vld [vmem:[%s4681_s1 + $0x1c8] sm:$0xff] }
  0x60   : > { %1128 = vmatmul.bf16.gmra.mxu3 %v3418_v52  ;;  %v1269_v27 = vor.u32 %v1268_v5, %v1264_v20  ;;  %v1260_v6 = vrot.slane %v1259_v7, 4  ;;  %v1274_v52 = vrot.slane %v1272_v28, 5  ;;  %1699 = vmatpush.bf16.msra.mxu1 %v3444_v46  ;;  %v790_v11 = vsel %vm3973_vm5, %v788_v9, %v789_v10  ;;  %v3475_v5 = vld [vmem:[%s4681_s1 + $0x210] sm:$0xff] }
  0x61   : > { %2485 = vmatpush.bf16.msra.mxu0 %v3476_v59  ;;  %v837_v28 = vunpack.c.l.b16 %v787_v18  ;;  %v838_v4 = vunpack.c.l.b16 %v790_v11  ;;  %v796_v10 = vrot.slane %v3827_v56, 5  ;;  %v3442_v56 = vld [vmem:[%s4681_s1 + $0x148] sm:$0xff]  ;;  %v4234_v18 = vld [vmem:[%s3704_s30 + $0x54] sm:$0xf]  ;;  %v4237_v11 = vld [vmem:[%s3704_s30 + $0x58] sm:$0xf] }
  0x62   : > { %v1270_v51 = vrot.slane %v1269_v27, 4  ;;  %v1265_v36 = vsel %vm3744_vm2, %v1260_v6, %v1264_v20  ;;  %v3443_v20 = vld [vmem:[%s4681_s1 + $0x150] sm:$0xff] }
  0x63   : > { %1482 = vmatmul.bf16.gmra.mxu0 %v1406_v41  ;;  %v1290_v41 = vshrl.u32 %v4161_v21, 16  ;;  %v1395_v50 = vunpack.c.l.b16 %v1265_v36  ;;  %v849_v36 = vpack.c.b16 %v838_v4, %v837_v28  ;;  %v1328_v28 = vshll.u32 %v4234_v18, 16 }
  0x64   : > { %v1275_v37 = vsel %vm3744_vm2, %v1270_v51, %v1274_v52  ;;  %1700 = vmatpush.bf16.msra.mxu1 %v3443_v20  ;;  %v1310_v52 = vshll.u32 %v4192_v14, 16  ;;  %v1334_v4 = vshll.u32 %v4237_v11, 16 }
  0x65   : > { %v1396_v58 = vunpack.c.l.b16 %v1275_v37  ;;  %v1292_v62 = vrot.slane %v1290_v41, 4  ;;  %2486 = vmatpush.bf16.msra.mxu0 %v3475_v5  ;;  %v3389_v37 = vld [vmem:[%s3704_s30 + $0x30] sm:$0xff] }
  0x66   : > { %v1312_v25 = vrot.slane %v1310_v52, 5 }
  0x67   : > { %v1408_v13 = vpack.c.b16 %v1396_v58, %v1395_v50  ;;  %v1293_v16 = vor.u32 %v1292_v62, %v1288_v63  ;;  %v793_v50 = vrot.slane %v3823_v47, 5  ;;  %v4215_v58 = vld [vmem:[%s3704_s30 + $0x50] sm:$0x1]  ;;  %v3458_v47 = vld [vmem:[%s4681_s1 + $0x188] sm:$0xff] }
  0x68   : > { %1701 = vmatpush.bf16.msra.mxu1 %v3442_v56  ;;  %v4273_v56 = vld [vmem:[%s3704_s30 + $0x60] sm:$0xf] }
  0x69   : > { %v1294_v7 = vrot.slane %v1293_v16, 4  ;;  %v795_v9 = vrot.slane %v793_v50, 4  ;;  %v794_v16 = vsel %vm3973_vm5, %v2911_v3, %v793_v50 }
  0x6e   : > { %927 = vmatmul.bf16.gmra.mxu2 %v4059_v42  ;;  %v3468_v42 = vld [vmem:[%s4681_s1 + $0x1d8] sm:$0xff] }
  0x6f   : > { %714 = vmatmul.bf16.gmra.mxu1 %v3387_v12  ;;  %2259 = vmatpush.bf16.msra.mxu3 %v3468_v42  ;;  %v3459_v12 = vld [vmem:[%s4681_s1 + $0x190] sm:$0xff]  ;;  %v1314_v42 = vshrl.u32 %v4192_v14, 16 }
  0x70   : > { %1133 = vmatmul.bf16.gmra.mxu3 %v3419_v17  ;;  %v1296_v17 = vshll.u32 %v4175_v1, 16  ;;  %1906 = vmatpush.bf16.msra.mxu2 %v3459_v12 }
  0x71   : > { %v1316_v41 = vrot.slane %v1314_v42, 4 }
  0x72   : > { %v1298_v27 = vrot.slane %v1296_v17, 5  ;;  %v797_v17 = vsel %vm3973_vm5, %v795_v9, %v796_v10  ;;  %v3457_v10 = vld [vmem:[%s4681_s1 + $0x180] sm:$0xff] }
  0x73   : > { %1487 = vmatmul.bf16.gmra.mxu0 %v1407_v24  ;;  %v1284_v24 = vrot.slane %v1283_v15, 4  ;;  %2260 = vmatpush.bf16.msra.mxu3 %v3467_v19  ;;  %v1317_v54 = vor.u32 %v1316_v41, %v1312_v25  ;;  %v839_v19 = vunpack.c.l.b16 %v794_v16  ;;  %v840_v20 = vunpack.c.l.b16 %v797_v17  ;;  %v3465_v17 = vld [vmem:[%s4681_s1 + $0x1c0] sm:$0xff] }
  0x74   : > { %v1299_v59 = vsel %vm3744_vm2, %v1294_v7, %v1298_v27  ;;  %1907 = vmatpush.bf16.msra.mxu2 %v3458_v47  ;;  %v3474_v7 = vld [vmem:[%s4681_s1 + $0x208] sm:$0xff]  ;;  %v1325_v27 = vshrl.u32 %v4234_v18, 16 }
  0x75   : > { %v1289_v46 = vsel %vm3744_vm2, %v1284_v24, %v1288_v63  ;;  %v1320_v63 = vshll.u32 %v4215_v58, 16  ;;  %v1318_v12 = vrot.slane %v1317_v54, 4  ;;  %2487 = vmatpush.bf16.msra.mxu0 %v3474_v7  ;;  %v850_v52 = vpack.c.b16 %v840_v20, %v839_v19  ;;  %v3595_v54 = vld [vmem:[%s3704_s30 + $0x50] sm:$0x1]  ;;  %v4276_v19 = vld [vmem:[%s3704_s30 + $0x64] sm:$0xf] }
  0x76   : > { %v1397_v45 = vunpack.c.l.b16 %v1289_v46 }
  0x77   : > { %v1322_v15 = vrot.slane %v1320_v63, 5  ;;  %2261 = vmatpush.bf16.msra.mxu3 %v3466_v32  ;;  %v803_v63 = vrot.slane %v3595_v54, 5  ;;  %v3441_v32 = vld [vmem:[%s4681_s1 + $0x140] sm:$0xff] }
  0x78   : > { %1908 = vmatpush.bf16.msra.mxu2 %v3457_v10  ;;  %1702 = vmatpush.bf16.msra.mxu1 %v3441_v32 }
  0x79   : > { %v1323_v24 = vsel %vm3744_vm2, %v1318_v12, %v1322_v15 }
  0x7a   : > { %v1400_v46 = vunpack.c.l.b16 %v1323_v24 }
  0x7b   : > { %2262 = vmatpush.bf16.msra.mxu3 %v3465_v17 }
  0x7e   : > { %932 = vmatmul.bf16.gmra.mxu2 %v4110_v29  ;;  %v4189_v29 = vld [vmem:[%s3704_s30 + $0x48] sm:$0xf] }
  0x7f   : > { %719 = vmatmul.bf16.gmra.mxu1 %v3388_v44  ;;  %v1301_v6 = vshrl.u32 %v4189_v29, 16  ;;  %v1304_v51 = vshll.u32 %v4189_v29, 16  ;;  %v3421_v44 = vld [vmem:[%s3704_s30 + $0x3c] sm:$0xff] }
  0x80   : > { %1138 = vmatmul.bf16.gmra.mxu3 %v3420_v48  ;;  %v1398_v48 = vunpack.c.l.b16 %v1299_v59  ;;  %v3593_v59 = vld [vmem:[%s3704_s30 + $0x4c] sm:$0xf] }
  0x81   : > { %v1303_v8 = vrot.slane %v1301_v6, 4  ;;  %v1306_v38 = vrot.slane %v1304_v51, 5  ;;  %v1338_v6 = vshrl.u32 %v4237_v11, 16  ;;  %v3390_v51 = vld [vmem:[%s3704_s30 + $0x3c] sm:$0xff] }
  0x82   : > { %v1409_v62 = vpack.c.b16 %v1398_v48, %v1397_v45  ;;  %v3594_v48 = vld [vmem:[%s3704_s30 + $0x48] sm:$0xf] }
  0x83   : > { %1492 = vmatmul.bf16.gmra.mxu0 %v1408_v13  ;;  %v1307_v53 = vor.u32 %v1306_v38, %v1303_v8  ;;  %v1327_v8 = vrot.slane %v1325_v27, 4  ;;  %v1330_v38 = vrot.slane %v1328_v28, 5  ;;  %v1340_v41 = vrot.slane %v1338_v6, 4 }
  0x84   : > { %v2912_v50 = vrot.slane %v3594_v48, 9  ;;  %v1349_v27 = vshrl.u32 %v4273_v56, 16  ;;  %v1352_v28 = vshll.u32 %v4273_v56, 16  ;;  %v1362_v6 = vshrl.u32 %v4276_v19, 16  ;;  %v4295_v48 = vld [vmem:[%s3704_s30 + $0x68] sm:$0x1] }
  0x85   : > { %v1308_v13 = vrot.slane %v1307_v53, 4  ;;  %4689 = vst [vmem:[#allocation2_spill] sm:$0xff] %v4295_v48 }
  0x87   : > { %v1313_v5 = vsel %vm3744_vm2, %v1308_v13, %v1312_v25  ;;  %v1336_v25 = vrot.slane %v1334_v4, 5  ;;  %v1358_v4 = vshll.u32 %v4276_v19, 16 }
  0x88   : > { %v1399_v42 = vunpack.c.l.b16 %v1313_v5 }
  0x89   : > { %v1341_v3 = vor.u32 %v1340_v41, %v1336_v25  ;;  %v1360_v41 = vrot.slane %v1358_v4, 5 }
  0x8a   : > { %v1410_v45 = vpack.c.b16 %v1400_v46, %v1399_v42 }
  0x8b   : > { %v1342_v15 = vrot.slane %v1341_v3, 4  ;;  %v810_v3 = vrot.slane %v3865_v22, 5 }
  0x8e   : > { %937 = vmatmul.bf16.gmra.mxu2 %v849_v36  ;;  %v800_v36 = vrot.slane %v3593_v59, 5  ;;  %v3423_v59 = vld [vmem:[%s3704_s30 + $0x54] sm:$0xff] }
  0x8f   : > { %724 = vmatmul.bf16.gmra.mxu1 %v3389_v37  ;;  %v3422_v37 = vld [vmem:[%s3704_s30 + $0x48] sm:$0xff] }
  0x90   : > { %1143 = vmatmul.bf16.gmra.mxu3 %v3421_v44  ;;  %v4254_v44 = vld [vmem:[%s3704_s30 + $0x5c] sm:$0x1]  ;;  %v802_v53 = vrot.slane %v800_v36, 4  ;;  %v801_v47 = vsel %vm3973_vm5, %v2912_v50, %v800_v36 }
  0x91   : > { %v1344_v9 = vshll.u32 %v4254_v44, 16  ;;  %v841_v20 = vunpack.c.l.b16 %v801_v47  ;;  %v1368_v47 = vshll.u32 %v4295_v48, 16 }
  0x92   : > { %v804_v13 = vsel %vm3973_vm5, %v802_v53, %v803_v63  ;;  %v4300_v53 = vld [vmem:[%s3704_s30 + $0x18] sm:$0xf]  ;;  %v2913_v63 = vrot.slane %v3836_v0, 9 }
  0x93   : > { %1497 = vmatmul.bf16.gmra.mxu0 %v1409_v62  ;;  %v1331_v62 = vor.u32 %v1330_v38, %v1327_v8  ;;  %v1346_v16 = vrot.slane %v1344_v9, 5  ;;  %v842_v5 = vunpack.c.l.b16 %v804_v13  ;;  %v807_v8 = vrot.slane %v3858_v26, 5  ;;  %v4305_v26 = vld [vmem:[%s3704_s30 + $0x1c] sm:$0xf] }
  0x94   : > { %v1351_v38 = vrot.slane %v1349_v27, 4  ;;  %v1976_v17 = vshll.u32 %v4305_v26, 16  ;;  %v1980_v0 = vshrl.u32 %v4305_v26, 16 }
  0x95   : > { %v1332_v12 = vrot.slane %v1331_v62, 4  ;;  %v1347_v7 = vsel %vm3744_vm2, %v1342_v15, %v1346_v16  ;;  %v851_v42 = vpack.c.b16 %v842_v5, %v841_v20  ;;  %v809_v62 = vrot.slane %v807_v8, 4 }
  0x96   : > { %v1970_v15 = vshll.u32 %v4300_v53, 16  ;;  %v808_v32 = vsel %vm3973_vm5, %v2913_v63, %v807_v8 }
  0x97   : > { %v1337_v24 = vsel %vm3744_vm2, %v1332_v12, %v1336_v25  ;;  %v1354_v25 = vrot.slane %v1352_v28, 5  ;;  %v1967_v12 = vshrl.u32 %v4300_v53, 16  ;;  %v811_v20 = vsel %vm3973_vm5, %v809_v62, %v810_v3 }
  0x98   : > { %v1401_v36 = vunpack.c.l.b16 %v1337_v24  ;;  %v1972_v28 = vrot.slane %v1970_v15, 5  ;;  %v3116_v15 = vrot.slane %v3930_v39, 9 }
  0x99   : > { %v1355_v9 = vor.u32 %v1354_v25, %v1351_v38  ;;  %v1969_v27 = vrot.slane %v1967_v12, 4  ;;  %v1544_v38 = vrot.slane %v3933_v40, 5  ;;  %v1547_v12 = vrot.slane %v3956_v2, 5 }
  0x9b   : > { %v1356_v5 = vrot.slane %v1355_v9, 4  ;;  %v1973_v25 = vor.u32 %v1972_v28, %v1969_v27  ;;  %v4347_v27 = vld [vmem:[%s3704_s30 + $0x28] sm:$0xf]  ;;  %v1545_v39 = vsel %vm3973_vm5, %v3116_v15, %v1544_v38 }
  0x9d   : > { %v1974_v40 = vrot.slane %v1973_v25, 4 }
  0x9e   : > { %942 = vmatmul.bf16.gmra.mxu2 %v850_v52  ;;  %v3391_v52 = vld [vmem:[%s3704_s30 + $0x48] sm:$0xff] }
  0x9f   : > { %729 = vmatmul.bf16.gmra.mxu1 %v3390_v51  ;;  %v3473_v51 = vld [vmem:[%s4681_s1 + $0x200] sm:$0xff] }
  0xa0   : > { %1148 = vmatmul.bf16.gmra.mxu3 %v3422_v37  ;;  %2488 = vmatpush.bf16.msra.mxu0 %v3473_v51  ;;  %v1402_v37 = vunpack.c.l.b16 %v1347_v7  ;;  %v1370_v7 = vrot.slane %v1368_v47, 5  ;;  %v844_v51 = vunpack.c.l.b16 %v811_v20  ;;  %v2330_v20 = vrot.slane %v4305_v26, 5 }
  0xa2   : > { %v1411_v54 = vpack.c.b16 %v1402_v37, %v1401_v36  ;;  %v1361_v36 = vsel %vm3744_vm2, %v1356_v5, %v1360_v41 }
  0xa3   : > { %1502 = vmatmul.bf16.gmra.mxu0 %v1410_v45  ;;  %v1364_v45 = vrot.slane %v1362_v6, 4  ;;  %v843_v6 = vunpack.c.l.b16 %v808_v32 }
  0xa5   : > { %v1365_v10 = vor.u32 %v1364_v45, %v1360_v41  ;;  %v852_v63 = vpack.c.b16 %v844_v51, %v843_v6  ;;  %v1403_v41 = vunpack.c.l.b16 %v1361_v36  ;;  %v2332_v36 = vrot.slane %v2330_v20, 4 }
  0xa7   : > { %v1366_v24 = vrot.slane %v1365_v10, 4  ;;  %v3424_v10 = vld [vmem:[%s3704_s30 + $0x60] sm:$0xff] }
  0xa9   : > { %v1371_v37 = vsel %vm3744_vm2, %v1366_v24, %v1370_v7  ;;  %v4344_v7 = vld [vmem:[%s3704_s30 + $0x24] sm:$0xf] }
  0xaa   : > { %v1404_v47 = vunpack.c.l.b16 %v1371_v37 }
  0xab   : > { %v4290_v46 = vpop.f32.mrf.mxu1 }
  0xac   : > { %v1412_v5 = vpack.c.b16 %v1404_v47, %v1403_v41 }
  0xae   : > { %v4297_v50 = vpop.f32.mrf.mxu0  ;;  %947 = vmatmul.bf16.gmra.mxu2 %v851_v42  ;;  %v1982_v42 = vrot.slane %v1980_v0, 4 }
  0xaf   : > { %734 = vmatmul.bf16.gmra.mxu1 %v3391_v52  ;;  %v1978_v52 = vrot.slane %v1976_v17, 5  ;;  %v1546_v17 = vrot.slane %v1544_v38, 4  ;;  %v1991_v38 = vshrl.u32 %v4344_v7, 16 }
  0xb0   : > { %1153 = vmatmul.bf16.gmra.mxu3 %v3423_v59  ;;  %v3176_v59 = vld [vmem:[%s3704_s30 + $0x20] sm:$0x1] }
  0xb1   : > { %v4308_v13 = vpop.f32.mrf.mxu2  ;;  %v1983_v62 = vor.u32 %v1982_v42, %v1978_v52  ;;  %v1986_v3 = vshll.u32 %v3176_v59, 16  ;;  %v1548_v2 = vsel %vm3973_vm5, %v1546_v17, %v1547_v12  ;;  %v1979_v6 = vsel %vm3744_vm2, %v1974_v40, %v1978_v52 }
  0xb2   : > { %v3326_v42 = vrot.slane %v4300_v53, 9  ;;  %v2333_v37 = vrot.slane %v3176_v59, 5  ;;  %v2004_v52 = vshrl.u32 %v4347_v27, 16  ;;  %v1993_v47 = vrot.slane %v1991_v38, 4 }
  0xb3   : > { %v4312_v16 = vpop.f32.mrf.mxu3  ;;  %1507 = vmatmul.bf16.gmra.mxu0 %v1411_v54  ;;  %v4316_v22 = vpop.f32.mrf.mxu1  ;;  %v3392_v54 = vld [vmem:[%s3704_s30 + $0x54] sm:$0xff]  ;;  %v1984_v0 = vrot.slane %v1983_v62, 4  ;;  %v1988_v32 = vrot.slane %v1986_v3, 5  ;;  %v1615_v62 = vunpack.c.l.b16 %v1545_v39  ;;  %v1616_v3 = vunpack.c.l.b16 %v1548_v2 }
  0xb4   : > { %4690 = vst [vmem:[#allocation3_spill] sm:$0xff] %v4312_v16  ;;  %v2331_v53 = vsel %vm3973_vm5, %v3326_v42, %v2330_v20  ;;  %v2334_v59 = vsel %vm3973_vm5, %v2332_v36, %v2333_v37  ;;  %v2006_v17 = vrot.slane %v2004_v52, 4  ;;  %v3449_v2 = vld [vmem:[%s3704_s30 + $0x18] sm:$0xff] }
  0xb5   : > { %v1989_v51 = vsel %vm3744_vm2, %v1984_v0, %v1988_v32  ;;  %v3179_v0 = vld [vmem:[%s3704_s30 + $0x2c] sm:$0x1]  ;;  %v1631_v39 = vpack.c.b16 %v1616_v3, %v1615_v62  ;;  %v2402_v20 = vunpack.c.l.b16 %v2334_v59  ;;  %v4384_v3 = vld [vmem:[%s3704_s30 + $0x30] sm:$0xf] }
  0xb6   : > { %v4322_v4 = vpop.f32.mrf.mxu0  ;;  %v2176_v41 = vunpack.c.l.b16 %v1989_v51  ;;  %v1551_v51 = vrot.slane %v3999_v34, 5  ;;  %v1554_v34 = vrot.slane %v4050_v30, 5 }
  0xb8   : > { %v1553_v62 = vrot.slane %v1551_v51, 4 }
  0xb9   : > { %v4329_v8 = vpop.f32.mrf.mxu2 }
  0xbb   : > { %v4332_v45 = vpop.f32.mrf.mxu3  ;;  %v4335_v9 = vpop.f32.mrf.mxu1 }
  0xbc   : > { %4691 = vst [vmem:[#allocation4_spill] sm:$0xff] %v4332_v45 }
  0xbe   : > { %952 = vmatmul.bf16.gmra.mxu2 %v852_v63  ;;  %v2000_v63 = vshll.u32 %v4347_v27, 16 }
  0xbf   : > { %739 = vmatmul.bf16.gmra.mxu1 %v3392_v54  ;;  %v1994_v54 = vshll.u32 %v4344_v7, 16 }
  0xc0   : > { %1158 = vmatmul.bf16.gmra.mxu3 %v3424_v10  ;;  %v4341_v24 = vpop.f32.mrf.mxu0  ;;  %v2175_v10 = vunpack.c.l.b16 %v1979_v6  ;;  %v2002_v15 = vrot.slane %v2000_v63, 5  ;;  %v2401_v6 = vunpack.c.l.b16 %v2331_v53 }
  0xc1   : > { %v4349_v28 = vpop.f32.mrf.mxu2  ;;  %v1996_v12 = vrot.slane %v1994_v54, 5  ;;  %v2010_v54 = vshll.u32 %v3179_v0, 16 }
  0xc2   : > { %v2191_v36 = vpack.c.b16 %v2176_v41, %v2175_v10  ;;  %v2007_v38 = vor.u32 %v2006_v17, %v2002_v15  ;;  %v2417_v52 = vpack.c.b16 %v2402_v20, %v2401_v6  ;;  %v2018_v17 = vshll.u32 %v4384_v3, 16 }
  0xc3   : > { %v4357_v26 = vpop.f32.mrf.mxu3  ;;  %1512 = vmatmul.bf16.gmra.mxu0 %v1412_v5  ;;  %v4362_v25 = vpop.f32.mrf.mxu1  ;;  %v1997_v37 = vor.u32 %v1996_v12, %v1993_v47  ;;  %v2012_v41 = vrot.slane %v2010_v54, 5  ;;  %v2337_v47 = vrot.slane %v4347_v27, 5  ;;  %v2015_v12 = vshrl.u32 %v4384_v3, 16 }
  0xc4   : > { %4692 = vst [vmem:[#allocation5_spill] sm:$0xff] %v4357_v26  ;;  %v4387_v26 = vld [vmem:[%s3704_s30 + $0x34] sm:$0xf]  ;;  %v2008_v10 = vrot.slane %v2007_v38, 4  ;;  %v1555_v27 = vsel %vm3973_vm5, %v1553_v62, %v1554_v34  ;;  %v3182_v62 = vld [vmem:[%s3704_s30 + $0x38] sm:$0x1] }
  0xc5   : > { %v1998_v53 = vrot.slane %v1997_v37, 4  ;;  %v3327_v37 = vrot.slane %v4344_v7, 9  ;;  %v1618_v48 = vunpack.c.l.b16 %v1555_v27 }
  0xc7   : > { %v2338_v7 = vsel %vm3973_vm5, %v3327_v37, %v2337_v47  ;;  %v3118_v37 = vrot.slane %v4074_v55, 9 }
  0xc8   : > { %v4372_v40 = vpop.f32.mrf.mxu0  ;;  %v2403_v27 = vunpack.c.l.b16 %v2338_v7 }
  0xc9   : > { %v4375_v32 = vpop.f32.mrf.mxu2 }
  0xcb   : > { %v4377_v5 = vpop.f32.mrf.mxu3 }
  0xcc   : > { %4693 = vst [vmem:[#allocation6_spill] sm:$0xff] %v4377_v5  ;;  %v705_v42 = vpop.f32.mrf.mxu1  ;;  %v3117_v5 = vrot.slane %v3996_v43, 9  ;;  %v2024_v43 = vshll.u32 %v4387_v26, 16 }
  0xcd   : > { %v706_v63 = vadd.f32 %v705_v42, %v4297_v50  ;;  %v2003_v42 = vsel %vm3744_vm2, %v1998_v53, %v2002_v15 }
  0xce   : > { %1909 = vmatmul.bf16.vlgmr.msra.gmra.mxu2 %v3449_v2  ;;  %v1552_v30 = vsel %vm3973_vm5, %v3117_v5, %v1551_v51  ;;  %v2017_v5 = vrot.slane %v2015_v12, 4  ;;  %v2020_v51 = vrot.slane %v2018_v17, 5  ;;  %v2177_v15 = vunpack.c.l.b16 %v2003_v42 }
  0xcf   : > { %1703 = vmatmul.bf16.vlgmr.msra.gmra.mxu1 %v1631_v39  ;;  %v2028_v39 = vshrl.u32 %v4387_v26, 16  ;;  %v1617_v16 = vunpack.c.l.b16 %v1552_v30 }
  0xd0   : > { %2263 = vmatmul.bf16.vlgmr.msra.gmra.mxu3 %v2191_v36  ;;  %v1478_v59 = vpop.f32.mrf.mxu0  ;;  %v2013_v36 = vsel %vm3744_vm2, %v2008_v10, %v2012_v41  ;;  %v2021_v12 = vor.u32 %v2020_v51, %v2017_v5  ;;  %v4421_v51 = vld [vmem:[%s3704_s30 + $0x3c] sm:$0xf] }
  0xd1   : > { %v918_v50 = vpop.f32.mrf.mxu2  ;;  %v2030_v45 = vrot.slane %v2028_v39, 4  ;;  %v2178_v53 = vunpack.c.l.b16 %v2013_v36 }
  0xd2   : > { %v958_v2 = vadd.f32 %v918_v50, %v706_v63  ;;  %v2339_v63 = vrot.slane %v2337_v47, 4  ;;  %v2340_v50 = vrot.slane %v3179_v0, 5  ;;  %v1558_v0 = vrot.slane %v4077_v57, 5 }
  0xd3   : > { %v1124_v6 = vpop.f32.mrf.mxu3  ;;  %2489 = vmatmul.bf16.vlgmr.msra.gmra.mxu0 %v2417_v52  ;;  %v2026_v52 = vrot.slane %v2024_v43, 5  ;;  %v2034_v43 = vshll.u32 %v3182_v62, 16 }
  0xd4   : > { %v707_v20 = vpop.f32.mrf.mxu1  ;;  %v1164_v38 = vadd.f32 %v1124_v6, %v958_v2  ;;  %v1632_v6 = vpack.c.b16 %v1618_v48, %v1617_v16  ;;  %v1560_v57 = vrot.slane %v1558_v0, 4  ;;  %v2344_v48 = vrot.slane %v4387_v26, 5 }
  0xd5   : > { %v708_v54 = vadd.f32 %v707_v20, %v4322_v4  ;;  %v2341_v4 = vsel %vm3973_vm5, %v2339_v63, %v2340_v50  ;;  %v2031_v17 = vor.u32 %v2030_v45, %v2026_v52  ;;  %v2192_v20 = vpack.c.b16 %v2178_v53, %v2177_v15 }
  0xd6   : > { %v4406_v34 = vadd.f32 %v1478_v59, %v1164_v38  ;;  %v3450_v59 = vld [vmem:[%s3704_s30 + $0x24] sm:$0xff]  ;;  %v2404_v42 = vunpack.c.l.b16 %v2341_v4  ;;  %v1561_v38 = vrot.slane %v4103_v33, 5  ;;  %v2022_v45 = vrot.slane %v2021_v12, 4 }
  0xd7   : > { %v2032_v63 = vrot.slane %v2031_v17, 4  ;;  %v1559_v33 = vsel %vm3973_vm5, %v3118_v37, %v1558_v0  ;;  %v3328_v4 = vrot.slane %v4384_v3, 9  ;;  %v2347_v12 = vrot.slane %v3182_v62, 5 }
  0xd8   : > { %v1480_v10 = vpop.f32.mrf.mxu0  ;;  %v2418_v16 = vpack.c.b16 %v2404_v42, %v2403_v27  ;;  %v1562_v15 = vsel %vm3973_vm5, %v1560_v57, %v1561_v38  ;;  %v2027_v53 = vsel %vm3744_vm2, %v2022_v45, %v2026_v52  ;;  %v2042_v0 = vshll.u32 %v4421_v51, 16  ;;  %v4447_v45 = vld [vmem:[%s3704_s30 + $0x44] sm:$0x1] }
  0xd9   : > { %v920_v41 = vpop.f32.mrf.mxu2  ;;  %v2179_v3 = vunpack.c.l.b16 %v2027_v53  ;;  %v2345_v62 = vsel %vm3973_vm5, %v3328_v4, %v2344_v48 }
  0xda   : > { %v959_v39 = vadd.f32 %v920_v41, %v708_v54  ;;  %v2036_v54 = vrot.slane %v2034_v43, 5  ;;  %v2346_v41 = vrot.slane %v2344_v48, 4  ;;  %v2039_v43 = vshrl.u32 %v4421_v51, 16 }
  0xdb   : > { %v1126_v2 = vpop.f32.mrf.mxu3 }
  0xdc   : > { %v710_v30 = vpop.f32.mrf.mxu1  ;;  %v1165_v36 = vadd.f32 %v1126_v2, %v959_v39  ;;  %v2037_v26 = vsel %vm3744_vm2, %v2032_v63, %v2036_v54  ;;  %v2348_v27 = vsel %vm3973_vm5, %v2346_v41, %v2347_v12  ;;  %v3119_v12 = vrot.slane %v4125_v60, 9 }
  0xdd   : > { %v711_v47 = vadd.f32 %v710_v30, %v4341_v24  ;;  %v4424_v24 = vld [vmem:[%s3704_s30 + $0x40] sm:$0xf]  ;;  %v1620_v30 = vunpack.c.l.b16 %v1562_v15  ;;  %v2406_v48 = vunpack.c.l.b16 %v2348_v27  ;;  %v1565_v15 = vrot.slane %v4128_v61, 5  ;;  %v4459_v61 = vld [vmem:[%s3704_s30 + $0x4c] sm:$0xf] }
  0xde   : > { %1914 = vmatmul.bf16.gmra.mxu2 %v3450_v59  ;;  %v4418_v50 = vadd.f32 %v1480_v10, %v1165_v36  ;;  %v2048_v39 = vshll.u32 %v4424_v24, 16  ;;  %v2052_v52 = vshrl.u32 %v4424_v24, 16  ;;  %v1619_v59 = vunpack.c.l.b16 %v1559_v33 }
  0xdf   : > { %1708 = vmatmul.bf16.gmra.mxu1 %v1632_v6  ;;  %v2041_v36 = vrot.slane %v2039_v43, 4  ;;  %v2405_v33 = vunpack.c.l.b16 %v2345_v62  ;;  %v1567_v43 = vrot.slane %v1565_v15, 4  ;;  %v2076_v62 = vshrl.u32 %v4459_v61, 16 }
  0xe0   : > { %2268 = vmatmul.bf16.gmra.mxu3 %v2192_v20  ;;  %v1483_v5 = vpop.f32.mrf.mxu0  ;;  %v2180_v20 = vunpack.c.l.b16 %v2037_v26  ;;  %v2050_v37 = vrot.slane %v2048_v39, 5  ;;  %v2054_v57 = vrot.slane %v2052_v52, 4  ;;  %v1633_v63 = vpack.c.b16 %v1620_v30, %v1619_v59  ;;  %v4456_v39 = vld [vmem:[%s3704_s30 + $0x48] sm:$0xf] }
  0xe1   : > { %v923_v55 = vpop.f32.mrf.mxu2 }
  0xe2   : > { %v960_v10 = vadd.f32 %v923_v55, %v711_v47  ;;  %v2044_v47 = vrot.slane %v2042_v0, 5  ;;  %v3451_v55 = vld [vmem:[%s3704_s30 + $0x30] sm:$0xff]  ;;  %v2193_v53 = vpack.c.b16 %v2180_v20, %v2179_v3  ;;  %v1568_v0 = vrot.slane %v4141_v49, 5 }
  0xe3   : > { %v1129_v7 = vpop.f32.mrf.mxu3  ;;  %2494 = vmatmul.bf16.gmra.mxu0 %v2418_v16  ;;  %v2063_v3 = vshrl.u32 %v4456_v39, 16  ;;  %v2066_v20 = vshll.u32 %v4456_v39, 16  ;;  %v2072_v49 = vshll.u32 %v4459_v61, 16 }
  0xe4   : > { %v712_v17 = vpop.f32.mrf.mxu1  ;;  %v1166_v2 = vadd.f32 %v1129_v7, %v960_v10  ;;  %v2045_v26 = vor.u32 %v2044_v47, %v2041_v36  ;;  %v2055_v10 = vor.u32 %v2054_v57, %v2050_v37  ;;  %v2058_v7 = vshll.u32 %v4447_v45, 16 }
  0xe5   : > { %v713_v6 = vadd.f32 %v712_v17, %v4372_v40  ;;  %v2419_v17 = vpack.c.b16 %v2406_v48, %v2405_v33  ;;  %v1566_v47 = vsel %vm3973_vm5, %v3119_v12, %v1565_v15  ;;  %v2354_v33 = vrot.slane %v4447_v45, 5 }
  0xe6   : > { %v4444_v42 = vadd.f32 %v1483_v5, %v1166_v2  ;;  %v2046_v52 = vrot.slane %v2045_v26, 4  ;;  %v2056_v2 = vrot.slane %v2055_v10, 4  ;;  %v2065_v48 = vrot.slane %v2063_v3, 4 }
  0xe7   : > { %v2068_v15 = vrot.slane %v2066_v20, 5  ;;  %v1621_v26 = vunpack.c.l.b16 %v1566_v47  ;;  %v1572_v45 = vrot.slane %v4161_v21, 5  ;;  %v1575_v47 = vrot.slane %v4175_v1, 5 }
  0xe8   : > { %v1485_v38 = vpop.f32.mrf.mxu0 }
  0xe9   : > { %v925_v40 = vpop.f32.mrf.mxu2  ;;  %v1574_v21 = vrot.slane %v1572_v45, 4 }
  0xea   : > { %v961_v54 = vadd.f32 %v925_v40, %v713_v6  ;;  %v2060_v6 = vrot.slane %v2058_v7, 5  ;;  %v3188_v7 = vld [vmem:[%s3704_s30 + $0x50] sm:$0x1] }
  0xeb   : > { %v1131_v16 = vpop.f32.mrf.mxu3 }
  0xec   : > { %v715_v5 = vpop.f32.mrf.mxu1  ;;  %v1167_v4 = vadd.f32 %v1131_v16, %v961_v54  ;;  %v2061_v40 = vsel %vm3744_vm2, %v2056_v2, %v2060_v6 }
  0xed   : > { %v716_v41 = vadd.f32 %v715_v5, %v4290_v46  ;;  %v2351_v46 = vrot.slane %v4424_v24, 5  ;;  %v1569_v24 = vsel %vm3973_vm5, %v1567_v43, %v1568_v0  ;;  %v2074_v5 = vrot.slane %v2072_v49, 5 }
  0xee   : > { %1919 = vmatmul.bf16.gmra.mxu2 %v3451_v55  ;;  %v4461_v59 = vadd.f32 %v1485_v38, %v1167_v4  ;;  %v2051_v38 = vsel %vm3744_vm2, %v2046_v52, %v2050_v37  ;;  %v1622_v10 = vunpack.c.l.b16 %v1569_v24  ;;  %v2069_v43 = vor.u32 %v2068_v15, %v2065_v48 }
  0xef   : > { %1713 = vmatmul.bf16.gmra.mxu1 %v1633_v63  ;;  %v3329_v63 = vrot.slane %v4421_v51, 9  ;;  %v2353_v55 = vrot.slane %v2351_v46, 4  ;;  %v2181_v4 = vunpack.c.l.b16 %v2051_v38  ;;  %v2082_v52 = vshll.u32 %v3188_v7, 16 }
  0xf0   : > { %2273 = vmatmul.bf16.gmra.mxu3 %v2193_v53  ;;  %v1488_v30 = vpop.f32.mrf.mxu0  ;;  %v2078_v53 = vrot.slane %v2076_v62, 4 }
  0xf1   : > { %v928_v60 = vpop.f32.mrf.mxu2  ;;  %v2352_v51 = vsel %vm3973_vm5, %v3329_v63, %v2351_v46  ;;  %v2084_v38 = vrot.slane %v2082_v52, 5 }
  0xf2   : > { %v962_v27 = vadd.f32 %v928_v60, %v716_v41  ;;  %v2182_v41 = vunpack.c.l.b16 %v2061_v40  ;;  %v2079_v0 = vor.u32 %v2078_v53, %v2074_v5  ;;  %v1634_v60 = vpack.c.b16 %v1622_v10, %v1621_v26 }
  0xf3   : > { %v1134_v36 = vpop.f32.mrf.mxu3  ;;  %2499 = vmatmul.bf16.gmra.mxu0 %v2419_v17  ;;  %v2407_v49 = vunpack.c.l.b16 %v2352_v51  ;;  %v2358_v40 = vrot.slane %v4459_v61, 5  ;;  %v3330_v26 = vrot.slane %v4456_v39, 9 }
  0xf4   : > { %v717_v57 = vpop.f32.mrf.mxu1  ;;  %v1168_v54 = vadd.f32 %v1134_v36, %v962_v27  ;;  %v2194_v20 = vpack.c.b16 %v2182_v41, %v2181_v4  ;;  %v3120_v36 = vrot.slane %v4158_v35, 9  ;;  %v2080_v24 = vrot.slane %v2079_v0, 4 }
  0xf5   : > { %v718_v16 = vadd.f32 %v717_v57, %v4316_v22  ;;  %v2355_v22 = vsel %vm3973_vm5, %v2353_v55, %v2354_v33  ;;  %v2070_v57 = vrot.slane %v2069_v43, 4  ;;  %v4495_v55 = vld [vmem:[%s3704_s30 + $0x54] sm:$0xf]  ;;  %v1576_v33 = vsel %vm3973_vm5, %v1574_v21, %v1575_v47  ;;  %v3453_v21 = vld [vmem:[%s3704_s30 + $0x48] sm:$0xff] }
  0xf6   : > { %v4480_v37 = vadd.f32 %v1488_v30, %v1168_v54  ;;  %v3452_v30 = vld [vmem:[%s3704_s30 + $0x3c] sm:$0xff]  ;;  %v2408_v62 = vunpack.c.l.b16 %v2355_v22  ;;  %v1573_v1 = vsel %vm3973_vm5, %v3120_v36, %v1572_v45  ;;  %v2085_v61 = vsel %vm3744_vm2, %v2080_v24, %v2084_v38 }
  0xf7   : > { %v2075_v48 = vsel %vm3744_vm2, %v2070_v57, %v2074_v5  ;;  %v2360_v10 = vrot.slane %v2358_v40, 4  ;;  %v2361_v4 = vrot.slane %v3188_v7, 5  ;;  %v2090_v51 = vshll.u32 %v4495_v55, 16 }
  0xf8   : > { %v1490_v12 = vpop.f32.mrf.mxu0  ;;  %v2420_v63 = vpack.c.b16 %v2408_v62, %v2407_v49  ;;  %v1623_v43 = vunpack.c.l.b16 %v1573_v1  ;;  %v1624_v0 = vunpack.c.l.b16 %v1576_v33  ;;  %v2183_v39 = vunpack.c.l.b16 %v2075_v48  ;;  %v4521_v62 = vld [vmem:[%s3704_s30 + $0x5c] sm:$0x1] }
  0xf9   : > { %v930_v17 = vpop.f32.mrf.mxu2  ;;  %v2184_v52 = vunpack.c.l.b16 %v2085_v61  ;;  %v2359_v7 = vsel %vm3973_vm5, %v3330_v26, %v2358_v40  ;;  %v1579_v24 = vrot.slane %v4192_v14, 5  ;;  %v3121_v33 = vrot.slane %v4189_v29, 9  ;;  %v4532_v26 = vld [vmem:[%s3704_s30 + $0x64] sm:$0xf] }
  0xfa   : > { %v963_v2 = vadd.f32 %v930_v17, %v718_v16  ;;  %v2409_v47 = vunpack.c.l.b16 %v2359_v7 }
  0xfb   : > { %v1136_v6 = vpop.f32.mrf.mxu3  ;;  %v2195_v40 = vpack.c.b16 %v2184_v52, %v2183_v39  ;;  %v1581_v61 = vrot.slane %v1579_v24, 4 }
  0xfc   : > { %v720_v3 = vpop.f32.mrf.mxu1  ;;  %v1169_v27 = vadd.f32 %v1136_v6, %v963_v2  ;;  %v2362_v2 = vsel %vm3973_vm5, %v2360_v10, %v2361_v4 }
  0xfd   : > { %v721_v46 = vadd.f32 %v720_v3, %v4335_v9  ;;  %v4498_v9 = vld [vmem:[%s3704_s30 + $0x58] sm:$0xf]  ;;  %v2410_v57 = vunpack.c.l.b16 %v2362_v2 }
  0xfe   : > { %1924 = vmatmul.bf16.gmra.mxu2 %v3452_v30  ;;  %v4492_v54 = vadd.f32 %v1490_v12, %v1169_v27  ;;  %v2087_v12 = vshrl.u32 %v4495_v55, 16  ;;  %v2096_v22 = vshll.u32 %v4498_v9, 16  ;;  %v2100_v5 = vshrl.u32 %v4498_v9, 16 }
  0xff   : > { %1718 = vmatmul.bf16.gmra.mxu1 %v1634_v60  ;;  %v2092_v30 = vrot.slane %v2090_v51, 5  ;;  %v1635_v27 = vpack.c.b16 %v1624_v0, %v1623_v43  ;;  %v2421_v48 = vpack.c.b16 %v2410_v57, %v2409_v47  ;;  %v2365_v29 = vrot.slane %v4498_v9, 5  ;;  %v3194_v47 = vld [vmem:[%s3704_s30 + $0x68] sm:$0x1] }
 0x100   : > { %2278 = vmatmul.bf16.gmra.mxu3 %v2194_v20  ;;  %v1493_v16 = vpop.f32.mrf.mxu0  ;;  %v2089_v60 = vrot.slane %v2087_v12, 4  ;;  %v2098_v3 = vrot.slane %v2096_v22, 5  ;;  %v2102_v20 = vrot.slane %v2100_v5, 4 }
 0x101   : > { %v933_v35 = vpop.f32.mrf.mxu2 }
 0x102   : > { %v964_v15 = vadd.f32 %v933_v35, %v721_v46  ;;  %v2106_v35 = vshll.u32 %v4521_v62, 16 }
 0x103   : > { %v1139_v53 = vpop.f32.mrf.mxu3  ;;  %2504 = vmatmul.bf16.gmra.mxu0 %v2420_v63  ;;  %v2093_v63 = vor.u32 %v2092_v30, %v2089_v60  ;;  %v3331_v60 = vrot.slane %v4495_v55, 9  ;;  %v2367_v30 = vrot.slane %v2365_v29, 4 }
 0x104   : > { %v722_v41 = vpop.f32.mrf.mxu1  ;;  %v1170_v45 = vadd.f32 %v1139_v53, %v964_v15  ;;  %v1582_v15 = vrot.slane %v4215_v58, 5  ;;  %v4529_v53 = vld [vmem:[%s3704_s30 + $0x60] sm:$0xf]  ;;  %v2108_v4 = vrot.slane %v2106_v35, 5 }
 0x105   : > { %v723_v17 = vadd.f32 %v722_v41, %v4362_v25  ;;  %v2094_v14 = vrot.slane %v2093_v63, 4  ;;  %v2111_v5 = vshrl.u32 %v4529_v53, 16  ;;  %v2114_v58 = vshll.u32 %v4529_v53, 16 }
 0x106   : > { %v4518_v6 = vadd.f32 %v1493_v16, %v1170_v45  ;;  %v2103_v16 = vor.u32 %v2102_v20, %v2098_v3  ;;  %v2120_v45 = vshll.u32 %v4532_v26, 16  ;;  %v1583_v9 = vsel %vm3973_vm5, %v1581_v61, %v1582_v15 }
 0x107   : > { %v2099_v52 = vsel %vm3744_vm2, %v2094_v14, %v2098_v3  ;;  %v2368_v20 = vrot.slane %v4521_v62, 5  ;;  %v2366_v55 = vsel %vm3973_vm5, %v3331_v60, %v2365_v29  ;;  %v1586_v63 = vrot.slane %v4237_v11, 5  ;;  %v3454_v14 = vld [vmem:[%s3704_s30 + $0x54] sm:$0xff] }
 0x108   : > { %v1495_v49 = vpop.f32.mrf.mxu0  ;;  %v2104_v10 = vrot.slane %v2103_v16, 4  ;;  %v2185_v3 = vunpack.c.l.b16 %v2099_v52  ;;  %v3122_v29 = vrot.slane %v4234_v18, 9  ;;  %v1589_v11 = vrot.slane %v4254_v44, 5  ;;  %v4572_v18 = vld [vmem:[%s3704_s30 + $0x70] sm:$0xf] }
 0x109   : > { %v935_v25 = vpop.f32.mrf.mxu2  ;;  %v2369_v62 = vsel %vm3973_vm5, %v2367_v30, %v2368_v20  ;;  %v3332_v30 = vrot.slane %v4529_v53, 9 }
 0x10a   : > { %v965_v46 = vadd.f32 %v935_v25, %v723_v17  ;;  %v2124_v17 = vshrl.u32 %v4532_v26, 16  ;;  %v2109_v7 = vsel %vm3744_vm2, %v2104_v10, %v2108_v4  ;;  %v2116_v25 = vrot.slane %v2114_v58, 5 }
 0x10b   : > { %v1141_v36 = vpop.f32.mrf.mxu3  ;;  %v1587_v44 = vsel %vm3973_vm5, %v3122_v29, %v1586_v63  ;;  %v1593_v29 = vrot.slane %v4276_v19, 5 }
 0x10c   : > { %v725_v38 = vpop.f32.mrf.mxu1  ;;  %v1171_v1 = vadd.f32 %v1141_v36, %v965_v46  ;;  %v2126_v46 = vrot.slane %v2124_v17, 4  ;;  %v2372_v17 = vrot.slane %v4532_v26, 5 }
 0x10d   : > { %v726_v12 = vadd.f32 %v725_v38, %v4308_v13  ;;  %v1580_v13 = vsel %vm3973_vm5, %v3121_v33, %v1579_v24  ;;  %v2186_v24 = vunpack.c.l.b16 %v2109_v7  ;;  %v2130_v33 = vshll.u32 %v3194_v47, 16 }
 0x10e   : > { %1929 = vmatmul.bf16.gmra.mxu2 %v3453_v21  ;;  %v4534_v41 = vadd.f32 %v1495_v49, %v1171_v1  ;;  %v2113_v49 = vrot.slane %v2111_v5, 4  ;;  %v1625_v36 = vunpack.c.l.b16 %v1580_v13  ;;  %v1626_v21 = vunpack.c.l.b16 %v1583_v9  ;;  %v4569_v9 = vld [vmem:[%s3704_s30 + $0x6c] sm:$0xf] }
 0x10f   : > { %1723 = vmatmul.bf16.gmra.mxu1 %v1635_v27  ;;  %v2122_v27 = vrot.slane %v2120_v45, 5  ;;  %v2196_v4 = vpack.c.b16 %v2186_v24, %v2185_v3  ;;  %v2132_v45 = vrot.slane %v2130_v33, 5  ;;  %v2374_v20 = vrot.slane %v2372_v17, 4 }
 0x110   : > { %2283 = vmatmul.bf16.gmra.mxu3 %v2195_v40  ;;  %v1498_v51 = vpop.f32.mrf.mxu0  ;;  %v2117_v35 = vor.u32 %v2116_v25, %v2113_v49  ;;  %v1636_v15 = vpack.c.b16 %v1626_v21, %v1625_v36  ;;  %v2375_v49 = vrot.slane %v3194_v47, 5  ;;  %v2138_v36 = vshll.u32 %v4569_v9, 16 }
 0x111   : > { %v938_v22 = vpop.f32.mrf.mxu2  ;;  %v2127_v1 = vor.u32 %v2126_v46, %v2122_v27  ;;  %v2135_v46 = vshrl.u32 %v4569_v9, 16  ;;  %v2144_v21 = vshll.u32 %v4572_v18, 16  ;;  %v1627_v24 = vunpack.c.l.b16 %v1587_v44 }
 0x112   : > { %v966_v43 = vadd.f32 %v938_v22, %v726_v12  ;;  %v2412_v12 = vunpack.c.l.b16 %v2369_v62  ;;  %v1588_v22 = vrot.slane %v1586_v63, 4  ;;  %v2118_v5 = vrot.slane %v2117_v35, 4 }
 0x113   : > { %v1144_v0 = vpop.f32.mrf.mxu3  ;;  %2509 = vmatmul.bf16.gmra.mxu0 %v2421_v48  ;;  %v2128_v58 = vrot.slane %v2127_v1, 4  ;;  %v2373_v53 = vsel %vm3973_vm5, %v3332_v30, %v2372_v17  ;;  %v2376_v47 = vsel %vm3973_vm5, %v2374_v20, %v2375_v49  ;;  %v2137_v63 = vrot.slane %v2135_v46, 4 }
 0x114   : > { %v727_v39 = vpop.f32.mrf.mxu1  ;;  %v1172_v2 = vadd.f32 %v1144_v0, %v966_v43  ;;  %v1590_v7 = vsel %vm3973_vm5, %v1588_v22, %v1589_v11  ;;  %v2123_v26 = vsel %vm3744_vm2, %v2118_v5, %v2122_v27  ;;  %v2148_v27 = vshrl.u32 %v4572_v18, 16 }
 0x115   : > { %v728_v38 = vadd.f32 %v727_v39, %v4329_v8  ;;  %v2411_v8 = vunpack.c.l.b16 %v2366_v55  ;;  %v2146_v35 = vrot.slane %v2144_v21, 5  ;;  %v2379_v30 = vrot.slane %v4572_v18, 5 }
 0x116   : > { %v4553_v57 = vadd.f32 %v1498_v51, %v1172_v2  ;;  %v2133_v2 = vsel %vm3744_vm2, %v2128_v58, %v2132_v45  ;;  %v2150_v1 = vrot.slane %v2148_v27, 4  ;;  %v3333_v18 = vrot.slane %v4569_v9, 9 }
 0x117   : > { %v2422_v43 = vpack.c.b16 %v2412_v12, %v2411_v8  ;;  %v2188_v55 = vunpack.c.l.b16 %v2133_v2  ;;  %v3455_v8 = vld [vmem:[%s3704_s30 + $0x60] sm:$0xff]  ;;  %v2413_v12 = vunpack.c.l.b16 %v2373_v53  ;;  %v4695_v2 = vld [vmem:[#allocation3_spill] sm:$0xff] }
 0x118   : > { %v1500_v40 = vpop.f32.mrf.mxu0  ;;  %v2151_v58 = vor.u32 %v2150_v1, %v2146_v35 }
 0x119   : > { %v940_v16 = vpop.f32.mrf.mxu2 }
 0x11a   : > { %v967_v48 = vadd.f32 %v940_v16, %v728_v38  ;;  %v1628_v38 = vunpack.c.l.b16 %v1590_v7  ;;  %v2140_v16 = vrot.slane %v2138_v36, 5 }
 0x11b   : > { %v1146_v61 = vpop.f32.mrf.mxu3 }
 0x11c   : > { %v730_v10 = vpop.f32.mrf.mxu1  ;;  %v1173_v51 = vadd.f32 %v1146_v61, %v967_v48  ;;  %v3197_v61 = vld [vmem:[%s3704_s30 + $0x74] sm:$0x1]  ;;  %v2141_v5 = vor.u32 %v2140_v16, %v2137_v63 }
 0x11d   : > { %v731_v39 = vadd.f32 %v730_v10, %v4349_v28  ;;  %v2154_v45 = vshll.u32 %v3197_v61, 16  ;;  %v4696_v16 = vld [vmem:[#allocation4_spill] sm:$0xff] }
 0x11e   : > { %1934 = vmatmul.bf16.gmra.mxu2 %v3454_v14  ;;  %v4565_v0 = vadd.f32 %v1500_v40, %v1173_v51  ;;  %v2187_v40 = vunpack.c.l.b16 %v2123_v26  ;;  %v1637_v14 = vpack.c.b16 %v1628_v38, %v1627_v24  ;;  %v2414_v51 = vunpack.c.l.b16 %v2376_v47 }
 0x11f   : > { %1728 = vmatmul.bf16.gmra.mxu1 %v1636_v15  ;;  %v2142_v7 = vrot.slane %v2141_v5, 4  ;;  %v2152_v26 = vrot.slane %v2151_v58, 4  ;;  %v2156_v19 = vrot.slane %v2154_v45, 5  ;;  %v2381_v24 = vrot.slane %v2379_v30, 4 }
 0x120   : > { %2288 = vmatmul.bf16.gmra.mxu3 %v2196_v4  ;;  %v1503_v13 = vpop.f32.mrf.mxu0  ;;  %v2197_v11 = vpack.c.b16 %v2188_v55, %v2187_v40  ;;  %v2382_v38 = vrot.slane %v3197_v61, 5  ;;  %v3456_v61 = vld [vmem:[%s3704_s30 + $0x6c] sm:$0xff]  ;;  %s2786_s30 = sshll.u32 %s3618_s12, 4  ;;  %s4714_s12 = smov (!%p209_p7, %s3618_s12), 1 }
 0x121   : > { %v943_v52 = vpop.f32.mrf.mxu2  ;;  %v2147_v21 = vsel %vm3744_vm2, %v2142_v7, %v2146_v35  ;;  %v2157_v27 = vsel %vm3744_vm2, %v2152_v26, %v2156_v19  ;;  %v2380_v35 = vsel %vm3973_vm5, %v3333_v18, %v2379_v30  ;;  %p200_p6 = scmp.lt.s32.totalorder %s2786_s30, 31  ;;  %s212_s23 = sadd.s32 %s2789_s22, %s4714_s12 }
 0x122   : > { %v968_v60 = vadd.f32 %v943_v52, %v731_v39  ;;  %v1595_v39 = vrot.slane %v1593_v29, 4  ;;  %v4694_v52 = vld [vmem:[#allocation2_spill] sm:$0xff]  ;;  %v2189_v47 = vunpack.c.l.b16 %v2147_v21  ;;  %v2190_v63 = vunpack.c.l.b16 %v2157_v27  ;;  %s2790_s24 = sshll.u32 %s212_s23, 1 }
 0x123   : > { %v1149_v28 = vpop.f32.mrf.mxu3  ;;  %2514 = vmatmul.bf16.gmra.mxu0 %v2422_v43  ;;  %v3123_v43 = vrot.slane %v4273_v56, 9  ;;  %v1596_v44 = vrot.slane %v4694_v52, 5  ;;  %v2383_v31 = vsel %vm3973_vm5, %v2381_v24, %v2382_v38  ;;  %v4698_v52 = vld [vmem:[#allocation6_spill] sm:$0xff]  ;;  %s4712_s30 = smov (!%p200_p6, %s2786_s30), 31  ;;  %s214_s27 = scalar_lea.vmem %s4683_s3, %s2790_s24 }
 0x124   : > { %v732_v25 = vpop.f32.mrf.mxu1  ;;  %v1174_v3 = vadd.f32 %v1149_v28, %v968_v60  ;;  %s203_s10 = sadd.s32 %s2787_s9, %s4712_s30 }
 0x125   : > { %v733_v33 = vadd.f32 %v732_v25, %v4375_v32  ;;  %v2423_v32 = vpack.c.b16 %v2414_v51, %v2413_v12  ;;  %v1594_v56 = vsel %vm3973_vm5, %v3123_v43, %v1593_v29  ;;  %v1597_v36 = vsel %vm3973_vm5, %v1595_v39, %v1596_v44  ;;  %s2788_s11 = sshll.u32 %s203_s10, 2 }
 0x126   : > { %v4591_v62 = vadd.f32 %v1503_v13, %v1174_v3  ;;  %v1629_v40 = vunpack.c.l.b16 %v1594_v56  ;;  %v1630_v55 = vunpack.c.l.b16 %v1597_v36  ;;  %v2416_v12 = vunpack.c.l.b16 %v2383_v31  ;;  %s4635_s21 = scalar_lea.vmem %s4682_s2, %s2788_s11 }
 0x128   : > { %v1505_v48 = vpop.f32.mrf.mxu0 }
 0x129   : > { %v945_v15 = vpop.f32.mrf.mxu2 }
 0x12a   : > { %v969_v10 = vadd.f32 %v945_v15, %v733_v33 }
 0x12b   : > { %v1151_v4 = vpop.f32.mrf.mxu3 }
 0x12c   : > { %v735_v22 = vpop.f32.mrf.mxu1  ;;  %v1175_v17 = vadd.f32 %v1151_v4, %v969_v10  ;;  %v2198_v4 = vpack.c.b16 %v2190_v63, %v2189_v47 }
 0x12d   : > { %v736_v60 = vadd.f32 %v735_v22, %v4695_v2 }
 0x12e   : > { %1939 = vmatmul.bf16.gmra.mxu2 %v3455_v8  ;;  %v4598_v13 = vadd.f32 %v1505_v48, %v1175_v17  ;;  %v2415_v8 = vunpack.c.l.b16 %v2380_v35 }
 0x12f   : > { %1733 = vmatmul.bf16.gmra.mxu1 %v1637_v14  ;;  %v1638_v14 = vpack.c.b16 %v1630_v55, %v1629_v40 }
 0x130   : > { %2293 = vmatmul.bf16.gmra.mxu3 %v2197_v11  ;;  %v1508_v28 = vpop.f32.mrf.mxu0  ;;  %v2424_v22 = vpack.c.b16 %v2416_v12, %v2415_v8  ;;  %v4697_v11 = vld [vmem:[#allocation5_spill] sm:$0xff] }
 0x131   : > { %v948_v20 = vpop.f32.mrf.mxu2 }
 0x132   : > { %v970_v49 = vadd.f32 %v948_v20, %v736_v60 }
 0x133   : > { %v1154_v25 = vpop.f32.mrf.mxu3  ;;  %2519 = vmatmul.bf16.gmra.mxu0 %v2423_v32 }
 0x134   : > { %v737_v46 = vpop.f32.mrf.mxu1  ;;  %v1176_v3 = vadd.f32 %v1154_v25, %v970_v49 }
 0x135   : > { %v738_v1 = vadd.f32 %v737_v46, %v4696_v16 }
 0x136   : > { %v4612_v53 = vadd.f32 %v1508_v28, %v1176_v3 }
 0x138   : > { %v1510_v33 = vpop.f32.mrf.mxu0 }
 0x139   : > { %v950_v48 = vpop.f32.mrf.mxu2 }
 0x13a   : > { %v971_v9 = vadd.f32 %v950_v48, %v738_v1 }
 0x13b   : > { %v1156_v15 = vpop.f32.mrf.mxu3 }
 0x13c   : > { %v740_v10 = vpop.f32.mrf.mxu1  ;;  %v1177_v51 = vadd.f32 %v1156_v15, %v971_v9 }
 0x13d   : > { %v741_v5 = vadd.f32 %v740_v10, %v4697_v11 }
 0x13e   : > { %1944 = vmatmul.bf16.gmra.mxu2 %v3456_v61  ;;  %v4620_v29 = vadd.f32 %v1510_v33, %v1177_v51 }
 0x13f   : > { %1738 = vmatmul.bf16.gmra.mxu1 %v1638_v14 }
 0x140   : > { %2298 = vmatmul.bf16.gmra.mxu3 %v2198_v4  ;;  %v1513_v23 = vpop.f32.mrf.mxu0 }
 0x141   : > { %v953_v58 = vpop.f32.mrf.mxu2 }
 0x142   : > { %v972_v45 = vadd.f32 %v953_v58, %v741_v5 }
 0x143   : > { %v1159_v17 = vpop.f32.mrf.mxu3  ;;  %2524 = vmatmul.bf16.gmra.mxu0 %v2424_v22 }
 0x144   : > { %v742_v32 = vpop.f32.mrf.mxu1  ;;  %v1178_v43 = vadd.f32 %v1159_v17, %v972_v45 }
 0x145   : > { %v743_v44 = vadd.f32 %v742_v32, %v4698_v52 }
 0x146   : > { %v4623_v39 = vadd.f32 %v1513_v23, %v1178_v43 }
 0x148   : > { %v1515_v7 = vpop.f32.mrf.mxu0 }
 0x149   : > { %v955_v26 = vpop.f32.mrf.mxu2 }
 0x14a   : > { %v973_v19 = vadd.f32 %v955_v26, %v743_v44 }
 0x14b   : > { %v1161_v2 = vpop.f32.mrf.mxu3 }
 0x14c   : > { %v1704_v60 = vpop.f32.mrf.mxu1  ;;  %v1179_v28 = vadd.f32 %v1161_v2, %v973_v19 }
 0x14d   : > { %v1744_v49 = vadd.f32 %v1704_v60, %v4406_v34 }
 0x14e   : > { %v4627_v30 = vadd.f32 %v1515_v7, %v1179_v28 }
 0x150   : > { %v2490_v20 = vpop.f32.mrf.mxu0 }
 0x151   : > { %v1910_v25 = vpop.f32.mrf.mxu2 }
 0x152   : > { %v1950_v56 = vadd.f32 %v1910_v25, %v1744_v49 }
 0x153   : > { %v2264_v46 = vpop.f32.mrf.mxu3 }
 0x154   : > { %v1706_v36 = vpop.f32.mrf.mxu1  ;;  %v2304_v21 = vadd.f32 %v2264_v46, %v1950_v56 }
 0x155   : > { %v1745_v27 = vadd.f32 %v1706_v36, %v4418_v50 }
 0x156   : > { %v2530_v40 = vadd.f32 %v2490_v20, %v2304_v21 }
 0x158   : > { %v2492_v3 = vpop.f32.mrf.mxu0  ;;  %v2599_v63 = vmul.f32 %v2530_v40, %v2530_v40 }
 0x159   : > { %v1912_v18 = vpop.f32.mrf.mxu2 }
 0x15a   : > { %v1951_v24 = vadd.f32 %v1912_v18, %v1745_v27 }
 0x15b   : > { %v2266_v38 = vpop.f32.mrf.mxu3 }
 0x15c   : > { %v1709_v55 = vpop.f32.mrf.mxu1  ;;  %v2305_v47 = vadd.f32 %v2266_v38, %v1951_v24 }
 0x15d   : > { %v1746_v33 = vadd.f32 %v1709_v55, %v4444_v42 }
 0x15e   : > { %v2531_v34 = vadd.f32 %v2492_v3, %v2305_v47 }
 0x160   : > { %v3484_v16 = vpack.c.bf16 %v2531_v34, %v2530_v40  ;;  %v2578_v1 = vadd.f32 %v2531_v34, %v2530_v40  ;;  %v2600_v50 = vmul.f32 %v2531_v34, %v2531_v34  ;;  %v2495_v35 = vpop.f32.mrf.mxu0 }
 0x161   : > { %v1915_v31 = vpop.f32.mrf.mxu2 }
 0x162   : > { %3485 = vst [vmem:[%s4635_s21] sm:$0xff] %v3484_v16   ;;  %v2615_v48 = vadd.f32 %v2600_v50, %v2599_v63  ;;  %v1952_v9 = vadd.f32 %v1915_v31, %v1746_v33 }
 0x163   : > { %v2269_v15 = vpop.f32.mrf.mxu3 }
 0x164   : > { %v1711_v14 = vpop.f32.mrf.mxu1  ;;  %v2306_v61 = vadd.f32 %v2269_v15, %v1952_v9 }
 0x165   : > { %v1747_v12 = vadd.f32 %v1711_v14, %v4461_v59 }
 0x166   : > { %v2532_v10 = vadd.f32 %v2495_v35, %v2306_v61 }
 0x168   : > { %v2579_v4 = vadd.f32 %v2578_v1, %v2532_v10  ;;  %v2601_v8 = vmul.f32 %v2532_v10, %v2532_v10  ;;  %v2497_v51 = vpop.f32.mrf.mxu0 }
 0x169   : > { %v1917_v22 = vpop.f32.mrf.mxu2 }
 0x16a   : > { %v2616_v11 = vadd.f32 %v2615_v48, %v2601_v8  ;;  %v1953_v5 = vadd.f32 %v1917_v22, %v1747_v12 }
 0x16b   : > { %v2271_v23 = vpop.f32.mrf.mxu3 }
 0x16c   : > { %v1714_v42 = vpop.f32.mrf.mxu1  ;;  %v2307_v58 = vadd.f32 %v2271_v23, %v1953_v5 }
 0x16d   : > { %v1748_v52 = vadd.f32 %v1714_v42, %v4480_v37 }
 0x16e   : > { %v2533_v45 = vadd.f32 %v2497_v51, %v2307_v58 }
 0x170   : > { %v3489_v17 = vpack.c.bf16 %v2533_v45, %v2532_v10  ;;  %v2580_v32 = vadd.f32 %v2579_v4, %v2533_v45  ;;  %v2602_v43 = vmul.f32 %v2533_v45, %v2533_v45  ;;  %v2500_v44 = vpop.f32.mrf.mxu0 }
 0x171   : > { %v1920_v7 = vpop.f32.mrf.mxu2 }
 0x172   : > { %3521 = vst [vmem:[%s4635_s21 + $0x8] sm:$0xff] %v3489_v17   ;;  %v2617_v26 = vadd.f32 %v2616_v11, %v2602_v43  ;;  %v1954_v19 = vadd.f32 %v1920_v7, %v1748_v52 }
 0x173   : > { %v2274_v2 = vpop.f32.mrf.mxu3 }
 0x174   : > { %v1716_v59 = vpop.f32.mrf.mxu1  ;;  %v2308_v60 = vadd.f32 %v2274_v2, %v1954_v19 }
 0x175   : > { %v1749_v25 = vadd.f32 %v1716_v59, %v4492_v54 }
 0x176   : > { %v2534_v28 = vadd.f32 %v2500_v44, %v2308_v60 }
 0x178   : > { %v2581_v20 = vadd.f32 %v2580_v32, %v2534_v28  ;;  %v2603_v49 = vmul.f32 %v2534_v28, %v2534_v28  ;;  %v2502_v46 = vpop.f32.mrf.mxu0 }
 0x179   : > { %v1922_v56 = vpop.f32.mrf.mxu2 }
 0x17a   : > { %v2618_v36 = vadd.f32 %v2617_v26, %v2603_v49  ;;  %v1955_v21 = vadd.f32 %v1922_v56, %v1749_v25 }
 0x17b   : > { %v2276_v27 = vpop.f32.mrf.mxu3 }
 0x17c   : > { %v1719_v37 = vpop.f32.mrf.mxu1  ;;  %v2309_v3 = vadd.f32 %v2276_v27, %v1955_v21 }
 0x17d   : > { %v1750_v55 = vadd.f32 %v1719_v37, %v4518_v6 }
 0x17e   : > { %v2535_v18 = vadd.f32 %v2502_v46, %v2309_v3 }
 0x180   : > { %v3494_v24 = vpack.c.bf16 %v2535_v18, %v2534_v28  ;;  %v2582_v38 = vadd.f32 %v2581_v20, %v2535_v18  ;;  %v2604_v40 = vmul.f32 %v2535_v18, %v2535_v18  ;;  %v2505_v47 = vpop.f32.mrf.mxu0 }
 0x181   : > { %v1925_v34 = vpop.f32.mrf.mxu2 }
 0x182   : > { %3522 = vst [vmem:[%s4635_s21 + $0x10] sm:$0xff] %v3494_v24   ;;  %v2619_v63 = vadd.f32 %v2618_v36, %v2604_v40  ;;  %v1956_v16 = vadd.f32 %v1925_v34, %v1750_v55 }
 0x183   : > { %v2279_v1 = vpop.f32.mrf.mxu3 }
 0x184   : > { %v1721_v54 = vpop.f32.mrf.mxu1  ;;  %v2310_v50 = vadd.f32 %v2279_v1, %v1956_v16 }
 0x185   : > { %v1751_v48 = vadd.f32 %v1721_v54, %v4534_v41 }
 0x186   : > { %v2536_v33 = vadd.f32 %v2505_v47, %v2310_v50 }
 0x188   : > { %v2583_v35 = vadd.f32 %v2582_v38, %v2536_v33  ;;  %v2605_v31 = vmul.f32 %v2536_v33, %v2536_v33  ;;  %v2507_v9 = vpop.f32.mrf.mxu0 }
 0x189   : > { %v1927_v15 = vpop.f32.mrf.mxu2 }
 0x18a   : > { %v2620_v14 = vadd.f32 %v2619_v63, %v2605_v31  ;;  %v1957_v61 = vadd.f32 %v1927_v15, %v1751_v48 }
 0x18b   : > { %v2281_v10 = vpop.f32.mrf.mxu3 }
 0x18c   : > { %v1724_v6 = vpop.f32.mrf.mxu1  ;;  %v2311_v4 = vadd.f32 %v2281_v10, %v1957_v61 }
 0x18d   : > { %v1752_v11 = vadd.f32 %v1724_v6, %v4553_v57 }
 0x18e   : > { %v2537_v8 = vadd.f32 %v2507_v9, %v2311_v4 }
 0x190   : > { %v3499_v12 = vpack.c.bf16 %v2537_v8, %v2536_v33  ;;  %v2584_v51 = vadd.f32 %v2583_v35, %v2537_v8  ;;  %v2606_v22 = vmul.f32 %v2537_v8, %v2537_v8  ;;  %v2510_v5 = vpop.f32.mrf.mxu0 }
 0x191   : > { %v1930_v23 = vpop.f32.mrf.mxu2 }
 0x192   : > { %3523 = vst [vmem:[%s4635_s21 + $0x18] sm:$0xff] %v3499_v12   ;;  %v2621_v42 = vadd.f32 %v2620_v14, %v2606_v22  ;;  %v1958_v58 = vadd.f32 %v1930_v23, %v1752_v11 }
 0x193   : > { %v2284_v45 = vpop.f32.mrf.mxu3 }
 0x194   : > { %v1726_v41 = vpop.f32.mrf.mxu1  ;;  %v2312_v17 = vadd.f32 %v2284_v45, %v1958_v58 }
 0x195   : > { %v1753_v44 = vadd.f32 %v1726_v41, %v4565_v0 }
 0x196   : > { %v2538_v32 = vadd.f32 %v2510_v5, %v2312_v17 }
 0x198   : > { %v2585_v43 = vadd.f32 %v2584_v51, %v2538_v32  ;;  %v2607_v52 = vmul.f32 %v2538_v32, %v2538_v32  ;;  %v2512_v7 = vpop.f32.mrf.mxu0 }
 0x199   : > { %v1932_v26 = vpop.f32.mrf.mxu2 }
 0x19a   : > { %v2622_v19 = vadd.f32 %v2621_v42, %v2607_v52  ;;  %v1959_v2 = vadd.f32 %v1932_v26, %v1753_v44 }
 0x19b   : > { %v2286_v59 = vpop.f32.mrf.mxu3 }
 0x19c   : > { %v1729_v57 = vpop.f32.mrf.mxu1  ;;  %v2313_v60 = vadd.f32 %v2286_v59, %v1959_v2 }
 0x19d   : > { %v1754_v46 = vadd.f32 %v1729_v57, %v4591_v62 }
 0x19e   : > { %v2539_v28 = vadd.f32 %v2512_v7, %v2313_v60 }
 0x1a0   : > { %v3504_v20 = vpack.c.bf16 %v2539_v28, %v2538_v32  ;;  %v2586_v49 = vadd.f32 %v2585_v43, %v2539_v28  ;;  %v2608_v25 = vmul.f32 %v2539_v28, %v2539_v28  ;;  %v2515_v56 = vpop.f32.mrf.mxu0 }
 0x1a1   : > { %v1935_v36 = vpop.f32.mrf.mxu2 }
 0x1a2   : > { %3524 = vst [vmem:[%s4635_s21 + $0x20] sm:$0xff] %v3504_v20   ;;  %v2623_v21 = vadd.f32 %v2622_v19, %v2608_v25  ;;  %v1960_v27 = vadd.f32 %v1935_v36, %v1754_v46 }
 0x1a3   : > { %v2289_v37 = vpop.f32.mrf.mxu3 }
 0x1a4   : > { %v1731_v0 = vpop.f32.mrf.mxu1  ;;  %v2314_v3 = vadd.f32 %v2289_v37, %v1960_v27 }
 0x1a5   : > { %v1755_v40 = vadd.f32 %v1731_v0, %v4598_v13 }
 0x1a6   : > { %v2540_v18 = vadd.f32 %v2515_v56, %v2314_v3 }
 0x1a8   : > { %v2587_v24 = vadd.f32 %v2586_v49, %v2540_v18  ;;  %v2609_v38 = vmul.f32 %v2540_v18, %v2540_v18  ;;  %v2517_v55 = vpop.f32.mrf.mxu0 }
 0x1a9   : > { %v1937_v47 = vpop.f32.mrf.mxu2 }
 0x1aa   : > { %v2624_v34 = vadd.f32 %v2623_v21, %v2609_v38  ;;  %v1961_v63 = vadd.f32 %v1937_v47, %v1755_v40 }
 0x1ab   : > { %v2291_v16 = vpop.f32.mrf.mxu3 }
 0x1ac   : > { %v1734_v62 = vpop.f32.mrf.mxu1  ;;  %v2315_v1 = vadd.f32 %v2291_v16, %v1961_v63 }
 0x1ad   : > { %v1756_v31 = vadd.f32 %v1734_v62, %v4612_v53 }
 0x1ae   : > { %v2541_v54 = vadd.f32 %v2517_v55, %v2315_v1 }
 0x1b0   : > { %v3509_v50 = vpack.c.bf16 %v2541_v54, %v2540_v18  ;;  %v2588_v33 = vadd.f32 %v2587_v24, %v2541_v54  ;;  %v2610_v35 = vmul.f32 %v2541_v54, %v2541_v54  ;;  %v2520_v48 = vpop.f32.mrf.mxu0 }
 0x1b1   : > { %v1940_v9 = vpop.f32.mrf.mxu2 }
 0x1b2   : > { %3525 = vst [vmem:[%s4635_s21 + $0x28] sm:$0xff] %v3509_v50   ;;  %v2625_v15 = vadd.f32 %v2624_v34, %v2610_v35  ;;  %v1962_v14 = vadd.f32 %v1940_v9, %v1756_v31 }
 0x1b3   : > { %v2294_v61 = vpop.f32.mrf.mxu3 }
 0x1b4   : > { %v1736_v13 = vpop.f32.mrf.mxu1  ;;  %v2316_v10 = vadd.f32 %v2294_v61, %v1962_v14 }
 0x1b5   : > { %v1757_v12 = vadd.f32 %v1736_v13, %v4620_v29 }
 0x1b6   : > { %v2542_v6 = vadd.f32 %v2520_v48, %v2316_v10 }
 0x1b8   : > { %v2589_v4 = vadd.f32 %v2588_v33, %v2542_v6  ;;  %v2611_v8 = vmul.f32 %v2542_v6, %v2542_v6  ;;  %v2522_v51 = vpop.f32.mrf.mxu0 }
 0x1b9   : > { %v1942_v22 = vpop.f32.mrf.mxu2 }
 0x1ba   : > { %v2626_v11 = vadd.f32 %v2625_v15, %v2611_v8  ;;  %v1963_v5 = vadd.f32 %v1942_v22, %v1757_v12 }
 0x1bb   : > { %v2296_v23 = vpop.f32.mrf.mxu3 }
 0x1bc   : > { %v1739_v53 = vpop.f32.mrf.mxu1  ;;  %v2317_v42 = vadd.f32 %v2296_v23, %v1963_v5 }
 0x1bd   : > { %v1758_v32 = vadd.f32 %v1739_v53, %v4623_v39 }
 0x1be   : > { %v2543_v58 = vadd.f32 %v2522_v51, %v2317_v42 }
 0x1c0   : > { %v3514_v45 = vpack.c.bf16 %v2543_v58, %v2542_v6  ;;  %v2590_v41 = vadd.f32 %v2589_v4, %v2543_v58  ;;  %v2612_v17 = vmul.f32 %v2543_v58, %v2543_v58  ;;  %v2525_v29 = vpop.f32.mrf.mxu0 }
 0x1c1   : > { %v1945_v43 = vpop.f32.mrf.mxu2 }
 0x1c2   : > { %3526 = vst [vmem:[%s4635_s21 + $0x30] sm:$0xff] %v3514_v45   ;;  %v2627_v52 = vadd.f32 %v2626_v11, %v2612_v17  ;;  %v1964_v44 = vadd.f32 %v1945_v43, %v1758_v32 }
 0x1c3   : > { %v2299_v7 = vpop.f32.mrf.mxu3 }
 0x1c4   : > { %v2318_v26 = vadd.f32 %v2299_v7, %v1964_v44  ;;  %v1741_v19 = vpop.f32.mrf.mxu1 }
 0x1c5   : > { %v1759_v60 = vadd.f32 %v1741_v19, %v4627_v30 }
 0x1c6   : > { %v2544_v2 = vadd.f32 %v2525_v29, %v2318_v26 }
 0x1c8   : > { %v2591_v59 = vadd.f32 %v2590_v41, %v2544_v2  ;;  %v2613_v57 = vmul.f32 %v2544_v2, %v2544_v2  ;;  %v2527_v46 = vpop.f32.mrf.mxu0 }
 0x1c9   : > { %v1947_v28 = vpop.f32.mrf.mxu2 }
 0x1ca   : > { %v2628_v20 = vadd.f32 %v2627_v52, %v2613_v57  ;;  %v1965_v39 = vadd.f32 %v1947_v28, %v1759_v60 }
 0x1cb   : > { %v2301_v49 = vpop.f32.mrf.mxu3 }
 0x1cc   : > { %v2319_v25 = vadd.f32 %v2301_v49, %v1965_v39 }
 0x1ce   : > { %v2545_v56 = vadd.f32 %v2527_v46, %v2319_v25 }
 0x1d0   : > { %v3519_v36 = vpack.c.bf16 %v2545_v56, %v2544_v2  ;;  %v2592_v21 = vadd.f32 %v2591_v59, %v2545_v56  ;;  %v2614_v27 = vmul.f32 %v2545_v56, %v2545_v56 }
 0x1d2   : > { %3527 = vst [vmem:[%s4635_s21 + $0x38] sm:$0xff] %v3519_v36   ;;  %v2593_v37 = vrot.slane %v2592_v21, 4  ;;  %v2629_v0 = vadd.f32 %v2628_v20, %v2614_v27 }
 0x1d4   : > { %v2594_v3 = vadd.f32 %v2593_v37, %v2592_v21  ;;  %v2630_v18 = vrot.slane %v2629_v0, 4 }
 0x1d6   : > { %v2595_v30 = vrot.slane %v2594_v3, 2  ;;  %v2631_v24 = vadd.f32 %v2630_v18, %v2629_v0 }
 0x1d8   : > { %v2596_v38 = vadd.f32 %v2595_v30, %v2594_v3  ;;  %v2632_v40 = vrot.slane %v2631_v24, 2 }
 0x1da   : > { %v2597_v55 = vrot.slane %v2596_v38, 1  ;;  %v2633_v47 = vadd.f32 %v2632_v40, %v2631_v24 }
 0x1dc   : > { %v2634_v34 = vrot.slane %v2633_v47, 1  ;;  %v2598_v63 = vadd.f32 %v2597_v55, %v2596_v38 }
 0x1de   : > { %v2635_v16 = vadd.f32 %v2634_v34, %v2633_v47 }
 0x1e0   : > { %v2637_v62 = vsel %vm2636_vm6, %v2598_v63, %v2635_v16 }
 0x1e1   : > { %2638 = vst [vmem:[%s214_s27] sm:$0x3] %v2637_v62 }
 0x1e2 PF: > { %s14_s16 = sadd.s32 1, %s3634_s16   ;;  %s4699_s12 = smov %s3626_s14 }
 0x1e3   : > { %p11_p8 = scmp.ge.s32.totalorder %s14_s16, 6   ;;  %s4700_s13 = smov %s3630_s15 }
 0x1e4   : > { %s4701_s14 = smov %s4704_s17  ;;  %s4702_s15 = smov %s4708_s18 }
 0x1e5   :  { %13 = sbr.rel (!%p11_p8) target bundleno = 3 (0x3), region = 81 }

// kernel: upblock_forward.6
= control target key start
LH: loop header
LB: loop body
LE: loop exit
PB: predicated region body
PF: predicated region fallthrough
CT: control target
= control target key end

     0   :  { %s6822_s18 = smov 0   ;;  %s6824_s19 = smov 0   ;;  %s8735_s0 = inlined_call_operand.vmem [shape: bf16[2,18,18,128], index: 0, kind: input, shape index: {}]   ;;  %s8736_s1 = inlined_call_operand.vmem [shape: bf16[2,18,18,128], index: 1, kind: input, shape index: {}]   ;;  %s8737_s2 = inlined_call_operand.vmem [shape: bf16[3,3,128,128], index: 2, kind: input, shape index: {}]   ;;  %s8738_s3 = inlined_call_operand.vmem [shape: bf16[3,3,128,128], index: 3, kind: input, shape index: {}]   ;;  %s8739_s4 = inlined_call_operand.vmem [shape: bf16[2,256,128], index: 4, kind: output, shape index: {0}]   ;;  %s8740_s5 = inlined_call_operand.vmem [shape: f32[2,2,2,128], index: 5, kind: output, shape index: {1}]  }
   0x1   :  { %s6826_s20 = smov 0   ;;  %s6828_s21 = smov 0  }
   0x2   :  { %s6830_s22 = smov 0  }
   0x3 LB: > { %s25_s23 = sadd.s32 1, %s6782_s20  ;;  %s28_s24 = sadd.s32 1, %s6786_s21  ;;  %s6790_s22 = sphi %s6830_s22, %s16_s22   ;;  %s6786_s21 = sphi %s6828_s21, %s8748_s21   ;;  %s6782_s20 = sphi %s6826_s20, %s8747_s20   ;;  %s6778_s19 = sphi %s6824_s19, %s8746_s19   ;;  %s6774_s18 = sphi %s6822_s18, %s8745_s18  }
   0x4   : > { %p26_p0 = scmp.ge.s32.totalorder %s25_s23, 2  ;;  %p5231_p1 = scmp.ge.s32.totalorder %s6790_s22, 1 }
   0x5   : > { %p216_p2 = scmp.lt.s32.totalorder %s6790_s22, 5 }
   0x6   : > { %s8750_s23 = smov (%p26_p0, %s25_s23), 0  ;;  %s8752_s24 = smov (!%p26_p0, %s28_s24), %s6786_s21 }
   0x7   : > { %p217_p3 = pnand %p5231_p1, %p216_p2  ;;  %p30_p4 = scmp.ge.s32.totalorder %s8752_s24, 2 }
   0x8   : > { %p261_p5 = scmp.lt.s32.totalorder (!%p217_p3), %s6778_s19, 1  ;;  %s6421_s8 = smul.u32 (!%p217_p3), 96, %s6774_s18 }
   0x9   : > { %s8754_s24 = smov (%p30_p4, %s8752_s24), 0  ;;  %220 = sbr.rel (%p217_p3) target bundleno = 772 (0x304), region = 36 }
   0xa   : > { %p283_p7 = scmp.lt.s32.totalorder (!%p217_p3), %s6774_s18, 1 }
   0xe   : > { %v6445_v0 = vld [vmem:[%s8737_s2 + $0x78] sm:$0xff]  ;;  %v6444_v2 = vld [vmem:[%s8737_s2 + $0x70] sm:$0xff]  ;;  %s8756_s19 = smov (!%p261_p5, %s6778_s19), 1  ;;  %v6443_v4 = vld [vmem:[%s8737_s2 + $0x68] sm:$0xff]  ;;  %vm333_vm0 = vsmask.f32 3328 }
   0xf   : > { %v6437_v1 = vld [vmem:[%s8737_s2 + $0x38] sm:$0xff]  ;;  %6662 = vmatpush.bf16.msra.mxu2 %v6445_v0  ;;  %v6436_v3 = vld [vmem:[%s8737_s2 + $0x30] sm:$0xff]  ;;  %625 = vmatpush.bf16.msra.mxu0 %v6445_v0  ;;  %s6678_s9 = smul.u32 216, %s8756_s19  ;;  %v6435_v5 = vld [vmem:[%s8737_s2 + $0x28] sm:$0xff]  ;;  %vm334_vm1 = vsmask.f32 7440 }
  0x10   : > { %6670 = vmatpush.bf16.msra.mxu3 %v6437_v1  ;;  %770 = vmatpush.bf16.msra.mxu1 %v6437_v1  ;;  %v6442_v8 = vld [vmem:[%s8737_s2 + $0x60] sm:$0xff]  ;;  %v6441_v28 = vld [vmem:[%s8737_s2 + $0x58] sm:$0xff]  ;;  %v6440_v37 = vld [vmem:[%s8737_s2 + $0x50] sm:$0xff]  ;;  %vm827_vm3 = vcmask 1042432   ;;  %vm828_vm4 = vcmask 1046532   ;;  %s5235_s15 = sshll.u32 %s8756_s19, 5 }
  0x11   : > { %s265_s16 = scalar_lea.vmem %s8735_s0, %s6678_s9  ;;  %v6434_v9 = vld [vmem:[%s8737_s2 + $0x20] sm:$0xff]  ;;  %v6433_v29 = vld [vmem:[%s8737_s2 + $0x18] sm:$0xff]  ;;  %v6432_v41 = vld [vmem:[%s8737_s2 + $0x10] sm:$0xff]  ;;  %s270_s14 = scalar_lea.vmem %s8736_s1, %s6678_s9  ;;  %vm5061_vm6 = vcmask 1040384  }
  0x12   : > { %s6883_s17 = scalar_lea.vmem %s265_s16, %s6421_s8  ;;  %vm6921_vm2 = vmor %vm333_vm0, %vm334_vm1  ;;  %v6439_v56 = vld [vmem:[%s8737_s2 + $0x48] sm:$0xff]  ;;  %s7586_s25 = scalar_lea.vmem %s270_s14, %s6421_s8 }
  0x13   : > { %6663 = vmatpush.bf16.msra.mxu2 %v6444_v2  ;;  %626 = vmatpush.bf16.msra.mxu0 %v6444_v2  ;;  %v305_v6 = vld [vmem:[%s6883_s17 + $0x30] sm:$0xf]  ;;  %v306_v7 = vld [vmem:[%s6883_s17 + $0x34] sm:$0xf]  ;;  %v307_v14 = vld [vmem:[%s6883_s17 + $0x38] sm:$0x1] }
  0x14   : > { %6671 = vmatpush.bf16.msra.mxu3 %v6436_v3  ;;  %771 = vmatpush.bf16.msra.mxu1 %v6436_v3  ;;  %v433_v10 = vshrl.u32 %v305_v6, 16  ;;  %v436_v11 = vshll.u32 %v305_v6, 16  ;;  %v442_v12 = vshll.u32 %v306_v7, 16  ;;  %v446_v13 = vshrl.u32 %v306_v7, 16  ;;  %v6895_v15 = vld [vmem:[%s6883_s17] sm:$0xf]  ;;  %vm7107_vm5 = vmor %vm827_vm3, %vm828_vm4 }
  0x15   : > { %v6898_v16 = vld [vmem:[%s6883_s17 + $0x4] sm:$0xf]  ;;  %v6901_v21 = vld [vmem:[%s6883_s17 + $0x8] sm:$0x1]  ;;  %v337_v22 = vshrl.u32 %v6895_v15, 16  ;;  %v340_v23 = vshll.u32 %v6895_v15, 16 }
  0x16   : > { %v435_v17 = vrot.slane %v433_v10, 4  ;;  %v438_v18 = vrot.slane %v436_v11, 5  ;;  %v444_v19 = vrot.slane %v442_v12, 5  ;;  %v448_v20 = vrot.slane %v446_v13, 4  ;;  %v308_v40 = vld [vmem:[%s6883_s17 + $0x3c] sm:$0xf] }
  0x17   : > { %6664 = vmatpush.bf16.msra.mxu2 %v6443_v4  ;;  %627 = vmatpush.bf16.msra.mxu0 %v6443_v4  ;;  %v346_v24 = vshll.u32 %v6898_v16, 16  ;;  %v452_v26 = vshll.u32 %v307_v14, 16  ;;  %v350_v27 = vshrl.u32 %v6898_v16, 16  ;;  %v339_v31 = vrot.slane %v337_v22, 4  ;;  %v309_v46 = vld [vmem:[%s6883_s17 + $0x40] sm:$0xf] }
  0x18   : > { %6672 = vmatpush.bf16.msra.mxu3 %v6435_v5  ;;  %772 = vmatpush.bf16.msra.mxu1 %v6435_v5  ;;  %v439_v25 = vor.u32 %v438_v18, %v435_v17  ;;  %v449_v30 = vor.u32 %v448_v20, %v444_v19  ;;  %v342_v32 = vrot.slane %v340_v23, 5  ;;  %v356_v35 = vshll.u32 %v6901_v21, 16  ;;  %v6927_v49 = vld [vmem:[%s6883_s17 + $0xc] sm:$0xf]  ;;  %v6930_v51 = vld [vmem:[%s6883_s17 + $0x10] sm:$0xf] }
  0x19   : > { %v348_v33 = vrot.slane %v346_v24, 5  ;;  %v352_v34 = vrot.slane %v350_v27, 4  ;;  %v454_v44 = vrot.slane %v452_v26, 5  ;;  %v457_v50 = vshrl.u32 %v308_v40, 16  ;;  %v6431_v57 = vld [vmem:[%s8737_s2 + $0x8] sm:$0xff]  ;;  %v6438_v7 = vld [vmem:[%s8737_s2 + $0x40] sm:$0xff] }
  0x1a   : > { %v343_v36 = vor.u32 %v342_v32, %v339_v31  ;;  %v440_v38 = vrot.slane %v439_v25, 4  ;;  %v450_v43 = vrot.slane %v449_v30, 4  ;;  %v358_v48 = vrot.slane %v356_v35, 5  ;;  %v6959_v11 = vld [vmem:[%s6883_s17 + $0x44] sm:$0x1]  ;;  %v6453_v18 = vld [vmem:[%s8737_s2 + $0xb8] sm:$0xff] }
  0x1b   : > { %6665 = vmatpush.bf16.msra.mxu2 %v6442_v8  ;;  %628 = vmatpush.bf16.msra.mxu0 %v6442_v8  ;;  %v353_v39 = vor.u32 %v352_v34, %v348_v33  ;;  %v460_v53 = vshll.u32 %v308_v40, 16  ;;  %v466_v54 = vshll.u32 %v309_v46, 16  ;;  %v470_v55 = vshrl.u32 %v309_v46, 16  ;;  %v6430_v8 = vld [vmem:[%s8737_s2] sm:$0xff]  ;;  %v6970_v20 = vld [vmem:[%s6883_s17 + $0x14] sm:$0x1] }
  0x1c   : > { %6673 = vmatpush.bf16.msra.mxu3 %v6434_v9  ;;  %773 = vmatpush.bf16.msra.mxu1 %v6434_v9  ;;  %v344_v45 = vrot.slane %v343_v36, 4  ;;  %v445_v52 = vsel %vm6921_vm2, %v440_v38, %v444_v19  ;;  %v455_v58 = vsel %vm6921_vm2, %v450_v43, %v454_v44  ;;  %v361_v60 = vshrl.u32 %v6927_v49, 16  ;;  %v6469_v19 = vld [vmem:[%s8737_s2 + $0xf8] sm:$0xff]  ;;  %v6426_v23 = vld [vmem:[%s6883_s17 + $0x30] sm:$0xff]  ;;  %v311_v34 = vld [vmem:[%s6883_s17 + $0x48] sm:$0xf] }
  0x1d   : > { %v354_v47 = vrot.slane %v353_v39, 4  ;;  %v364_v62 = vshll.u32 %v6927_v49, 16  ;;  %v370_v63 = vshll.u32 %v6930_v51, 16  ;;  %v374_v0 = vshrl.u32 %v6930_v51, 16  ;;  %v6485_v30 = vld [vmem:[%s8737_s2 + $0x178] sm:$0xff]  ;;  %v6452_v36 = vld [vmem:[%s8737_s2 + $0xb0] sm:$0xff] }
  0x1e   : > { %v349_v59 = vsel %vm6921_vm2, %v344_v45, %v348_v33  ;;  %v553_v1 = vunpack.c.l.b16 %v445_v52  ;;  %v459_v2 = vrot.slane %v457_v50, 4  ;;  %v554_v3 = vunpack.c.l.b16 %v455_v58  ;;  %v312_v35 = vld [vmem:[%s6883_s17 + $0x4c] sm:$0xf]  ;;  %v6993_v46 = vld [vmem:[%s6883_s17 + $0x18] sm:$0xf]  ;;  %v6476_v52 = vld [vmem:[%s8737_s2 + $0x130] sm:$0xff] }
  0x1f   : > { %6666 = vmatpush.bf16.msra.mxu2 %v6441_v28  ;;  %629 = vmatpush.bf16.msra.mxu0 %v6441_v28  ;;  %v359_v61 = vsel %vm6921_vm2, %v354_v47, %v358_v48  ;;  %v462_v4 = vrot.slane %v460_v53, 5  ;;  %v6950_v5 = vrot.slane %v466_v54, 5  ;;  %v472_v6 = vrot.slane %v470_v55, 4  ;;  %v6422_v28 = vld [vmem:[%s6883_s17] sm:$0xff]  ;;  %v6484_v53 = vld [vmem:[%s8737_s2 + $0x170] sm:$0xff]  ;;  %v6451_v54 = vld [vmem:[%s8737_s2 + $0xa8] sm:$0xff] }
  0x20   : > { %6674 = vmatpush.bf16.msra.mxu3 %v6433_v29  ;;  %774 = vmatpush.bf16.msra.mxu1 %v6433_v29  ;;  %v545_v9 = vunpack.c.l.b16 %v349_v59  ;;  %v546_v10 = vunpack.c.l.b16 %v359_v61  ;;  %v363_v12 = vrot.slane %v361_v60, 4  ;;  %v366_v13 = vrot.slane %v364_v62, 5  ;;  %v6477_v29 = vld [vmem:[%s8737_s2 + $0x138] sm:$0xff]  ;;  %v6467_v55 = vld [vmem:[%s8737_s2 + $0xe8] sm:$0xff]  ;;  %v313_v61 = vld [vmem:[%s6883_s17 + $0x50] sm:$0x1] }
  0x21   : > { %v6961_v14 = vrot.slane %v370_v63, 5  ;;  %v376_v17 = vrot.slane %v374_v0, 4  ;;  %v565_v22 = vpack.c.b16 %v554_v3, %v553_v1  ;;  %v463_v24 = vor.u32 %v462_v4, %v459_v2  ;;  %v6475_v4 = vld [vmem:[%s8737_s2 + $0x128] sm:$0xff]  ;;  %s5237_s28 = sshll.u32 %s8756_s19, 1 }
  0x22   : > { %v473_v25 = vor.u32 %v472_v6, %v6950_v5  ;;  %v476_v26 = vshll.u32 %v6959_v11, 16  ;;  %v561_v27 = vpack.c.b16 %v546_v10, %v545_v9  ;;  %v367_v31 = vor.u32 %v366_v13, %v363_v12  ;;  %v6450_v9 = vld [vmem:[%s8737_s2 + $0xa0] sm:$0xff] }
  0x23   : > { %6667 = vmatpush.bf16.msra.mxu2 %v6440_v37  ;;  %630 = vmatpush.bf16.msra.mxu0 %v6440_v37  ;;  %v377_v32 = vor.u32 %v376_v17, %v6961_v14  ;;  %v380_v33 = vshll.u32 %v6970_v20, 16  ;;  %v6468_v37 = vld [vmem:[%s8737_s2 + $0xf0] sm:$0xff]  ;;  %v464_v38 = vrot.slane %v463_v24, 4  ;;  %v484_v43 = vshll.u32 %v311_v34, 16  ;;  %v6466_v10 = vld [vmem:[%s8737_s2 + $0xe0] sm:$0xff] }
  0x24   : > { %6675 = vmatpush.bf16.msra.mxu3 %v6432_v41  ;;  %775 = vmatpush.bf16.msra.mxu1 %v6432_v41  ;;  %v474_v39 = vrot.slane %v473_v25, 4  ;;  %v478_v40 = vrot.slane %v476_v26, 5  ;;  %v481_v41 = vshrl.u32 %v311_v34, 16  ;;  %v490_v44 = vshll.u32 %v312_v35, 16  ;;  %v7041_v24 = vld [vmem:[%s6883_s17 + $0x20] sm:$0x1] }
  0x25   : > { %v494_v45 = vshrl.u32 %v312_v35, 16  ;;  %v368_v47 = vrot.slane %v367_v31, 4  ;;  %v378_v48 = vrot.slane %v377_v32, 4  ;;  %v382_v50 = vrot.slane %v380_v33, 5  ;;  %v6427_v32 = vld [vmem:[%s6883_s17 + $0x3c] sm:$0xff] }
  0x26   : > { %v479_v58 = vsel %vm6921_vm2, %v474_v39, %v478_v40  ;;  %v385_v59 = vshrl.u32 %v6993_v46, 16  ;;  %v388_v60 = vshll.u32 %v6993_v46, 16  ;;  %v483_v62 = vrot.slane %v481_v41, 4  ;;  %v6473_v41 = vld [vmem:[%s8737_s2 + $0x118] sm:$0xff] }
  0x27   : > { %6668 = vmatpush.bf16.msra.mxu2 %v6439_v56  ;;  %631 = vmatpush.bf16.msra.mxu0 %v6439_v56  ;;  %v7008_v56 = vld [vmem:[%s6883_s17 + $0x1c] sm:$0xf]  ;;  %v486_v63 = vrot.slane %v484_v43, 5  ;;  %v7018_v0 = vrot.slane %v490_v44, 5  ;;  %v496_v1 = vrot.slane %v494_v45, 4  ;;  %v373_v2 = vsel %vm6921_vm2, %v368_v47, %v6961_v14  ;;  %v6448_v44 = vld [vmem:[%s8737_s2 + $0x90] sm:$0xff] }
  0x28   : > { %6676 = vmatpush.bf16.msra.mxu3 %v6431_v57  ;;  %776 = vmatpush.bf16.msra.mxu1 %v6431_v57  ;;  %v469_v57 = vsel %vm6921_vm2, %v464_v38, %v6950_v5  ;;  %v383_v3 = vsel %vm6921_vm2, %v378_v48, %v382_v50  ;;  %v6483_v5 = vld [vmem:[%s8737_s2 + $0x168] sm:$0xff]  ;;  %v394_v6 = vshll.u32 %v7008_v56, 16  ;;  %v556_v12 = vunpack.c.l.b16 %v479_v58  ;;  %v6481_v43 = vld [vmem:[%s8737_s2 + $0x158] sm:$0xff]  ;;  %v6464_v45 = vld [vmem:[%s8737_s2 + $0xd0] sm:$0xff] }
  0x29   : > { %v500_v13 = vshll.u32 %v313_v61, 16  ;;  %v387_v14 = vrot.slane %v385_v59, 4  ;;  %v390_v17 = vrot.slane %v388_v60, 5  ;;  %v404_v34 = vshll.u32 %v7041_v24, 16  ;;  %v314_v50 = vld [vmem:[%s6883_s17 + $0x54] sm:$0xf] }
  0x2a   : > { %v7043_v25 = vrot.slane %v394_v6, 5  ;;  %v6472_v59 = vld [vmem:[%s8737_s2 + $0x110] sm:$0xff]  ;;  %v5354_v61 = vrot.slane %v6895_v15, 9  ;;  %v6463_v15 = vld [vmem:[%s8737_s2 + $0xc8] sm:$0xff] }
  0x2b   : > { %6669 = vmatpush.bf16.msra.mxu2 %v6438_v7  ;;  %632 = vmatpush.bf16.msra.mxu0 %v6438_v7  ;;  %v398_v7 = vshrl.u32 %v7008_v56, 16  ;;  %v391_v33 = vor.u32 %v390_v17, %v387_v14  ;;  %v502_v39 = vrot.slane %v500_v13, 5  ;;  %v406_v48 = vrot.slane %v404_v34, 5  ;;  %v6480_v60 = vld [vmem:[%s8737_s2 + $0x150] sm:$0xff]  ;;  %v6471_v17 = vld [vmem:[%s8737_s2 + $0x108] sm:$0xff] }
  0x2c   : > { %6677 = vmatpush.bf16.msra.mxu3 %v6430_v8  ;;  %777 = vmatpush.bf16.msra.mxu1 %v6430_v8  ;;  %v555_v8 = vunpack.c.l.b16 %v469_v57  ;;  %v7086_v57 = vld [vmem:[%s6883_s17 + $0x28] sm:$0xf] }
  0x2d   : > { %v400_v26 = vrot.slane %v398_v7, 4  ;;  %v392_v47 = vrot.slane %v391_v33, 4  ;;  %v418_v13 = vshll.u32 %v7086_v57, 16  ;;  %v422_v14 = vshrl.u32 %v7086_v57, 16 }
  0x2e   : > { %653 = vmatmul.bf16.vlgmr.msra.gmra.mxu2 %v565_v22  ;;  %633 = vmatmul.bf16.vlgmr.msra.gmra.mxu0 %v561_v27  ;;  %v487_v22 = vor.u32 %v486_v63, %v483_v62  ;;  %v6474_v27 = vld [vmem:[%s8737_s2 + $0x120] sm:$0xff]  ;;  %v566_v31 = vpack.c.b16 %v556_v12, %v555_v8  ;;  %v832_v62 = vrot.slane %v6898_v16, 5  ;;  %v835_v63 = vrot.slane %v6901_v21, 5 }
  0x2f   : > { %983 = vmatpush.bf16.msrb.mxu2 %v6453_v18  ;;  %798 = vmatmul.bf16.vlgmr.msra.gmra.mxu3 %v6426_v23  ;;  %v547_v18 = vunpack.c.l.b16 %v373_v2  ;;  %v497_v23 = vor.u32 %v496_v1, %v7018_v0  ;;  %v401_v40 = vor.u32 %v400_v26, %v7043_v25  ;;  %v508_v1 = vshll.u32 %v314_v50, 16  ;;  %v6446_v26 = vld [vmem:[%s8737_s2 + $0x80] sm:$0xff] }
  0x30   : > { %1189 = vmatpush.bf16.msrb.mxu3 %v6469_v19  ;;  %778 = vmatmul.bf16.vlgmr.msra.gmra.mxu1 %v6422_v28  ;;  %v548_v19 = vunpack.c.l.b16 %v383_v3  ;;  %v6482_v28 = vld [vmem:[%s8737_s2 + $0x160] sm:$0xff]  ;;  %v833_v6 = vsel %vm7107_vm5, %v5354_v61, %v832_v62  ;;  %v834_v7 = vrot.slane %v832_v62, 4 }
  0x31   : > { %1543 = vmatpush.bf16.msrb.mxu0 %v6477_v29  ;;  %1769 = vmatpush.bf16.msrb.mxu1 %v6485_v30  ;;  %v6449_v29 = vld [vmem:[%s8737_s2 + $0x98] sm:$0xff]  ;;  %v498_v38 = vrot.slane %v497_v23, 4  ;;  %v402_v58 = vrot.slane %v401_v40, 4 }
  0x32   : > { %v6465_v30 = vld [vmem:[%s8737_s2 + $0xd8] sm:$0xff]  ;;  %v562_v35 = vpack.c.b16 %v548_v19, %v547_v18  ;;  %v6479_v18 = vld [vmem:[%s8737_s2 + $0x148] sm:$0xff]  ;;  %v836_v19 = vsel %vm7107_vm5, %v834_v7, %v835_v63 }
  0x33   : > { %984 = vmatpush.bf16.msrb.mxu2 %v6452_v36  ;;  %v6423_v36 = vld [vmem:[%s6883_s17 + $0xc] sm:$0xff]  ;;  %v407_v12 = vsel %vm6921_vm2, %v402_v58, %v406_v48 }
  0x34   : > { %1190 = vmatpush.bf16.msrb.mxu3 %v6468_v37  ;;  %v488_v37 = vrot.slane %v487_v22, 4 }
  0x35   : > { %1544 = vmatpush.bf16.msrb.mxu0 %v6476_v52  ;;  %1770 = vmatpush.bf16.msrb.mxu1 %v6484_v53  ;;  %v7075_v52 = vld [vmem:[%s6883_s17 + $0x58] sm:$0xf] }
  0x36   : > { %v493_v53 = vsel %vm6921_vm2, %v488_v37, %v7018_v0  ;;  %v505_v0 = vshrl.u32 %v314_v50, 16  ;;  %v514_v2 = vshll.u32 %v7075_v52, 16  ;;  %v518_v3 = vshrl.u32 %v7075_v52, 16 }
  0x37   : > { %985 = vmatpush.bf16.msrb.mxu2 %v6451_v54  ;;  %v503_v54 = vsel %vm6921_vm2, %v498_v38, %v502_v39  ;;  %v557_v8 = vunpack.c.l.b16 %v493_v53  ;;  %v420_v37 = vrot.slane %v418_v13, 5  ;;  %v424_v38 = vrot.slane %v422_v14, 4  ;;  %v6470_v39 = vld [vmem:[%s8737_s2 + $0x100] sm:$0xff]  ;;  %v6424_v53 = vld [vmem:[%s6883_s17 + $0x18] sm:$0xff] }
  0x38   : > { %1191 = vmatpush.bf16.msrb.mxu3 %v6467_v55  ;;  %v7083_v55 = vld [vmem:[%s6883_s17 + $0x24] sm:$0xf]  ;;  %v558_v22 = vunpack.c.l.b16 %v503_v54  ;;  %v507_v23 = vrot.slane %v505_v0, 4  ;;  %v6501_v0 = vld [vmem:[%s8737_s2 + $0x1b8] sm:$0xff] }
  0x39   : > { %1545 = vmatpush.bf16.msrb.mxu0 %v6475_v4  ;;  %1771 = vmatpush.bf16.msrb.mxu1 %v6483_v5  ;;  %v6447_v4 = vld [vmem:[%s8737_s2 + $0x88] sm:$0xff]  ;;  %v409_v21 = vshrl.u32 %v7083_v55, 16  ;;  %v412_v5 = vshll.u32 %v7083_v55, 16  ;;  %v425_v54 = vor.u32 %v424_v38, %v420_v37 }
  0x3b   : > { %986 = vmatpush.bf16.msrb.mxu2 %v6450_v9  ;;  %v397_v9 = vsel %vm6921_vm2, %v392_v47, %v7043_v25  ;;  %v510_v25 = vrot.slane %v508_v1, 5  ;;  %v414_v33 = vrot.slane %v412_v5, 5  ;;  %v7161_v1 = vld [vmem:[%s6883_s17 + $0xc] sm:$0xf]  ;;  %v842_v5 = vrot.slane %v6970_v20, 5 }
  0x3c   : > { %1192 = vmatpush.bf16.msrb.mxu3 %v6466_v10  ;;  %v903_v10 = vunpack.c.l.b16 %v833_v6  ;;  %v549_v34 = vunpack.c.l.b16 %v397_v9  ;;  %v426_v6 = vrot.slane %v425_v54, 4  ;;  %v1255_v9 = vshrl.u32 %v7161_v1, 16  ;;  %v7205_v54 = vld [vmem:[%s6883_s17 + $0x18] sm:$0xf] }
  0x3d   : > { %1546 = vmatpush.bf16.msrb.mxu0 %v6474_v27  ;;  %1772 = vmatpush.bf16.msrb.mxu1 %v6482_v28  ;;  %v6462_v27 = vld [vmem:[%s8737_s2 + $0xc0] sm:$0xff]  ;;  %v904_v28 = vunpack.c.l.b16 %v836_v19 }
  0x3e   : > { %658 = vmatmul.bf16.gmra.mxu2 %v566_v31  ;;  %638 = vmatmul.bf16.gmra.mxu0 %v562_v35  ;;  %v520_v31 = vrot.slane %v518_v3, 4  ;;  %v550_v35 = vunpack.c.l.b16 %v407_v12  ;;  %v6517_v3 = vld [vmem:[%s8737_s2 + $0x238] sm:$0xff] }
  0x3f   : > { %987 = vmatpush.bf16.msrb.mxu2 %v6449_v29  ;;  %803 = vmatmul.bf16.gmra.mxu3 %v6427_v32  ;;  %v7137_v29 = vld [vmem:[%s6883_s17 + $0x5c] sm:$0x1]  ;;  %v411_v32 = vrot.slane %v409_v21, 4  ;;  %v839_v21 = vrot.slane %v6930_v51, 5 }
  0x40   : > { %1193 = vmatpush.bf16.msrb.mxu3 %v6465_v30  ;;  %783 = vmatmul.bf16.gmra.mxu1 %v6423_v36  ;;  %v7139_v30 = vrot.slane %v514_v2, 5  ;;  %v7141_v36 = vpack.c.b16 %v904_v28, %v903_v10  ;;  %v524_v40 = vshll.u32 %v7137_v29, 16  ;;  %v563_v50 = vpack.c.b16 %v550_v35, %v549_v34  ;;  %v6509_v2 = vld [vmem:[%s8737_s2 + $0x1f8] sm:$0xff] }
  0x41   : > { %1547 = vmatpush.bf16.msrb.mxu0 %v6473_v41  ;;  %1773 = vmatpush.bf16.msrb.mxu1 %v6481_v43  ;;  %v7148_v41 = vld [vmem:[%s6883_s17 + $0x2c] sm:$0x1]  ;;  %v567_v43 = vpack.c.b16 %v558_v22, %v557_v8  ;;  %v415_v48 = vor.u32 %v414_v33, %v411_v32  ;;  %v7176_v8 = vld [vmem:[%s6883_s17 + $0x10] sm:$0xf]  ;;  %v1258_v10 = vshll.u32 %v7161_v1, 16 }
  0x42   : > { %v521_v47 = vor.u32 %v520_v31, %v7139_v30  ;;  %v428_v58 = vshll.u32 %v7148_v41, 16  ;;  %v1264_v19 = vshll.u32 %v7176_v8, 16  ;;  %v1268_v22 = vshrl.u32 %v7176_v8, 16  ;;  %v5414_v33 = vld [vmem:[%s6883_s17 + $0x14] sm:$0x1] }
  0x43   : > { %988 = vmatpush.bf16.msrb.mxu2 %v6448_v44  ;;  %v6428_v44 = vld [vmem:[%s6883_s17 + $0x48] sm:$0xff]  ;;  %v416_v63 = vrot.slane %v415_v48, 4 }
  0x44   : > { %1194 = vmatpush.bf16.msrb.mxu3 %v6464_v45  ;;  %v511_v45 = vor.u32 %v510_v25, %v507_v23  ;;  %v522_v62 = vrot.slane %v521_v47, 4  ;;  %v430_v7 = vrot.slane %v428_v58, 5  ;;  %v1257_v25 = vrot.slane %v1255_v9, 4  ;;  %v7208_v58 = vld [vmem:[%s6883_s17 + $0x1c] sm:$0xf] }
  0x45   : > { %1548 = vmatpush.bf16.msrb.mxu0 %v6472_v59  ;;  %1774 = vmatpush.bf16.msrb.mxu1 %v6480_v60  ;;  %v526_v59 = vrot.slane %v524_v40, 5  ;;  %v6478_v60 = vld [vmem:[%s8737_s2 + $0x140] sm:$0xff]  ;;  %v421_v14 = vsel %vm6921_vm2, %v416_v63, %v420_v37  ;;  %v1266_v34 = vrot.slane %v1264_v19, 5  ;;  %v1270_v35 = vrot.slane %v1268_v22, 4 }
  0x46   : > { %v512_v61 = vrot.slane %v511_v45, 4  ;;  %v551_v31 = vunpack.c.l.b16 %v421_v14  ;;  %v1274_v40 = vshll.u32 %v5414_v33, 16  ;;  %v1618_v47 = vrot.slane %v7176_v8, 5 }
  0x47   : > { %989 = vmatpush.bf16.msrb.mxu2 %v6447_v4  ;;  %v6534_v4 = vld [vmem:[%s8738_s3 + $0x38] sm:$0xff]  ;;  %v527_v13 = vsel %vm6921_vm2, %v522_v62, %v526_v59  ;;  %v1271_v45 = vor.u32 %v1270_v35, %v1266_v34  ;;  %v6508_v59 = vld [vmem:[%s8737_s2 + $0x1f0] sm:$0xff]  ;;  %v5356_v62 = vrot.slane %v6993_v46, 9  ;;  %v846_v63 = vrot.slane %v7008_v56, 5 }
  0x48   : > { %1195 = vmatpush.bf16.msrb.mxu3 %v6463_v15  ;;  %v5355_v15 = vrot.slane %v6927_v49, 9  ;;  %v841_v49 = vrot.slane %v839_v21, 4  ;;  %v517_v20 = vsel %vm6921_vm2, %v512_v61, %v7139_v30  ;;  %v560_v28 = vunpack.c.l.b16 %v527_v13  ;;  %v6533_v61 = vld [vmem:[%s8738_s3 + $0x30] sm:$0xff] }
  0x49   : > { %1549 = vmatpush.bf16.msrb.mxu0 %v6471_v17  ;;  %1775 = vmatpush.bf16.msrb.mxu1 %v6479_v18  ;;  %v431_v18 = vsel %vm6921_vm2, %v426_v6, %v430_v7  ;;  %v848_v6 = vrot.slane %v846_v63, 4  ;;  %v1282_v46 = vshll.u32 %v7205_v54, 16  ;;  %v1288_v56 = vshll.u32 %v7208_v58, 16 }
  0x4a   : > { %v840_v12 = vsel %vm7107_vm5, %v5355_v15, %v839_v21  ;;  %v843_v17 = vsel %vm7107_vm5, %v841_v49, %v842_v5  ;;  %v552_v32 = vunpack.c.l.b16 %v431_v18  ;;  %v1621_v15 = vrot.slane %v5414_v33, 5 }
  0x4b   : > { %990 = vmatpush.bf16.msrb.mxu2 %v6446_v26  ;;  %v905_v51 = vunpack.c.l.b16 %v840_v12  ;;  %v906_v23 = vunpack.c.l.b16 %v843_v17  ;;  %v1260_v26 = vrot.slane %v1258_v10, 5  ;;  %v1279_v21 = vshrl.u32 %v7205_v54, 16 }
  0x4c   : > { %1196 = vmatpush.bf16.msrb.mxu3 %v6462_v27  ;;  %v559_v27 = vunpack.c.l.b16 %v517_v20  ;;  %v847_v5 = vsel %vm7107_vm5, %v5356_v62, %v846_v63  ;;  %v1284_v20 = vrot.slane %v1282_v46, 5  ;;  %v1290_v13 = vrot.slane %v1288_v56, 5 }
  0x4d   : > { %1550 = vmatpush.bf16.msrb.mxu0 %v6470_v39  ;;  %1776 = vmatpush.bf16.msrb.mxu1 %v6478_v60  ;;  %v7195_v30 = vpack.c.b16 %v906_v23, %v905_v51  ;;  %v1261_v37 = vor.u32 %v1260_v26, %v1257_v25  ;;  %v6429_v39 = vld [vmem:[%s6883_s17 + $0x54] sm:$0xff]  ;;  %v907_v7 = vunpack.c.l.b16 %v847_v5  ;;  %v1281_v51 = vrot.slane %v1279_v21, 4  ;;  %v5417_v25 = vld [vmem:[%s6883_s17 + $0x20] sm:$0x1]  ;;  %v6454_v26 = vld [vmem:[%s6883_s17 + $0xc] sm:$0xff] }
  0x4e   : > { %663 = vmatmul.bf16.gmra.mxu2 %v567_v43  ;;  %643 = vmatmul.bf16.gmra.mxu0 %v563_v50  ;;  %v568_v38 = vpack.c.b16 %v560_v28, %v559_v27  ;;  %v564_v43 = vpack.c.b16 %v552_v32, %v551_v31  ;;  %v1276_v50 = vrot.slane %v1274_v40, 5  ;;  %v6516_v60 = vld [vmem:[%s8737_s2 + $0x230] sm:$0xff]  ;;  %v1298_v31 = vshll.u32 %v5417_v25, 16  ;;  %v6499_v40 = vld [vmem:[%s8737_s2 + $0x1a8] sm:$0xff] }
  0x4f   : > { %808 = vmatmul.bf16.gmra.mxu3 %v6428_v44  ;;  %1975 = vmatpush.bf16.msra.mxu2 %v6501_v0  ;;  %v6425_v44 = vld [vmem:[%s6883_s17 + $0x24] sm:$0xff]  ;;  %v1262_v48 = vrot.slane %v1261_v37, 4  ;;  %v849_v0 = vrot.slane %v7041_v24, 5  ;;  %v1292_v24 = vshrl.u32 %v7208_v58, 16  ;;  %v1285_v27 = vor.u32 %v1284_v20, %v1281_v51 }
  0x50   : > { %788 = vmatmul.bf16.gmra.mxu1 %v6424_v53  ;;  %2329 = vmatpush.bf16.msra.mxu3 %v6509_v2  ;;  %v6500_v53 = vld [vmem:[%s8737_s2 + $0x1b0] sm:$0xff]  ;;  %v1272_v2 = vrot.slane %v1271_v45, 4  ;;  %v5357_v45 = vrot.slane %v7083_v55, 9 }
  0x51   : > { %2555 = vmatpush.bf16.msra.mxu0 %v6517_v3  ;;  %2758 = vmatpush.bf16.msra.mxu1 %v6534_v4  ;;  %v5564_v3 = vrot.slane %v7161_v1, 9  ;;  %v1620_v4 = vrot.slane %v1618_v47, 4  ;;  %v1267_v1 = vsel %vm6921_vm2, %v1262_v48, %v1266_v34  ;;  %v850_v8 = vsel %vm7107_vm5, %v848_v6, %v849_v0 }
  0x52   : > { %v1277_v9 = vsel %vm6921_vm2, %v1272_v2, %v1276_v50  ;;  %v908_v49 = vunpack.c.l.b16 %v850_v8  ;;  %v1294_v14 = vrot.slane %v1292_v24, 4  ;;  %v1463_v18 = vunpack.c.l.b16 %v1267_v1  ;;  %v5420_v1 = vld [vmem:[%s6883_s17 + $0x2c] sm:$0x1] }
  0x53   : > { %1976 = vmatpush.bf16.msra.mxu2 %v6500_v53  ;;  %v1619_v10 = vsel %vm7107_vm5, %v5564_v3, %v1618_v47  ;;  %v1622_v12 = vsel %vm7107_vm5, %v1620_v4, %v1621_v15  ;;  %v1464_v19 = vunpack.c.l.b16 %v1277_v9  ;;  %v1625_v34 = vrot.slane %v7208_v58, 5  ;;  %v5419_v58 = vld [vmem:[%s6883_s17 + $0x28] sm:$0xf] }
  0x54   : > { %2330 = vmatpush.bf16.msra.mxu3 %v6508_v59  ;;  %v7239_v17 = vpack.c.b16 %v908_v49, %v907_v7  ;;  %v1689_v22 = vunpack.c.l.b16 %v1619_v10  ;;  %v1690_v23 = vunpack.c.l.b16 %v1622_v12  ;;  %v1295_v28 = vor.u32 %v1294_v14, %v1290_v13  ;;  %v6455_v10 = vld [vmem:[%s6883_s17 + $0x18] sm:$0xff] }
  0x55   : > { %2556 = vmatpush.bf16.msra.mxu0 %v6516_v60  ;;  %2759 = vmatpush.bf16.msra.mxu1 %v6533_v61  ;;  %v1479_v32 = vpack.c.b16 %v1464_v19, %v1463_v18  ;;  %v1286_v35 = vrot.slane %v1285_v27, 4  ;;  %v853_v47 = vrot.slane %v7086_v57, 5  ;;  %v856_v48 = vrot.slane %v7148_v41, 5  ;;  %v6498_v18 = vld [vmem:[%s8737_s2 + $0x1a0] sm:$0xff]  ;;  %v5421_v19 = vld [vmem:[%s6883_s17 + $0x30] sm:$0xf] }
  0x56   : > { %v1705_v33 = vpack.c.b16 %v1690_v23, %v1689_v22  ;;  %v1296_v37 = vrot.slane %v1295_v28, 4  ;;  %v1627_v50 = vrot.slane %v1625_v34, 4  ;;  %v1628_v53 = vrot.slane %v5417_v25, 5  ;;  %v5422_v22 = vld [vmem:[%s6883_s17 + $0x34] sm:$0xf]  ;;  %v6514_v27 = vld [vmem:[%s8737_s2 + $0x220] sm:$0xff] }
  0x57   : > { %1977 = vmatpush.bf16.msra.mxu2 %v6499_v40  ;;  %v854_v59 = vsel %vm7107_vm5, %v5357_v45, %v853_v47  ;;  %v855_v60 = vrot.slane %v853_v47, 4  ;;  %v1291_v61 = vsel %vm6921_vm2, %v1286_v35, %v1290_v13  ;;  %v1312_v3 = vshll.u32 %v5419_v58, 16  ;;  %v5423_v47 = vld [vmem:[%s6883_s17 + $0x38] sm:$0x1] }
  0x58   : > { %v909_v57 = vunpack.c.l.b16 %v854_v59  ;;  %v1629_v2 = vsel %vm7107_vm5, %v1627_v50, %v1628_v53  ;;  %v1316_v4 = vshrl.u32 %v5419_v58, 16  ;;  %v1465_v21 = vunpack.c.l.b16 %v1291_v61 }
  0x59   : > { %v857_v0 = vsel %vm7107_vm5, %v855_v60, %v856_v48  ;;  %v1692_v56 = vunpack.c.l.b16 %v1629_v2  ;;  %v1314_v8 = vrot.slane %v1312_v3, 5  ;;  %v1322_v20 = vshll.u32 %v5420_v1, 16 }
  0x5a   : > { %v910_v15 = vunpack.c.l.b16 %v857_v0  ;;  %v1318_v9 = vrot.slane %v1316_v4, 4  ;;  %v1632_v14 = vrot.slane %v5419_v58, 5  ;;  %v1330_v35 = vshll.u32 %v5421_v19, 16 }
  0x5b   : > { %v1324_v25 = vrot.slane %v1322_v20, 5  ;;  %1978 = vmatpush.bf16.msra.mxu2 %v6498_v18  ;;  %v1346_v61 = vshll.u32 %v5423_v47, 16  ;;  %v5567_v4 = vrot.slane %v5421_v19, 9 }
  0x5c   : > { %v7279_v6 = vpack.c.b16 %v910_v15, %v909_v57  ;;  %v1319_v13 = vor.u32 %v1318_v9, %v1314_v8  ;;  %v1332_v45 = vrot.slane %v1330_v35, 5 }
  0x5d   : > { %v1348_v2 = vrot.slane %v1346_v61, 5 }
  0x5e   : > { %668 = vmatmul.bf16.gmra.mxu2 %v568_v38  ;;  %648 = vmatmul.bf16.gmra.mxu0 %v564_v43  ;;  %v1300_v38 = vrot.slane %v1298_v31, 5  ;;  %v6507_v43 = vld [vmem:[%s8737_s2 + $0x1e8] sm:$0xff]  ;;  %v1320_v28 = vrot.slane %v1319_v13, 4 }
  0x5f   : > { %813 = vmatmul.bf16.gmra.mxu3 %v6429_v39  ;;  %v5565_v39 = vrot.slane %v7205_v54, 9  ;;  %v7262_v54 = vld [vmem:[%s6883_s17 + $0x24] sm:$0xf] }
  0x60   : > { %793 = vmatmul.bf16.gmra.mxu1 %v6425_v44  ;;  %v6532_v44 = vld [vmem:[%s8738_s3 + $0x28] sm:$0xff]  ;;  %2331 = vmatpush.bf16.msra.mxu3 %v6507_v43  ;;  %v1301_v55 = vsel %vm6921_vm2, %v1296_v37, %v1300_v38  ;;  %v1303_v62 = vshrl.u32 %v7262_v54, 16  ;;  %v1306_v63 = vshll.u32 %v7262_v54, 16  ;;  %v5566_v31 = vrot.slane %v7262_v54, 9 }
  0x61   : > { %2760 = vmatpush.bf16.msra.mxu1 %v6532_v44  ;;  %v1626_v41 = vsel %vm7107_vm5, %v5565_v39, %v1625_v34  ;;  %v1466_v5 = vunpack.c.l.b16 %v1301_v55  ;;  %v1327_v34 = vshrl.u32 %v5421_v19, 16  ;;  %v1336_v37 = vshll.u32 %v5422_v22, 16  ;;  %v6456_v55 = vld [vmem:[%s6883_s17 + $0x24] sm:$0xff] }
  0x62   : > { %v1691_v46 = vunpack.c.l.b16 %v1626_v41  ;;  %v1305_v24 = vrot.slane %v1303_v62, 4  ;;  %v1308_v7 = vrot.slane %v1306_v63, 5  ;;  %v1340_v38 = vshrl.u32 %v5422_v22, 16 }
  0x63   : > { %v1480_v12 = vpack.c.b16 %v1466_v5, %v1465_v21  ;;  %v1325_v40 = vsel %vm6921_vm2, %v1320_v28, %v1324_v25  ;;  %v1633_v43 = vsel %vm7107_vm5, %v5566_v31, %v1632_v14  ;;  %v1329_v44 = vrot.slane %v1327_v34, 4  ;;  %v6497_v5 = vld [vmem:[%s8737_s2 + $0x198] sm:$0xff] }
  0x64   : > { %v1706_v49 = vpack.c.b16 %v1692_v56, %v1691_v46  ;;  %v1309_v51 = vor.u32 %v1308_v7, %v1305_v24  ;;  %v1338_v48 = vrot.slane %v1336_v37, 5  ;;  %v1342_v50 = vrot.slane %v1340_v38, 4  ;;  %v6505_v46 = vld [vmem:[%s8737_s2 + $0x1d8] sm:$0xff]  ;;  %1979 = vmatpush.bf16.msra.mxu2 %v6497_v5  ;;  %v7320_v24 = vld [vmem:[%s6883_s17 + $0x40] sm:$0xf] }
  0x65   : > { %v1468_v54 = vunpack.c.l.b16 %v1325_v40  ;;  %v1693_v58 = vunpack.c.l.b16 %v1633_v43  ;;  %v1333_v60 = vor.u32 %v1332_v45, %v1329_v44  ;;  %v1639_v41 = vrot.slane %v5422_v22, 5  ;;  %v7317_v56 = vld [vmem:[%s6883_s17 + $0x3c] sm:$0xf]  ;;  %v6496_v43 = vld [vmem:[%s8737_s2 + $0x190] sm:$0xff]  ;;  %v7353_v44 = vld [vmem:[%s6883_s17 + $0x4c] sm:$0xf] }
  0x66   : > { %v1310_v23 = vrot.slane %v1309_v51, 4  ;;  %v1343_v57 = vor.u32 %v1342_v50, %v1338_v48  ;;  %v1642_v21 = vrot.slane %v5423_v47, 5  ;;  %v1351_v9 = vshrl.u32 %v7317_v56, 16  ;;  %v6513_v51 = vld [vmem:[%s8737_s2 + $0x218] sm:$0xff] }
  0x67   : > { %v1334_v0 = vrot.slane %v1333_v60, 4  ;;  %v1641_v15 = vrot.slane %v1639_v41, 4  ;;  %v6530_v28 = vld [vmem:[%s8738_s3 + $0x18] sm:$0xff]  ;;  %v1646_v38 = vrot.slane %v7320_v24, 5 }
  0x68   : > { %v1315_v39 = vsel %vm6921_vm2, %v1310_v23, %v1314_v8  ;;  %v1344_v3 = vrot.slane %v1343_v57, 4  ;;  %v1353_v19 = vrot.slane %v1351_v9, 4  ;;  %v6721_v47 = vld [vmem:[%s6883_s17 + $0x38] sm:$0x1]  ;;  %1980 = vmatpush.bf16.msra.mxu2 %v6496_v43  ;;  %v1384_v57 = vshll.u32 %v7353_v44, 16  ;;  %v6495_v43 = vld [vmem:[%s8737_s2 + $0x188] sm:$0xff] }
  0x69   : > { %v1467_v53 = vunpack.c.l.b16 %v1315_v39  ;;  %v1643_v8 = vsel %vm7107_vm5, %v1641_v15, %v1642_v21  ;;  %v6720_v39 = vld [vmem:[%s6883_s17 + $0x30] sm:$0xf] }
  0x6a   : > { %v1349_v7 = vsel %vm6921_vm2, %v1344_v3, %v1348_v2  ;;  %v1696_v18 = vunpack.c.l.b16 %v1643_v8  ;;  %v5358_v40 = vrot.slane %v6720_v39, 9  ;;  %v7376_v5 = vrot.slane %v1384_v57, 5 }
  0x6b   : > { %v1481_v62 = vpack.c.b16 %v1468_v54, %v1467_v53  ;;  %v1470_v13 = vunpack.c.l.b16 %v1349_v7 }
  0x6c   : > { %1981 = vmatpush.bf16.msra.mxu2 %v6495_v43 }
  0x6e   : > { %991 = vmatmul.bf16.vlgmr.msrb.gmra.mxu2 %v7141_v36  ;;  %1551 = vmatmul.bf16.vlgmr.msrb.gmra.mxu0 %v1479_v32  ;;  %v6515_v36 = vld [vmem:[%s8737_s2 + $0x228] sm:$0xff]  ;;  %v1634_v32 = vrot.slane %v1632_v14, 4 }
  0x6f   : > { %1197 = vmatmul.bf16.vlgmr.msrb.gmra.mxu3 %v6454_v26  ;;  %2557 = vmatpush.bf16.msra.mxu0 %v6515_v36  ;;  %v6506_v26 = vld [vmem:[%s8737_s2 + $0x1e0] sm:$0xff] }
  0x70   : > { %1777 = vmatmul.bf16.vlgmr.msrb.gmra.mxu1 %v1705_v33  ;;  %v1635_v33 = vrot.slane %v5420_v1, 5  ;;  %2332 = vmatpush.bf16.msra.mxu3 %v6506_v26  ;;  %v1640_v1 = vsel %vm7107_vm5, %v5567_v4, %v1639_v41  ;;  %v5426_v26 = vld [vmem:[%s6883_s17 + $0x44] sm:$0x1]  ;;  %v1388_v41 = vshrl.u32 %v7353_v44, 16 }
  0x71   : > { %v1695_v14 = vunpack.c.l.b16 %v1640_v1  ;;  %v1370_v37 = vshll.u32 %v5426_v26, 16  ;;  %v1649_v60 = vrot.slane %v5426_v26, 5 }
  0x72   : > { %v1636_v36 = vsel %vm7107_vm5, %v1634_v32, %v1635_v33  ;;  %v6719_v32 = vld [vmem:[%s6883_s17 + $0x34] sm:$0xf] }
  0x73   : > { %2558 = vmatpush.bf16.msra.mxu0 %v6514_v27  ;;  %v1694_v59 = vunpack.c.l.b16 %v1636_v36  ;;  %v6457_v27 = vld [vmem:[%s6883_s17 + $0x30] sm:$0xff]  ;;  %v1708_v31 = vpack.c.b16 %v1696_v18, %v1695_v14  ;;  %v860_v33 = vrot.slane %v6719_v32, 5  ;;  %v7350_v36 = vld [vmem:[%s6883_s17 + $0x48] sm:$0xf]  ;;  %v1372_v54 = vrot.slane %v1370_v37, 5  ;;  %v6458_v14 = vld [vmem:[%s6883_s17 + $0x3c] sm:$0xff] }
  0x74   : > { %2333 = vmatpush.bf16.msra.mxu3 %v6505_v46  ;;  %v1375_v61 = vshrl.u32 %v7350_v36, 16  ;;  %v1390_v46 = vrot.slane %v1388_v41, 4 }
  0x75   : > { %v1707_v63 = vpack.c.b16 %v1694_v59, %v1693_v58  ;;  %v862_v45 = vrot.slane %v860_v33, 4  ;;  %v5568_v58 = vrot.slane %v7317_v56, 9  ;;  %v1648_v59 = vrot.slane %v1646_v38, 4 }
  0x76   : > { %v1377_v15 = vrot.slane %v1375_v61, 4 }
  0x77   : > { %2559 = vmatpush.bf16.msra.mxu0 %v6513_v51  ;;  %v1647_v3 = vsel %vm7107_vm5, %v5568_v58, %v1646_v38  ;;  %v1650_v4 = vsel %vm7107_vm5, %v1648_v59, %v1649_v60  ;;  %v5569_v38 = vrot.slane %v7350_v36, 9 }
  0x78   : > { %v1697_v8 = vunpack.c.l.b16 %v1647_v3  ;;  %v1698_v9 = vunpack.c.l.b16 %v1650_v4  ;;  %v6511_v3 = vld [vmem:[%s8737_s2 + $0x208] sm:$0xff] }
  0x7e   : > { %996 = vmatmul.bf16.gmra.mxu2 %v7195_v30  ;;  %1556 = vmatmul.bf16.gmra.mxu0 %v1480_v12  ;;  %v6531_v30 = vld [vmem:[%s8738_s3 + $0x20] sm:$0xff]  ;;  %v1360_v12 = vshll.u32 %v7320_v24, 16 }
  0x7f   : > { %1202 = vmatmul.bf16.gmra.mxu3 %v6455_v10  ;;  %2761 = vmatpush.bf16.msra.mxu1 %v6531_v30  ;;  %v1354_v10 = vshll.u32 %v7317_v56, 16  ;;  %v6512_v56 = vld [vmem:[%s8737_s2 + $0x210] sm:$0xff] }
  0x80   : > { %1782 = vmatmul.bf16.gmra.mxu1 %v1706_v49  ;;  %v1364_v49 = vshrl.u32 %v7320_v24, 16  ;;  %v1362_v23 = vrot.slane %v1360_v12, 5  ;;  %2560 = vmatpush.bf16.msra.mxu0 %v6512_v56  ;;  %v6722_v12 = vld [vmem:[%s6883_s17 + $0x40] sm:$0xf] }
  0x81   : > { %v1356_v22 = vrot.slane %v1354_v10, 5  ;;  %v5429_v10 = vld [vmem:[%s6883_s17 + $0x50] sm:$0x1] }
  0x82   : > { %v1366_v25 = vrot.slane %v1364_v49, 4  ;;  %v867_v49 = vrot.slane %v6722_v12, 5  ;;  %v1394_v18 = vshll.u32 %v5429_v10, 16  ;;  %v6459_v12 = vld [vmem:[%s6883_s17 + $0x48] sm:$0xff] }
  0x83   : > { %v1357_v34 = vor.u32 %v1356_v22, %v1353_v19  ;;  %2762 = vmatpush.bf16.msra.mxu1 %v6530_v28  ;;  %v1653_v19 = vrot.slane %v7353_v44, 5  ;;  %v6529_v22 = vld [vmem:[%s8738_s3 + $0x10] sm:$0xff]  ;;  %v6503_v44 = vld [vmem:[%s8737_s2 + $0x1c8] sm:$0xff] }
  0x84   : > { %v1367_v35 = vor.u32 %v1366_v25, %v1362_v23  ;;  %v1709_v25 = vpack.c.b16 %v1698_v9, %v1697_v8  ;;  %v1396_v37 = vrot.slane %v1394_v18, 5  ;;  %2561 = vmatpush.bf16.msra.mxu0 %v6511_v3 }
  0x85   : > { %v1358_v50 = vrot.slane %v1357_v34, 4  ;;  %v1655_v39 = vrot.slane %v1653_v19, 4  ;;  %v1654_v58 = vsel %vm7107_vm5, %v5569_v38, %v1653_v19 }
  0x86   : > { %v1368_v53 = vrot.slane %v1367_v35, 4 }
  0x87   : > { %2763 = vmatpush.bf16.msra.mxu1 %v6529_v22 }
  0x88   : > { %v1373_v2 = vsel %vm6921_vm2, %v1368_v53, %v1372_v54 }
  0x89   : > { %v1472_v1 = vunpack.c.l.b16 %v1373_v2 }
  0x8e   : > { %1001 = vmatmul.bf16.gmra.mxu2 %v7239_v17  ;;  %1561 = vmatmul.bf16.gmra.mxu0 %v1481_v62  ;;  %v1339_v17 = vsel %vm6921_vm2, %v1334_v0, %v1338_v48  ;;  %v863_v48 = vrot.slane %v6721_v47, 5  ;;  %v861_v62 = vsel %vm7107_vm5, %v5358_v40, %v860_v33  ;;  %v1363_v0 = vsel %vm6921_vm2, %v1358_v50, %v1362_v23 }
  0x8f   : > { %1207 = vmatmul.bf16.gmra.mxu3 %v6456_v55  ;;  %v1469_v20 = vunpack.c.l.b16 %v1339_v17  ;;  %v1378_v55 = vshll.u32 %v7350_v36, 16  ;;  %v911_v24 = vunpack.c.l.b16 %v861_v62  ;;  %v1471_v7 = vunpack.c.l.b16 %v1363_v0 }
  0x90   : > { %1787 = vmatmul.bf16.gmra.mxu1 %v1707_v63  ;;  %v864_v63 = vsel %vm7107_vm5, %v862_v45, %v863_v48  ;;  %v870_v33 = vrot.slane %v6959_v11, 5  ;;  %v1656_v40 = vrot.slane %v5429_v10, 5  ;;  %v7401_v11 = vld [vmem:[%s6883_s17 + $0x54] sm:$0xf]  ;;  %v7404_v45 = vld [vmem:[%s6883_s17 + $0x58] sm:$0xf] }
  0x91   : > { %v1482_v30 = vpack.c.b16 %v1470_v13, %v1469_v20  ;;  %v1380_v21 = vrot.slane %v1378_v55, 5  ;;  %v912_v17 = vunpack.c.l.b16 %v864_v63  ;;  %v1391_v20 = vor.u32 %v1390_v46, %v7376_v5 }
  0x92   : > { %v1483_v23 = vpack.c.b16 %v1472_v1, %v1471_v7  ;;  %v1657_v59 = vsel %vm7107_vm5, %v1655_v39, %v1656_v40  ;;  %v1399_v60 = vshrl.u32 %v7401_v11, 16  ;;  %v1402_v61 = vshll.u32 %v7401_v11, 16  ;;  %v5432_v7 = vld [vmem:[%s6883_s17 + $0x5c] sm:$0x1] }
  0x93   : > { %v1381_v51 = vor.u32 %v1380_v21, %v1377_v15  ;;  %v923_v13 = vpack.c.b16 %v912_v17, %v911_v24  ;;  %v1392_v35 = vrot.slane %v1391_v20, 4  ;;  %v1408_v55 = vshll.u32 %v7404_v45, 16 }
  0x94   : > { %v1412_v57 = vshrl.u32 %v7404_v45, 16  ;;  %v1699_v21 = vunpack.c.l.b16 %v1654_v58  ;;  %v1401_v46 = vrot.slane %v1399_v60, 4  ;;  %v1404_v56 = vrot.slane %v1402_v61, 5 }
  0x95   : > { %v1382_v34 = vrot.slane %v1381_v51, 4  ;;  %v1397_v54 = vsel %vm6921_vm2, %v1392_v35, %v1396_v37  ;;  %v7430_v24 = vrot.slane %v1408_v55, 5  ;;  %v6724_v51 = vld [vmem:[%s6883_s17 + $0x4c] sm:$0xf]  ;;  %v1418_v22 = vshll.u32 %v5432_v7, 16 }
  0x96   : > { %v1474_v15 = vunpack.c.l.b16 %v1397_v54  ;;  %v1414_v17 = vrot.slane %v1412_v57, 4  ;;  %v874_v20 = vrot.slane %v6724_v51, 5  ;;  %v1405_v18 = vor.u32 %v1404_v56, %v1401_v46  ;;  %v7452_v35 = vld [vmem:[%s6883_s17 + $0x64] sm:$0xf]  ;;  %v6726_v37 = vld [vmem:[%s6883_s17 + $0x50] sm:$0x1] }
  0x97   : > { %v1387_v53 = vsel %vm6921_vm2, %v1382_v34, %v7376_v5  ;;  %v1700_v5 = vunpack.c.l.b16 %v1657_v59  ;;  %v6494_v34 = vld [vmem:[%s8737_s2 + $0x180] sm:$0xff]  ;;  %v877_v38 = vrot.slane %v6726_v37, 5  ;;  %v1420_v43 = vrot.slane %v1418_v22, 5 }
  0x98   : > { %v1473_v4 = vunpack.c.l.b16 %v1387_v53  ;;  %v1415_v19 = vor.u32 %v1414_v17, %v7430_v24  ;;  %v1406_v39 = vrot.slane %v1405_v18, 4  ;;  %1982 = vmatpush.bf16.msra.mxu2 %v6494_v34  ;;  %v1432_v58 = vshll.u32 %v7452_v35, 16  ;;  %v6510_v46 = vld [vmem:[%s8737_s2 + $0x200] sm:$0xff] }
  0x99   : > { %v1436_v59 = vshrl.u32 %v7452_v35, 16  ;;  %2562 = vmatpush.bf16.msra.mxu0 %v6510_v46 }
  0x9a   : > { %v1416_v40 = vrot.slane %v1415_v19, 4  ;;  %v1411_v55 = vsel %vm6921_vm2, %v1406_v39, %v7430_v24  ;;  %v6460_v19 = vld [vmem:[%s6883_s17 + $0x54] sm:$0xff]  ;;  %v884_v39 = vrot.slane %v7137_v29, 5 }
  0x9b   : > { %v1475_v17 = vunpack.c.l.b16 %v1411_v55  ;;  %v7507_v29 = vld [vmem:[%s6883_s17 + $0x18] sm:$0xf] }
  0x9e   : > { %1006 = vmatmul.bf16.gmra.mxu2 %v7279_v6  ;;  %1566 = vmatmul.bf16.gmra.mxu0 %v1482_v30  ;;  %v6504_v6 = vld [vmem:[%s8737_s2 + $0x1d0] sm:$0xff]  ;;  %v6723_v30 = vld [vmem:[%s6883_s17 + $0x3c] sm:$0xf] }
  0x9f   : > { %1212 = vmatmul.bf16.gmra.mxu3 %v6457_v27  ;;  %v5359_v28 = vrot.slane %v6723_v30, 9  ;;  %v7445_v30 = vld [vmem:[%s6883_s17 + $0x60] sm:$0xf] }
  0xa0   : > { %1792 = vmatmul.bf16.gmra.mxu1 %v1708_v31  ;;  %2334 = vmatpush.bf16.msra.mxu3 %v6504_v6  ;;  %v869_v31 = vrot.slane %v867_v49, 4  ;;  %v1426_v54 = vshll.u32 %v7445_v30, 16 }
  0xa1   : > { %v868_v36 = vsel %vm7107_vm5, %v5359_v28, %v867_v49  ;;  %v1484_v49 = vpack.c.b16 %v1474_v15, %v1473_v4  ;;  %v6725_v28 = vld [vmem:[%s6883_s17 + $0x48] sm:$0xf] }
  0xa2   : > { %v871_v50 = vsel %vm7107_vm5, %v869_v31, %v870_v33  ;;  %v913_v0 = vunpack.c.l.b16 %v868_v36  ;;  %v5360_v31 = vrot.slane %v6725_v28, 9  ;;  %v876_v33 = vrot.slane %v874_v20, 4 }
  0xa3   : > { %v914_v2 = vunpack.c.l.b16 %v871_v50  ;;  %v1423_v36 = vshrl.u32 %v7445_v30, 16  ;;  %v1428_v15 = vrot.slane %v1426_v54, 5 }
  0xa4   : > { %2335 = vmatpush.bf16.msra.mxu3 %v6503_v44  ;;  %v6502_v44 = vld [vmem:[%s8737_s2 + $0x1c0] sm:$0xff]  ;;  %v875_v61 = vsel %vm7107_vm5, %v5360_v31, %v874_v20 }
  0xa5   : > { %v924_v10 = vpack.c.b16 %v914_v2, %v913_v0  ;;  %v1425_v3 = vrot.slane %v1423_v36, 4  ;;  %v915_v56 = vunpack.c.l.b16 %v875_v61  ;;  %v6550_v36 = vld [vmem:[%s8738_s3 + $0xb8] sm:$0xff] }
  0xa7   : > { %v1429_v20 = vor.u32 %v1428_v15, %v1425_v3 }
  0xa8   : > { %2336 = vmatpush.bf16.msra.mxu3 %v6502_v44  ;;  %v5571_v44 = vrot.slane %v7445_v30, 9 }
  0xab   : > { %v634_v26 = vpop.f32.mrf.mxu0 }
  0xac   : > { %3338 = vmatpush.bf16.msrb.mxu3 %v6550_v36  ;;  %v5774_v36 = vrot.slane %v7507_v29, 9 }
  0xad   : > { %v779_v27 = vpop.f32.mrf.mxu1 }
  0xae   : > { %v7390_v32 = vadd.f32 %v779_v27, %v634_v26  ;;  %1011 = vmatmul.bf16.gmra.mxu2 %v923_v13  ;;  %1571 = vmatmul.bf16.gmra.mxu0 %v1483_v23  ;;  %v6528_v13 = vld [vmem:[%s8738_s3 + $0x8] sm:$0xff]  ;;  %v1660_v26 = vrot.slane %v7404_v45, 5  ;;  %v5570_v45 = vrot.slane %v7401_v11, 9  ;;  %v878_v11 = vsel %vm7107_vm5, %v876_v33, %v877_v38  ;;  %v6727_v33 = vld [vmem:[%s6883_s17 + $0x54] sm:$0xf] }
  0xaf   : > { %1217 = vmatmul.bf16.gmra.mxu3 %v6458_v14  ;;  %v1710_v14 = vpack.c.b16 %v1700_v5, %v1699_v21  ;;  %2764 = vmatpush.bf16.msra.mxu1 %v6528_v13  ;;  %v7480_v21 = vrot.slane %v1432_v58, 5  ;;  %v1438_v5 = vrot.slane %v1436_v59, 4  ;;  %v916_v24 = vunpack.c.l.b16 %v878_v11 }
  0xb0   : > { %1797 = vmatmul.bf16.gmra.mxu1 %v1709_v25  ;;  %v1661_v0 = vsel %vm7107_vm5, %v5570_v45, %v1660_v26  ;;  %v5361_v34 = vrot.slane %v6727_v33, 9 }
  0xb1   : > { %v654_v47 = vpop.f32.mrf.mxu2  ;;  %v1439_v13 = vor.u32 %v1438_v5, %v7480_v21  ;;  %v925_v18 = vpack.c.b16 %v916_v24, %v915_v56 }
  0xb2   : > { %v799_v48 = vpop.f32.mrf.mxu3 }
  0xb3   : > { %v7413_v6 = vadd.f32 %v799_v48, %v654_v47  ;;  %v636_v41 = vpop.f32.mrf.mxu0  ;;  %v1662_v47 = vrot.slane %v1660_v26, 4  ;;  %v1663_v48 = vrot.slane %v5432_v7, 5 }
  0xb5   : > { %v781_v62 = vpop.f32.mrf.mxu1  ;;  %v1664_v2 = vsel %vm7107_vm5, %v1662_v47, %v1663_v48  ;;  %v6542_v48 = vld [vmem:[%s8738_s3 + $0x78] sm:$0xff] }
  0xb6   : > { %v7425_v63 = vadd.f32 %v781_v62, %v636_v41  ;;  %v1421_v62 = vsel %vm6921_vm2, %v1416_v40, %v1420_v43  ;;  %v1430_v40 = vrot.slane %v1429_v20, 4  ;;  %3112 = vmatpush.bf16.msrb.mxu2 %v6542_v48  ;;  %v6549_v48 = vld [vmem:[%s8738_s3 + $0xb0] sm:$0xff] }
  0xb7   : > { %v1476_v7 = vunpack.c.l.b16 %v1421_v62  ;;  %v2044_v62 = vshll.u32 %v7507_v29, 16  ;;  %3339 = vmatpush.bf16.msrb.mxu3 %v6549_v48  ;;  %v6573_v48 = vld [vmem:[%s8738_s3 + $0x130] sm:$0xff] }
  0xb8   : > { %v1435_v59 = vsel %vm6921_vm2, %v1430_v40, %v7480_v21  ;;  %v6574_v40 = vld [vmem:[%s8738_s3 + $0x138] sm:$0xff] }
  0xb9   : > { %v656_v1 = vpop.f32.mrf.mxu2  ;;  %v1485_v26 = vpack.c.b16 %v1476_v7, %v1475_v17  ;;  %v1477_v56 = vunpack.c.l.b16 %v1435_v59 }
  0xba   : > { %v801_v8 = vpop.f32.mrf.mxu3 }
  0xbb   : > { %v7433_v9 = vadd.f32 %v801_v8, %v656_v1  ;;  %v639_v23 = vpop.f32.mrf.mxu0  ;;  %v1701_v1 = vunpack.c.l.b16 %v1661_v0  ;;  %v1702_v8 = vunpack.c.l.b16 %v1664_v2 }
  0xbd   : > { %v784_v25 = vpop.f32.mrf.mxu1  ;;  %v1711_v28 = vpack.c.b16 %v1702_v8, %v1701_v1  ;;  %v6566_v1 = vld [vmem:[%s8738_s3 + $0xf8] sm:$0xff] }
  0xbe   : > { %v7442_v27 = vadd.f32 %v784_v25, %v639_v23  ;;  %1016 = vmatmul.bf16.gmra.mxu2 %v924_v10  ;;  %1576 = vmatmul.bf16.gmra.mxu0 %v1484_v49  ;;  %v5435_v10 = vld [vmem:[%s6883_s17 + $0x68] sm:$0x1]  ;;  %v1667_v23 = vrot.slane %v7452_v35, 5  ;;  %v6527_v25 = vld [vmem:[%s8738_s3] sm:$0xff]  ;;  %v1440_v35 = vrot.slane %v1439_v13, 4 }
  0xbf   : > { %1222 = vmatmul.bf16.gmra.mxu3 %v6459_v12  ;;  %v881_v12 = vrot.slane %v7075_v52, 5  ;;  %v1442_v22 = vshll.u32 %v5435_v10, 16  ;;  %2765 = vmatpush.bf16.msra.mxu1 %v6527_v25  ;;  %v1670_v47 = vrot.slane %v5435_v10, 5  ;;  %v2046_v10 = vrot.slane %v2044_v62, 5 }
  0xc0   : > { %1802 = vmatmul.bf16.gmra.mxu1 %v1710_v14  ;;  %v1669_v45 = vrot.slane %v1667_v23, 4  ;;  %v1668_v55 = vsel %vm7107_vm5, %v5571_v44, %v1667_v23  ;;  %3542 = vmatpush.bf16.msrb.mxu0 %v6566_v1  ;;  %v6565_v1 = vld [vmem:[%s8738_s3 + $0xf0] sm:$0xff] }
  0xc1   : > { %v659_v50 = vpop.f32.mrf.mxu2  ;;  %v883_v37 = vrot.slane %v881_v12, 4  ;;  %v1444_v43 = vrot.slane %v1442_v22, 5  ;;  %v882_v30 = vsel %vm7107_vm5, %v5361_v34, %v881_v12  ;;  %v1703_v17 = vunpack.c.l.b16 %v1668_v55  ;;  %v6461_v22 = vld [vmem:[%s6883_s17 + $0x60] sm:$0xff] }
  0xc2   : > { %v804_v53 = vpop.f32.mrf.mxu3  ;;  %v917_v5 = vunpack.c.l.b16 %v882_v30 }
  0xc3   : > { %v7463_v60 = vadd.f32 %v804_v53, %v659_v50  ;;  %v641_v57 = vpop.f32.mrf.mxu0  ;;  %v7510_v50 = vld [vmem:[%s6883_s17 + $0x1c] sm:$0xf]  ;;  %v885_v58 = vsel %vm7107_vm5, %v883_v37, %v884_v39  ;;  %v1445_v11 = vsel %vm6921_vm2, %v1440_v35, %v1444_v43  ;;  %v7544_v39 = vld [vmem:[%s6883_s17 + $0x24] sm:$0xf]  ;;  %v7550_v35 = vld [vmem:[%s6883_s17 + $0x28] sm:$0xf]  ;;  %3896 = vmatpush.bf16.msrb.mxu1 %v6574_v40 }
  0xc4   : > { %v2050_v0 = vshll.u32 %v7510_v50, 16  ;;  %v2054_v2 = vshrl.u32 %v7510_v50, 16  ;;  %v918_v46 = vunpack.c.l.b16 %v885_v58  ;;  %v1478_v24 = vunpack.c.l.b16 %v1445_v11  ;;  %v6541_v43 = vld [vmem:[%s8738_s3 + $0x70] sm:$0xff]  ;;  %3543 = vmatpush.bf16.msrb.mxu0 %v6565_v1 }
  0xc5   : > { %v786_v41 = vpop.f32.mrf.mxu1  ;;  %v2404_v34 = vrot.slane %v7510_v50, 5  ;;  %3113 = vmatpush.bf16.msrb.mxu2 %v6541_v43  ;;  %v2068_v59 = vshll.u32 %v7544_v39, 16  ;;  %v2074_v11 = vshll.u32 %v7550_v35, 16  ;;  %v2078_v55 = vshrl.u32 %v7550_v35, 16 }
  0xc6   : > { %v7478_v4 = vadd.f32 %v786_v41, %v641_v57  ;;  %v1671_v57 = vsel %vm7107_vm5, %v1669_v45, %v1670_v47  ;;  %v2041_v41 = vshrl.u32 %v7507_v29, 16  ;;  %v2052_v12 = vrot.slane %v2050_v0, 5 }
  0xc7   : > { %v1704_v7 = vunpack.c.l.b16 %v1671_v57  ;;  %v1486_v23 = vpack.c.b16 %v1478_v24, %v1477_v56  ;;  %v2406_v50 = vrot.slane %v2404_v34, 4  ;;  %v2076_v56 = vrot.slane %v2074_v11, 5  ;;  %3897 = vmatpush.bf16.msrb.mxu1 %v6573_v48  ;;  %v7639_v48 = vld [vmem:[%s6883_s17 + $0x40] sm:$0xf] }
  0xc8   : > { %v2043_v8 = vrot.slane %v2041_v41, 4  ;;  %v2080_v24 = vrot.slane %v2078_v55, 4 }
  0xc9   : > { %v661_v49 = vpop.f32.mrf.mxu2  ;;  %v1712_v25 = vpack.c.b16 %v1704_v7, %v1703_v17 }
  0xca   : > { %v806_v51 = vpop.f32.mrf.mxu3 }
  0xcb   : > { %v7488_v14 = vadd.f32 %v806_v51, %v661_v49  ;;  %v644_v31 = vpop.f32.mrf.mxu0  ;;  %v2056_v49 = vrot.slane %v2054_v2, 4  ;;  %v5624_v51 = vld [vmem:[%s6883_s17 + $0x20] sm:$0x1]  ;;  %v2405_v2 = vsel %vm7107_vm5, %v5774_v36, %v2404_v34  ;;  %v6548_v36 = vld [vmem:[%s8738_s3 + $0xa8] sm:$0xff] }
  0xcc   : > { %3340 = vmatpush.bf16.msrb.mxu3 %v6548_v36 }
  0xcd   : > { %v789_v52 = vpop.f32.mrf.mxu1 }
  0xce   : > { %v7496_v38 = vadd.f32 %v789_v52, %v644_v31  ;;  %1021 = vmatmul.bf16.gmra.mxu2 %v925_v18  ;;  %1581 = vmatmul.bf16.gmra.mxu0 %v1485_v26  ;;  %v2047_v26 = vor.u32 %v2046_v10, %v2043_v8  ;;  %v2060_v31 = vshll.u32 %v5624_v51, 16  ;;  %v2475_v8 = vunpack.c.l.b16 %v2405_v2 }
  0xcf   : > { %1227 = vmatmul.bf16.gmra.mxu3 %v6460_v19  ;;  %v926_v19 = vpack.c.b16 %v918_v46, %v917_v5  ;;  %v2070_v46 = vrot.slane %v2068_v59, 5 }
  0xd0   : > { %1807 = vmatmul.bf16.gmra.mxu1 %v1711_v28  ;;  %v2057_v28 = vor.u32 %v2056_v49, %v2052_v12  ;;  %v2048_v44 = vrot.slane %v2047_v26, 4  ;;  %v2062_v47 = vrot.slane %v2060_v31, 5  ;;  %v2411_v26 = vrot.slane %v7550_v35, 5  ;;  %v6519_v31 = vld [vmem:[%s7586_s25] sm:$0xff]  ;;  %v6540_v35 = vld [vmem:[%s8738_s3 + $0x68] sm:$0xff] }
  0xd1   : > { %v664_v53 = vpop.f32.mrf.mxu2  ;;  %3114 = vmatpush.bf16.msrb.mxu2 %v6540_v35  ;;  %v6539_v35 = vld [vmem:[%s8738_s3 + $0x60] sm:$0xff] }
  0xd2   : > { %v809_v54 = vpop.f32.mrf.mxu3  ;;  %v2058_v45 = vrot.slane %v2057_v28, 4  ;;  %v2053_v29 = vsel %vm6921_vm2, %v2048_v44, %v2052_v12  ;;  %v5627_v12 = vld [vmem:[%s6883_s17 + $0x2c] sm:$0x1]  ;;  %v5775_v44 = vrot.slane %v7544_v39, 9 }
  0xd3   : > { %v7519_v61 = vadd.f32 %v809_v54, %v664_v53  ;;  %v646_v3 = vpop.f32.mrf.mxu0  ;;  %v2407_v53 = vrot.slane %v5624_v51, 5  ;;  %v2065_v54 = vshrl.u32 %v7544_v39, 16  ;;  %v2249_v17 = vunpack.c.l.b16 %v2053_v29  ;;  %v7607_v39 = vld [vmem:[%s6883_s17 + $0x34] sm:$0xf] }
  0xd4   : > { %v2063_v41 = vsel %vm6921_vm2, %v2058_v45, %v2062_v47  ;;  %v2413_v45 = vrot.slane %v2411_v26, 4  ;;  %v2414_v47 = vrot.slane %v5627_v12, 5  ;;  %v2412_v11 = vsel %vm7107_vm5, %v5775_v44, %v2411_v26 }
  0xd5   : > { %v791_v15 = vpop.f32.mrf.mxu1  ;;  %v2250_v7 = vunpack.c.l.b16 %v2063_v41  ;;  %3115 = vmatpush.bf16.msrb.mxu2 %v6539_v35  ;;  %v6521_v35 = vld [vmem:[%s7586_s25 + $0x18] sm:$0xff] }
  0xd6   : > { %v7531_v21 = vadd.f32 %v791_v15, %v646_v3  ;;  %v2408_v3 = vsel %vm7107_vm5, %v2406_v50, %v2407_v53  ;;  %v2067_v15 = vrot.slane %v2065_v54, 4  ;;  %v7604_v50 = vld [vmem:[%s6883_s17 + $0x30] sm:$0xf]  ;;  %v2415_v55 = vsel %vm7107_vm5, %v2413_v45, %v2414_v47  ;;  %v7633_v47 = vld [vmem:[%s6883_s17 + $0x3c] sm:$0xf] }
  0xd7   : > { %v2476_v10 = vunpack.c.l.b16 %v2408_v3  ;;  %v2089_v29 = vshrl.u32 %v7604_v50, 16  ;;  %v2092_v41 = vshll.u32 %v7604_v50, 16  ;;  %v2418_v45 = vrot.slane %v7607_v39, 5 }
  0xd9   : > { %v666_v20 = vpop.f32.mrf.mxu2  ;;  %v2491_v28 = vpack.c.b16 %v2476_v10, %v2475_v8  ;;  %v2091_v1 = vrot.slane %v2089_v29, 4  ;;  %v2094_v8 = vrot.slane %v2092_v41, 5  ;;  %v2113_v41 = vshrl.u32 %v7633_v47, 16 }
  0xda   : > { %v811_v13 = vpop.f32.mrf.mxu3 }
  0xdb   : > { %v7537_v18 = vadd.f32 %v811_v13, %v666_v20  ;;  %v649_v52 = vpop.f32.mrf.mxu0  ;;  %v2071_v20 = vor.u32 %v2070_v46, %v2067_v15  ;;  %v2081_v13 = vor.u32 %v2080_v24, %v2076_v56  ;;  %v2477_v24 = vunpack.c.l.b16 %v2412_v11 }
  0xdd   : > { %v794_v33 = vpop.f32.mrf.mxu1  ;;  %v2072_v34 = vrot.slane %v2071_v20, 4  ;;  %v2082_v40 = vrot.slane %v2081_v13, 4 }
  0xde   : > { %v7541_v37 = vadd.f32 %v794_v33, %v649_v52  ;;  %1026 = vmatmul.bf16.gmra.mxu2 %v926_v19  ;;  %1586 = vmatmul.bf16.gmra.mxu0 %v1486_v23  ;;  %v2265_v23 = vpack.c.b16 %v2250_v7, %v2249_v17  ;;  %v2478_v17 = vunpack.c.l.b16 %v2415_v55  ;;  %v6564_v7 = vld [vmem:[%s8738_s3 + $0xe8] sm:$0xff] }
  0xdf   : > { %1232 = vmatmul.bf16.gmra.mxu3 %v6461_v22  ;;  %v6486_v22 = vld [vmem:[%s6883_s17 + $0x18] sm:$0xff]  ;;  %3544 = vmatpush.bf16.msrb.mxu0 %v6564_v7  ;;  %v2115_v7 = vrot.slane %v2113_v41, 4 }
  0xe0   : > { %1812 = vmatmul.bf16.gmra.mxu1 %v1712_v25  ;;  %v2084_v25 = vshll.u32 %v5627_v12, 16  ;;  %v2492_v26 = vpack.c.b16 %v2478_v17, %v2477_v24  ;;  %v6546_v41 = vld [vmem:[%s8738_s3 + $0x98] sm:$0xff] }
  0xe1   : > { %v669_v30 = vpop.f32.mrf.mxu2 }
  0xe2   : > { %v814_v58 = vpop.f32.mrf.mxu3  ;;  %v2086_v43 = vrot.slane %v2084_v25, 5 }
  0xe3   : > { %v7563_v57 = vadd.f32 %v814_v58, %v669_v30  ;;  %v651_v62 = vpop.f32.mrf.mxu0  ;;  %v2077_v30 = vsel %vm6921_vm2, %v2072_v34, %v2076_v56 }
  0xe4   : > { %v2087_v59 = vsel %vm6921_vm2, %v2082_v40, %v2086_v43  ;;  %v2251_v15 = vunpack.c.l.b16 %v2077_v30  ;;  %v5776_v30 = vrot.slane %v7604_v50, 9 }
  0xe5   : > { %v796_v0 = vpop.f32.mrf.mxu1  ;;  %v2252_v56 = vunpack.c.l.b16 %v2087_v59 }
  0xe6   : > { %v7573_v5 = vadd.f32 %v796_v0, %v651_v62  ;;  %v2098_v62 = vshll.u32 %v7607_v39, 16  ;;  %v2102_v0 = vshrl.u32 %v7607_v39, 16  ;;  %v2419_v24 = vsel %vm7107_vm5, %v5776_v30, %v2418_v45 }
  0xe7   : > { %v2266_v25 = vpack.c.b16 %v2252_v56, %v2251_v15 }
  0xe8   : > { %v2100_v10 = vrot.slane %v2098_v62, 5  ;;  %v2104_v12 = vrot.slane %v2102_v0, 4  ;;  %v2116_v62 = vshll.u32 %v7633_v47, 16  ;;  %v2122_v0 = vshll.u32 %v7639_v48, 16 }
  0xe9   : > { %v671_v49 = vpop.f32.mrf.mxu2 }
  0xea   : > { %v816_v51 = vpop.f32.mrf.mxu3 }
  0xeb   : > { %v7588_v19 = vadd.f32 %v816_v51, %v671_v49  ;;  %v1552_v52 = vpop.f32.mrf.mxu0  ;;  %v5630_v49 = vld [vmem:[%s6883_s17 + $0x38] sm:$0x1] }
  0xec   : > { %v2108_v34 = vshll.u32 %v5630_v49, 16  ;;  %v2421_v59 = vrot.slane %v5630_v49, 5 }
  0xed   : > { %v1778_v33 = vpop.f32.mrf.mxu1 }
  0xee   : > { %1983 = vmatmul.bf16.vlgmr.msra.gmra.mxu2 %v6486_v22  ;;  %2563 = vmatmul.bf16.vlgmr.msra.gmra.mxu0 %v2491_v28  ;;  %v6520_v28 = vld [vmem:[%s7586_s25 + $0xc] sm:$0xff]  ;;  %v2110_v39 = vrot.slane %v2108_v34, 5 }
  0xef   : > { %2337 = vmatmul.bf16.vlgmr.msra.gmra.mxu3 %v2265_v23  ;;  %v6487_v23 = vld [vmem:[%s6883_s17 + $0x24] sm:$0xff] }
  0xf0   : > { %2766 = vmatmul.bf16.vlgmr.msra.gmra.mxu1 %v6519_v31  ;;  %v2095_v31 = vor.u32 %v2094_v8, %v2091_v1  ;;  %v2118_v1 = vrot.slane %v2116_v62, 5  ;;  %v2124_v8 = vrot.slane %v2122_v0, 5  ;;  %v7684_v62 = vld [vmem:[%s6883_s17 + $0x48] sm:$0xf] }
  0xf1   : > { %v992_v53 = vpop.f32.mrf.mxu2 }
  0xf2   : > { %v1198_v54 = vpop.f32.mrf.mxu3  ;;  %v1032_v58 = vadd.f32 %v992_v53, %v7390_v32  ;;  %v2096_v36 = vrot.slane %v2095_v31, 4  ;;  %v2119_v31 = vor.u32 %v2118_v1, %v2115_v7 }
  0xf3   : > { %v1554_v32 = vpop.f32.mrf.mxu0 }
  0xf4   : > { %v1238_v2 = vadd.f32 %v1198_v54, %v1032_v58  ;;  %v6547_v54 = vld [vmem:[%s8738_s3 + $0xa0] sm:$0xff]  ;;  %v2420_v58 = vrot.slane %v2418_v45, 4 }
  0xf5   : > { %v1780_v3 = vpop.f32.mrf.mxu1  ;;  %3341 = vmatpush.bf16.msrb.mxu3 %v6547_v54  ;;  %v2120_v54 = vrot.slane %v2119_v31, 4 }
  0xf6   : > { %v1592_v46 = vadd.f32 %v1552_v52, %v1238_v2  ;;  %v2105_v52 = vor.u32 %v2104_v12, %v2100_v10  ;;  %v2126_v2 = vshrl.u32 %v7639_v48, 16  ;;  %v2422_v17 = vsel %vm7107_vm5, %v2420_v58, %v2421_v59 }
  0xf7   : > { %v5777_v59 = vrot.slane %v7633_v47, 9  ;;  %v7687_v47 = vld [vmem:[%s6883_s17 + $0x4c] sm:$0xf] }
  0xf8   : > { %v7626_v51 = vadd.f32 %v1778_v33, %v1592_v46  ;;  %v2106_v53 = vrot.slane %v2105_v52, 4  ;;  %v2128_v12 = vrot.slane %v2126_v2, 4  ;;  %v2146_v7 = vshll.u32 %v7687_v47, 16 }
  0xf9   : > { %v994_v20 = vpop.f32.mrf.mxu2  ;;  %3342 = vmatpush.bf16.msrb.mxu3 %v6546_v41  ;;  %v2150_v1 = vshrl.u32 %v7687_v47, 16 }
  0xfa   : > { %v1200_v13 = vpop.f32.mrf.mxu3  ;;  %v1033_v22 = vadd.f32 %v994_v20, %v7425_v63  ;;  %v6572_v63 = vld [vmem:[%s8738_s3 + $0x128] sm:$0xff]  ;;  %v5633_v20 = vld [vmem:[%s6883_s17 + $0x44] sm:$0x1]  ;;  %v2129_v52 = vor.u32 %v2128_v12, %v2124_v8 }
  0xfb   : > { %v1557_v43 = vpop.f32.mrf.mxu0  ;;  %3898 = vmatpush.bf16.msrb.mxu1 %v6572_v63  ;;  %v2132_v34 = vshll.u32 %v5633_v20, 16  ;;  %v2152_v31 = vrot.slane %v2150_v1, 4 }
  0xfc   : > { %v1239_v40 = vadd.f32 %v1200_v13, %v1033_v22  ;;  %v6563_v13 = vld [vmem:[%s8738_s3 + $0xe0] sm:$0xff]  ;;  %v2479_v22 = vunpack.c.l.b16 %v2419_v24 }
  0xfd   : > { %v1783_v44 = vpop.f32.mrf.mxu1  ;;  %3545 = vmatpush.bf16.msrb.mxu0 %v6563_v13  ;;  %v2134_v30 = vrot.slane %v2132_v34, 5 }
  0xfe   : > { %v1593_v33 = vadd.f32 %v1554_v32, %v1239_v40  ;;  %1988 = vmatmul.bf16.gmra.mxu2 %v6487_v23  ;;  %2568 = vmatmul.bf16.gmra.mxu0 %v2492_v26  ;;  %v2101_v32 = vsel %vm6921_vm2, %v2096_v36, %v2100_v10  ;;  %v2480_v23 = vunpack.c.l.b16 %v2422_v17  ;;  %v2140_v17 = vshll.u32 %v7684_v62, 16 }
  0xff   : > { %2342 = vmatmul.bf16.gmra.mxu3 %v2266_v25  ;;  %v2253_v49 = vunpack.c.l.b16 %v2101_v32  ;;  %v2125_v32 = vsel %vm6921_vm2, %v2120_v54, %v2124_v8 }
 0x100   : > { %2771 = vmatmul.bf16.gmra.mxu1 %v6520_v28  ;;  %v7648_v11 = vadd.f32 %v1780_v3, %v1593_v33  ;;  %v2111_v3 = vsel %vm6921_vm2, %v2106_v53, %v2110_v39  ;;  %v2425_v33 = vrot.slane %v7639_v48, 5  ;;  %v2493_v63 = vpack.c.b16 %v2480_v23, %v2479_v22  ;;  %v6571_v48 = vld [vmem:[%s8738_s3 + $0x120] sm:$0xff]  ;;  %v6562_v22 = vld [vmem:[%s8738_s3 + $0xd8] sm:$0xff] }
 0x101   : > { %v997_v55 = vpop.f32.mrf.mxu2  ;;  %v2254_v10 = vunpack.c.l.b16 %v2111_v3  ;;  %3899 = vmatpush.bf16.msrb.mxu1 %v6571_v48  ;;  %3546 = vmatpush.bf16.msrb.mxu0 %v6562_v22  ;;  %v7721_v48 = vld [vmem:[%s6883_s17 + $0x58] sm:$0xf] }
 0x102   : > { %v1203_v29 = vpop.f32.mrf.mxu3  ;;  %v1034_v50 = vadd.f32 %v997_v55, %v7442_v27  ;;  %v2428_v55 = vrot.slane %v5633_v20, 5  ;;  %v2170_v1 = vshll.u32 %v7721_v48, 16 }
 0x103   : > { %v1559_v46 = vpop.f32.mrf.mxu0  ;;  %v2267_v45 = vpack.c.b16 %v2254_v10, %v2253_v49 }
 0x104   : > { %v1240_v15 = vadd.f32 %v1203_v29, %v1034_v50  ;;  %v6538_v29 = vld [vmem:[%s8738_s3 + $0x58] sm:$0xff] }
 0x105   : > { %v1785_v56 = vpop.f32.mrf.mxu1  ;;  %3116 = vmatpush.bf16.msrb.mxu2 %v6538_v29  ;;  %v6537_v29 = vld [vmem:[%s8738_s3 + $0x50] sm:$0xff] }
 0x106   : > { %v1594_v27 = vadd.f32 %v1557_v43, %v1240_v15  ;;  %v6488_v43 = vld [vmem:[%s6883_s17 + $0x30] sm:$0xff] }
 0x108   : > { %v7667_v25 = vadd.f32 %v1783_v44, %v1594_v27  ;;  %v2130_v44 = vrot.slane %v2129_v52, 4  ;;  %v2255_v27 = vunpack.c.l.b16 %v2125_v32  ;;  %v5636_v52 = vld [vmem:[%s6883_s17 + $0x50] sm:$0x1]  ;;  %v5778_v32 = vrot.slane %v7684_v62, 9 }
 0x109   : > { %v999_v26 = vpop.f32.mrf.mxu2  ;;  %3117 = vmatpush.bf16.msrb.mxu2 %v6537_v29  ;;  %v6523_v29 = vld [vmem:[%s7586_s25 + $0x30] sm:$0xff] }
 0x10a   : > { %v1205_v28 = vpop.f32.mrf.mxu3  ;;  %v1035_v40 = vadd.f32 %v999_v26, %v7478_v4  ;;  %v2427_v4 = vrot.slane %v2425_v33, 4  ;;  %v2135_v15 = vsel %vm6921_vm2, %v2130_v44, %v2134_v30  ;;  %v2142_v26 = vrot.slane %v2140_v17, 5 }
 0x10b   : > { %v1562_v53 = vpop.f32.mrf.mxu0  ;;  %v2256_v10 = vunpack.c.l.b16 %v2135_v15  ;;  %v2156_v44 = vshll.u32 %v5636_v52, 16  ;;  %v2435_v15 = vrot.slane %v5636_v52, 5 }
 0x10c   : > { %v1241_v36 = vadd.f32 %v1205_v28, %v1035_v40  ;;  %v2429_v24 = vsel %vm7107_vm5, %v2427_v4, %v2428_v55  ;;  %v2148_v28 = vrot.slane %v2146_v7, 5  ;;  %v2432_v4 = vrot.slane %v7687_v47, 5  ;;  %v7715_v55 = vld [vmem:[%s6883_s17 + $0x54] sm:$0xf] }
 0x10d   : > { %v1788_v39 = vpop.f32.mrf.mxu1  ;;  %v2482_v13 = vunpack.c.l.b16 %v2429_v24  ;;  %v2158_v47 = vrot.slane %v2156_v44, 5  ;;  %v2161_v17 = vshrl.u32 %v7715_v55, 16  ;;  %v2164_v7 = vshll.u32 %v7715_v55, 16 }
 0x10e   : > { %v1595_v58 = vadd.f32 %v1559_v46, %v1241_v36  ;;  %1993 = vmatmul.bf16.gmra.mxu2 %v6488_v43  ;;  %2573 = vmatmul.bf16.gmra.mxu0 %v2493_v63  ;;  %v2426_v46 = vsel %vm7107_vm5, %v5777_v59, %v2425_v33  ;;  %v6489_v33 = vld [vmem:[%s6883_s17 + $0x3c] sm:$0xff]  ;;  %v2268_v63 = vpack.c.b16 %v2256_v10, %v2255_v27  ;;  %v6522_v36 = vld [vmem:[%s7586_s25 + $0x24] sm:$0xff] }
 0x10f   : > { %2347 = vmatmul.bf16.gmra.mxu3 %v2267_v45  ;;  %v2481_v20 = vunpack.c.l.b16 %v2426_v46  ;;  %v2153_v54 = vor.u32 %v2152_v31, %v2148_v28  ;;  %v2163_v22 = vrot.slane %v2161_v17, 4  ;;  %v6544_v17 = vld [vmem:[%s8738_s3 + $0x88] sm:$0xff] }
 0x110   : > { %2776 = vmatmul.bf16.gmra.mxu1 %v6521_v35  ;;  %v7689_v0 = vadd.f32 %v1785_v56, %v1595_v58  ;;  %v2137_v56 = vshrl.u32 %v7684_v62, 16 }
 0x111   : > { %v1002_v2 = vpop.f32.mrf.mxu2  ;;  %v2494_v35 = vpack.c.b16 %v2482_v13, %v2481_v20  ;;  %v2433_v20 = vsel %vm7107_vm5, %v5778_v32, %v2432_v4 }
 0x112   : > { %v1208_v50 = vpop.f32.mrf.mxu3  ;;  %v1036_v3 = vadd.f32 %v1002_v2, %v7496_v38  ;;  %v2139_v23 = vrot.slane %v2137_v56, 4  ;;  %v2154_v2 = vrot.slane %v2153_v54, 4 }
 0x113   : > { %v1564_v38 = vpop.f32.mrf.mxu0 }
 0x114   : > { %v1242_v8 = vadd.f32 %v1208_v50, %v1036_v3  ;;  %v6545_v50 = vld [vmem:[%s8738_s3 + $0x90] sm:$0xff]  ;;  %v2434_v3 = vrot.slane %v2432_v4, 4 }
 0x115   : > { %v1790_v12 = vpop.f32.mrf.mxu1  ;;  %3343 = vmatpush.bf16.msrb.mxu3 %v6545_v50 }
 0x116   : > { %v1596_v49 = vadd.f32 %v1562_v53, %v1242_v8  ;;  %v2143_v53 = vor.u32 %v2142_v26, %v2139_v23  ;;  %v2174_v8 = vshrl.u32 %v7721_v48, 16  ;;  %v2436_v13 = vsel %vm7107_vm5, %v2434_v3, %v2435_v15 }
 0x117   : > { %v2166_v23 = vrot.slane %v2164_v7, 5  ;;  %v2172_v26 = vrot.slane %v2170_v1, 5  ;;  %v5779_v15 = vrot.slane %v7715_v55, 9  ;;  %v7766_v7 = vld [vmem:[%s6883_s17 + $0x60] sm:$0xf] }
 0x118   : > { %v7708_v34 = vadd.f32 %v1788_v39, %v1596_v49  ;;  %v2144_v41 = vrot.slane %v2143_v53, 4  ;;  %v2176_v31 = vrot.slane %v2174_v8, 4  ;;  %v7769_v55 = vld [vmem:[%s6883_s17 + $0x64] sm:$0xf] }
 0x119   : > { %v1004_v40 = vpop.f32.mrf.mxu2  ;;  %v2167_v53 = vor.u32 %v2166_v23, %v2163_v22  ;;  %3344 = vmatpush.bf16.msrb.mxu3 %v6544_v17  ;;  %v2194_v22 = vshll.u32 %v7769_v55, 16  ;;  %v2198_v23 = vshrl.u32 %v7769_v55, 16 }
 0x11a   : > { %v1210_v43 = vpop.f32.mrf.mxu3  ;;  %v1037_v45 = vadd.f32 %v1004_v40, %v7531_v21  ;;  %v6570_v21 = vld [vmem:[%s8738_s3 + $0x118] sm:$0xff]  ;;  %v2177_v54 = vor.u32 %v2176_v31, %v2172_v26 }
 0x11b   : > { %v1567_v58 = vpop.f32.mrf.mxu0  ;;  %3900 = vmatpush.bf16.msrb.mxu1 %v6570_v21  ;;  %v5639_v40 = vld [vmem:[%s6883_s17 + $0x5c] sm:$0x1]  ;;  %v2168_v50 = vrot.slane %v2167_v53, 4  ;;  %v2200_v53 = vrot.slane %v2198_v23, 4 }
 0x11c   : > { %v1243_v30 = vadd.f32 %v1210_v43, %v1037_v45  ;;  %v6561_v43 = vld [vmem:[%s8738_s3 + $0xd0] sm:$0xff]  ;;  %v2483_v45 = vunpack.c.l.b16 %v2433_v20  ;;  %v2180_v44 = vshll.u32 %v5639_v40, 16 }
 0x11d   : > { %v1793_v59 = vpop.f32.mrf.mxu1  ;;  %3547 = vmatpush.bf16.msrb.mxu0 %v6561_v43 }
 0x11e   : > { %v1597_v39 = vadd.f32 %v1564_v38, %v1243_v30  ;;  %1998 = vmatmul.bf16.gmra.mxu2 %v6489_v33  ;;  %2578 = vmatmul.bf16.gmra.mxu0 %v2494_v35  ;;  %v2149_v38 = vsel %vm6921_vm2, %v2144_v41, %v2148_v28  ;;  %v2484_v33 = vunpack.c.l.b16 %v2436_v13  ;;  %v2182_v32 = vrot.slane %v2180_v44, 5 }
 0x11f   : > { %2352 = vmatmul.bf16.gmra.mxu3 %v2268_v63  ;;  %v2257_v52 = vunpack.c.l.b16 %v2149_v38  ;;  %v2173_v38 = vsel %vm6921_vm2, %v2168_v50, %v2172_v26  ;;  %v2188_v13 = vshll.u32 %v7766_v7, 16 }
 0x120   : > { %2781 = vmatmul.bf16.gmra.mxu1 %v6522_v36  ;;  %v7730_v46 = vadd.f32 %v1790_v12, %v1597_v39  ;;  %v2159_v12 = vsel %vm6921_vm2, %v2154_v2, %v2158_v47  ;;  %v2439_v39 = vrot.slane %v7721_v48, 5  ;;  %v2495_v21 = vpack.c.b16 %v2484_v33, %v2483_v45  ;;  %v6569_v48 = vld [vmem:[%s8738_s3 + $0x110] sm:$0xff]  ;;  %v6560_v45 = vld [vmem:[%s8738_s3 + $0xc8] sm:$0xff] }
 0x121   : > { %v1007_v24 = vpop.f32.mrf.mxu2  ;;  %v2258_v28 = vunpack.c.l.b16 %v2159_v12  ;;  %3901 = vmatpush.bf16.msrb.mxu1 %v6569_v48  ;;  %3548 = vmatpush.bf16.msrb.mxu0 %v6560_v45  ;;  %v7805_v48 = vld [vmem:[%s6883_s17 + $0x70] sm:$0xf] }
 0x122   : > { %v1213_v56 = vpop.f32.mrf.mxu3  ;;  %v1038_v62 = vadd.f32 %v1007_v24, %v7541_v37  ;;  %v2442_v24 = vrot.slane %v5639_v40, 5  ;;  %v2218_v23 = vshll.u32 %v7805_v48, 16 }
 0x123   : > { %v1569_v49 = vpop.f32.mrf.mxu0  ;;  %v2269_v4 = vpack.c.b16 %v2258_v28, %v2257_v52 }
 0x124   : > { %v1244_v27 = vadd.f32 %v1213_v56, %v1038_v62  ;;  %v6536_v56 = vld [vmem:[%s8738_s3 + $0x48] sm:$0xff] }
 0x125   : > { %v1795_v10 = vpop.f32.mrf.mxu1  ;;  %3118 = vmatpush.bf16.msrb.mxu2 %v6536_v56  ;;  %v6535_v56 = vld [vmem:[%s8738_s3 + $0x40] sm:$0xff] }
 0x126   : > { %v1598_v37 = vadd.f32 %v1567_v58, %v1244_v27  ;;  %v6490_v58 = vld [vmem:[%s6883_s17 + $0x48] sm:$0xff] }
 0x128   : > { %v7749_v63 = vadd.f32 %v1793_v59, %v1598_v37  ;;  %v2178_v59 = vrot.slane %v2177_v54, 4  ;;  %v2259_v37 = vunpack.c.l.b16 %v2173_v38  ;;  %v5642_v54 = vld [vmem:[%s6883_s17 + $0x68] sm:$0x1]  ;;  %v5780_v38 = vrot.slane %v7766_v7, 9 }
 0x129   : > { %v1009_v35 = vpop.f32.mrf.mxu2  ;;  %3119 = vmatpush.bf16.msrb.mxu2 %v6535_v56 }
 0x12a   : > { %v1215_v36 = vpop.f32.mrf.mxu3  ;;  %v1039_v30 = vadd.f32 %v1009_v35, %v7573_v5  ;;  %v2441_v5 = vrot.slane %v2439_v39, 4  ;;  %v2183_v27 = vsel %vm6921_vm2, %v2178_v59, %v2182_v32  ;;  %v2190_v35 = vrot.slane %v2188_v13, 5 }
 0x12b   : > { %v1572_v2 = vpop.f32.mrf.mxu0  ;;  %v2260_v28 = vunpack.c.l.b16 %v2183_v27  ;;  %v2204_v59 = vshll.u32 %v5642_v54, 16  ;;  %v2449_v27 = vrot.slane %v5642_v54, 5 }
 0x12c   : > { %v1245_v41 = vadd.f32 %v1215_v36, %v1039_v30  ;;  %v2443_v20 = vsel %vm7107_vm5, %v2441_v5, %v2442_v24  ;;  %v2196_v36 = vrot.slane %v2194_v22, 5  ;;  %v2446_v5 = vrot.slane %v7769_v55, 5 }
 0x12d   : > { %v1798_v47 = vpop.f32.mrf.mxu1  ;;  %v2486_v43 = vunpack.c.l.b16 %v2443_v20  ;;  %v2206_v55 = vrot.slane %v2204_v59, 5 }
 0x12e   : > { %v1599_v3 = vadd.f32 %v1569_v49, %v1245_v41  ;;  %2003 = vmatmul.bf16.gmra.mxu2 %v6490_v58  ;;  %2583 = vmatmul.bf16.gmra.mxu0 %v2495_v21  ;;  %v2440_v49 = vsel %vm7107_vm5, %v5779_v15, %v2439_v39  ;;  %v6491_v39 = vld [vmem:[%s6883_s17 + $0x54] sm:$0xff]  ;;  %v2270_v21 = vpack.c.b16 %v2260_v28, %v2259_v37  ;;  %v6524_v41 = vld [vmem:[%s7586_s25 + $0x3c] sm:$0xff] }
 0x12f   : > { %2357 = vmatmul.bf16.gmra.mxu3 %v2269_v4  ;;  %v2485_v40 = vunpack.c.l.b16 %v2440_v49  ;;  %v2201_v50 = vor.u32 %v2200_v53, %v2196_v36 }
 0x130   : > { %2786 = vmatmul.bf16.gmra.mxu1 %v6523_v29  ;;  %v7771_v1 = vadd.f32 %v1795_v10, %v1599_v3  ;;  %v2185_v10 = vshrl.u32 %v7766_v7, 16 }
 0x131   : > { %v1012_v8 = vpop.f32.mrf.mxu2  ;;  %v2496_v29 = vpack.c.b16 %v2486_v43, %v2485_v40  ;;  %v2447_v40 = vsel %vm7107_vm5, %v5780_v38, %v2446_v5 }
 0x132   : > { %v1218_v62 = vpop.f32.mrf.mxu3  ;;  %v1040_v12 = vadd.f32 %v1012_v8, %v7413_v6  ;;  %v2187_v33 = vrot.slane %v2185_v10, 4  ;;  %v2202_v8 = vrot.slane %v2201_v50, 4 }
 0x133   : > { %v1574_v6 = vpop.f32.mrf.mxu0 }
 0x134   : > { %v1246_v26 = vadd.f32 %v1218_v62, %v1040_v12  ;;  %v6543_v62 = vld [vmem:[%s8738_s3 + $0x80] sm:$0xff]  ;;  %v2448_v12 = vrot.slane %v2446_v5, 4  ;;  %v2453_v5 = vrot.slane %v7805_v48, 5 }
 0x135   : > { %v1800_v31 = vpop.f32.mrf.mxu1  ;;  %3345 = vmatpush.bf16.msrb.mxu3 %v6543_v62  ;;  %v7846_v62 = vld [vmem:[%s7586_s25 + $0x4] sm:$0xf] }
 0x136   : > { %v1600_v52 = vadd.f32 %v1572_v2, %v1246_v26  ;;  %v2191_v2 = vor.u32 %v2190_v35, %v2187_v33  ;;  %v2222_v26 = vshrl.u32 %v7805_v48, 16  ;;  %v2450_v43 = vsel %vm7107_vm5, %v2448_v12, %v2449_v27  ;;  %v6567_v48 = vld [vmem:[%s8738_s3 + $0x100] sm:$0xff] }
 0x137   : > { %v7829_v35 = vrot.slane %v2218_v23, 5 }
 0x138   : > { %v7790_v44 = vadd.f32 %v1798_v47, %v1600_v52  ;;  %v7799_v47 = vld [vmem:[%s6883_s17 + $0x6c] sm:$0xf]  ;;  %v2192_v17 = vrot.slane %v2191_v2, 4 }
 0x139   : > { %v1014_v30 = vpop.f32.mrf.mxu2  ;;  %v2209_v13 = vshrl.u32 %v7799_v47, 16  ;;  %v2212_v22 = vshll.u32 %v7799_v47, 16 }
 0x13a   : > { %v1220_v58 = vpop.f32.mrf.mxu3  ;;  %v1041_v4 = vadd.f32 %v1014_v30, %v7433_v9  ;;  %v6568_v9 = vld [vmem:[%s8738_s3 + $0x108] sm:$0xff]  ;;  %v5645_v30 = vld [vmem:[%s6883_s17 + $0x74] sm:$0x1] }
 0x13b   : > { %v1577_v3 = vpop.f32.mrf.mxu0  ;;  %3902 = vmatpush.bf16.msrb.mxu1 %v6568_v9  ;;  %v2211_v45 = vrot.slane %v2209_v13, 4  ;;  %v2214_v33 = vrot.slane %v2212_v22, 5  ;;  %v2228_v50 = vshll.u32 %v5645_v30, 16  ;;  %v6525_v9 = vld [vmem:[%s7586_s25 + $0x48] sm:$0xff]  ;;  %v2455_v13 = vrot.slane %v2453_v5, 4 }
 0x13c   : > { %v1247_v32 = vadd.f32 %v1220_v58, %v1041_v4  ;;  %v6559_v58 = vld [vmem:[%s8738_s3 + $0xc0] sm:$0xff]  ;;  %v2487_v4 = vunpack.c.l.b16 %v2447_v40  ;;  %v2456_v22 = vrot.slane %v5645_v30, 5 }
 0x13d   : > { %v7795_v15 = vpop.f32.mrf.mxu1  ;;  %3549 = vmatpush.bf16.msrb.mxu0 %v6559_v58 }
 0x13e   : > { %v1601_v24 = vadd.f32 %v1574_v6, %v1247_v32  ;;  %2008 = vmatmul.bf16.gmra.mxu2 %v6491_v39  ;;  %2588 = vmatmul.bf16.gmra.mxu0 %v2496_v29  ;;  %v2197_v6 = vsel %vm6921_vm2, %v2192_v17, %v2196_v36  ;;  %v2488_v39 = vunpack.c.l.b16 %v2450_v43  ;;  %v6492_v32 = vld [vmem:[%s6883_s17 + $0x60] sm:$0xff] }
 0x13f   : > { %2362 = vmatmul.bf16.gmra.mxu3 %v2270_v21  ;;  %v2261_v36 = vunpack.c.l.b16 %v2197_v6  ;;  %v6598_v6 = vld [vmem:[%s8738_s3 + $0x1b8] sm:$0xff]  ;;  %3903 = vmatpush.bf16.msrb.mxu1 %v6567_v48 }
 0x140   : > { %2791 = vmatmul.bf16.gmra.mxu1 %v6524_v41  ;;  %v7814_v49 = vadd.f32 %v1800_v31, %v1601_v24  ;;  %v2207_v31 = vsel %vm6921_vm2, %v2202_v8, %v2206_v55  ;;  %v2215_v41 = vor.u32 %v2214_v33, %v2211_v45  ;;  %v2497_v24 = vpack.c.b16 %v2488_v39, %v2487_v4  ;;  %v7843_v55 = vld [vmem:[%s7586_s25] sm:$0xf]  ;;  %v6002_v33 = vld [vmem:[%s7586_s25 + $0x10] sm:$0xf] }
 0x141   : > { %v1017_v20 = vpop.f32.mrf.mxu2  ;;  %v2262_v54 = vunpack.c.l.b16 %v2207_v31  ;;  %v2824_v23 = vshrl.u32 %v7843_v55, 16  ;;  %v2837_v31 = vshrl.u32 %v7846_v62, 16  ;;  %4326 = vmatpush.bf16.msra.mxu3 %v6598_v6 }
 0x142   : > { %v1223_v10 = vpop.f32.mrf.mxu3  ;;  %v1042_v7 = vadd.f32 %v1017_v20, %v7463_v60  ;;  %v2224_v60 = vrot.slane %v2222_v26, 4  ;;  %v2216_v12 = vrot.slane %v2215_v41, 4  ;;  %v2827_v26 = vshll.u32 %v7843_v55, 16 }
 0x143   : > { %v1579_v52 = vpop.f32.mrf.mxu0  ;;  %v2826_v30 = vrot.slane %v2824_v23, 4  ;;  %v3617_v41 = vshll.u32 %v6002_v33, 16  ;;  %v6493_v23 = vld [vmem:[%s6883_s17 + $0x6c] sm:$0xff] }
 0x144   : > { %v1248_v37 = vadd.f32 %v1223_v10, %v1042_v7  ;;  %v2225_v2 = vor.u32 %v2224_v60, %v7829_v35  ;;  %v5781_v10 = vrot.slane %v7799_v47, 9  ;;  %v2833_v7 = vshll.u32 %v7846_v62, 16  ;;  %v6001_v47 = vld [vmem:[%s7586_s25 + $0xc] sm:$0xf] }
 0x145   : > { %v1805_v28 = vpop.f32.mrf.mxu1  ;;  %v2221_v43 = vsel %vm6921_vm2, %v2216_v12, %v7829_v35  ;;  %v2829_v58 = vrot.slane %v2827_v26, 5 }
 0x146   : > { %v1602_v53 = vadd.f32 %v1577_v3, %v1248_v37  ;;  %v2271_v3 = vpack.c.b16 %v2262_v54, %v2261_v36  ;;  %v2226_v27 = vrot.slane %v2225_v2, 4  ;;  %v3608_v36 = vshrl.u32 %v6001_v47, 16 }
 0x147   : > { %v2457_v54 = vsel %vm7107_vm5, %v2455_v13, %v2456_v22  ;;  %v7879_v4 = vrot.slane %v2833_v7, 5  ;;  %v3621_v2 = vshrl.u32 %v6002_v33, 16  ;;  %v2830_v12 = vor.u32 %v2829_v58, %v2826_v30  ;;  %v6003_v22 = vld [vmem:[%s7586_s25 + $0x14] sm:$0x1] }
 0x148   : > { %v7849_v38 = vadd.f32 %v7795_v15, %v1602_v53  ;;  %v6582_v15 = vld [vmem:[%s8738_s3 + $0x178] sm:$0xff]  ;;  %v2454_v53 = vsel %vm7107_vm5, %v5781_v10, %v2453_v5  ;;  %v3187_v13 = vrot.slane %v7846_v62, 5 }
 0x149   : > { %v1019_v21 = vpop.f32.mrf.mxu2  ;;  %4122 = vmatpush.bf16.msra.mxu2 %v6582_v15 }
 0x14a   : > { %v1225_v29 = vpop.f32.mrf.mxu3  ;;  %v1043_v59 = vadd.f32 %v1019_v21, %v7488_v14  ;;  %v2230_v14 = vrot.slane %v2228_v50, 5 }
 0x14b   : > { %v1582_v17 = vpop.f32.mrf.mxu0 }
 0x14c   : > { %v1249_v56 = vadd.f32 %v1225_v29, %v1043_v59  ;;  %v2231_v45 = vsel %vm6921_vm2, %v2226_v27, %v2230_v14  ;;  %v2839_v29 = vrot.slane %v2837_v31, 4  ;;  %v7888_v14 = vrot.slane %v3617_v41, 5  ;;  %v6597_v41 = vld [vmem:[%s8738_s3 + $0x1b0] sm:$0xff] }
 0x14d   : > { %v7840_v8 = vpop.f32.mrf.mxu1  ;;  %v2264_v59 = vunpack.c.l.b16 %v2231_v45  ;;  %v2831_v31 = vrot.slane %v2830_v12, 4  ;;  %4327 = vmatpush.bf16.msra.mxu3 %v6597_v41  ;;  %v6005_v12 = vld [vmem:[%s7586_s25 + $0x1c] sm:$0xf] }
 0x14e   : > { %v1603_v20 = vadd.f32 %v1579_v52, %v1249_v56  ;;  %2013 = vmatmul.bf16.gmra.mxu2 %v6492_v32  ;;  %2593 = vmatmul.bf16.gmra.mxu0 %v2497_v24  ;;  %v7882_v32 = vld [vmem:[%s7586_s25 + $0x8] sm:$0x1]  ;;  %v6606_v24 = vld [vmem:[%s8738_s3 + $0x1f8] sm:$0xff]  ;;  %v2490_v56 = vunpack.c.l.b16 %v2457_v54  ;;  %v2840_v27 = vor.u32 %v2839_v29, %v7879_v4  ;;  %v7911_v29 = vld [vmem:[%s7586_s25 + $0x10] sm:$0xf] }
 0x14f   : > { %2367 = vmatmul.bf16.gmra.mxu3 %v2271_v3  ;;  %v3610_v3 = vrot.slane %v3608_v36, 4  ;;  %4680 = vmatpush.bf16.msra.mxu0 %v6606_v24  ;;  %v2843_v10 = vshll.u32 %v7882_v32, 16  ;;  %v3189_v36 = vrot.slane %v3187_v13, 4  ;;  %v3190_v30 = vrot.slane %v7882_v32, 5 }
 0x150   : > { %2796 = vmatmul.bf16.gmra.mxu1 %v6525_v9  ;;  %v7866_v37 = vadd.f32 %v1805_v28, %v1603_v20  ;;  %v3611_v28 = vshll.u32 %v6001_v47, 16  ;;  %v2489_v9 = vunpack.c.l.b16 %v2454_v53  ;;  %v6526_v47 = vld [vmem:[%s7586_s25 + $0x54] sm:$0xff]  ;;  %v2841_v45 = vrot.slane %v2840_v27, 4  ;;  %v7900_v53 = vld [vmem:[%s7586_s25 + $0xc] sm:$0xf] }
 0x151   : > { %v1022_v52 = vpop.f32.mrf.mxu2  ;;  %v2845_v62 = vrot.slane %v2843_v10, 5 }
 0x152   : > { %v1228_v40 = vpop.f32.mrf.mxu3  ;;  %v1044_v60 = vadd.f32 %v1022_v52, %v7519_v61  ;;  %v2263_v61 = vunpack.c.l.b16 %v2221_v43  ;;  %v3613_v5 = vrot.slane %v3611_v28, 5  ;;  %v2498_v6 = vpack.c.b16 %v2490_v56, %v2489_v9 }
 0x153   : > { %v1584_v39 = vpop.f32.mrf.mxu0  ;;  %v2846_v24 = vsel %vm6921_vm2, %v2841_v45, %v2845_v62  ;;  %v2857_v9 = vshll.u32 %v7911_v29, 16  ;;  %v2861_v56 = vshrl.u32 %v7911_v29, 16  ;;  %v7947_v62 = vld [vmem:[%s7586_s25 + $0x14] sm:$0x1] }
 0x154   : > { %v1250_v35 = vadd.f32 %v1228_v40, %v1044_v60  ;;  %v2272_v26 = vpack.c.b16 %v2264_v59, %v2263_v61  ;;  %v3614_v7 = vor.u32 %v3613_v5, %v3610_v3  ;;  %v3627_v60 = vshll.u32 %v6003_v22, 16 }
 0x155   : > { %v1810_v21 = vpop.f32.mrf.mxu1  ;;  %v2836_v5 = vsel %vm6921_vm2, %v2831_v31, %v7879_v4  ;;  %v7944_v31 = vrot.slane %v2857_v9, 5  ;;  %v2867_v41 = vshll.u32 %v7947_v62, 16 }
 0x156   : > { %v1604_v50 = vadd.f32 %v1582_v17, %v1250_v35  ;;  %v3623_v17 = vrot.slane %v3621_v2, 4  ;;  %v3615_v58 = vrot.slane %v3614_v7, 4  ;;  %v6614_v35 = vld [vmem:[%s8738_s3 + $0x238] sm:$0xff]  ;;  %v3629_v61 = vrot.slane %v3627_v60, 5 }
 0x157   : > { %4906 = vmatpush.bf16.msra.mxu1 %v6614_v35  ;;  %v3645_v7 = vshrl.u32 %v6005_v12, 16 }
 0x158   : > { %v3624_v33 = vor.u32 %v3623_v17, %v7888_v14  ;;  %v7904_v28 = vadd.f32 %v7840_v8, %v1604_v50  ;;  %v2848_v8 = vshrl.u32 %v7900_v53, 16  ;;  %v6004_v50 = vld [vmem:[%s7586_s25 + $0x18] sm:$0xf]  ;;  %v3191_v17 = vsel %vm7107_vm5, %v3189_v36, %v3190_v30 }
 0x159   : > { %v1024_v48 = vpop.f32.mrf.mxu2  ;;  %v3620_v4 = vsel %vm6921_vm2, %v3615_v58, %v7888_v14  ;;  %v3632_v10 = vshrl.u32 %v6004_v50, 16  ;;  %v3635_v22 = vshll.u32 %v6004_v50, 16 }
 0x15a   : > { %v1230_v20 = vpop.f32.mrf.mxu3  ;;  %v1045_v15 = vadd.f32 %v1024_v48, %v7537_v18  ;;  %v5943_v18 = vrot.slane %v7843_v55, 9  ;;  %v6581_v55 = vld [vmem:[%s8738_s3 + $0x170] sm:$0xff]  ;;  %v3625_v2 = vrot.slane %v3624_v33, 4  ;;  %v2850_v48 = vrot.slane %v2848_v8, 4 }
 0x15b   : > { %v1587_v40 = vpop.f32.mrf.mxu0  ;;  %4123 = vmatpush.bf16.msra.mxu2 %v6581_v55  ;;  %v3259_v33 = vunpack.c.l.b16 %v3191_v17  ;;  %v3816_v60 = vunpack.c.l.b16 %v3620_v4  ;;  %v3634_v30 = vrot.slane %v3632_v10, 4  ;;  %v3637_v58 = vrot.slane %v3635_v22, 5 }
 0x15c   : > { %v1251_v52 = vadd.f32 %v1230_v20, %v1045_v15  ;;  %v3647_v55 = vrot.slane %v3645_v7, 4  ;;  %v5944_v10 = vrot.slane %v7900_v53, 9  ;;  %v7975_v7 = vld [vmem:[%s7586_s25 + $0x1c] sm:$0xf] }
 0x15d   : > { %v7896_v43 = vpop.f32.mrf.mxu1 }
 0x15e   : > { %v1605_v54 = vadd.f32 %v1584_v39, %v1251_v52  ;;  %2018 = vmatmul.bf16.gmra.mxu2 %v6493_v23  ;;  %2598 = vmatmul.bf16.gmra.mxu0 %v2498_v6  ;;  %v2851_v39 = vshll.u32 %v7900_v53, 16  ;;  %v3032_v6 = vunpack.c.l.b16 %v2836_v5  ;;  %v2863_v52 = vrot.slane %v2861_v56, 4  ;;  %v6551_v5 = vld [vmem:[%s7586_s25 + $0xc] sm:$0xff] }
 0x15f   : > { %2372 = vmatmul.bf16.gmra.mxu3 %v2272_v26  ;;  %v3638_v56 = vor.u32 %v3637_v58, %v3634_v30  ;;  %v6580_v53 = vld [vmem:[%s8738_s3 + $0x168] sm:$0xff]  ;;  %v2885_v30 = vshrl.u32 %v7975_v7, 16 }
 0x160   : > { %2801 = vmatmul.bf16.gmra.mxu1 %v6526_v47  ;;  %v7922_v59 = vadd.f32 %v1810_v21, %v1605_v54  ;;  %v3188_v21 = vsel %vm7107_vm5, %v5943_v18, %v3187_v13  ;;  %v2853_v20 = vrot.slane %v2851_v39, 5  ;;  %v3641_v13 = vshll.u32 %v6005_v12, 16  ;;  %v6605_v18 = vld [vmem:[%s8738_s3 + $0x1f0] sm:$0xff]  ;;  %4124 = vmatpush.bf16.msra.mxu2 %v6580_v53  ;;  %v6008_v58 = vld [vmem:[%s7586_s25 + $0x28] sm:$0xf] }
 0x161   : > { %v1027_v32 = vpop.f32.mrf.mxu2  ;;  %v3033_v47 = vunpack.c.l.b16 %v2846_v24  ;;  %v3258_v45 = vunpack.c.l.b16 %v3188_v21  ;;  %4681 = vmatpush.bf16.msra.mxu0 %v6605_v18  ;;  %v2864_v39 = vor.u32 %v2863_v52, %v7944_v31  ;;  %v6596_v52 = vld [vmem:[%s8738_s3 + $0x1a8] sm:$0xff] }
 0x162   : > { %v1233_v3 = vpop.f32.mrf.mxu3  ;;  %v1046_v27 = vadd.f32 %v1027_v32, %v7563_v57  ;;  %v3630_v57 = vsel %vm6921_vm2, %v3625_v2, %v3629_v61  ;;  %v2854_v54 = vor.u32 %v2853_v20, %v2850_v48  ;;  %v7952_v35 = vrot.slane %v3641_v13, 5  ;;  %v6006_v2 = vld [vmem:[%s7586_s25 + $0x20] sm:$0x1]  ;;  %v7964_v48 = vld [vmem:[%s7586_s25 + $0x18] sm:$0xf]  ;;  %v6613_v13 = vld [vmem:[%s8738_s3 + $0x230] sm:$0xff]  ;;  %4328 = vmatpush.bf16.msra.mxu3 %v6596_v52 }
 0x163   : > { %v1589_v23 = vpop.f32.mrf.mxu0  ;;  %v3817_v36 = vunpack.c.l.b16 %v3630_v57  ;;  %v3048_v50 = vpack.c.b16 %v3033_v47, %v3032_v6  ;;  %v3274_v32 = vpack.c.b16 %v3259_v33, %v3258_v45  ;;  %v3651_v4 = vshll.u32 %v6006_v2, 16  ;;  %4907 = vmatpush.bf16.msra.mxu1 %v6613_v13 }
 0x164   : > { %v1252_v15 = vadd.f32 %v1233_v3, %v1046_v27  ;;  %v3194_v3 = vrot.slane %v7911_v29, 5  ;;  %v2855_v9 = vrot.slane %v2854_v54, 4  ;;  %v3648_v17 = vor.u32 %v3647_v55, %v7952_v35 }
 0x165   : > { %v7940_v26 = vpop.f32.mrf.mxu1  ;;  %v3832_v24 = vpack.c.b16 %v3817_v36, %v3816_v60  ;;  %v2865_v20 = vrot.slane %v2864_v39, 4  ;;  %v3197_v57 = vrot.slane %v7947_v62, 5  ;;  %v2872_v6 = vshrl.u32 %v7964_v48, 16 }
 0x166   : > { %v1606_v14 = vadd.f32 %v1587_v40, %v1252_v15  ;;  %v3196_v15 = vrot.slane %v3194_v3, 4  ;;  %v2875_v47 = vshll.u32 %v7964_v48, 16  ;;  %v3649_v45 = vrot.slane %v3648_v17, 4 }
 0x167   : > { %v3653_v33 = vrot.slane %v3651_v4, 5  ;;  %v3195_v36 = vsel %vm7107_vm5, %v5944_v10, %v3194_v3  ;;  %v2881_v54 = vshll.u32 %v7975_v7, 16  ;;  %v2874_v2 = vrot.slane %v2872_v6, 4 }
 0x168   : > { %v7968_v29 = vadd.f32 %v7896_v43, %v1606_v14  ;;  %v2860_v43 = vsel %vm6921_vm2, %v2855_v9, %v7944_v31  ;;  %v6007_v14 = vld [vmem:[%s7586_s25 + $0x24] sm:$0xf]  ;;  %v3198_v39 = vsel %vm7107_vm5, %v3196_v15, %v3197_v57  ;;  %v3669_v9 = vshrl.u32 %v6008_v58, 16 }
 0x169   : > { %v1029_v40 = vpop.f32.mrf.mxu2  ;;  %v8012_v17 = vrot.slane %v2881_v54, 5  ;;  %v2887_v4 = vrot.slane %v2885_v30, 4  ;;  %v3201_v52 = vrot.slane %v7975_v7, 5 }
 0x16a   : > { %v1235_v8 = vpop.f32.mrf.mxu3  ;;  %v1047_v61 = vadd.f32 %v1029_v40, %v7588_v19  ;;  %v2869_v19 = vrot.slane %v2867_v41, 5  ;;  %v3034_v40 = vunpack.c.l.b16 %v2860_v43 }
 0x16b   : > { %v2564_v27 = vpop.f32.mrf.mxu0 }
 0x16c   : > { %v1253_v12 = vadd.f32 %v1235_v8, %v1047_v61  ;;  %v2870_v18 = vsel %vm6921_vm2, %v2865_v20, %v2869_v19  ;;  %v3659_v8 = vshll.u32 %v6007_v14, 16  ;;  %v2877_v61 = vrot.slane %v2875_v47, 5 }
 0x16d   : > { %v7960_v21 = vpop.f32.mrf.mxu1  ;;  %v2888_v47 = vor.u32 %v2887_v4, %v8012_v17 }
 0x16e   : > { %v1607_v22 = vadd.f32 %v1589_v23, %v1253_v12  ;;  %3120 = vmatmul.bf16.vlgmr.msrb.gmra.mxu2 %v3048_v50  ;;  %3550 = vmatmul.bf16.vlgmr.msrb.gmra.mxu0 %v6551_v5  ;;  %v3639_v23 = vrot.slane %v3638_v56, 4  ;;  %v3654_v5 = vsel %vm6921_vm2, %v3649_v45, %v3653_v33  ;;  %v3035_v56 = vunpack.c.l.b16 %v2870_v18  ;;  %v6552_v18 = vld [vmem:[%s7586_s25 + $0x18] sm:$0xff] }
 0x16f   : > { %3346 = vmatmul.bf16.vlgmr.msrb.gmra.mxu3 %v3274_v32  ;;  %v3260_v12 = vunpack.c.l.b16 %v3195_v36  ;;  %v3661_v10 = vrot.slane %v3659_v8, 5  ;;  %v3819_v57 = vunpack.c.l.b16 %v3654_v5  ;;  %v2878_v13 = vor.u32 %v2877_v61, %v2874_v2 }
 0x170   : > { %3904 = vmatmul.bf16.vlgmr.msrb.gmra.mxu1 %v3832_v24  ;;  %v7990_v60 = vadd.f32 %v7940_v26, %v1607_v22  ;;  %v3656_v26 = vshrl.u32 %v6007_v14, 16  ;;  %v3644_v41 = vsel %vm6921_vm2, %v3639_v23, %v7952_v35  ;;  %v3665_v24 = vshll.u32 %v6008_v58, 16  ;;  %v6604_v22 = vld [vmem:[%s8738_s3 + $0x1e8] sm:$0xff] }
 0x171   : > { %v1984_v62 = vpop.f32.mrf.mxu2  ;;  %v3261_v35 = vunpack.c.l.b16 %v3198_v39  ;;  %v3818_v15 = vunpack.c.l.b16 %v3644_v41  ;;  %v3671_v23 = vrot.slane %v3669_v9, 4  ;;  %4682 = vmatpush.bf16.msra.mxu0 %v6604_v22  ;;  %v6009_v14 = vld [vmem:[%s7586_s25 + $0x2c] sm:$0x1]  ;;  %v3049_v33 = vpack.c.b16 %v3035_v56, %v3034_v40  ;;  %v8030_v41 = vld [vmem:[%s7586_s25 + $0x24] sm:$0xf] }
 0x172   : > { %v2338_v31 = vpop.f32.mrf.mxu3  ;;  %v2024_v55 = vadd.f32 %v1984_v62, %v7626_v51  ;;  %v8010_v51 = vld [vmem:[%s7586_s25 + $0x20] sm:$0x1]  ;;  %v3658_v19 = vrot.slane %v3656_v26, 4  ;;  %v8018_v43 = vrot.slane %v3665_v24, 5  ;;  %v2879_v54 = vrot.slane %v2878_v13, 4 }
 0x173   : > { %v2566_v32 = vpop.f32.mrf.mxu0  ;;  %v2891_v53 = vshll.u32 %v8010_v51, 16  ;;  %v3275_v62 = vpack.c.b16 %v3261_v35, %v3260_v12  ;;  %v3833_v36 = vpack.c.b16 %v3819_v57, %v3818_v15  ;;  %v5945_v8 = vrot.slane %v7964_v48, 9  ;;  %v6612_v48 = vld [vmem:[%s8738_s3 + $0x228] sm:$0xff]  ;;  %v6579_v9 = vld [vmem:[%s8738_s3 + $0x160] sm:$0xff]  ;;  %v6010_v12 = vld [vmem:[%s7586_s25 + $0x30] sm:$0xf] }
 0x174   : > { %v2378_v50 = vadd.f32 %v2338_v31, %v2024_v55  ;;  %v3662_v31 = vor.u32 %v3661_v10, %v3658_v19  ;;  %v3672_v7 = vor.u32 %v3671_v23, %v8018_v43  ;;  %v3675_v39 = vshll.u32 %v6009_v14, 16  ;;  %v8040_v24 = vld [vmem:[%s7586_s25 + $0x28] sm:$0xf]  ;;  %v6595_v56 = vld [vmem:[%s8738_s3 + $0x1a0] sm:$0xff]  ;;  %4908 = vmatpush.bf16.msra.mxu1 %v6612_v48  ;;  %4125 = vmatpush.bf16.msra.mxu2 %v6579_v9  ;;  %v6011_v19 = vld [vmem:[%s7586_s25 + $0x34] sm:$0xf] }
 0x175   : > { %v8005_v3 = vpop.f32.mrf.mxu1  ;;  %v2893_v30 = vrot.slane %v2891_v53, 5  ;;  %v3203_v40 = vrot.slane %v3201_v52, 4  ;;  %v3204_v2 = vrot.slane %v8010_v51, 5  ;;  %v2899_v51 = vshll.u32 %v8030_v41, 16  ;;  %4329 = vmatpush.bf16.msra.mxu3 %v6595_v56 }
 0x176   : > { %v2604_v20 = vadd.f32 %v2564_v27, %v2378_v50  ;;  %v3663_v5 = vrot.slane %v3662_v31, 4  ;;  %v3202_v4 = vsel %vm7107_vm5, %v5945_v8, %v3201_v52  ;;  %v3677_v35 = vrot.slane %v3675_v39, 5 }
 0x177   : > { %v3205_v57 = vsel %vm7107_vm5, %v3203_v40, %v3204_v2  ;;  %v2905_v13 = vshll.u32 %v8040_v24, 16  ;;  %v2909_v53 = vshrl.u32 %v8040_v24, 16  ;;  %v2901_v52 = vrot.slane %v2899_v51, 5  ;;  %v6603_v2 = vld [vmem:[%s8738_s3 + $0x1e0] sm:$0xff] }
 0x178   : > { %v8034_v61 = vadd.f32 %v7960_v21, %v2604_v20  ;;  %v2884_v21 = vsel %vm6921_vm2, %v2879_v54, %v8012_v17  ;;  %v3673_v20 = vrot.slane %v3672_v7, 4  ;;  %v3689_v14 = vshll.u32 %v6011_v19, 16  ;;  %4683 = vmatpush.bf16.msra.mxu0 %v6603_v2 }
 0x179   : > { %v1986_v6 = vpop.f32.mrf.mxu2  ;;  %v2911_v8 = vrot.slane %v2909_v53, 4 }
 0x17a   : > { %v2340_v27 = vpop.f32.mrf.mxu3  ;;  %v2025_v45 = vadd.f32 %v1986_v6, %v7648_v11  ;;  %v2889_v11 = vrot.slane %v2888_v47, 4  ;;  %v3680_v6 = vshrl.u32 %v6010_v12, 16  ;;  %v3678_v54 = vsel %vm6921_vm2, %v3673_v20, %v3677_v35 }
 0x17b   : > { %v2569_v55 = vpop.f32.mrf.mxu0  ;;  %v8080_v48 = vrot.slane %v3689_v14, 5 }
 0x17c   : > { %v2379_v58 = vadd.f32 %v2340_v27, %v2025_v45  ;;  %v2894_v15 = vsel %vm6921_vm2, %v2889_v11, %v2893_v30  ;;  %v3683_v27 = vshll.u32 %v6010_v12, 16  ;;  %v3693_v45 = vshrl.u32 %v6011_v19, 16 }
 0x17d   : > { %v8025_v26 = vpop.f32.mrf.mxu1  ;;  %v3263_v30 = vunpack.c.l.b16 %v3205_v57  ;;  %v3682_v11 = vrot.slane %v3680_v6, 4  ;;  %v3208_v12 = vrot.slane %v8040_v24, 5 }
 0x17e   : > { %v2605_v50 = vadd.f32 %v2566_v32, %v2379_v58  ;;  %3125 = vmatmul.bf16.gmra.mxu2 %v3049_v33  ;;  %3555 = vmatmul.bf16.gmra.mxu0 %v6552_v18  ;;  %v2896_v32 = vshrl.u32 %v8030_v41, 16  ;;  %v3036_v18 = vunpack.c.l.b16 %v2884_v21  ;;  %v8073_v58 = vld [vmem:[%s7586_s25 + $0x2c] sm:$0x1]  ;;  %v3685_v40 = vrot.slane %v3683_v27, 5  ;;  %v8092_v27 = vld [vmem:[%s7586_s25 + $0x30] sm:$0xf] }
 0x17f   : > { %3351 = vmatmul.bf16.gmra.mxu3 %v3275_v62  ;;  %v3695_v9 = vrot.slane %v3693_v45, 4  ;;  %v2915_v21 = vshll.u32 %v8073_v58, 16  ;;  %v3211_v45 = vrot.slane %v8073_v58, 5  ;;  %v6013_v58 = vld [vmem:[%s7586_s25 + $0x3c] sm:$0xf] }
 0x180   : > { %3909 = vmatmul.bf16.gmra.mxu1 %v3833_v36  ;;  %v8058_v10 = vadd.f32 %v8005_v3, %v2605_v50  ;;  %v3668_v3 = vsel %vm6921_vm2, %v3663_v5, %v8018_v43  ;;  %v2898_v47 = vrot.slane %v2896_v32, 4  ;;  %v3037_v36 = vunpack.c.l.b16 %v2894_v15  ;;  %v6012_v32 = vld [vmem:[%s7586_s25 + $0x38] sm:$0x1] }
 0x181   : > { %v1989_v17 = vpop.f32.mrf.mxu2  ;;  %v8075_v43 = vrot.slane %v2905_v13, 5  ;;  %v3820_v39 = vunpack.c.l.b16 %v3668_v3  ;;  %v3821_v50 = vunpack.c.l.b16 %v3678_v54  ;;  %v3686_v19 = vor.u32 %v3685_v40, %v3682_v11 }
 0x182   : > { %v2343_v22 = vpop.f32.mrf.mxu3  ;;  %v2026_v23 = vadd.f32 %v1989_v17, %v7667_v25  ;;  %v3262_v25 = vunpack.c.l.b16 %v3202_v4  ;;  %v2902_v5 = vor.u32 %v2901_v52, %v2898_v47  ;;  %v3050_v20 = vpack.c.b16 %v3037_v36, %v3036_v18  ;;  %v6553_v17 = vld [vmem:[%s7586_s25 + $0x24] sm:$0xff]  ;;  %v8103_v36 = vld [vmem:[%s7586_s25 + $0x34] sm:$0xf] }
 0x183   : > { %v2571_v62 = vpop.f32.mrf.mxu0  ;;  %v3696_v57 = vor.u32 %v3695_v9, %v8080_v48  ;;  %v3699_v13 = vshll.u32 %v6012_v32, 16  ;;  %v2917_v6 = vrot.slane %v2915_v21, 5  ;;  %v3210_v47 = vrot.slane %v3208_v12, 4  ;;  %v6611_v18 = vld [vmem:[%s8738_s3 + $0x220] sm:$0xff] }
 0x184   : > { %v2380_v33 = vadd.f32 %v2343_v22, %v2026_v23  ;;  %v3276_v35 = vpack.c.b16 %v3263_v30, %v3262_v25  ;;  %v3834_v22 = vpack.c.b16 %v3821_v50, %v3820_v39  ;;  %v2903_v15 = vrot.slane %v2902_v5, 4  ;;  %v6594_v30 = vld [vmem:[%s8738_s3 + $0x198] sm:$0xff]  ;;  %4909 = vmatpush.bf16.msra.mxu1 %v6611_v18  ;;  %v6014_v5 = vld [vmem:[%s7586_s25 + $0x40] sm:$0xf] }
 0x185   : > { %v2774_v31 = vpop.f32.mrf.mxu1  ;;  %v3701_v54 = vrot.slane %v3699_v13, 5  ;;  %v2920_v25 = vshrl.u32 %v8092_v27, 16  ;;  %v2929_v2 = vshll.u32 %v8103_v36, 16  ;;  %v2933_v50 = vshrl.u32 %v8103_v36, 16  ;;  %4330 = vmatpush.bf16.msra.mxu3 %v6594_v30 }
 0x186   : > { %v2606_v7 = vadd.f32 %v2569_v55, %v2380_v33  ;;  %v2912_v55 = vor.u32 %v2911_v8, %v8075_v43  ;;  %v3687_v33 = vrot.slane %v3686_v19, 4  ;;  %v2923_v8 = vshll.u32 %v8092_v27, 16 }
 0x187   : > { %v3704_v32 = vshrl.u32 %v6013_v58, 16  ;;  %v2935_v13 = vrot.slane %v2933_v50, 4  ;;  %v3215_v30 = vrot.slane %v8103_v36, 5 }
 0x188   : > { %v2913_v24 = vrot.slane %v2912_v55, 4  ;;  %v8096_v52 = vadd.f32 %v8025_v26, %v2606_v7  ;;  %v2908_v26 = vsel %vm6921_vm2, %v2903_v15, %v8075_v43  ;;  %v2925_v19 = vrot.slane %v2923_v8, 5 }
 0x189   : > { %v1991_v51 = vpop.f32.mrf.mxu2  ;;  %v3038_v21 = vunpack.c.l.b16 %v2908_v26 }
 0x18a   : > { %v2345_v56 = vpop.f32.mrf.mxu3  ;;  %v2027_v4 = vadd.f32 %v1991_v51, %v7689_v0  ;;  %v5946_v0 = vrot.slane %v8030_v41, 9  ;;  %v6578_v41 = vld [vmem:[%s8738_s3 + $0x158] sm:$0xff]  ;;  %v2918_v43 = vsel %vm6921_vm2, %v2913_v24, %v2917_v6  ;;  %v3212_v51 = vsel %vm7107_vm5, %v3210_v47, %v3211_v45 }
 0x18b   : > { %v2574_v23 = vpop.f32.mrf.mxu0  ;;  %4126 = vmatpush.bf16.msra.mxu2 %v6578_v41  ;;  %v3265_v6 = vunpack.c.l.b16 %v3212_v51  ;;  %v8137_v24 = vld [vmem:[%s7586_s25 + $0x38] sm:$0x1]  ;;  %v8157_v51 = vld [vmem:[%s7586_s25 + $0x3c] sm:$0xf] }
 0x18c   : > { %v2381_v53 = vadd.f32 %v2345_v56, %v2027_v4  ;;  %v3209_v40 = vsel %vm7107_vm5, %v5946_v0, %v3208_v12  ;;  %v3692_v56 = vsel %vm6921_vm2, %v3687_v33, %v8080_v48  ;;  %v2922_v12 = vrot.slane %v2920_v25, 4  ;;  %v6602_v47 = vld [vmem:[%s8738_s3 + $0x1d8] sm:$0xff] }
 0x18d   : > { %v8089_v3 = vpop.f32.mrf.mxu1  ;;  %v3264_v15 = vunpack.c.l.b16 %v3209_v40  ;;  %v3706_v48 = vrot.slane %v3704_v32, 4  ;;  %4684 = vmatpush.bf16.msra.mxu0 %v6602_v47  ;;  %v2939_v25 = vshll.u32 %v8137_v24, 16  ;;  %v6554_v40 = vld [vmem:[%s7586_s25 + $0x30] sm:$0xff] }
 0x18e   : > { %v2607_v14 = vadd.f32 %v2571_v62, %v2381_v53  ;;  %3130 = vmatmul.bf16.gmra.mxu2 %v3050_v20  ;;  %3560 = vmatmul.bf16.gmra.mxu0 %v6553_v17  ;;  %v3697_v62 = vrot.slane %v3696_v57, 4  ;;  %v3717_v17 = vshrl.u32 %v6014_v5, 16  ;;  %v8134_v57 = vrot.slane %v2929_v2, 5 }
 0x18f   : > { %3356 = vmatmul.bf16.gmra.mxu3 %v3276_v35  ;;  %v2926_v33 = vor.u32 %v2925_v19, %v2922_v12  ;;  %v3218_v12 = vrot.slane %v8137_v24, 5  ;;  %v6610_v19 = vld [vmem:[%s8738_s3 + $0x218] sm:$0xff] }
 0x190   : > { %3914 = vmatmul.bf16.gmra.mxu1 %v3834_v22  ;;  %v8117_v7 = vadd.f32 %v2774_v31, %v2607_v14  ;;  %v3707_v31 = vshll.u32 %v6013_v58, 16  ;;  %v3702_v55 = vsel %vm6921_vm2, %v3697_v62, %v3701_v54  ;;  %v3039_v22 = vunpack.c.l.b16 %v2918_v43  ;;  %v6015_v58 = vld [vmem:[%s7586_s25 + $0x44] sm:$0x1] }
 0x191   : > { %v1994_v39 = vpop.f32.mrf.mxu2  ;;  %v3822_v14 = vunpack.c.l.b16 %v3692_v56  ;;  %v3823_v45 = vunpack.c.l.b16 %v3702_v55  ;;  %v3719_v41 = vrot.slane %v3717_v17, 4  ;;  %v2936_v54 = vor.u32 %v2935_v13, %v8134_v57  ;;  %v6577_v17 = vld [vmem:[%s8738_s3 + $0x150] sm:$0xff]  ;;  %4910 = vmatpush.bf16.msra.mxu1 %v6610_v19 }
 0x192   : > { %v2348_v11 = vpop.f32.mrf.mxu3  ;;  %v2028_v9 = vadd.f32 %v1994_v39, %v7708_v34  ;;  %v3713_v34 = vshll.u32 %v6014_v5, 16  ;;  %v3709_v0 = vrot.slane %v3707_v31, 5  ;;  %v3051_v39 = vpack.c.b16 %v3039_v22, %v3038_v21  ;;  %v6593_v22 = vld [vmem:[%s8738_s3 + $0x190] sm:$0xff]  ;;  %4127 = vmatpush.bf16.msra.mxu2 %v6577_v17 }
 0x193   : > { %v2576_v20 = vpop.f32.mrf.mxu0  ;;  %v3835_v2 = vpack.c.b16 %v3823_v45, %v3822_v14  ;;  %v3723_v31 = vshll.u32 %v6015_v58, 16  ;;  %v2937_v36 = vrot.slane %v2936_v54, 4  ;;  %v2941_v56 = vrot.slane %v2939_v25, 5  ;;  %4331 = vmatpush.bf16.msra.mxu3 %v6593_v22  ;;  %v6018_v19 = vld [vmem:[%s7586_s25 + $0x50] sm:$0x1] }
 0x194   : > { %v2382_v4 = vadd.f32 %v2348_v11, %v2028_v9  ;;  %v8142_v18 = vrot.slane %v3713_v34, 5  ;;  %v3277_v11 = vpack.c.b16 %v3265_v6, %v3264_v15  ;;  %v3710_v43 = vor.u32 %v3709_v0, %v3706_v48  ;;  %v8165_v34 = vld [vmem:[%s7586_s25 + $0x40] sm:$0xf] }
 0x195   : > { %v2779_v35 = vpop.f32.mrf.mxu1  ;;  %v2927_v9 = vrot.slane %v2926_v33, 4  ;;  %v3217_v21 = vrot.slane %v3215_v30, 4  ;;  %v3725_v13 = vrot.slane %v3723_v31, 5  ;;  %v2953_v14 = vshll.u32 %v8165_v34, 16  ;;  %v6017_v33 = vld [vmem:[%s7586_s25 + $0x4c] sm:$0xf] }
 0x196   : > { %v2608_v53 = vadd.f32 %v2574_v23, %v2382_v4  ;;  %v3720_v32 = vor.u32 %v3719_v41, %v8142_v18  ;;  %v3711_v4 = vrot.slane %v3710_v43, 4  ;;  %v2957_v45 = vshrl.u32 %v8165_v34, 16 }
 0x197   : > { %v2932_v0 = vsel %vm6921_vm2, %v2927_v9, %v8134_v57  ;;  %v3741_v43 = vshrl.u32 %v6017_v33, 16 }
 0x198   : > { %v8145_v23 = vadd.f32 %v8089_v3, %v2608_v53  ;;  %v3721_v15 = vrot.slane %v3720_v32, 4  ;;  %v6016_v53 = vld [vmem:[%s7586_s25 + $0x48] sm:$0xf]  ;;  %v3716_v57 = vsel %vm6921_vm2, %v3711_v4, %v8142_v18  ;;  %v2959_v18 = vrot.slane %v2957_v45, 4 }
 0x199   : > { %v1996_v26 = vpop.f32.mrf.mxu2  ;;  %v3728_v25 = vshrl.u32 %v6016_v53, 16 }
 0x19a   : > { %v2350_v62 = vpop.f32.mrf.mxu3  ;;  %v2029_v8 = vadd.f32 %v1996_v26, %v7730_v46  ;;  %v5947_v46 = vrot.slane %v8092_v27, 9  ;;  %v2944_v27 = vshrl.u32 %v8157_v51, 16  ;;  %v3219_v26 = vsel %vm7107_vm5, %v3217_v21, %v3218_v12 }
 0x19b   : > { %v2579_v3 = vpop.f32.mrf.mxu0  ;;  %v3267_v31 = vunpack.c.l.b16 %v3219_v26  ;;  %v3730_v12 = vrot.slane %v3728_v25, 4  ;;  %v8222_v25 = vld [vmem:[%s7586_s25 + $0x48] sm:$0xf] }
 0x19c   : > { %v2383_v50 = vadd.f32 %v2350_v62, %v2029_v8  ;;  %v3216_v47 = vsel %vm7107_vm5, %v5947_v46, %v3215_v30  ;;  %v2946_v62 = vrot.slane %v2944_v27, 4  ;;  %v3731_v30 = vshll.u32 %v6016_v53, 16  ;;  %v6601_v46 = vld [vmem:[%s8738_s3 + $0x1d0] sm:$0xff] }
 0x19d   : > { %v8153_v5 = vpop.f32.mrf.mxu1  ;;  %v3266_v32 = vunpack.c.l.b16 %v3216_v47  ;;  %v3743_v27 = vrot.slane %v3741_v43, 4  ;;  %4685 = vmatpush.bf16.msra.mxu0 %v6601_v46  ;;  %v6555_v47 = vld [vmem:[%s7586_s25 + $0x3c] sm:$0xff] }
 0x19e   : > { %v2609_v55 = vadd.f32 %v2576_v20, %v2383_v50  ;;  %3135 = vmatmul.bf16.gmra.mxu2 %v3051_v39  ;;  %3565 = vmatmul.bf16.gmra.mxu0 %v6554_v40  ;;  %v2947_v20 = vshll.u32 %v8157_v51, 16  ;;  %v3040_v40 = vunpack.c.l.b16 %v2932_v0  ;;  %v8198_v50 = vrot.slane %v2953_v14, 5 }
 0x19f   : > { %3361 = vmatmul.bf16.gmra.mxu3 %v3277_v11  ;;  %v3737_v11 = vshll.u32 %v6017_v33, 16  ;;  %v3733_v4 = vrot.slane %v3731_v30, 5  ;;  %v3222_v0 = vrot.slane %v8165_v34, 5 }
 0x1a0   : > { %3919 = vmatmul.bf16.gmra.mxu1 %v3835_v2  ;;  %v8176_v6 = vadd.f32 %v2779_v35, %v2609_v55  ;;  %v2942_v35 = vsel %vm6921_vm2, %v2937_v36, %v2941_v56  ;;  %v2949_v54 = vrot.slane %v2947_v20, 5  ;;  %v3824_v36 = vunpack.c.l.b16 %v3716_v57  ;;  %v8201_v56 = vld [vmem:[%s7586_s25 + $0x44] sm:$0x1] }
 0x1a1   : > { %v1999_v24 = vpop.f32.mrf.mxu2  ;;  %v3041_v2 = vunpack.c.l.b16 %v2942_v35  ;;  %v8207_v17 = vrot.slane %v3737_v11, 5  ;;  %v3734_v33 = vor.u32 %v3733_v4, %v3730_v12  ;;  %v3224_v30 = vrot.slane %v3222_v0, 4  ;;  %v6576_v11 = vld [vmem:[%s8738_s3 + $0x148] sm:$0xff] }
 0x1a2   : > { %v2353_v48 = vpop.f32.mrf.mxu3  ;;  %v2030_v41 = vadd.f32 %v1999_v24, %v7749_v63  ;;  %v3726_v63 = vsel %vm6921_vm2, %v3721_v15, %v3725_v13  ;;  %v2950_v55 = vor.u32 %v2949_v54, %v2946_v62  ;;  %v2960_v15 = vor.u32 %v2959_v18, %v8198_v50  ;;  %v6019_v18 = vld [vmem:[%s7586_s25 + $0x54] sm:$0xf]  ;;  %4128 = vmatpush.bf16.msra.mxu2 %v6576_v11  ;;  %v6021_v11 = vld [vmem:[%s7586_s25 + $0x5c] sm:$0x1] }
 0x1a3   : > { %v2581_v8 = vpop.f32.mrf.mxu0  ;;  %v3825_v21 = vunpack.c.l.b16 %v3726_v63  ;;  %v2963_v13 = vshll.u32 %v8201_v56, 16  ;;  %v3052_v24 = vpack.c.b16 %v3041_v2, %v3040_v40  ;;  %v3744_v57 = vor.u32 %v3743_v27, %v8207_v17  ;;  %v8228_v63 = vld [vmem:[%s7586_s25 + $0x4c] sm:$0xf] }
 0x1a4   : > { %v2384_v58 = vadd.f32 %v2353_v48, %v2030_v41  ;;  %v3278_v48 = vpack.c.b16 %v3267_v31, %v3266_v32  ;;  %v2951_v45 = vrot.slane %v2950_v55, 4  ;;  %v2961_v62 = vrot.slane %v2960_v15, 4  ;;  %v6592_v2 = vld [vmem:[%s8738_s3 + $0x188] sm:$0xff] }
 0x1a5   : > { %v8194_v39 = vpop.f32.mrf.mxu1  ;;  %v3836_v14 = vpack.c.b16 %v3825_v21, %v3824_v36  ;;  %v2965_v54 = vrot.slane %v2963_v13, 5  ;;  %v3735_v43 = vrot.slane %v3734_v33, 4  ;;  %v2968_v32 = vshrl.u32 %v8222_v25, 16  ;;  %v6020_v36 = vld [vmem:[%s7586_s25 + $0x58] sm:$0xf]  ;;  %4332 = vmatpush.bf16.msra.mxu3 %v6592_v2 }
 0x1a6   : > { %v2610_v9 = vadd.f32 %v2579_v3, %v2384_v58  ;;  %v6609_v58 = vld [vmem:[%s8738_s3 + $0x210] sm:$0xff]  ;;  %v2971_v31 = vshll.u32 %v8222_v25, 16  ;;  %v2977_v12 = vshll.u32 %v8228_v63, 16  ;;  %v2981_v4 = vshrl.u32 %v8228_v63, 16 }
 0x1a7   : > { %4911 = vmatpush.bf16.msra.mxu1 %v6609_v58  ;;  %v2966_v21 = vsel %vm6921_vm2, %v2961_v62, %v2965_v54  ;;  %v3740_v15 = vsel %vm6921_vm2, %v3735_v43, %v8207_v17  ;;  %v3761_v13 = vshll.u32 %v6020_v36, 16 }
 0x1a8   : > { %v8210_v3 = vadd.f32 %v8153_v5, %v2610_v9  ;;  %v3747_v5 = vshll.u32 %v6018_v19, 16  ;;  %v3745_v9 = vrot.slane %v3744_v57, 4  ;;  %v2983_v57 = vrot.slane %v2981_v4, 4 }
 0x1a9   : > { %v2001_v20 = vpop.f32.mrf.mxu2 }
 0x1aa   : > { %v2355_v22 = vpop.f32.mrf.mxu3  ;;  %v2031_v53 = vadd.f32 %v2001_v20, %v7771_v1  ;;  %v5948_v1 = vrot.slane %v8157_v51, 9  ;;  %v2956_v51 = vsel %vm6921_vm2, %v2951_v45, %v8198_v50  ;;  %v3749_v40 = vrot.slane %v3747_v5, 5  ;;  %v8264_v5 = vld [vmem:[%s7586_s25 + $0x50] sm:$0x1] }
 0x1ab   : > { %v2584_v35 = vpop.f32.mrf.mxu0  ;;  %v3042_v27 = vunpack.c.l.b16 %v2956_v51  ;;  %v3752_v20 = vshrl.u32 %v6019_v18, 16  ;;  %v3043_v45 = vunpack.c.l.b16 %v2966_v21  ;;  %v8272_v51 = vrot.slane %v3761_v13, 5 }
 0x1ac   : > { %v2385_v41 = vadd.f32 %v2355_v22, %v2031_v53  ;;  %v3223_v55 = vsel %vm7107_vm5, %v5948_v1, %v3222_v0  ;;  %v3765_v53 = vshrl.u32 %v6020_v36, 16  ;;  %v3771_v21 = vshll.u32 %v6021_v11, 16 }
 0x1ad   : > { %v8217_v26 = vpop.f32.mrf.mxu1  ;;  %v3268_v33 = vunpack.c.l.b16 %v3223_v55  ;;  %v3754_v54 = vrot.slane %v3752_v20, 4  ;;  %v6556_v55 = vld [vmem:[%s7586_s25 + $0x48] sm:$0xff]  ;;  %v3232_v13 = vrot.slane %v8264_v5, 5 }
 0x1ae   : > { %v2611_v34 = vadd.f32 %v2581_v8, %v2385_v41  ;;  %3140 = vmatmul.bf16.gmra.mxu2 %v3052_v24  ;;  %3570 = vmatmul.bf16.gmra.mxu0 %v6555_v47  ;;  %v3225_v8 = vrot.slane %v8201_v56, 5  ;;  %v2970_v47 = vrot.slane %v2968_v32, 4  ;;  %v8266_v41 = vrot.slane %v2977_v12, 5 }
 0x1af   : > { %3366 = vmatmul.bf16.gmra.mxu3 %v3278_v48 }
 0x1b0   : > { %3924 = vmatmul.bf16.gmra.mxu1 %v3836_v14  ;;  %v8245_v46 = vadd.f32 %v8194_v39, %v2611_v34  ;;  %v3755_v39 = vshll.u32 %v6019_v18, 16  ;;  %v3226_v22 = vsel %vm7107_vm5, %v3224_v30, %v3225_v8  ;;  %v2973_v14 = vrot.slane %v2971_v31, 5  ;;  %v6600_v34 = vld [vmem:[%s8738_s3 + $0x1c8] sm:$0xff] }
 0x1b1   : > { %v2004_v50 = vpop.f32.mrf.mxu2  ;;  %v3269_v62 = vunpack.c.l.b16 %v3226_v22  ;;  %v3826_v30 = vunpack.c.l.b16 %v3740_v15  ;;  %v3767_v8 = vrot.slane %v3765_v53, 4  ;;  %4686 = vmatpush.bf16.msra.mxu0 %v6600_v34  ;;  %v2984_v32 = vor.u32 %v2983_v57, %v8266_v41 }
 0x1b2   : > { %v2358_v56 = vpop.f32.mrf.mxu3  ;;  %v2032_v19 = vadd.f32 %v2004_v50, %v7790_v44  ;;  %v3750_v44 = vsel %vm6921_vm2, %v3745_v9, %v3749_v40  ;;  %v3757_v1 = vrot.slane %v3755_v39, 5  ;;  %v2974_v43 = vor.u32 %v2973_v14, %v2970_v47  ;;  %v6608_v47 = vld [vmem:[%s8738_s3 + $0x208] sm:$0xff]  ;;  %v6575_v14 = vld [vmem:[%s8738_s3 + $0x140] sm:$0xff] }
 0x1b3   : > { %v2586_v48 = vpop.f32.mrf.mxu0  ;;  %v3827_v58 = vunpack.c.l.b16 %v3750_v44  ;;  %v2987_v40 = vshll.u32 %v8264_v5, 16  ;;  %v3053_v9 = vpack.c.b16 %v3043_v45, %v3042_v27  ;;  %v3229_v31 = vrot.slane %v8228_v63, 5  ;;  %v8286_v27 = vld [vmem:[%s7586_s25 + $0x54] sm:$0xf]  ;;  %v8297_v45 = vld [vmem:[%s7586_s25 + $0x58] sm:$0xf]  ;;  %4912 = vmatpush.bf16.msra.mxu1 %v6608_v47  ;;  %4129 = vmatpush.bf16.msra.mxu2 %v6575_v14 }
 0x1b4   : > { %v2386_v24 = vadd.f32 %v2358_v56, %v2032_v19  ;;  %v3279_v50 = vpack.c.b16 %v3269_v62, %v3268_v33  ;;  %v3758_v56 = vor.u32 %v3757_v1, %v3754_v54  ;;  %v3768_v4 = vor.u32 %v3767_v8, %v8272_v51  ;;  %v6591_v5 = vld [vmem:[%s8738_s3 + $0x180] sm:$0xff] }
 0x1b5   : > { %v8259_v0 = vpop.f32.mrf.mxu1  ;;  %v3837_v12 = vpack.c.b16 %v3827_v58, %v3826_v30  ;;  %v2975_v39 = vrot.slane %v2974_v43, 4  ;;  %v2989_v22 = vrot.slane %v2987_v40, 5  ;;  %v2985_v15 = vrot.slane %v2984_v32, 4  ;;  %4333 = vmatpush.bf16.msra.mxu3 %v6591_v5  ;;  %v6023_v58 = vld [vmem:[%s7586_s25 + $0x64] sm:$0xf] }
 0x1b6   : > { %v2612_v17 = vadd.f32 %v2584_v35, %v2386_v24  ;;  %v5949_v63 = vrot.slane %v8222_v25, 9  ;;  %v3759_v24 = vrot.slane %v3758_v56, 4  ;;  %v3773_v44 = vrot.slane %v3771_v21, 5 }
 0x1b7   : > { %v3769_v25 = vrot.slane %v3768_v4, 4  ;;  %v2995_v33 = vshll.u32 %v8286_v27, 16  ;;  %v2980_v57 = vsel %vm6921_vm2, %v2975_v39, %v8266_v41  ;;  %v2990_v1 = vsel %vm6921_vm2, %v2985_v15, %v2989_v22  ;;  %v6599_v39 = vld [vmem:[%s8738_s3 + $0x1c0] sm:$0xff]  ;;  %v2645_v15 = vld [vmem:[%s7586_s25 + $0x5c] sm:$0x1] }
 0x1b8   : > { %v8276_v35 = vadd.f32 %v8217_v26, %v2612_v17  ;;  %v6022_v17 = vld [vmem:[%s7586_s25 + $0x60] sm:$0xf]  ;;  %v3230_v34 = vsel %vm7107_vm5, %v5949_v63, %v3229_v31  ;;  %v3764_v8 = vsel %vm6921_vm2, %v3759_v24, %v8272_v51  ;;  %v3001_v43 = vshll.u32 %v8297_v45, 16  ;;  %4687 = vmatpush.bf16.msra.mxu0 %v6599_v39 }
 0x1b9   : > { %v2006_v2 = vpop.f32.mrf.mxu2  ;;  %v3005_v40 = vshrl.u32 %v8297_v45, 16  ;;  %v3776_v32 = vshrl.u32 %v6022_v17, 16  ;;  %v3789_v56 = vshrl.u32 %v6023_v58, 16  ;;  %v3044_v21 = vunpack.c.l.b16 %v2980_v57 }
 0x1ba   : > { %v2360_v18 = vpop.f32.mrf.mxu3  ;;  %v2033_v36 = vadd.f32 %v2006_v2, %v7814_v49  ;;  %v3231_v49 = vrot.slane %v3229_v31, 4  ;;  %v3774_v2 = vsel %vm6921_vm2, %v3769_v25, %v3773_v44  ;;  %v3045_v51 = vunpack.c.l.b16 %v2990_v1  ;;  %v6024_v25 = vld [vmem:[%s7586_s25 + $0x68] sm:$0x1] }
 0x1bb   : > { %v2589_v26 = vpop.f32.mrf.mxu0  ;;  %v3829_v22 = vunpack.c.l.b16 %v3774_v2  ;;  %v3791_v47 = vrot.slane %v3789_v56, 4  ;;  %v8343_v2 = vld [vmem:[%s7586_s25 + $0x18] sm:$0xf]  ;;  %v3239_v56 = vrot.slane %v2645_v15, 5 }
 0x1bc   : > { %v2387_v19 = vadd.f32 %v2360_v18, %v2033_v36  ;;  %v3233_v30 = vsel %vm7107_vm5, %v3231_v49, %v3232_v13  ;;  %v3003_v49 = vrot.slane %v3001_v43, 5  ;;  %v3007_v13 = vrot.slane %v3005_v40, 4 }
 0x1bd   : > { %v8283_v20 = vpop.f32.mrf.mxu1  ;;  %v3271_v4 = vunpack.c.l.b16 %v3233_v30  ;;  %v3054_v5 = vpack.c.b16 %v3045_v51, %v3044_v21  ;;  %v3236_v30 = vrot.slane %v8297_v45, 5  ;;  %v3795_v40 = vshll.u32 %v6024_v25, 16  ;;  %v8350_v45 = vld [vmem:[%s7586_s25 + $0x1c] sm:$0xf] }
 0x1be   : > { %v2613_v53 = vadd.f32 %v2586_v48, %v2387_v19  ;;  %3145 = vmatmul.bf16.gmra.mxu2 %v3053_v9  ;;  %3575 = vmatmul.bf16.gmra.mxu0 %v6556_v55  ;;  %v2992_v48 = vshrl.u32 %v8286_v27, 16  ;;  %v2997_v9 = vrot.slane %v2995_v33, 5  ;;  %v3828_v19 = vunpack.c.l.b16 %v3764_v8 }
 0x1bf   : > { %3371 = vmatmul.bf16.gmra.mxu3 %v3279_v50  ;;  %v3785_v50 = vshll.u32 %v6023_v58, 16  ;;  %v3797_v51 = vrot.slane %v3795_v40, 5  ;;  %v4405_v39 = vshrl.u32 %v8350_v45, 16 }
 0x1c0   : > { %3929 = vmatmul.bf16.gmra.mxu1 %v3837_v12  ;;  %v8316_v11 = vadd.f32 %v8259_v0, %v2613_v53  ;;  %v2994_v18 = vrot.slane %v2992_v48, 4  ;;  %v3270_v12 = vunpack.c.l.b16 %v3230_v34  ;;  %v3778_v53 = vrot.slane %v3776_v32, 4  ;;  %v6607_v32 = vld [vmem:[%s8738_s3 + $0x200] sm:$0xff] }
 0x1c1   : > { %v2009_v62 = vpop.f32.mrf.mxu2  ;;  %v8332_v44 = vrot.slane %v3785_v50, 5  ;;  %v3008_v34 = vor.u32 %v3007_v13, %v3003_v49  ;;  %v3238_v50 = vrot.slane %v3236_v30, 4  ;;  %4913 = vmatpush.bf16.msra.mxu1 %v6607_v32 }
 0x1c2   : > { %v2363_v54 = vpop.f32.mrf.mxu3  ;;  %v2034_v41 = vadd.f32 %v2009_v62, %v7849_v38  ;;  %v3779_v38 = vshll.u32 %v6022_v17, 16  ;;  %v2998_v63 = vor.u32 %v2997_v9, %v2994_v18  ;;  %v3280_v57 = vpack.c.b16 %v3271_v4, %v3270_v12  ;;  %v6557_v62 = vld [vmem:[%s7586_s25 + $0x54] sm:$0xff] }
 0x1c3   : > { %v2591_v0 = vpop.f32.mrf.mxu0  ;;  %v3011_v17 = vshll.u32 %v2645_v15, 16  ;;  %v5950_v9 = vrot.slane %v8286_v27, 9  ;;  %v4392_v27 = vshrl.u32 %v8343_v2, 16  ;;  %v4395_v4 = vshll.u32 %v8343_v2, 16 }
 0x1c4   : > { %v2388_v31 = vadd.f32 %v2363_v54, %v2034_v41  ;;  %v3781_v24 = vrot.slane %v3779_v38, 5  ;;  %v3838_v54 = vpack.c.b16 %v3829_v22, %v3828_v19  ;;  %v2999_v1 = vrot.slane %v2998_v63, 4 }
 0x1c5   : > { %v8326_v36 = vpop.f32.mrf.mxu1  ;;  %v3013_v18 = vrot.slane %v3011_v17, 5  ;;  %v3009_v38 = vrot.slane %v3008_v34, 4  ;;  %v4401_v19 = vshll.u32 %v8350_v45, 16  ;;  %v3240_v13 = vsel %vm7107_vm5, %v3238_v50, %v3239_v56  ;;  %v6558_v50 = vld [vmem:[%s7586_s25 + $0x60] sm:$0xff] }
 0x1c6   : > { %v2614_v55 = vadd.f32 %v2589_v26, %v2388_v31  ;;  %v3782_v43 = vor.u32 %v3781_v24, %v3778_v53  ;;  %v3004_v31 = vsel %vm6921_vm2, %v2999_v1, %v3003_v49  ;;  %v3237_v49 = vsel %vm7107_vm5, %v5950_v9, %v3236_v30  ;;  %v6213_v1 = vld [vmem:[%s7586_s25 + $0x20] sm:$0x1] }
 0x1c7   : > { %v3014_v15 = vsel %vm6921_vm2, %v3009_v38, %v3013_v18  ;;  %v4397_v25 = vrot.slane %v4395_v4, 5  ;;  %v4411_v18 = vshll.u32 %v6213_v1, 16  ;;  %v4755_v38 = vrot.slane %v8350_v45, 5  ;;  %v6730_v4 = vld [vmem:[%s7586_s25 + $0x14] sm:$0x1] }
 0x1c8   : > { %v8336_v48 = vadd.f32 %v8283_v20, %v2614_v55  ;;  %v3792_v20 = vor.u32 %v3791_v47, %v8332_v44  ;;  %v3047_v17 = vunpack.c.l.b16 %v3014_v15  ;;  %v6363_v45 = vrot.slane %v8343_v2, 9 }
 0x1c9   : > { %v2011_v26 = vpop.f32.mrf.mxu2  ;;  %v4757_v15 = vrot.slane %v4755_v38, 4 }
 0x1ca   : > { %v2365_v14 = vpop.f32.mrf.mxu3  ;;  %v2035_v33 = vadd.f32 %v2011_v26, %v7866_v37  ;;  %v3793_v21 = vrot.slane %v3792_v20, 4  ;;  %v3046_v26 = vunpack.c.l.b16 %v3004_v31 }
 0x1cb   : > { %v2594_v41 = vpop.f32.mrf.mxu0 }
 0x1cc   : > { %v2389_v58 = vadd.f32 %v2365_v14, %v2035_v33  ;;  %v4394_v14 = vrot.slane %v4392_v27, 4  ;;  %v8373_v33 = vrot.slane %v4401_v19, 5  ;;  %v3055_v32 = vpack.c.b16 %v3047_v17, %v3046_v26  ;;  %v6729_v27 = vld [vmem:[%s7586_s25 + $0xc] sm:$0xf] }
 0x1cd   : > { %v2797_v8 = vpop.f32.mrf.mxu1  ;;  %v3974_v19 = vrot.slane %v6730_v4, 5  ;;  %v6731_v4 = vld [vmem:[%s7586_s25 + $0x1c] sm:$0xf] }
 0x1ce   : > { %v2615_v37 = vadd.f32 %v2591_v0, %v2389_v58  ;;  %3150 = vmatmul.bf16.gmra.mxu2 %v3054_v5  ;;  %3580 = vmatmul.bf16.gmra.mxu0 %v6557_v62  ;;  %v3783_v0 = vrot.slane %v3782_v43, 4  ;;  %v4407_v5 = vrot.slane %v4405_v39, 4  ;;  %v3272_v62 = vunpack.c.l.b16 %v3237_v49  ;;  %v6728_v58 = vld [vmem:[%s7586_s25 + $0x10] sm:$0xf] }
 0x1cf   : > { %3376 = vmatmul.bf16.gmra.mxu3 %v3280_v57  ;;  %v3971_v43 = vrot.slane %v6728_v58, 5  ;;  %v4398_v40 = vor.u32 %v4397_v25, %v4394_v14  ;;  %v4758_v49 = vrot.slane %v6213_v1, 5 }
 0x1d0   : > { %3934 = vmatmul.bf16.gmra.mxu1 %v3838_v54  ;;  %v8359_v22 = vadd.f32 %v8326_v36, %v2615_v37  ;;  %v3788_v36 = vsel %vm6921_vm2, %v3783_v0, %v8332_v44  ;;  %v3273_v54 = vunpack.c.l.b16 %v3240_v13  ;;  %v4408_v37 = vor.u32 %v4407_v5, %v8373_v33  ;;  %v8387_v13 = vld [vmem:[%s7586_s25 + $0x24] sm:$0xf] }
 0x1d1   : > { %v2014_v55 = vpop.f32.mrf.mxu2  ;;  %v3830_v34 = vunpack.c.l.b16 %v3788_v36  ;;  %v4759_v17 = vsel %vm7107_vm5, %v4757_v15, %v4758_v49 }
 0x1d2   : > { %v2368_v12 = vpop.f32.mrf.mxu3  ;;  %v2036_v63 = vadd.f32 %v2014_v55, %v7904_v28  ;;  %v3798_v28 = vsel %vm6921_vm2, %v3793_v21, %v3797_v51  ;;  %v3281_v31 = vpack.c.b16 %v3273_v54, %v3272_v62  ;;  %v6153_v55 = vrot.slane %v6729_v27, 9 }
 0x1d3   : > { %v2596_v24 = vpop.f32.mrf.mxu0  ;;  %v3831_v30 = vunpack.c.l.b16 %v3798_v28  ;;  %v4409_v39 = vrot.slane %v4408_v37, 4  ;;  %v4416_v62 = vshrl.u32 %v8387_v13, 16  ;;  %v4419_v54 = vshll.u32 %v8387_v13, 16 }
 0x1d4   : > { %v2390_v53 = vadd.f32 %v2368_v12, %v2036_v63  ;;  %v3973_v12 = vrot.slane %v3971_v43, 4  ;;  %v4413_v63 = vrot.slane %v4411_v18, 5  ;;  %v3972_v28 = vsel %vm7107_vm5, %v6153_v55, %v3971_v43 }
 0x1d5   : > { %v2799_v47 = vpop.f32.mrf.mxu1  ;;  %v3839_v56 = vpack.c.b16 %v3831_v30, %v3830_v34  ;;  %v4042_v30 = vunpack.c.l.b16 %v3972_v28  ;;  %v4827_v37 = vunpack.c.l.b16 %v4759_v17  ;;  %v4418_v18 = vrot.slane %v4416_v62, 4 }
 0x1d6   : > { %v2616_v57 = vadd.f32 %v2594_v41, %v2390_v53  ;;  %v8390_v53 = vld [vmem:[%s7586_s25 + $0x28] sm:$0xf]  ;;  %v4414_v5 = vsel %vm6921_vm2, %v4409_v39, %v4413_v63 }
 0x1d7   : > { %v4425_v1 = vshll.u32 %v8390_v53, 16 }
 0x1d8   : > { %v8378_v9 = vadd.f32 %v2797_v8, %v2616_v57  ;;  %v4399_v8 = vrot.slane %v4398_v40, 4  ;;  %v4756_v57 = vsel %vm7107_vm5, %v6363_v45, %v4755_v38  ;;  %v6216_v38 = vld [vmem:[%s7586_s25 + $0x2c] sm:$0x1] }
 0x1d9   : > { %v2016_v44 = vpop.f32.mrf.mxu2  ;;  %v4826_v40 = vunpack.c.l.b16 %v4756_v57 }
 0x1da   : > { %v2370_v20 = vpop.f32.mrf.mxu3  ;;  %v2037_v41 = vadd.f32 %v2016_v44, %v7922_v59  ;;  %v4404_v2 = vsel %vm6921_vm2, %v4399_v8, %v8373_v33 }
 0x1db   : > { %v2599_v21 = vpop.f32.mrf.mxu0  ;;  %v4600_v43 = vunpack.c.l.b16 %v4404_v2  ;;  %v4842_v8 = vpack.c.b16 %v4827_v37, %v4826_v40  ;;  %v8427_v2 = vld [vmem:[%s7586_s25 + $0x34] sm:$0xf] }
 0x1dc   : > { %v2391_v0 = vadd.f32 %v2370_v20, %v2037_v41  ;;  %v4601_v20 = vunpack.c.l.b16 %v4414_v5  ;;  %v4421_v41 = vrot.slane %v4419_v54, 5  ;;  %v6364_v54 = vrot.slane %v8387_v13, 9 }
 0x1dd   : > { %v2802_v51 = vpop.f32.mrf.mxu1 }
 0x1de   : > { %v2617_v59 = vadd.f32 %v2596_v24, %v2391_v0  ;;  %3155 = vmatmul.bf16.gmra.mxu2 %v3055_v32  ;;  %3585 = vmatmul.bf16.gmra.mxu0 %v6558_v50  ;;  %v3975_v24 = vsel %vm7107_vm5, %v3973_v12, %v3974_v19  ;;  %v8412_v32 = vrot.slane %v4425_v1, 5  ;;  %v6583_v12 = vld [vmem:[%s7586_s25 + $0x18] sm:$0xff]  ;;  %v3978_v19 = vrot.slane %v6731_v4, 5 }
 0x1df   : > { %3381 = vmatmul.bf16.gmra.mxu3 %v3281_v31  ;;  %v4043_v58 = vunpack.c.l.b16 %v3975_v24  ;;  %v4422_v39 = vor.u32 %v4421_v41, %v4418_v18  ;;  %v4765_v1 = vrot.slane %v6216_v38, 5  ;;  %v6219_v4 = vld [vmem:[%s7586_s25 + $0x38] sm:$0x1] }
 0x1e0   : > { %3939 = vmatmul.bf16.gmra.mxu1 %v3839_v56  ;;  %v8399_v14 = vadd.f32 %v2799_v47, %v2617_v59  ;;  %v4429_v47 = vshrl.u32 %v8390_v53, 16  ;;  %v4435_v59 = vshll.u32 %v6216_v38, 16  ;;  %v3980_v24 = vrot.slane %v3978_v19, 4 }
 0x1e1   : > { %v2019_v26 = vpop.f32.mrf.mxu2  ;;  %v4058_v55 = vpack.c.b16 %v4043_v58, %v4042_v30  ;;  %v4423_v57 = vrot.slane %v4422_v39, 4  ;;  %v4449_v58 = vshll.u32 %v8427_v2, 16 }
 0x1e2   : > { %v2373_v36 = vpop.f32.mrf.mxu3  ;;  %v2038_v25 = vadd.f32 %v2019_v26, %v7968_v29  ;;  %v4431_v31 = vrot.slane %v4429_v47, 4  ;;  %v8423_v26 = vld [vmem:[%s7586_s25 + $0x30] sm:$0xf]  ;;  %v4437_v62 = vrot.slane %v4435_v59, 5  ;;  %v6734_v59 = vld [vmem:[%s7586_s25 + $0x28] sm:$0xf] }
 0x1e3   : > { %v2601_v29 = vpop.f32.mrf.mxu0  ;;  %v4440_v47 = vshrl.u32 %v8423_v26, 16  ;;  %v4443_v30 = vshll.u32 %v8423_v26, 16  ;;  %v4428_v37 = vsel %vm6921_vm2, %v4423_v57, %v8412_v32  ;;  %v6584_v57 = vld [vmem:[%s7586_s25 + $0x24] sm:$0xff] }
 0x1e4   : > { %v2392_v33 = vadd.f32 %v2373_v36, %v2038_v25  ;;  %v4432_v63 = vor.u32 %v4431_v31, %v8412_v32  ;;  %v6732_v36 = vld [vmem:[%s7586_s25 + $0x18] sm:$0xf]  ;;  %v6733_v25 = vld [vmem:[%s7586_s25 + $0x20] sm:$0x1] }
 0x1e5   : > { %v2804_v34 = vpop.f32.mrf.mxu1  ;;  %v6154_v28 = vrot.slane %v6732_v36, 9  ;;  %v3981_v5 = vrot.slane %v6733_v25, 5 }
 0x1e6   : > { %v2618_v44 = vadd.f32 %v2599_v21, %v2392_v33  ;;  %v4616_v21 = vpack.c.b16 %v4601_v20, %v4600_v43  ;;  %v4433_v17 = vrot.slane %v4432_v63, 4  ;;  %v4453_v43 = vshrl.u32 %v8427_v2, 16 }
 0x1e7   : > { %v3979_v40 = vsel %vm7107_vm5, %v6154_v28, %v3978_v19  ;;  %v3982_v13 = vsel %vm7107_vm5, %v3980_v24, %v3981_v5  ;;  %v4602_v19 = vunpack.c.l.b16 %v4428_v37  ;;  %v4459_v24 = vshll.u32 %v6219_v4, 16 }
 0x1e8   : > { %v8415_v0 = vadd.f32 %v2802_v51, %v2618_v44  ;;  %v4762_v51 = vrot.slane %v8390_v53, 5  ;;  %v4044_v32 = vunpack.c.l.b16 %v3979_v40  ;;  %v4772_v37 = vrot.slane %v6219_v4, 5 }
 0x1e9   : > { %v2021_v50 = vpop.f32.mrf.mxu2  ;;  %v4461_v40 = vrot.slane %v4459_v24, 5 }
 0x1ea   : > { %v2375_v56 = vpop.f32.mrf.mxu3  ;;  %v2039_v27 = vadd.f32 %v2021_v50, %v7990_v60  ;;  %v4764_v53 = vrot.slane %v4762_v51, 4  ;;  %v4442_v50 = vrot.slane %v4440_v47, 4 }
 0x1eb   : > { %v3551_v15 = vpop.f32.mrf.mxu0 }
 0x1ec   : > { %v2393_v45 = vadd.f32 %v2375_v56, %v2039_v27  ;;  %v4766_v38 = vsel %vm7107_vm5, %v4764_v53, %v4765_v1  ;;  %v4445_v56 = vrot.slane %v4443_v30, 5  ;;  %v8451_v27 = vrot.slane %v4449_v58, 5  ;;  %v6736_v58 = vld [vmem:[%s7586_s25 + $0x2c] sm:$0x1] }
 0x1ed   : > { %v3905_v49 = vpop.f32.mrf.mxu1  ;;  %v4829_v63 = vunpack.c.l.b16 %v4766_v38 }
 0x1ee   : > { %v2619_v60 = vadd.f32 %v2601_v29, %v2393_v45  ;;  %4130 = vmatmul.bf16.vlgmr.msra.gmra.mxu2 %v4058_v55  ;;  %4688 = vmatmul.bf16.vlgmr.msra.gmra.mxu0 %v4616_v21  ;;  %v4455_v55 = vrot.slane %v4453_v43, 4  ;;  %v4045_v21 = vunpack.c.l.b16 %v3982_v13  ;;  %v3985_v45 = vrot.slane %v6734_v59, 5 }
 0x1ef   : > { %4334 = vmatmul.bf16.vlgmr.msra.gmra.mxu3 %v6583_v12  ;;  %v4446_v36 = vor.u32 %v4445_v56, %v4442_v50  ;;  %v3988_v43 = vrot.slane %v6736_v58, 5  ;;  %v6737_v58 = vld [vmem:[%s7586_s25 + $0x34] sm:$0xf] }
 0x1f0   : > { %4914 = vmatmul.bf16.vlgmr.msra.gmra.mxu1 %v4842_v8  ;;  %v8435_v44 = vadd.f32 %v2804_v34, %v2619_v60  ;;  %v4438_v34 = vsel %vm6921_vm2, %v4433_v17, %v4437_v62  ;;  %v4456_v28 = vor.u32 %v4455_v55, %v8451_v27  ;;  %v4059_v5 = vpack.c.b16 %v4045_v21, %v4044_v32 }
 0x1f1   : > { %v3121_v33 = vpop.f32.mrf.mxu2  ;;  %v4603_v8 = vunpack.c.l.b16 %v4438_v34  ;;  %v4769_v17 = vrot.slane %v8427_v2, 5  ;;  %v3987_v30 = vrot.slane %v3985_v45, 4  ;;  %v6365_v2 = vrot.slane %v8423_v26, 9  ;;  %v8468_v34 = vld [vmem:[%s7586_s25 + $0x40] sm:$0xf] }
 0x1f2   : > { %v3347_v29 = vpop.f32.mrf.mxu3  ;;  %v3161_v20 = vadd.f32 %v3121_v33, %v8034_v61  ;;  %v4763_v61 = vsel %vm7107_vm5, %v6364_v54, %v4762_v51  ;;  %v6735_v33 = vld [vmem:[%s7586_s25 + $0x24] sm:$0xf] }
 0x1f3   : > { %v3553_v41 = vpop.f32.mrf.mxu0  ;;  %v4828_v39 = vunpack.c.l.b16 %v4763_v61  ;;  %v4617_v62 = vpack.c.b16 %v4603_v8, %v4602_v19  ;;  %v4771_v13 = vrot.slane %v4769_v17, 4  ;;  %v4770_v32 = vsel %vm7107_vm5, %v6365_v2, %v4769_v17  ;;  %v6222_v17 = vld [vmem:[%s7586_s25 + $0x44] sm:$0x1] }
 0x1f4   : > { %v3387_v18 = vadd.f32 %v3347_v29, %v3161_v20  ;;  %v6155_v29 = vrot.slane %v6735_v33, 9  ;;  %v4457_v20 = vrot.slane %v4456_v28, 4  ;;  %v4473_v8 = vshll.u32 %v8468_v34, 16 }
 0x1f5   : > { %v3907_v31 = vpop.f32.mrf.mxu1  ;;  %v4843_v54 = vpack.c.b16 %v4829_v63, %v4828_v39  ;;  %v4773_v21 = vsel %vm7107_vm5, %v4771_v13, %v4772_v37 }
 0x1f6   : > { %v3591_v12 = vadd.f32 %v3551_v15, %v3387_v18  ;;  %v8465_v18 = vld [vmem:[%s7586_s25 + $0x3c] sm:$0xf]  ;;  %v3986_v50 = vsel %vm7107_vm5, %v6155_v29, %v3985_v45  ;;  %v4831_v28 = vunpack.c.l.b16 %v4773_v21 }
 0x1f7   : > { %v4464_v4 = vshrl.u32 %v8465_v18, 16  ;;  %v4467_v19 = vshll.u32 %v8465_v18, 16  ;;  %v4046_v63 = vunpack.c.l.b16 %v3986_v50 }
 0x1f8   : > { %v8456_v25 = vadd.f32 %v3905_v49, %v3591_v12  ;;  %v4447_v49 = vrot.slane %v4446_v36, 4  ;;  %v4462_v12 = vsel %vm6921_vm2, %v4457_v20, %v4461_v40  ;;  %v4830_v36 = vunpack.c.l.b16 %v4770_v32 }
 0x1f9   : > { %v3123_v51 = vpop.f32.mrf.mxu2  ;;  %v4466_v24 = vrot.slane %v4464_v4, 4 }
 0x1fa   : > { %v3349_v60 = vpop.f32.mrf.mxu3  ;;  %v3162_v15 = vadd.f32 %v3123_v51, %v8058_v10  ;;  %v4452_v26 = vsel %vm6921_vm2, %v4447_v49, %v8451_v27  ;;  %v4844_v49 = vpack.c.b16 %v4831_v28, %v4830_v36 }
 0x1fb   : > { %v3556_v1 = vpop.f32.mrf.mxu0  ;;  %v4604_v45 = vunpack.c.l.b16 %v4452_v26  ;;  %v8505_v26 = vld [vmem:[%s7586_s25 + $0x4c] sm:$0xf] }
 0x1fc   : > { %v3388_v53 = vadd.f32 %v3349_v60, %v3162_v15  ;;  %v4605_v60 = vunpack.c.l.b16 %v4462_v12  ;;  %v4469_v15 = vrot.slane %v4467_v19, 5  ;;  %v6366_v19 = vrot.slane %v8465_v18, 9 }
 0x1fd   : > { %v3910_v47 = vpop.f32.mrf.mxu1 }
 0x1fe   : > { %v3592_v10 = vadd.f32 %v3553_v41, %v3388_v53  ;;  %4135 = vmatmul.bf16.gmra.mxu2 %v4059_v5  ;;  %4693 = vmatmul.bf16.gmra.mxu0 %v4617_v62  ;;  %v3989_v41 = vsel %vm7107_vm5, %v3987_v30, %v3988_v43  ;;  %v8490_v5 = vrot.slane %v4473_v8, 5  ;;  %v6585_v30 = vld [vmem:[%s7586_s25 + $0x30] sm:$0xff]  ;;  %v3992_v43 = vrot.slane %v6737_v58, 5 }
 0x1ff   : > { %4339 = vmatmul.bf16.gmra.mxu3 %v6584_v57  ;;  %v4047_v59 = vunpack.c.l.b16 %v3989_v41  ;;  %v4470_v20 = vor.u32 %v4469_v15, %v4466_v24  ;;  %v4779_v8 = vrot.slane %v6222_v17, 5  ;;  %v6225_v58 = vld [vmem:[%s7586_s25 + $0x50] sm:$0x1] }
 0x200   : > { %4919 = vmatmul.bf16.gmra.mxu1 %v4843_v54  ;;  %v8477_v56 = vadd.f32 %v3907_v31, %v3592_v10  ;;  %v4477_v31 = vshrl.u32 %v8468_v34, 16  ;;  %v4483_v10 = vshll.u32 %v6222_v17, 16  ;;  %v3994_v41 = vrot.slane %v3992_v43, 4 }
 0x201   : > { %v3126_v61 = vpop.f32.mrf.mxu2  ;;  %v4060_v29 = vpack.c.b16 %v4047_v59, %v4046_v63  ;;  %v4471_v32 = vrot.slane %v4470_v20, 4  ;;  %v4497_v59 = vshll.u32 %v8505_v26, 16 }
 0x202   : > { %v3352_v38 = vpop.f32.mrf.mxu3  ;;  %v3163_v55 = vadd.f32 %v3126_v61, %v8096_v52  ;;  %v4479_v57 = vrot.slane %v4477_v31, 4  ;;  %v8501_v61 = vld [vmem:[%s7586_s25 + $0x48] sm:$0xf]  ;;  %v4485_v4 = vrot.slane %v4483_v10, 5  ;;  %v6740_v10 = vld [vmem:[%s7586_s25 + $0x40] sm:$0xf] }
 0x203   : > { %v3558_v52 = vpop.f32.mrf.mxu0  ;;  %v4488_v31 = vshrl.u32 %v8501_v61, 16  ;;  %v4491_v63 = vshll.u32 %v8501_v61, 16  ;;  %v4476_v28 = vsel %vm6921_vm2, %v4471_v32, %v8490_v5  ;;  %v6586_v32 = vld [vmem:[%s7586_s25 + $0x3c] sm:$0xff] }
 0x204   : > { %v3389_v27 = vadd.f32 %v3352_v38, %v3163_v55  ;;  %v4480_v40 = vor.u32 %v4479_v57, %v8490_v5  ;;  %v6738_v38 = vld [vmem:[%s7586_s25 + $0x30] sm:$0xf]  ;;  %v6739_v55 = vld [vmem:[%s7586_s25 + $0x38] sm:$0x1] }
 0x205   : > { %v3912_v39 = vpop.f32.mrf.mxu1  ;;  %v6156_v50 = vrot.slane %v6738_v38, 9  ;;  %v3995_v12 = vrot.slane %v6739_v55, 5 }
 0x206   : > { %v3593_v51 = vadd.f32 %v3556_v1, %v3389_v27  ;;  %v4618_v1 = vpack.c.b16 %v4605_v60, %v4604_v45  ;;  %v4481_v21 = vrot.slane %v4480_v40, 4  ;;  %v4501_v45 = vshrl.u32 %v8505_v26, 16 }
 0x207   : > { %v3993_v36 = vsel %vm7107_vm5, %v6156_v50, %v3992_v43  ;;  %v3996_v18 = vsel %vm7107_vm5, %v3994_v41, %v3995_v12  ;;  %v4606_v43 = vunpack.c.l.b16 %v4476_v28  ;;  %v4507_v41 = vshll.u32 %v6225_v58, 16 }
 0x208   : > { %v8493_v53 = vadd.f32 %v3910_v47, %v3593_v51  ;;  %v4776_v47 = vrot.slane %v8468_v34, 5  ;;  %v4048_v5 = vunpack.c.l.b16 %v3993_v36  ;;  %v4786_v28 = vrot.slane %v6225_v58, 5 }
 0x209   : > { %v3128_v62 = vpop.f32.mrf.mxu2  ;;  %v4509_v36 = vrot.slane %v4507_v41, 5 }
 0x20a   : > { %v3354_v54 = vpop.f32.mrf.mxu3  ;;  %v3164_v33 = vadd.f32 %v3128_v62, %v8117_v7  ;;  %v4778_v34 = vrot.slane %v4776_v47, 4  ;;  %v4490_v62 = vrot.slane %v4488_v31, 4 }
 0x20b   : > { %v3561_v13 = vpop.f32.mrf.mxu0 }
 0x20c   : > { %v3390_v2 = vadd.f32 %v3354_v54, %v3164_v33  ;;  %v4780_v17 = vsel %vm7107_vm5, %v4778_v34, %v4779_v8  ;;  %v4493_v54 = vrot.slane %v4491_v63, 5  ;;  %v8529_v33 = vrot.slane %v4497_v59, 5  ;;  %v6742_v59 = vld [vmem:[%s7586_s25 + $0x44] sm:$0x1] }
 0x20d   : > { %v3915_v37 = vpop.f32.mrf.mxu1  ;;  %v4833_v40 = vunpack.c.l.b16 %v4780_v17 }
 0x20e   : > { %v3594_v7 = vadd.f32 %v3558_v52, %v3390_v2  ;;  %4140 = vmatmul.bf16.gmra.mxu2 %v4060_v29  ;;  %4698 = vmatmul.bf16.gmra.mxu0 %v4618_v1  ;;  %v4503_v29 = vrot.slane %v4501_v45, 4  ;;  %v4049_v1 = vunpack.c.l.b16 %v3996_v18  ;;  %v3999_v2 = vrot.slane %v6740_v10, 5 }
 0x20f   : > { %4344 = vmatmul.bf16.gmra.mxu3 %v6585_v30  ;;  %v4494_v38 = vor.u32 %v4493_v54, %v4490_v62  ;;  %v4002_v45 = vrot.slane %v6742_v59, 5  ;;  %v6743_v59 = vld [vmem:[%s7586_s25 + $0x4c] sm:$0xf] }
 0x210   : > { %4924 = vmatmul.bf16.gmra.mxu1 %v4844_v49  ;;  %v8513_v51 = vadd.f32 %v3912_v39, %v3594_v7  ;;  %v4486_v39 = vsel %vm6921_vm2, %v4481_v21, %v4485_v4  ;;  %v4504_v50 = vor.u32 %v4503_v29, %v8529_v33  ;;  %v4061_v12 = vpack.c.b16 %v4049_v1, %v4048_v5 }
 0x211   : > { %v3131_v27 = vpop.f32.mrf.mxu2  ;;  %v4607_v49 = vunpack.c.l.b16 %v4486_v39  ;;  %v4783_v21 = vrot.slane %v8505_v26, 5  ;;  %v4001_v63 = vrot.slane %v3999_v2, 4  ;;  %v6367_v26 = vrot.slane %v8501_v61, 9  ;;  %v8546_v39 = vld [vmem:[%s7586_s25 + $0x58] sm:$0xf] }
 0x212   : > { %v3357_v52 = vpop.f32.mrf.mxu3  ;;  %v3165_v60 = vadd.f32 %v3131_v27, %v8145_v23  ;;  %v4777_v23 = vsel %vm7107_vm5, %v6366_v19, %v4776_v47  ;;  %v6741_v27 = vld [vmem:[%s7586_s25 + $0x3c] sm:$0xf] }
 0x213   : > { %v3563_v15 = vpop.f32.mrf.mxu0  ;;  %v4832_v20 = vunpack.c.l.b16 %v4777_v23  ;;  %v4619_v4 = vpack.c.b16 %v4607_v49, %v4606_v43  ;;  %v4785_v18 = vrot.slane %v4783_v21, 4  ;;  %v4784_v5 = vsel %vm7107_vm5, %v6367_v26, %v4783_v21  ;;  %v6228_v21 = vld [vmem:[%s7586_s25 + $0x5c] sm:$0x1] }
 0x214   : > { %v3391_v24 = vadd.f32 %v3357_v52, %v3165_v60  ;;  %v6157_v52 = vrot.slane %v6741_v27, 9  ;;  %v4505_v60 = vrot.slane %v4504_v50, 4  ;;  %v4521_v49 = vshll.u32 %v8546_v39, 16 }
 0x215   : > { %v3917_v57 = vpop.f32.mrf.mxu1  ;;  %v4845_v19 = vpack.c.b16 %v4833_v40, %v4832_v20  ;;  %v4787_v1 = vsel %vm7107_vm5, %v4785_v18, %v4786_v28 }
 0x216   : > { %v3595_v30 = vadd.f32 %v3561_v13, %v3391_v24  ;;  %v8543_v24 = vld [vmem:[%s7586_s25 + $0x54] sm:$0xf]  ;;  %v4000_v62 = vsel %vm7107_vm5, %v6157_v52, %v3999_v2  ;;  %v4835_v50 = vunpack.c.l.b16 %v4787_v1 }
 0x217   : > { %v4512_v58 = vshrl.u32 %v8543_v24, 16  ;;  %v4515_v43 = vshll.u32 %v8543_v24, 16  ;;  %v4050_v40 = vunpack.c.l.b16 %v4000_v62 }
 0x218   : > { %v8534_v55 = vadd.f32 %v3915_v37, %v3595_v30  ;;  %v4495_v37 = vrot.slane %v4494_v38, 4  ;;  %v4510_v30 = vsel %vm6921_vm2, %v4505_v60, %v4509_v36  ;;  %v4834_v38 = vunpack.c.l.b16 %v4784_v5 }
 0x219   : > { %v3133_v47 = vpop.f32.mrf.mxu2  ;;  %v4514_v41 = vrot.slane %v4512_v58, 4 }
 0x21a   : > { %v3359_v7 = vpop.f32.mrf.mxu3  ;;  %v3166_v13 = vadd.f32 %v3133_v47, %v8176_v6  ;;  %v4500_v61 = vsel %vm6921_vm2, %v4495_v37, %v8529_v33  ;;  %v4846_v37 = vpack.c.b16 %v4835_v50, %v4834_v38 }
 0x21b   : > { %v3566_v8 = vpop.f32.mrf.mxu0  ;;  %v4608_v2 = vunpack.c.l.b16 %v4500_v61  ;;  %v8583_v61 = vld [vmem:[%s7586_s25 + $0x64] sm:$0xf] }
 0x21c   : > { %v3392_v34 = vadd.f32 %v3359_v7, %v3166_v13  ;;  %v4609_v7 = vunpack.c.l.b16 %v4510_v30  ;;  %v4517_v13 = vrot.slane %v4515_v43, 5  ;;  %v6368_v43 = vrot.slane %v8543_v24, 9 }
 0x21d   : > { %v3920_v31 = vpop.f32.mrf.mxu1 }
 0x21e   : > { %v3596_v6 = vadd.f32 %v3563_v15, %v3392_v34  ;;  %4145 = vmatmul.bf16.gmra.mxu2 %v4061_v12  ;;  %4703 = vmatmul.bf16.gmra.mxu0 %v4619_v4  ;;  %v4003_v15 = vsel %vm7107_vm5, %v4001_v63, %v4002_v45  ;;  %v8568_v12 = vrot.slane %v4521_v49, 5  ;;  %v6587_v63 = vld [vmem:[%s7586_s25 + $0x48] sm:$0xff]  ;;  %v4006_v45 = vrot.slane %v6743_v59, 5 }
 0x21f   : > { %4349 = vmatmul.bf16.gmra.mxu3 %v6586_v32  ;;  %v4051_v10 = vunpack.c.l.b16 %v4003_v15  ;;  %v4518_v60 = vor.u32 %v4517_v13, %v4514_v41  ;;  %v4793_v49 = vrot.slane %v6228_v21, 5  ;;  %v6231_v59 = vld [vmem:[%s7586_s25 + $0x68] sm:$0x1] }
 0x220   : > { %4929 = vmatmul.bf16.gmra.mxu1 %v4845_v19  ;;  %v8555_v54 = vadd.f32 %v3917_v57, %v3596_v6  ;;  %v4525_v57 = vshrl.u32 %v8546_v39, 16  ;;  %v4531_v6 = vshll.u32 %v6228_v21, 16  ;;  %v4008_v15 = vrot.slane %v4006_v45, 4 }
 0x221   : > { %v3136_v23 = vpop.f32.mrf.mxu2  ;;  %v4062_v52 = vpack.c.b16 %v4051_v10, %v4050_v40  ;;  %v4519_v5 = vrot.slane %v4518_v60, 4  ;;  %v4545_v10 = vshll.u32 %v8583_v61, 16 }
 0x222   : > { %v3362_v17 = vpop.f32.mrf.mxu3  ;;  %v3167_v29 = vadd.f32 %v3136_v23, %v8210_v3  ;;  %v4527_v32 = vrot.slane %v4525_v57, 4  ;;  %v8579_v23 = vld [vmem:[%s7586_s25 + $0x60] sm:$0xf]  ;;  %v4533_v58 = vrot.slane %v4531_v6, 5  ;;  %v6746_v6 = vld [vmem:[%s7586_s25 + $0x58] sm:$0xf] }
 0x223   : > { %v3568_v3 = vpop.f32.mrf.mxu0  ;;  %v4536_v57 = vshrl.u32 %v8579_v23, 16  ;;  %v4539_v40 = vshll.u32 %v8579_v23, 16  ;;  %v4524_v50 = vsel %vm6921_vm2, %v4519_v5, %v8568_v12  ;;  %v6588_v5 = vld [vmem:[%s7586_s25 + $0x54] sm:$0xff] }
 0x224   : > { %v3393_v33 = vadd.f32 %v3362_v17, %v3167_v29  ;;  %v4528_v36 = vor.u32 %v4527_v32, %v8568_v12  ;;  %v6744_v17 = vld [vmem:[%s7586_s25 + $0x48] sm:$0xf]  ;;  %v6745_v29 = vld [vmem:[%s7586_s25 + $0x50] sm:$0x1] }
 0x225   : > { %v3922_v20 = vpop.f32.mrf.mxu1  ;;  %v6158_v62 = vrot.slane %v6744_v17, 9  ;;  %v4009_v30 = vrot.slane %v6745_v29, 5 }
 0x226   : > { %v3597_v47 = vadd.f32 %v3566_v8, %v3393_v33  ;;  %v4620_v8 = vpack.c.b16 %v4609_v7, %v4608_v2  ;;  %v4529_v1 = vrot.slane %v4528_v36, 4  ;;  %v4549_v2 = vshrl.u32 %v8583_v61, 16 }
 0x227   : > { %v4007_v38 = vsel %vm7107_vm5, %v6158_v62, %v4006_v45  ;;  %v4010_v24 = vsel %vm7107_vm5, %v4008_v15, %v4009_v30  ;;  %v4610_v45 = vunpack.c.l.b16 %v4524_v50  ;;  %v4555_v15 = vshll.u32 %v6231_v59, 16 }
 0x228   : > { %v8571_v34 = vadd.f32 %v3920_v31, %v3597_v47  ;;  %v4790_v31 = vrot.slane %v8546_v39, 5  ;;  %v4052_v12 = vunpack.c.l.b16 %v4007_v38  ;;  %v4800_v50 = vrot.slane %v6231_v59, 5 }
 0x229   : > { %v3138_v4 = vpop.f32.mrf.mxu2  ;;  %v4557_v38 = vrot.slane %v4555_v15, 5 }
 0x22a   : > { %v3364_v19 = vpop.f32.mrf.mxu3  ;;  %v3168_v27 = vadd.f32 %v3138_v4, %v8245_v46  ;;  %v4792_v39 = vrot.slane %v4790_v31, 4  ;;  %v4538_v4 = vrot.slane %v4536_v57, 4 }
 0x22b   : > { %v3571_v18 = vpop.f32.mrf.mxu0 }
 0x22c   : > { %v3394_v26 = vadd.f32 %v3364_v19, %v3168_v27  ;;  %v4794_v21 = vsel %vm7107_vm5, %v4792_v39, %v4793_v49  ;;  %v4541_v19 = vrot.slane %v4539_v40, 5  ;;  %v8607_v27 = vrot.slane %v4545_v10, 5  ;;  %v6748_v10 = vld [vmem:[%s7586_s25 + $0x5c] sm:$0x1] }
 0x22d   : > { %v3925_v28 = vpop.f32.mrf.mxu1  ;;  %v4837_v36 = vunpack.c.l.b16 %v4794_v21 }
 0x22e   : > { %v3598_v46 = vadd.f32 %v3568_v3, %v3394_v26  ;;  %4150 = vmatmul.bf16.gmra.mxu2 %v4062_v52  ;;  %4708 = vmatmul.bf16.gmra.mxu0 %v4620_v8  ;;  %v4551_v52 = vrot.slane %v4549_v2, 4  ;;  %v4053_v8 = vunpack.c.l.b16 %v4010_v24  ;;  %v4013_v26 = vrot.slane %v6746_v6, 5 }
 0x22f   : > { %4354 = vmatmul.bf16.gmra.mxu3 %v6587_v63  ;;  %v4542_v17 = vor.u32 %v4541_v19, %v4538_v4  ;;  %v4016_v2 = vrot.slane %v6748_v10, 5 }
 0x230   : > { %4934 = vmatmul.bf16.gmra.mxu1 %v4846_v37  ;;  %v8591_v47 = vadd.f32 %v3922_v20, %v3598_v46  ;;  %v4534_v20 = vsel %vm6921_vm2, %v4529_v1, %v4533_v58  ;;  %v4552_v62 = vor.u32 %v4551_v52, %v8607_v27  ;;  %v4063_v30 = vpack.c.b16 %v4053_v8, %v4052_v12 }
 0x231   : > { %v3141_v33 = vpop.f32.mrf.mxu2  ;;  %v4611_v37 = vunpack.c.l.b16 %v4534_v20  ;;  %v4797_v1 = vrot.slane %v8583_v61, 5  ;;  %v4015_v40 = vrot.slane %v4013_v26, 4  ;;  %v6369_v61 = vrot.slane %v8579_v23, 9  ;;  %v8624_v20 = vld [vmem:[%s7586_s25 + $0x70] sm:$0xf] }
 0x232   : > { %v3367_v3 = vpop.f32.mrf.mxu3  ;;  %v3169_v7 = vadd.f32 %v3141_v33, %v8276_v35  ;;  %v4791_v35 = vsel %vm7107_vm5, %v6368_v43, %v4790_v31  ;;  %v6747_v33 = vld [vmem:[%s7586_s25 + $0x54] sm:$0xf] }
 0x233   : > { %v3573_v13 = vpop.f32.mrf.mxu0  ;;  %v4836_v60 = vunpack.c.l.b16 %v4791_v35  ;;  %v4621_v58 = vpack.c.b16 %v4611_v37, %v4610_v45  ;;  %v4799_v24 = vrot.slane %v4797_v1, 4  ;;  %v4798_v12 = vsel %vm7107_vm5, %v6369_v61, %v4797_v1  ;;  %v6234_v1 = vld [vmem:[%s7586_s25 + $0x74] sm:$0x1] }
 0x234   : > { %v3395_v41 = vadd.f32 %v3367_v3, %v3169_v7  ;;  %v6159_v3 = vrot.slane %v6747_v33, 9  ;;  %v4553_v7 = vrot.slane %v4552_v62, 4  ;;  %v4569_v37 = vshll.u32 %v8624_v20, 16 }
 0x235   : > { %v3927_v32 = vpop.f32.mrf.mxu1  ;;  %v4847_v43 = vpack.c.b16 %v4837_v36, %v4836_v60  ;;  %v4801_v8 = vsel %vm7107_vm5, %v4799_v24, %v4800_v50 }
 0x236   : > { %v3599_v63 = vadd.f32 %v3571_v18, %v3395_v41  ;;  %v8621_v41 = vld [vmem:[%s7586_s25 + $0x6c] sm:$0xf]  ;;  %v4014_v4 = vsel %vm7107_vm5, %v6159_v3, %v4013_v26  ;;  %v4839_v62 = vunpack.c.l.b16 %v4801_v8 }
 0x237   : > { %v4560_v59 = vshrl.u32 %v8621_v41, 16  ;;  %v4563_v45 = vshll.u32 %v8621_v41, 16  ;;  %v4054_v36 = vunpack.c.l.b16 %v4014_v4  ;;  %v6370_v8 = vrot.slane %v8621_v41, 9 }
 0x238   : > { %v8612_v29 = vadd.f32 %v3925_v28, %v3599_v63  ;;  %v4543_v28 = vrot.slane %v4542_v17, 4  ;;  %v4558_v63 = vsel %vm6921_vm2, %v4553_v7, %v4557_v38  ;;  %v4838_v17 = vunpack.c.l.b16 %v4798_v12 }
 0x239   : > { %v3143_v31 = vpop.f32.mrf.mxu2  ;;  %v4562_v15 = vrot.slane %v4560_v59, 4 }
 0x23a   : > { %v3369_v46 = vpop.f32.mrf.mxu3  ;;  %v3170_v18 = vadd.f32 %v3143_v31, %v8316_v11  ;;  %v4548_v23 = vsel %vm6921_vm2, %v4543_v28, %v8607_v27  ;;  %v4848_v28 = vpack.c.b16 %v4839_v62, %v4838_v17 }
 0x23b   : > { %v3576_v49 = vpop.f32.mrf.mxu0  ;;  %v4612_v26 = vunpack.c.l.b16 %v4548_v23 }
 0x23c   : > { %v3396_v39 = vadd.f32 %v3369_v46, %v3170_v18  ;;  %v4613_v46 = vunpack.c.l.b16 %v4558_v63  ;;  %v4565_v18 = vrot.slane %v4563_v45, 5  ;;  %v4807_v45 = vrot.slane %v6234_v1, 5 }
 0x23d   : > { %v3930_v57 = vpop.f32.mrf.mxu1 }
 0x23e   : > { %v3600_v11 = vadd.f32 %v3573_v13, %v3396_v39  ;;  %4155 = vmatmul.bf16.gmra.mxu2 %v4063_v30  ;;  %4713 = vmatmul.bf16.gmra.mxu0 %v4621_v58  ;;  %v4017_v13 = vsel %vm7107_vm5, %v4015_v40, %v4016_v2  ;;  %v4571_v30 = vrot.slane %v4569_v37, 5  ;;  %v6589_v40 = vld [vmem:[%s7586_s25 + $0x60] sm:$0xff]  ;;  %v4622_v10 = vpack.c.b16 %v4613_v46, %v4612_v26 }
 0x23f   : > { %4359 = vmatmul.bf16.gmra.mxu3 %v6588_v5  ;;  %v4055_v6 = vunpack.c.l.b16 %v4017_v13  ;;  %v4566_v7 = vor.u32 %v4565_v18, %v4562_v15  ;;  %v6751_v13 = vld [vmem:[%s7586_s25 + $0x68] sm:$0x1] }
 0x240   : > { %4939 = vmatmul.bf16.gmra.mxu1 %v4847_v43  ;;  %v8633_v19 = vadd.f32 %v3927_v32, %v3600_v11  ;;  %v4573_v32 = vshrl.u32 %v8624_v20, 16  ;;  %v4579_v11 = vshll.u32 %v6234_v1, 16  ;;  %v4023_v23 = vrot.slane %v6751_v13, 5 }
 0x241   : > { %v3146_v35 = vpop.f32.mrf.mxu2  ;;  %v4064_v3 = vpack.c.b16 %v4055_v6, %v4054_v36 }
 0x242   : > { %v3372_v21 = vpop.f32.mrf.mxu3  ;;  %v3171_v52 = vadd.f32 %v3146_v35, %v8336_v48  ;;  %v4575_v5 = vrot.slane %v4573_v32, 4  ;;  %v4581_v12 = vrot.slane %v4579_v11, 5 }
 0x243   : > { %v3578_v48 = vpop.f32.mrf.mxu0 }
 0x244   : > { %v3397_v27 = vadd.f32 %v3372_v21, %v3171_v52  ;;  %v4576_v38 = vor.u32 %v4575_v5, %v4571_v30  ;;  %v4567_v52 = vrot.slane %v4566_v7, 4 }
 0x245   : > { %v3932_v60 = vpop.f32.mrf.mxu1 }
 0x246   : > { %v3601_v31 = vadd.f32 %v3576_v49, %v3397_v27  ;;  %v6749_v49 = vld [vmem:[%s7586_s25 + $0x64] sm:$0xf]  ;;  %v4577_v63 = vrot.slane %v4576_v38, 4  ;;  %v4572_v6 = vsel %vm6921_vm2, %v4567_v52, %v4571_v30 }
 0x247   : > { %v4020_v2 = vrot.slane %v6749_v49, 5  ;;  %v4614_v18 = vunpack.c.l.b16 %v4572_v6 }
 0x248   : > { %v8647_v58 = vadd.f32 %v3930_v57, %v3601_v31  ;;  %v4804_v57 = vrot.slane %v8624_v20, 5 }
 0x249   : > { %v3148_v43 = vpop.f32.mrf.mxu2  ;;  %v4022_v4 = vrot.slane %v4020_v2, 4 }
 0x24a   : > { %v3374_v39 = vpop.f32.mrf.mxu3  ;;  %v3172_v33 = vadd.f32 %v3148_v43, %v8359_v22  ;;  %v6750_v22 = vld [vmem:[%s7586_s25 + $0x60] sm:$0xf]  ;;  %v4806_v59 = vrot.slane %v4804_v57, 4  ;;  %v4805_v46 = vsel %vm7107_vm5, %v6370_v8, %v4804_v57 }
 0x24b   : > { %v3581_v24 = vpop.f32.mrf.mxu0  ;;  %v6160_v21 = vrot.slane %v6750_v22, 9  ;;  %v4024_v36 = vsel %vm7107_vm5, %v4022_v4, %v4023_v23  ;;  %v4840_v1 = vunpack.c.l.b16 %v4805_v46 }
 0x24c   : > { %v3398_v61 = vadd.f32 %v3374_v39, %v3172_v33  ;;  %v4057_v15 = vunpack.c.l.b16 %v4024_v36 }
 0x24d   : > { %v3935_v50 = vpop.f32.mrf.mxu1 }
 0x24e   : > { %v3602_v35 = vadd.f32 %v3578_v48, %v3398_v61  ;;  %4160 = vmatmul.bf16.gmra.mxu2 %v4064_v3  ;;  %4718 = vmatmul.bf16.gmra.mxu0 %v4622_v10  ;;  %v4021_v48 = vsel %vm7107_vm5, %v6160_v21, %v4020_v2 }
 0x24f   : > { %4364 = vmatmul.bf16.gmra.mxu3 %v6589_v40  ;;  %v4056_v62 = vunpack.c.l.b16 %v4021_v48  ;;  %v6590_v40 = vld [vmem:[%s7586_s25 + $0x6c] sm:$0xff]  ;;  %s5234_s25 = sshll.u32 %s6774_s18, 4  ;;  %s8760_s18 = smov (!%p283_p7, %s6774_s18), 1 }
 0x250   : > { %4944 = vmatmul.bf16.gmra.mxu1 %v4848_v28  ;;  %v8656_v37 = vadd.f32 %v3932_v60, %v3602_v35  ;;  %v4582_v60 = vsel %vm6921_vm2, %v4577_v63, %v4581_v12  ;;  %p274_p6 = scmp.lt.s32.totalorder %s5234_s25, 31  ;;  %s286_s29 = sadd.s32 %s5237_s28, %s8760_s18 }
 0x251   : > { %v3151_v20 = vpop.f32.mrf.mxu2  ;;  %v4615_v5 = vunpack.c.l.b16 %v4582_v60  ;;  %v4065_v3 = vpack.c.b16 %v4057_v15, %v4056_v62  ;;  %s5238_s30 = sshll.u32 %s286_s29, 1 }
 0x252   : > { %v3377_v32 = vpop.f32.mrf.mxu3  ;;  %v3173_v27 = vadd.f32 %v3151_v20, %v8378_v9  ;;  %v4808_v9 = vsel %vm7107_vm5, %v4806_v59, %v4807_v45  ;;  %s8758_s25 = smov (!%p274_p6, %s5234_s25), 31  ;;  %s288_s7 = scalar_lea.vmem %s8740_s5, %s5238_s30 }
 0x253   : > { %v3583_v31 = vpop.f32.mrf.mxu0  ;;  %v4841_v30 = vunpack.c.l.b16 %v4808_v9  ;;  %v4623_v10 = vpack.c.b16 %v4615_v5, %v4614_v18  ;;  %s277_s16 = sadd.s32 %s5235_s15, %s8758_s25 }
 0x254   : > { %v3399_v26 = vadd.f32 %v3377_v32, %v3173_v27  ;;  %s5236_s8 = sshll.u32 %s277_s16, 2 }
 0x255   : > { %v3937_v41 = vpop.f32.mrf.mxu1  ;;  %v4849_v49 = vpack.c.b16 %v4841_v30, %v4840_v1  ;;  %s8690_s27 = scalar_lea.vmem %s8739_s4, %s5236_s8 }
 0x256   : > { %v3603_v17 = vadd.f32 %v3581_v24, %v3399_v26 }
 0x258   : > { %v8671_v43 = vadd.f32 %v3935_v50, %v3603_v17 }
 0x259   : > { %v3153_v39 = vpop.f32.mrf.mxu2 }
 0x25a   : > { %v3379_v33 = vpop.f32.mrf.mxu3  ;;  %v3174_v42 = vadd.f32 %v3153_v39, %v8399_v14 }
 0x25b   : > { %v3586_v16 = vpop.f32.mrf.mxu0 }
 0x25c   : > { %v3400_v2 = vadd.f32 %v3379_v33, %v3174_v42 }
 0x25d   : > { %v3940_v28 = vpop.f32.mrf.mxu1 }
 0x25e   : > { %v3604_v7 = vadd.f32 %v3583_v31, %v3400_v2  ;;  %4165 = vmatmul.bf16.gmra.mxu2 %v4065_v3  ;;  %4723 = vmatmul.bf16.gmra.mxu0 %v4623_v10 }
 0x25f   : > { %4369 = vmatmul.bf16.gmra.mxu3 %v6590_v40 }
 0x260   : > { %4949 = vmatmul.bf16.gmra.mxu1 %v4849_v49  ;;  %v8675_v38 = vadd.f32 %v3937_v41, %v3604_v7 }
 0x261   : > { %v3156_v11 = vpop.f32.mrf.mxu2 }
 0x262   : > { %v3382_v61 = vpop.f32.mrf.mxu3  ;;  %v3175_v24 = vadd.f32 %v3156_v11, %v8415_v0 }
 0x263   : > { %v3588_v50 = vpop.f32.mrf.mxu0 }
 0x264   : > { %v3401_v14 = vadd.f32 %v3382_v61, %v3175_v24 }
 0x265   : > { %v3942_v57 = vpop.f32.mrf.mxu1 }
 0x266   : > { %v3605_v35 = vadd.f32 %v3586_v16, %v3401_v14 }
 0x268   : > { %v8678_v22 = vadd.f32 %v3940_v28, %v3605_v35 }
 0x269   : > { %v3158_v21 = vpop.f32.mrf.mxu2 }
 0x26a   : > { %v3384_v4 = vpop.f32.mrf.mxu3  ;;  %v3176_v13 = vadd.f32 %v3158_v21, %v8435_v44 }
 0x26b   : > { %v4689_v52 = vpop.f32.mrf.mxu0 }
 0x26c   : > { %v3402_v23 = vadd.f32 %v3384_v4, %v3176_v13 }
 0x26d   : > { %v4915_v63 = vpop.f32.mrf.mxu1 }
 0x26e   : > { %v3606_v12 = vadd.f32 %v3588_v50, %v3402_v23 }
 0x270   : > { %v8682_v8 = vadd.f32 %v3942_v57, %v3606_v12 }
 0x271   : > { %v4131_v59 = vpop.f32.mrf.mxu2 }
 0x272   : > { %v4335_v0 = vpop.f32.mrf.mxu3  ;;  %v4171_v45 = vadd.f32 %v4131_v59, %v8456_v25 }
 0x273   : > { %v4691_v20 = vpop.f32.mrf.mxu0 }
 0x274   : > { %v4375_v27 = vadd.f32 %v4335_v0, %v4171_v45 }
 0x275   : > { %v4917_v32 = vpop.f32.mrf.mxu1 }
 0x276   : > { %v4729_v48 = vadd.f32 %v4689_v52, %v4375_v27 }
 0x278   : > { %v4955_v60 = vadd.f32 %v4915_v63, %v4729_v48 }
 0x279   : > { %v4133_v36 = vpop.f32.mrf.mxu2 }
 0x27a   : > { %v4337_v44 = vpop.f32.mrf.mxu3  ;;  %v4172_v6 = vadd.f32 %v4133_v36, %v8477_v56  ;;  %v5024_v25 = vmul.f32 %v4955_v60, %v4955_v60 }
 0x27b   : > { %v4694_v31 = vpop.f32.mrf.mxu0 }
 0x27c   : > { %v4376_v26 = vadd.f32 %v4337_v44, %v4172_v6 }
 0x27d   : > { %v4920_v41 = vpop.f32.mrf.mxu1 }
 0x27e   : > { %v4730_v46 = vadd.f32 %v4691_v20, %v4376_v26 }
 0x280   : > { %v4956_v9 = vadd.f32 %v4917_v32, %v4730_v46 }
 0x281   : > { %v4136_v17 = vpop.f32.mrf.mxu2 }
 0x282   : > { %v4340_v62 = vpop.f32.mrf.mxu3  ;;  %v6618_v15 = vpack.c.bf16 %v4956_v9, %v4955_v60  ;;  %v5003_v18 = vadd.f32 %v4956_v9, %v4955_v60  ;;  %v5025_v56 = vmul.f32 %v4956_v9, %v4956_v9  ;;  %v4173_v5 = vadd.f32 %v4136_v17, %v8493_v53 }
 0x283   : > { %v4696_v39 = vpop.f32.mrf.mxu0 }
 0x284   : > { %6619 = vst [vmem:[%s8690_s27] sm:$0xff] %v6618_v15   ;;  %v5040_v1 = vadd.f32 %v5025_v56, %v5024_v25  ;;  %v4377_v30 = vadd.f32 %v4340_v62, %v4173_v5 }
 0x285   : > { %v4922_v33 = vpop.f32.mrf.mxu1 }
 0x286   : > { %v4731_v42 = vadd.f32 %v4694_v31, %v4377_v30 }
 0x288   : > { %v4957_v3 = vadd.f32 %v4920_v41, %v4731_v42 }
 0x289   : > { %v4138_v40 = vpop.f32.mrf.mxu2 }
 0x28a   : > { %v4342_v10 = vpop.f32.mrf.mxu3  ;;  %v5004_v49 = vadd.f32 %v5003_v18, %v4957_v3  ;;  %v5026_v2 = vmul.f32 %v4957_v3, %v4957_v3  ;;  %v4174_v16 = vadd.f32 %v4138_v40, %v8513_v51 }
 0x28b   : > { %v4699_v11 = vpop.f32.mrf.mxu0 }
 0x28c   : > { %v5041_v28 = vadd.f32 %v5040_v1, %v5026_v2  ;;  %v4378_v7 = vadd.f32 %v4342_v10, %v4174_v16 }
 0x28d   : > { %v4925_v61 = vpop.f32.mrf.mxu1 }
 0x28e   : > { %v4732_v24 = vadd.f32 %v4696_v39, %v4378_v7 }
 0x290   : > { %v4958_v53 = vadd.f32 %v4922_v33, %v4732_v24 }
 0x291   : > { %v4141_v14 = vpop.f32.mrf.mxu2 }
 0x292   : > { %v4345_v50 = vpop.f32.mrf.mxu3  ;;  %v6623_v57 = vpack.c.bf16 %v4958_v53, %v4957_v3  ;;  %v5005_v35 = vadd.f32 %v5004_v49, %v4958_v53  ;;  %v5027_v21 = vmul.f32 %v4958_v53, %v4958_v53  ;;  %v4175_v4 = vadd.f32 %v4141_v14, %v8534_v55 }
 0x293   : > { %v4701_v52 = vpop.f32.mrf.mxu0 }
 0x294   : > { %6655 = vst [vmem:[%s8690_s27 + $0x8] sm:$0xff] %v6623_v57   ;;  %v5042_v13 = vadd.f32 %v5041_v28, %v5027_v21  ;;  %v4379_v23 = vadd.f32 %v4345_v50, %v4175_v4 }
 0x295   : > { %v4927_v63 = vpop.f32.mrf.mxu1 }
 0x296   : > { %v4733_v12 = vadd.f32 %v4699_v11, %v4379_v23 }
 0x298   : > { %v4959_v51 = vadd.f32 %v4925_v61, %v4733_v12 }
 0x299   : > { %v4143_v59 = vpop.f32.mrf.mxu2 }
 0x29a   : > { %v4347_v0 = vpop.f32.mrf.mxu3  ;;  %v5006_v45 = vadd.f32 %v5005_v35, %v4959_v51  ;;  %v5028_v20 = vmul.f32 %v4959_v51, %v4959_v51  ;;  %v4176_v32 = vadd.f32 %v4143_v59, %v8555_v54 }
 0x29b   : > { %v4704_v36 = vpop.f32.mrf.mxu0 }
 0x29c   : > { %v5043_v27 = vadd.f32 %v5042_v13, %v5028_v20  ;;  %v4380_v48 = vadd.f32 %v4347_v0, %v4176_v32 }
 0x29d   : > { %v4930_v44 = vpop.f32.mrf.mxu1 }
 0x29e   : > { %v4734_v6 = vadd.f32 %v4701_v52, %v4380_v48 }
 0x2a0   : > { %v4960_v55 = vadd.f32 %v4927_v63, %v4734_v6 }
 0x2a1   : > { %v4146_v26 = vpop.f32.mrf.mxu2 }
 0x2a2   : > { %v4350_v31 = vpop.f32.mrf.mxu3  ;;  %v6628_v41 = vpack.c.bf16 %v4960_v55, %v4959_v51  ;;  %v5007_v60 = vadd.f32 %v5006_v45, %v4960_v55  ;;  %v5029_v46 = vmul.f32 %v4960_v55, %v4960_v55  ;;  %v4177_v9 = vadd.f32 %v4146_v26, %v8571_v34 }
 0x2a3   : > { %v4706_v62 = vpop.f32.mrf.mxu0 }
 0x2a4   : > { %6656 = vst [vmem:[%s8690_s27 + $0x10] sm:$0xff] %v6628_v41   ;;  %v5044_v25 = vadd.f32 %v5043_v27, %v5029_v46  ;;  %v4381_v17 = vadd.f32 %v4350_v31, %v4177_v9 }
 0x2a5   : > { %v4932_v15 = vpop.f32.mrf.mxu1 }
 0x2a6   : > { %v4735_v18 = vadd.f32 %v4704_v36, %v4381_v17 }
 0x2a8   : > { %v4961_v54 = vadd.f32 %v4930_v44, %v4735_v18 }
 0x2a9   : > { %v4148_v56 = vpop.f32.mrf.mxu2 }
 0x2aa   : > { %v4352_v5 = vpop.f32.mrf.mxu3  ;;  %v5008_v1 = vadd.f32 %v5007_v60, %v4961_v54  ;;  %v5030_v30 = vmul.f32 %v4961_v54, %v4961_v54  ;;  %v4178_v39 = vadd.f32 %v4148_v56, %v8591_v47 }
 0x2ab   : > { %v4709_v3 = vpop.f32.mrf.mxu0 }
 0x2ac   : > { %v5045_v33 = vadd.f32 %v5044_v25, %v5030_v30  ;;  %v4382_v42 = vadd.f32 %v4352_v5, %v4178_v39 }
 0x2ad   : > { %v4935_v40 = vpop.f32.mrf.mxu1 }
 0x2ae   : > { %v4736_v10 = vadd.f32 %v4706_v62, %v4382_v42 }
 0x2b0   : > { %v4962_v34 = vadd.f32 %v4932_v15, %v4736_v10 }
 0x2b1   : > { %v4151_v49 = vpop.f32.mrf.mxu2 }
 0x2b2   : > { %v4355_v2 = vpop.f32.mrf.mxu3  ;;  %v6633_v16 = vpack.c.bf16 %v4962_v34, %v4961_v54  ;;  %v5009_v28 = vadd.f32 %v5008_v1, %v4962_v34  ;;  %v5031_v7 = vmul.f32 %v4962_v34, %v4962_v34  ;;  %v4179_v11 = vadd.f32 %v4151_v49, %v8612_v29 }
 0x2b3   : > { %v4711_v53 = vpop.f32.mrf.mxu0 }
 0x2b4   : > { %6657 = vst [vmem:[%s8690_s27 + $0x18] sm:$0xff] %v6633_v16   ;;  %v5046_v61 = vadd.f32 %v5045_v33, %v5031_v7  ;;  %v4383_v24 = vadd.f32 %v4355_v2, %v4179_v11 }
 0x2b5   : > { %v4937_v14 = vpop.f32.mrf.mxu1 }
 0x2b6   : > { %v4737_v50 = vadd.f32 %v4709_v3, %v4383_v24 }
 0x2b8   : > { %v4963_v47 = vadd.f32 %v4935_v40, %v4737_v50 }
 0x2b9   : > { %v4153_v57 = vpop.f32.mrf.mxu2 }
 0x2ba   : > { %v4357_v35 = vpop.f32.mrf.mxu3  ;;  %v5010_v21 = vadd.f32 %v5009_v28, %v4963_v47  ;;  %v5032_v4 = vmul.f32 %v4963_v47, %v4963_v47  ;;  %v4180_v13 = vadd.f32 %v4153_v57, %v8633_v19 }
 0x2bb   : > { %v4714_v63 = vpop.f32.mrf.mxu0 }
 0x2bc   : > { %v5047_v23 = vadd.f32 %v5046_v61, %v5032_v4  ;;  %v4384_v52 = vadd.f32 %v4357_v35, %v4180_v13 }
 0x2bd   : > { %v4940_v12 = vpop.f32.mrf.mxu1 }
 0x2be   : > { %v4738_v51 = vadd.f32 %v4711_v53, %v4384_v52 }
 0x2c0   : > { %v4964_v29 = vadd.f32 %v4937_v14, %v4738_v51 }
 0x2c1   : > { %v4156_v59 = vpop.f32.mrf.mxu2 }
 0x2c2   : > { %v4360_v0 = vpop.f32.mrf.mxu3  ;;  %v6638_v45 = vpack.c.bf16 %v4964_v29, %v4963_v47  ;;  %v5011_v20 = vadd.f32 %v5010_v21, %v4964_v29  ;;  %v5033_v32 = vmul.f32 %v4964_v29, %v4964_v29  ;;  %v4181_v27 = vadd.f32 %v4156_v59, %v8647_v58 }
 0x2c3   : > { %v4716_v44 = vpop.f32.mrf.mxu0 }
 0x2c4   : > { %6658 = vst [vmem:[%s8690_s27 + $0x20] sm:$0xff] %v6638_v45   ;;  %v5048_v48 = vadd.f32 %v5047_v23, %v5033_v32  ;;  %v4385_v36 = vadd.f32 %v4360_v0, %v4181_v27 }
 0x2c5   : > { %v4942_v55 = vpop.f32.mrf.mxu1 }
 0x2c6   : > { %v4739_v6 = vadd.f32 %v4714_v63, %v4385_v36 }
 0x2c8   : > { %v4965_v19 = vadd.f32 %v4940_v12, %v4739_v6 }
 0x2c9   : > { %v4158_v26 = vpop.f32.mrf.mxu2 }
 0x2ca   : > { %v4362_v31 = vpop.f32.mrf.mxu3  ;;  %v5012_v41 = vadd.f32 %v5011_v20, %v4965_v19  ;;  %v5034_v60 = vmul.f32 %v4965_v19, %v4965_v19  ;;  %v4182_v46 = vadd.f32 %v4158_v26, %v8656_v37 }
 0x2cb   : > { %v4719_v62 = vpop.f32.mrf.mxu0 }
 0x2cc   : > { %v5049_v9 = vadd.f32 %v5048_v48, %v5034_v60  ;;  %v4386_v25 = vadd.f32 %v4362_v31, %v4182_v46 }
 0x2cd   : > { %v4945_v58 = vpop.f32.mrf.mxu1 }
 0x2ce   : > { %v4740_v17 = vadd.f32 %v4716_v44, %v4386_v25 }
 0x2d0   : > { %v4966_v15 = vadd.f32 %v4942_v55, %v4740_v17 }
 0x2d1   : > { %v4161_v18 = vpop.f32.mrf.mxu2 }
 0x2d2   : > { %v4365_v54 = vpop.f32.mrf.mxu3  ;;  %v6643_v56 = vpack.c.bf16 %v4966_v15, %v4965_v19  ;;  %v5013_v5 = vadd.f32 %v5012_v41, %v4966_v15  ;;  %v5035_v1 = vmul.f32 %v4966_v15, %v4966_v15  ;;  %v4183_v30 = vadd.f32 %v4161_v18, %v8671_v43 }
 0x2d3   : > { %v4721_v40 = vpop.f32.mrf.mxu0 }
 0x2d4   : > { %6659 = vst [vmem:[%s8690_s27 + $0x28] sm:$0xff] %v6643_v56   ;;  %v5050_v39 = vadd.f32 %v5049_v9, %v5035_v1  ;;  %v4387_v33 = vadd.f32 %v4365_v54, %v4183_v30 }
 0x2d5   : > { %v4947_v16 = vpop.f32.mrf.mxu1 }
 0x2d6   : > { %v4741_v42 = vadd.f32 %v4719_v62, %v4387_v33 }
 0x2d8   : > { %v4967_v3 = vadd.f32 %v4945_v58, %v4741_v42 }
 0x2d9   : > { %v4163_v37 = vpop.f32.mrf.mxu2 }
 0x2da   : > { %v4367_v10 = vpop.f32.mrf.mxu3  ;;  %v5014_v34 = vadd.f32 %v5013_v5, %v4967_v3  ;;  %v5036_v49 = vmul.f32 %v4967_v3, %v4967_v3  ;;  %v4184_v2 = vadd.f32 %v4163_v37, %v8675_v38 }
 0x2db   : > { %v4724_v57 = vpop.f32.mrf.mxu0 }
 0x2dc   : > { %v5051_v28 = vadd.f32 %v5050_v39, %v5036_v49  ;;  %v4388_v7 = vadd.f32 %v4367_v10, %v4184_v2 }
 0x2dd   : > { %v4950_v4 = vpop.f32.mrf.mxu1 }
 0x2de   : > { %v4742_v11 = vadd.f32 %v4721_v40, %v4388_v7 }
 0x2e0   : > { %v4968_v61 = vadd.f32 %v4947_v16, %v4742_v11 }
 0x2e1   : > { %v4166_v24 = vpop.f32.mrf.mxu2 }
 0x2e2   : > { %v4370_v43 = vpop.f32.mrf.mxu3  ;;  %v6648_v53 = vpack.c.bf16 %v4968_v61, %v4967_v3  ;;  %v5015_v14 = vadd.f32 %v5014_v34, %v4968_v61  ;;  %v5037_v50 = vmul.f32 %v4968_v61, %v4968_v61  ;;  %v4185_v47 = vadd.f32 %v4166_v24, %v8678_v22 }
 0x2e3   : > { %v4726_v22 = vpop.f32.mrf.mxu0 }
 0x2e4   : > { %6660 = vst [vmem:[%s8690_s27 + $0x30] sm:$0xff] %v6648_v53   ;;  %v5052_v35 = vadd.f32 %v5051_v28, %v5037_v50  ;;  %v4389_v21 = vadd.f32 %v4370_v43, %v4185_v47 }
 0x2e5   : > { %v4952_v45 = vpop.f32.mrf.mxu1 }
 0x2e6   : > { %v4743_v13 = vadd.f32 %v4724_v57, %v4389_v21 }
 0x2e8   : > { %v4969_v38 = vadd.f32 %v4950_v4, %v4743_v13 }
 0x2e9   : > { %v4168_v23 = vpop.f32.mrf.mxu2 }
 0x2ea   : > { %v5016_v52 = vadd.f32 %v5015_v14, %v4969_v38  ;;  %v5038_v63 = vmul.f32 %v4969_v38, %v4969_v38  ;;  %v4186_v12 = vadd.f32 %v4168_v23, %v8682_v8  ;;  %v4372_v51 = vpop.f32.mrf.mxu3 }
 0x2ec   : > { %v5053_v29 = vadd.f32 %v5052_v35, %v5038_v63  ;;  %v4390_v59 = vadd.f32 %v4372_v51, %v4186_v12 }
 0x2ee   : > { %v4744_v0 = vadd.f32 %v4726_v22, %v4390_v59 }
 0x2f0   : > { %v4970_v20 = vadd.f32 %v4952_v45, %v4744_v0 }
 0x2f2   : > { %v6653_v32 = vpack.c.bf16 %v4970_v20, %v4969_v38  ;;  %v5017_v27 = vadd.f32 %v5016_v52, %v4970_v20  ;;  %v5039_v48 = vmul.f32 %v4970_v20, %v4970_v20 }
 0x2f4   : > { %6661 = vst [vmem:[%s8690_s27 + $0x38] sm:$0xff] %v6653_v32   ;;  %v5018_v36 = vrot.slane %v5017_v27, 4  ;;  %v5054_v44 = vadd.f32 %v5053_v29, %v5039_v48 }
 0x2f6   : > { %v5019_v6 = vadd.f32 %v5018_v36, %v5017_v27  ;;  %v5055_v55 = vrot.slane %v5054_v44, 4 }
 0x2f8   : > { %v5020_v8 = vrot.slane %v5019_v6, 2  ;;  %v5056_v19 = vadd.f32 %v5055_v55, %v5054_v44 }
 0x2fa   : > { %v5021_v26 = vadd.f32 %v5020_v8, %v5019_v6  ;;  %v5057_v31 = vrot.slane %v5056_v19, 2 }
 0x2fc   : > { %v5022_v41 = vrot.slane %v5021_v26, 1  ;;  %v5058_v60 = vadd.f32 %v5057_v31, %v5056_v19 }
 0x2fe   : > { %v5059_v46 = vrot.slane %v5058_v60, 1  ;;  %v5023_v9 = vadd.f32 %v5022_v41, %v5021_v26 }
 0x300   : > { %v5060_v25 = vadd.f32 %v5059_v46, %v5058_v60 }
 0x302   : > { %v5062_v17 = vsel %vm5061_vm6, %v5023_v9, %v5060_v25 }
 0x303   : > { %5063 = vst [vmem:[%s288_s7] sm:$0x3] %v5062_v17 }
 0x304 PF: > { %s16_s22 = sadd.s32 1, %s6790_s22   ;;  %s8745_s18 = smov %s6782_s20 }
 0x305   : > { %p13_p8 = scmp.ge.s32.totalorder %s16_s22, 6   ;;  %s8746_s19 = smov %s6786_s21 }
 0x306   : > { %s8747_s20 = smov %s8750_s23  ;;  %s8748_s21 = smov %s8754_s24 }
 0x307   :  { %15 = sbr.rel (!%p13_p8) target bundleno = 3 (0x3), region = 103 }

</bundles_post_ra>
